<compile_context>
chip_gen: v7x
topology: tpu7x:2x2x1
jax: 0.10.0
libtpu: 0.0.40
codegen_flags: <defaults>
</compile_context>

<pallas_src>
import math
from functools import partial

import jax
import jax.numpy as jnp
import numpy as np
from jax import lax
from jax.experimental import pallas as pl
from jax.experimental.pallas import tpu as pltpu

BN_EPS = 1e-5
LANE = 128


def _round_up(v, m):
    return (v + m - 1) // m * m


def _pick_row_tile(R):
    for tr in (1024, 512, 256, 128, 64, 32, 16, 8):
        if R % tr == 0:
            return tr
    return R


def _vmem_limit_bytes():
    """Generation-aware scoped-VMEM budget (v5e/v6e: 128 MiB phys, v7x: 64 MiB)."""
    default = 32 * 1024 * 1024
    try:
        cap = int(pltpu.get_tpu_info().vmem_capacity_bytes)
    except Exception:
        return default
    return max(default, min(cap * 3 // 4, 100 * 1024 * 1024))


def _silu(z):
    # divide -> EUP reciprocal (approx) instead of a VALU divide.
    return z * pl.reciprocal(1.0 + jnp.exp(-z), approx=True)


# ---------------------------------------------------------------------------
# Kernels 1 & 2: [optional BN-apply + SiLU] -> fused-im2col 3x3 conv -> BN stats
# ---------------------------------------------------------------------------
def _conv3x3_stats_kernel(inp_ref, w_ref, scale_ref, shift_ref,
                          y_ref, ssum_ref, ssq_ref, pad_ref, acc_ref,
                          *, H, W, C, Cp, fuse_bn_silu):
    Wp = W + 2
    M = H * Wp

    # Zero the whole flat padded-activation scratch every step (parallel-grid
    # safe; the spatial halo and the lanes beyond C must be zero).
    pad_ref[...] = jnp.zeros_like(pad_ref)

    t = inp_ref[0].astype(jnp.float32)                       # (H, W, C)
    if fuse_bn_silu:
        t = t * scale_ref[...] + shift_ref[...]              # BN1 apply
        t = _silu(t)                                         # SiLU
    t16 = t.astype(jnp.bfloat16)

    # Scatter the H data rows into the flat padded buffer (left halo offset 1).
    for h in range(H):
        pad_ref[pl.ds((h + 1) * Wp + 1, W), :C] = t16[h]

    # 3x3 conv (padding=1) as 9 contiguous flat slices feeding the MXU; the
    # im2col patches are never materialized.  Output columns w in {W, W+1} of
    # each row are wrap garbage and handled below.
    first = True
    for kh in range(3):
        for kw in range(3):
            off = kh * Wp + kw
            patch = pad_ref[pl.ds(off, M), :]                # (M, Cp) bf16
            contrib = jnp.dot(patch, w_ref[kh * 3 + kw],
                              preferred_element_type=jnp.float32)
            if first:
                acc_ref[...] = contrib
                first = False
            else:
                acc_ref[...] += contrib

    # Mask the wrap-garbage columns, round to bf16 (the precision the next
    # pass sees) and take BN statistics from exactly those values.
    col = lax.broadcasted_iota(jnp.int32, (M, 1), 0) % Wp
    acc = jnp.where(col < W, acc_ref[...], 0.0)
    acc16 = acc.astype(jnp.bfloat16)
    accf = acc16.astype(jnp.float32)

    ssum_ref[...] = jnp.sum(accf, axis=0, keepdims=True).reshape(1, 1, Cp)
    ssq_ref[...] = jnp.sum(accf * accf, axis=0, keepdims=True).reshape(1, 1, Cp)
    y_ref[...] = acc16.reshape(H, Wp, Cp)[:, :W, :C].reshape(1, H, W, C)


def _conv3x3_bn_stats(inp, w_taps, scale, shift, *, Cp, fuse_bn_silu,
                      vmem_limit):
    N, H, W, C = inp.shape
    M = H * (W + 2)
    P = _round_up((H + 2) * (W + 2) + 2, 8)   # +2: taps of last garbage cols
    kern = partial(_conv3x3_stats_kernel, H=H, W=W, C=C, Cp=Cp,
                   fuse_bn_silu=fuse_bn_silu)
    return pl.pallas_call(
        kern,
        out_shape=(jax.ShapeDtypeStruct((N, H, W, C), jnp.bfloat16),
                   jax.ShapeDtypeStruct((N, 1, Cp), jnp.float32),
                   jax.ShapeDtypeStruct((N, 1, Cp), jnp.float32)),
        grid=(N,),
        in_specs=[
            pl.BlockSpec((1, H, W, C), lambda n: (n, 0, 0, 0)),
            pl.BlockSpec((9, Cp, Cp), lambda n: (0, 0, 0)),   # resident weights
            pl.BlockSpec((1, C), lambda n: (0, 0)),           # resident scale
            pl.BlockSpec((1, C), lambda n: (0, 0)),           # resident shift
        ],
        out_specs=(
            pl.BlockSpec((1, H, W, C), lambda n: (n, 0, 0, 0)),
            pl.BlockSpec((1, 1, Cp), lambda n: (n, 0, 0)),    # per-sample sum
            pl.BlockSpec((1, 1, Cp), lambda n: (n, 0, 0)),    # per-sample sumsq
        ),
        scratch_shapes=[pltpu.VMEM((P, Cp), jnp.bfloat16),    # flat halo (bf16)
                        pltpu.VMEM((M, Cp), jnp.float32)],    # conv accumulator
        compiler_params=pltpu.CompilerParams(
            dimension_semantics=("parallel",),   # per-step stats => core-safe
            vmem_limit_bytes=vmem_limit),
    )(inp, w_taps, scale, shift)


# ---------------------------------------------------------------------------
# Kernel 3: BN2-apply + residual + SiLU (lane-dense (N*H, W*C) view, parallel)
# ---------------------------------------------------------------------------
def _bn_res_silu_kernel(y_ref, id_ref, scale_ref, shift_ref, out_ref):
    z = (y_ref[...].astype(jnp.float32) * scale_ref[...] + shift_ref[...]
         + id_ref[...])
    out_ref[...] = _silu(z)


def _bn_res_silu(y2_flat, id_flat, scale_wc, shift_wc, vmem_limit):
    R, L = y2_flat.shape
    TR = _pick_row_tile(R)
    return pl.pallas_call(
        _bn_res_silu_kernel,
        out_shape=jax.ShapeDtypeStruct((R, L), jnp.float32),
        grid=(R // TR,),
        in_specs=[
            pl.BlockSpec((TR, L), lambda i: (i, 0)),
            pl.BlockSpec((TR, L), lambda i: (i, 0)),
            pl.BlockSpec((1, L), lambda i: (0, 0)),
            pl.BlockSpec((1, L), lambda i: (0, 0)),
        ],
        out_specs=pl.BlockSpec((TR, L), lambda i: (i, 0)),
        compiler_params=pltpu.CompilerParams(
            dimension_semantics=("parallel",),
            vmem_limit_bytes=vmem_limit),
    )(y2_flat, id_flat, scale_wc, shift_wc)


# ---------------------------------------------------------------------------
# JAX glue (tiny per-channel math + weight layout)
# ---------------------------------------------------------------------------
def _sample_weights(mean, log_var, eps):
    # BayesConv2d._sample_weights: mean + eps * exp(0.5 * log_var)
    return mean + eps * jnp.exp(0.5 * log_var)


def _bn_scale_shift(ssum_rows, ssq_rows, gamma, beta, count, C):
    s = jnp.sum(ssum_rows, axis=(0, 1))[:C]
    q = jnp.sum(ssq_rows, axis=(0, 1))[:C]
    mean = s / count
    var = jnp.maximum(q / count - mean * mean, 0.0)   # clamp f32 cancellation
    scale = gamma * lax.rsqrt(var + BN_EPS)
    shift = beta - mean * scale
    return scale.reshape(1, C), shift.reshape(1, C)


def _oihw_to_taps(w_oihw, Cp):
    """(Cout, Cin, 3, 3) -> (9, Cp, Cp) bf16, zero-padded to lane multiples."""
    cout, cin = w_oihw.shape[0], w_oihw.shape[1]
    w = jnp.transpose(w_oihw, (2, 3, 1, 0))                 # (3, 3, Cin, Cout)
    w = jnp.pad(w, ((0, 0), (0, 0), (0, Cp - cin), (0, Cp - cout)))
    return w.reshape(9, Cp, Cp).astype(jnp.bfloat16)


def bayes_block_forward(x_nchw, params, eps):
    """Forward of BayesBlock(inplanes=planes, stride=1, downsample=None)."""
    x = jnp.transpose(x_nchw, (0, 2, 3, 1)).astype(jnp.float32)   # NHWC
    N, H, W, C = x.shape
    Cp = _round_up(C, LANE)
    count = float(N * H * W)
    vmem_limit = _vmem_limit_bytes()

    w1 = _sample_weights(params["w1_mean"], params["w1_log_var"], eps)  # OIHW
    w2 = _sample_weights(params["w2_mean"], params["w2_log_var"], eps)  # OIHW
    w1_taps = _oihw_to_taps(w1, Cp)
    w2_taps = _oihw_to_taps(w2, Cp)

    ones = jnp.ones((1, C), jnp.float32)
    zeros = jnp.zeros((1, C), jnp.float32)

    # Pass 1: conv1 + per-sample BN1 partial statistics.
    y1, s1, q1 = _conv3x3_bn_stats(x, w1_taps, ones, zeros, Cp=Cp,
                                   fuse_bn_silu=False, vmem_limit=vmem_limit)
    scale1, shift1 = _bn_scale_shift(s1, q1, params["gamma1"], params["beta1"],
                                     count, C)

    # Pass 2: (BN1-apply + SiLU) fused with conv2 + per-sample BN2 statistics
    # (the f32 intermediate activation never touches HBM).
    y2, s2, q2 = _conv3x3_bn_stats(y1, w2_taps, scale1, shift1, Cp=Cp,
                                   fuse_bn_silu=True, vmem_limit=vmem_limit)
    scale2, shift2 = _bn_scale_shift(s2, q2, params["gamma2"], params["beta2"],
                                     count, C)

    # Pass 3: BN2-apply + residual + SiLU on a lane-dense (N*H, W*C) view
    # (free, contiguous reshapes; residual taken straight from x, no padded
    # activation copy in HBM).
    L = W * C
    y2_flat = y2.reshape(N * H, L)
    id_flat = x.reshape(N * H, L)
    scale_wc = jnp.tile(scale2.reshape(-1), W).reshape(1, L)
    shift_wc = jnp.tile(shift2.reshape(-1), W).reshape(1, L)
    out = _bn_res_silu(y2_flat, id_flat, scale_wc, shift_wc, vmem_limit)

    out_nchw = jnp.transpose(out.reshape(N, H, W, C), (0, 3, 1, 2))
    # Module returns [out, sampled_w1, sampled_w2] (bias=False for 3x3 convs).
    return [out_nchw, w1, w2]


# ---------------------------------------------------------------------------
# Pure-JAX reference (f32) for in-script correctness check
# ---------------------------------------------------------------------------
def _reference_forward(x_nchw, params, eps):
    x = jnp.transpose(x_nchw, (0, 2, 3, 1)).astype(jnp.float32)
    w1 = _sample_weights(params["w1_mean"], params["w1_log_var"], eps)
    w2 = _sample_weights(params["w2_mean"], params["w2_log_var"], eps)

    def conv(inp, w_oihw):
        w_hwio = jnp.transpose(w_oihw, (2, 3, 1, 0))
        return lax.conv_general_dilated(
            inp, w_hwio, (1, 1), "SAME",
            dimension_numbers=("NHWC", "HWIO", "NHWC"))

    def bn(y, g, b):
        m = jnp.mean(y, axis=(0, 1, 2))
        v = jnp.mean((y - m) ** 2, axis=(0, 1, 2))
        return (y - m) / jnp.sqrt(v + BN_EPS) * g + b

    silu = lambda z: z * jax.nn.sigmoid(z)
    h = silu(bn(conv(x, w1), params["gamma1"], params["beta1"]))
    o = silu(bn(conv(h, w2), params["gamma2"], params["beta2"]) + x)
    return jnp.transpose(o, (0, 3, 1, 2))


# ---------------------------------------------------------------------------
# Main
# ---------------------------------------------------------------------------
if __name__ == "__main__":
    # Small shapes consistent with the module: inplanes == planes, stride=1.
    N, C, H, W = 2, 8, 16, 16
    inplanes = planes = C

    key = jax.random.PRNGKey(0)
    k_x, k_w1, k_lv1, k_w2, k_lv2, k_eps = jax.random.split(key, 6)

    std = 0.001 / math.sqrt(inplanes)  # matches BayesConv2d init
    params = {
        "w1_mean": jax.random.normal(k_w1, (planes, inplanes, 3, 3), jnp.float32) * std,
        "w1_log_var": jax.random.normal(k_lv1, (planes, inplanes, 3, 3), jnp.float32) * std,
        "w2_mean": jax.random.normal(k_w2, (planes, planes, 3, 3), jnp.float32) * std,
        "w2_log_var": jax.random.normal(k_lv2, (planes, planes, 3, 3), jnp.float32) * std,
        "gamma1": jnp.ones((planes,), jnp.float32),   # BatchNorm2d default weight
        "beta1": jnp.zeros((planes,), jnp.float32),   # BatchNorm2d default bias
        "gamma2": jnp.ones((planes,), jnp.float32),
        "beta2": jnp.zeros((planes,), jnp.float32),
    }

    x = jax.random.normal(k_x, (N, C, H, W), jnp.float32)                  # NCHW
    eps = jax.random.normal(k_eps, (planes, inplanes, 3, 3), jnp.float32)  # shared eps

    fwd = jax.jit(bayes_block_forward)
    out, w1_s, w2_s = fwd(x, params, eps)
    out = jax.block_until_ready(out)

    ref = _reference_forward(x, params, eps)
    # bf16 MXU inputs (f32 accumulation / BN statistics) => relaxed tolerance.
    np.testing.assert_allclose(np.asarray(out), np.asarray(ref),
                               rtol=5e-2, atol=5e-2)
    assert w1_s.shape == (planes, inplanes, 3, 3)
    assert w2_s.shape == (planes, planes, 3, 3)

    print("KERNEL_OK")
</pallas_src>

<mosaic_0001>
module attributes {stable_mosaic.version = 11 : i64} {
  func.func @_conv3x3_stats_kernel(%arg0: i32, %arg1: memref<1x16x16x8xf32, #tpu.memory_space<vmem>>, %arg2: memref<9x128x128xbf16, #tpu.memory_space<vmem>>, %arg3: memref<1x8xf32, #tpu.memory_space<vmem>>, %arg4: memref<1x8xf32, #tpu.memory_space<vmem>>, %arg5: memref<1x16x16x8xbf16, #tpu.memory_space<vmem>>, %arg6: memref<1x1x128xf32, #tpu.memory_space<vmem>>, %arg7: memref<1x1x128xf32, #tpu.memory_space<vmem>>, %arg8: memref<328x128xbf16, #tpu.memory_space<vmem>>, %arg9: memref<288x128xf32, #tpu.memory_space<vmem>>) attributes {dimension_semantics = [#tpu.dimension_semantics<parallel>], iteration_bounds = array<i64: 2>, scalar_prefetch = 0 : i64, scratch_operands = 2 : i64, tpu.core_type = #tpu.core_type<tc>, window_params = [{transform_indices = @transform_0, window_bounds = array<i64: 1, 16, 16, 8>}, {pipeline_mode = #tpu.pipeline_mode<synchronous>, transform_indices = @transform_1, window_bounds = array<i64: 9, 128, 128>}, {pipeline_mode = #tpu.pipeline_mode<synchronous>, transform_indices = @transform_2, window_bounds = array<i64: 1, 8>}, {pipeline_mode = #tpu.pipeline_mode<synchronous>, transform_indices = @transform_3, window_bounds = array<i64: 1, 8>}, {transform_indices = @transform_4, window_bounds = array<i64: 1, 16, 16, 8>}, {transform_indices = @transform_5, window_bounds = array<i64: 1, 1, 128>}, {transform_indices = @transform_6, window_bounds = array<i64: 1, 1, 128>}]} {
    %cst = arith.constant 0.000000e+00 : bf16
    %0 = vector.broadcast %cst : bf16 to vector<328x128xbf16>
    %c0 = arith.constant 0 : index
    %c0_0 = arith.constant 0 : index
    %1 = vector.load %arg8[%c0, %c0_0] : memref<328x128xbf16, #tpu.memory_space<vmem>>, vector<328x128xbf16>
    tpu.vector_store %arg8[%c0, %c0_0], %0 {strides = array<i32>} : memref<328x128xbf16, #tpu.memory_space<vmem>>, vector<328x128xbf16>,
    %c0_1 = arith.constant 0 : index
    %c0_2 = arith.constant 0 : index
    %c0_3 = arith.constant 0 : index
    %c0_4 = arith.constant 0 : index
    %2 = vector.load %arg1[%c0_1, %c0_2, %c0_3, %c0_4] : memref<1x16x16x8xf32, #tpu.memory_space<vmem>>, vector<1x16x16x8xf32>
    %3 = vector.shape_cast %2 : vector<1x16x16x8xf32> to vector<16x16x8xf32>
    %4 = arith.truncf %3 : vector<16x16x8xf32> to vector<16x16x8xbf16>
    %5 = vector.extract_strided_slice %4 {offsets = [0, 0, 0], sizes = [1, 16, 8], strides = [1, 1, 1]} : vector<16x16x8xbf16> to vector<1x16x8xbf16>
    %6 = vector.shape_cast %5 : vector<1x16x8xbf16> to vector<16x8xbf16>
    %c19 = arith.constant 19 : index
    %c0_5 = arith.constant 0 : index
    %7 = vector.load %arg8[%c19, %c0_5] : memref<328x128xbf16, #tpu.memory_space<vmem>>, vector<16x8xbf16>
    tpu.vector_store %arg8[%c19, %c0_5], %6 {strides = array<i32>} : memref<328x128xbf16, #tpu.memory_space<vmem>>, vector<16x8xbf16>,
    %8 = vector.extract_strided_slice %4 {offsets = [1, 0, 0], sizes = [1, 16, 8], strides = [1, 1, 1]} : vector<16x16x8xbf16> to vector<1x16x8xbf16>
    %9 = vector.shape_cast %8 : vector<1x16x8xbf16> to vector<16x8xbf16>
    %c37 = arith.constant 37 : index
    %c0_6 = arith.constant 0 : index
    %10 = vector.load %arg8[%c37, %c0_6] : memref<328x128xbf16, #tpu.memory_space<vmem>>, vector<16x8xbf16>
    tpu.vector_store %arg8[%c37, %c0_6], %9 {strides = array<i32>} : memref<328x128xbf16, #tpu.memory_space<vmem>>, vector<16x8xbf16>,
    %11 = vector.extract_strided_slice %4 {offsets = [2, 0, 0], sizes = [1, 16, 8], strides = [1, 1, 1]} : vector<16x16x8xbf16> to vector<1x16x8xbf16>
    %12 = vector.shape_cast %11 : vector<1x16x8xbf16> to vector<16x8xbf16>
    %c55 = arith.constant 55 : index
    %c0_7 = arith.constant 0 : index
    %13 = vector.load %arg8[%c55, %c0_7] : memref<328x128xbf16, #tpu.memory_space<vmem>>, vector<16x8xbf16>
    tpu.vector_store %arg8[%c55, %c0_7], %12 {strides = array<i32>} : memref<328x128xbf16, #tpu.memory_space<vmem>>, vector<16x8xbf16>,
    %14 = vector.extract_strided_slice %4 {offsets = [3, 0, 0], sizes = [1, 16, 8], strides = [1, 1, 1]} : vector<16x16x8xbf16> to vector<1x16x8xbf16>
    %15 = vector.shape_cast %14 : vector<1x16x8xbf16> to vector<16x8xbf16>
    %c73 = arith.constant 73 : index
    %c0_8 = arith.constant 0 : index
    %16 = vector.load %arg8[%c73, %c0_8] : memref<328x128xbf16, #tpu.memory_space<vmem>>, vector<16x8xbf16>
    tpu.vector_store %arg8[%c73, %c0_8], %15 {strides = array<i32>} : memref<328x128xbf16, #tpu.memory_space<vmem>>, vector<16x8xbf16>,
    %17 = vector.extract_strided_slice %4 {offsets = [4, 0, 0], sizes = [1, 16, 8], strides = [1, 1, 1]} : vector<16x16x8xbf16> to vector<1x16x8xbf16>
    %18 = vector.shape_cast %17 : vector<1x16x8xbf16> to vector<16x8xbf16>
    %c91 = arith.constant 91 : index
    %c0_9 = arith.constant 0 : index
    %19 = vector.load %arg8[%c91, %c0_9] : memref<328x128xbf16, #tpu.memory_space<vmem>>, vector<16x8xbf16>
    tpu.vector_store %arg8[%c91, %c0_9], %18 {strides = array<i32>} : memref<328x128xbf16, #tpu.memory_space<vmem>>, vector<16x8xbf16>,
    %20 = vector.extract_strided_slice %4 {offsets = [5, 0, 0], sizes = [1, 16, 8], strides = [1, 1, 1]} : vector<16x16x8xbf16> to vector<1x16x8xbf16>
    %21 = vector.shape_cast %20 : vector<1x16x8xbf16> to vector<16x8xbf16>
    %c109 = arith.constant 109 : index
    %c0_10 = arith.constant 0 : index
    %22 = vector.load %arg8[%c109, %c0_10] : memref<328x128xbf16, #tpu.memory_space<vmem>>, vector<16x8xbf16>
    tpu.vector_store %arg8[%c109, %c0_10], %21 {strides = array<i32>} : memref<328x128xbf16, #tpu.memory_space<vmem>>, vector<16x8xbf16>,
    %23 = vector.extract_strided_slice %4 {offsets = [6, 0, 0], sizes = [1, 16, 8], strides = [1, 1, 1]} : vector<16x16x8xbf16> to vector<1x16x8xbf16>
    %24 = vector.shape_cast %23 : vector<1x16x8xbf16> to vector<16x8xbf16>
    %c127 = arith.constant 127 : index
    %c0_11 = arith.constant 0 : index
    %25 = vector.load %arg8[%c127, %c0_11] : memref<328x128xbf16, #tpu.memory_space<vmem>>, vector<16x8xbf16>
    tpu.vector_store %arg8[%c127, %c0_11], %24 {strides = array<i32>} : memref<328x128xbf16, #tpu.memory_space<vmem>>, vector<16x8xbf16>,
    %26 = vector.extract_strided_slice %4 {offsets = [7, 0, 0], sizes = [1, 16, 8], strides = [1, 1, 1]} : vector<16x16x8xbf16> to vector<1x16x8xbf16>
    %27 = vector.shape_cast %26 : vector<1x16x8xbf16> to vector<16x8xbf16>
    %c145 = arith.constant 145 : index
    %c0_12 = arith.constant 0 : index
    %28 = vector.load %arg8[%c145, %c0_12] : memref<328x128xbf16, #tpu.memory_space<vmem>>, vector<16x8xbf16>
    tpu.vector_store %arg8[%c145, %c0_12], %27 {strides = array<i32>} : memref<328x128xbf16, #tpu.memory_space<vmem>>, vector<16x8xbf16>,
    %29 = vector.extract_strided_slice %4 {offsets = [8, 0, 0], sizes = [1, 16, 8], strides = [1, 1, 1]} : vector<16x16x8xbf16> to vector<1x16x8xbf16>
    %30 = vector.shape_cast %29 : vector<1x16x8xbf16> to vector<16x8xbf16>
    %c163 = arith.constant 163 : index
    %c0_13 = arith.constant 0 : index
    %31 = vector.load %arg8[%c163, %c0_13] : memref<328x128xbf16, #tpu.memory_space<vmem>>, vector<16x8xbf16>
    tpu.vector_store %arg8[%c163, %c0_13], %30 {strides = array<i32>} : memref<328x128xbf16, #tpu.memory_space<vmem>>, vector<16x8xbf16>,
    %32 = vector.extract_strided_slice %4 {offsets = [9, 0, 0], sizes = [1, 16, 8], strides = [1, 1, 1]} : vector<16x16x8xbf16> to vector<1x16x8xbf16>
    %33 = vector.shape_cast %32 : vector<1x16x8xbf16> to vector<16x8xbf16>
    %c181 = arith.constant 181 : index
    %c0_14 = arith.constant 0 : index
    %34 = vector.load %arg8[%c181, %c0_14] : memref<328x128xbf16, #tpu.memory_space<vmem>>, vector<16x8xbf16>
    tpu.vector_store %arg8[%c181, %c0_14], %33 {strides = array<i32>} : memref<328x128xbf16, #tpu.memory_space<vmem>>, vector<16x8xbf16>,
    %35 = vector.extract_strided_slice %4 {offsets = [10, 0, 0], sizes = [1, 16, 8], strides = [1, 1, 1]} : vector<16x16x8xbf16> to vector<1x16x8xbf16>
    %36 = vector.shape_cast %35 : vector<1x16x8xbf16> to vector<16x8xbf16>
    %c199 = arith.constant 199 : index
    %c0_15 = arith.constant 0 : index
    %37 = vector.load %arg8[%c199, %c0_15] : memref<328x128xbf16, #tpu.memory_space<vmem>>, vector<16x8xbf16>
    tpu.vector_store %arg8[%c199, %c0_15], %36 {strides = array<i32>} : memref<328x128xbf16, #tpu.memory_space<vmem>>, vector<16x8xbf16>,
    %38 = vector.extract_strided_slice %4 {offsets = [11, 0, 0], sizes = [1, 16, 8], strides = [1, 1, 1]} : vector<16x16x8xbf16> to vector<1x16x8xbf16>
    %39 = vector.shape_cast %38 : vector<1x16x8xbf16> to vector<16x8xbf16>
    %c217 = arith.constant 217 : index
    %c0_16 = arith.constant 0 : index
    %40 = vector.load %arg8[%c217, %c0_16] : memref<328x128xbf16, #tpu.memory_space<vmem>>, vector<16x8xbf16>
    tpu.vector_store %arg8[%c217, %c0_16], %39 {strides = array<i32>} : memref<328x128xbf16, #tpu.memory_space<vmem>>, vector<16x8xbf16>,
    %41 = vector.extract_strided_slice %4 {offsets = [12, 0, 0], sizes = [1, 16, 8], strides = [1, 1, 1]} : vector<16x16x8xbf16> to vector<1x16x8xbf16>
    %42 = vector.shape_cast %41 : vector<1x16x8xbf16> to vector<16x8xbf16>
    %c235 = arith.constant 235 : index
    %c0_17 = arith.constant 0 : index
    %43 = vector.load %arg8[%c235, %c0_17] : memref<328x128xbf16, #tpu.memory_space<vmem>>, vector<16x8xbf16>
    tpu.vector_store %arg8[%c235, %c0_17], %42 {strides = array<i32>} : memref<328x128xbf16, #tpu.memory_space<vmem>>, vector<16x8xbf16>,
    %44 = vector.extract_strided_slice %4 {offsets = [13, 0, 0], sizes = [1, 16, 8], strides = [1, 1, 1]} : vector<16x16x8xbf16> to vector<1x16x8xbf16>
    %45 = vector.shape_cast %44 : vector<1x16x8xbf16> to vector<16x8xbf16>
    %c253 = arith.constant 253 : index
    %c0_18 = arith.constant 0 : index
    %46 = vector.load %arg8[%c253, %c0_18] : memref<328x128xbf16, #tpu.memory_space<vmem>>, vector<16x8xbf16>
    tpu.vector_store %arg8[%c253, %c0_18], %45 {strides = array<i32>} : memref<328x128xbf16, #tpu.memory_space<vmem>>, vector<16x8xbf16>,
    %47 = vector.extract_strided_slice %4 {offsets = [14, 0, 0], sizes = [1, 16, 8], strides = [1, 1, 1]} : vector<16x16x8xbf16> to vector<1x16x8xbf16>
    %48 = vector.shape_cast %47 : vector<1x16x8xbf16> to vector<16x8xbf16>
    %c271 = arith.constant 271 : index
    %c0_19 = arith.constant 0 : index
    %49 = vector.load %arg8[%c271, %c0_19] : memref<328x128xbf16, #tpu.memory_space<vmem>>, vector<16x8xbf16>
    tpu.vector_store %arg8[%c271, %c0_19], %48 {strides = array<i32>} : memref<328x128xbf16, #tpu.memory_space<vmem>>, vector<16x8xbf16>,
    %50 = vector.extract_strided_slice %4 {offsets = [15, 0, 0], sizes = [1, 16, 8], strides = [1, 1, 1]} : vector<16x16x8xbf16> to vector<1x16x8xbf16>
    %51 = vector.shape_cast %50 : vector<1x16x8xbf16> to vector<16x8xbf16>
    %c289 = arith.constant 289 : index
    %c0_20 = arith.constant 0 : index
    %52 = vector.load %arg8[%c289, %c0_20] : memref<328x128xbf16, #tpu.memory_space<vmem>>, vector<16x8xbf16>
    tpu.vector_store %arg8[%c289, %c0_20], %51 {strides = array<i32>} : memref<328x128xbf16, #tpu.memory_space<vmem>>, vector<16x8xbf16>,
    %c0_21 = arith.constant 0 : index
    %c0_22 = arith.constant 0 : index
    %53 = vector.load %arg8[%c0_21, %c0_22] : memref<328x128xbf16, #tpu.memory_space<vmem>>, vector<288x128xbf16>
    %c0_23 = arith.constant 0 : index
    %c0_24 = arith.constant 0 : index
    %c0_25 = arith.constant 0 : index
    %54 = vector.load %arg2[%c0_23, %c0_24, %c0_25] : memref<9x128x128xbf16, #tpu.memory_space<vmem>>, vector<1x128x128xbf16>
    %55 = vector.shape_cast %54 : vector<1x128x128xbf16> to vector<128x128xbf16>
    %cst_26 = arith.constant dense<0.000000e+00> : vector<288x128xf32>
    %56 = tpu.matmul %53, %55, %cst_26 {dimension_numbers = #tpu.dot_dimension_numbers<[1], [0], [0], [1], [0, 0, 1, 1], [], []>} : vector<288x128xbf16>, vector<128x128xbf16>, vector<288x128xf32> -> vector<288x128xf32>
    %c0_27 = arith.constant 0 : index
    %c0_28 = arith.constant 0 : index
    %57 = vector.load %arg9[%c0_27, %c0_28] : memref<288x128xf32, #tpu.memory_space<vmem>>, vector<288x128xf32>
    tpu.vector_store %arg9[%c0_27, %c0_28], %56 {strides = array<i32>} : memref<288x128xf32, #tpu.memory_space<vmem>>, vector<288x128xf32>,
    %c1 = arith.constant 1 : index
    %c0_29 = arith.constant 0 : index
    %58 = vector.load %arg8[%c1, %c0_29] : memref<328x128xbf16, #tpu.memory_space<vmem>>, vector<288x128xbf16>
    %c1_30 = arith.constant 1 : index
    %c0_31 = arith.constant 0 : index
    %c0_32 = arith.constant 0 : index
    %59 = vector.load %arg2[%c1_30, %c0_31, %c0_32] : memref<9x128x128xbf16, #tpu.memory_space<vmem>>, vector<1x128x128xbf16>
    %60 = vector.shape_cast %59 : vector<1x128x128xbf16> to vector<128x128xbf16>
    %cst_33 = arith.constant dense<0.000000e+00> : vector<288x128xf32>
    %61 = tpu.matmul %58, %60, %cst_33 {dimension_numbers = #tpu.dot_dimension_numbers<[1], [0], [0], [1], [0, 0, 1, 1], [], []>} : vector<288x128xbf16>, vector<128x128xbf16>, vector<288x128xf32> -> vector<288x128xf32>
    %c0_34 = arith.constant 0 : index
    %c0_35 = arith.constant 0 : index
    %62 = vector.load %arg9[%c0_34, %c0_35] : memref<288x128xf32, #tpu.memory_space<vmem>>, vector<288x128xf32>
    %63 = arith.addf %62, %61 : vector<288x128xf32>
    %c0_36 = arith.constant 0 : index
    %c0_37 = arith.constant 0 : index
    %64 = vector.load %arg9[%c0_36, %c0_37] : memref<288x128xf32, #tpu.memory_space<vmem>>, vector<288x128xf32>
    tpu.vector_store %arg9[%c0_36, %c0_37], %63 {strides = array<i32>} : memref<288x128xf32, #tpu.memory_space<vmem>>, vector<288x128xf32>,
    %c2 = arith.constant 2 : index
    %c0_38 = arith.constant 0 : index
    %65 = vector.load %arg8[%c2, %c0_38] : memref<328x128xbf16, #tpu.memory_space<vmem>>, vector<288x128xbf16>
    %c2_39 = arith.constant 2 : index
    %c0_40 = arith.constant 0 : index
    %c0_41 = arith.constant 0 : index
    %66 = vector.load %arg2[%c2_39, %c0_40, %c0_41] : memref<9x128x128xbf16, #tpu.memory_space<vmem>>, vector<1x128x128xbf16>
    %67 = vector.shape_cast %66 : vector<1x128x128xbf16> to vector<128x128xbf16>
    %cst_42 = arith.constant dense<0.000000e+00> : vector<288x128xf32>
    %68 = tpu.matmul %65, %67, %cst_42 {dimension_numbers = #tpu.dot_dimension_numbers<[1], [0], [0], [1], [0, 0, 1, 1], [], []>} : vector<288x128xbf16>, vector<128x128xbf16>, vector<288x128xf32> -> vector<288x128xf32>
    %c0_43 = arith.constant 0 : index
    %c0_44 = arith.constant 0 : index
    %69 = vector.load %arg9[%c0_43, %c0_44] : memref<288x128xf32, #tpu.memory_space<vmem>>, vector<288x128xf32>
    %70 = arith.addf %69, %68 : vector<288x128xf32>
    %c0_45 = arith.constant 0 : index
    %c0_46 = arith.constant 0 : index
    %71 = vector.load %arg9[%c0_45, %c0_46] : memref<288x128xf32, #tpu.memory_space<vmem>>, vector<288x128xf32>
    tpu.vector_store %arg9[%c0_45, %c0_46], %70 {strides = array<i32>} : memref<288x128xf32, #tpu.memory_space<vmem>>, vector<288x128xf32>,
    %c18 = arith.constant 18 : index
    %c0_47 = arith.constant 0 : index
    %72 = vector.load %arg8[%c18, %c0_47] : memref<328x128xbf16, #tpu.memory_space<vmem>>, vector<288x128xbf16>
    %c3 = arith.constant 3 : index
    %c0_48 = arith.constant 0 : index
    %c0_49 = arith.constant 0 : index
    %73 = vector.load %arg2[%c3, %c0_48, %c0_49] : memref<9x128x128xbf16, #tpu.memory_space<vmem>>, vector<1x128x128xbf16>
    %74 = vector.shape_cast %73 : vector<1x128x128xbf16> to vector<128x128xbf16>
    %cst_50 = arith.constant dense<0.000000e+00> : vector<288x128xf32>
    %75 = tpu.matmul %72, %74, %cst_50 {dimension_numbers = #tpu.dot_dimension_numbers<[1], [0], [0], [1], [0, 0, 1, 1], [], []>} : vector<288x128xbf16>, vector<128x128xbf16>, vector<288x128xf32> -> vector<288x128xf32>
    %c0_51 = arith.constant 0 : index
    %c0_52 = arith.constant 0 : index
    %76 = vector.load %arg9[%c0_51, %c0_52] : memref<288x128xf32, #tpu.memory_space<vmem>>, vector<288x128xf32>
    %77 = arith.addf %76, %75 : vector<288x128xf32>
    %c0_53 = arith.constant 0 : index
    %c0_54 = arith.constant 0 : index
    %78 = vector.load %arg9[%c0_53, %c0_54] : memref<288x128xf32, #tpu.memory_space<vmem>>, vector<288x128xf32>
    tpu.vector_store %arg9[%c0_53, %c0_54], %77 {strides = array<i32>} : memref<288x128xf32, #tpu.memory_space<vmem>>, vector<288x128xf32>,
    %c19_55 = arith.constant 19 : index
    %c0_56 = arith.constant 0 : index
    %79 = vector.load %arg8[%c19_55, %c0_56] : memref<328x128xbf16, #tpu.memory_space<vmem>>, vector<288x128xbf16>
    %c4 = arith.constant 4 : index
    %c0_57 = arith.constant 0 : index
    %c0_58 = arith.constant 0 : index
    %80 = vector.load %arg2[%c4, %c0_57, %c0_58] : memref<9x128x128xbf16, #tpu.memory_space<vmem>>, vector<1x128x128xbf16>
    %81 = vector.shape_cast %80 : vector<1x128x128xbf16> to vector<128x128xbf16>
    %cst_59 = arith.constant dense<0.000000e+00> : vector<288x128xf32>
    %82 = tpu.matmul %79, %81, %cst_59 {dimension_numbers = #tpu.dot_dimension_numbers<[1], [0], [0], [1], [0, 0, 1, 1], [], []>} : vector<288x128xbf16>, vector<128x128xbf16>, vector<288x128xf32> -> vector<288x128xf32>
    %c0_60 = arith.constant 0 : index
    %c0_61 = arith.constant 0 : index
    %83 = vector.load %arg9[%c0_60, %c0_61] : memref<288x128xf32, #tpu.memory_space<vmem>>, vector<288x128xf32>
    %84 = arith.addf %83, %82 : vector<288x128xf32>
    %c0_62 = arith.constant 0 : index
    %c0_63 = arith.constant 0 : index
    %85 = vector.load %arg9[%c0_62, %c0_63] : memref<288x128xf32, #tpu.memory_space<vmem>>, vector<288x128xf32>
    tpu.vector_store %arg9[%c0_62, %c0_63], %84 {strides = array<i32>} : memref<288x128xf32, #tpu.memory_space<vmem>>, vector<288x128xf32>,
    %c20 = arith.constant 20 : index
    %c0_64 = arith.constant 0 : index
    %86 = vector.load %arg8[%c20, %c0_64] : memref<328x128xbf16, #tpu.memory_space<vmem>>, vector<288x128xbf16>
    %c5 = arith.constant 5 : index
    %c0_65 = arith.constant 0 : index
    %c0_66 = arith.constant 0 : index
    %87 = vector.load %arg2[%c5, %c0_65, %c0_66] : memref<9x128x128xbf16, #tpu.memory_space<vmem>>, vector<1x128x128xbf16>
    %88 = vector.shape_cast %87 : vector<1x128x128xbf16> to vector<128x128xbf16>
    %cst_67 = arith.constant dense<0.000000e+00> : vector<288x128xf32>
    %89 = tpu.matmul %86, %88, %cst_67 {dimension_numbers = #tpu.dot_dimension_numbers<[1], [0], [0], [1], [0, 0, 1, 1], [], []>} : vector<288x128xbf16>, vector<128x128xbf16>, vector<288x128xf32> -> vector<288x128xf32>
    %c0_68 = arith.constant 0 : index
    %c0_69 = arith.constant 0 : index
    %90 = vector.load %arg9[%c0_68, %c0_69] : memref<288x128xf32, #tpu.memory_space<vmem>>, vector<288x128xf32>
    %91 = arith.addf %90, %89 : vector<288x128xf32>
    %c0_70 = arith.constant 0 : index
    %c0_71 = arith.constant 0 : index
    %92 = vector.load %arg9[%c0_70, %c0_71] : memref<288x128xf32, #tpu.memory_space<vmem>>, vector<288x128xf32>
    tpu.vector_store %arg9[%c0_70, %c0_71], %91 {strides = array<i32>} : memref<288x128xf32, #tpu.memory_space<vmem>>, vector<288x128xf32>,
    %c36 = arith.constant 36 : index
    %c0_72 = arith.constant 0 : index
    %93 = vector.load %arg8[%c36, %c0_72] : memref<328x128xbf16, #tpu.memory_space<vmem>>, vector<288x128xbf16>
    %c6 = arith.constant 6 : index
    %c0_73 = arith.constant 0 : index
    %c0_74 = arith.constant 0 : index
    %94 = vector.load %arg2[%c6, %c0_73, %c0_74] : memref<9x128x128xbf16, #tpu.memory_space<vmem>>, vector<1x128x128xbf16>
    %95 = vector.shape_cast %94 : vector<1x128x128xbf16> to vector<128x128xbf16>
    %cst_75 = arith.constant dense<0.000000e+00> : vector<288x128xf32>
    %96 = tpu.matmul %93, %95, %cst_75 {dimension_numbers = #tpu.dot_dimension_numbers<[1], [0], [0], [1], [0, 0, 1, 1], [], []>} : vector<288x128xbf16>, vector<128x128xbf16>, vector<288x128xf32> -> vector<288x128xf32>
    %c0_76 = arith.constant 0 : index
    %c0_77 = arith.constant 0 : index
    %97 = vector.load %arg9[%c0_76, %c0_77] : memref<288x128xf32, #tpu.memory_space<vmem>>, vector<288x128xf32>
    %98 = arith.addf %97, %96 : vector<288x128xf32>
    %c0_78 = arith.constant 0 : index
    %c0_79 = arith.constant 0 : index
    %99 = vector.load %arg9[%c0_78, %c0_79] : memref<288x128xf32, #tpu.memory_space<vmem>>, vector<288x128xf32>
    tpu.vector_store %arg9[%c0_78, %c0_79], %98 {strides = array<i32>} : memref<288x128xf32, #tpu.memory_space<vmem>>, vector<288x128xf32>,
    %c37_80 = arith.constant 37 : index
    %c0_81 = arith.constant 0 : index
    %100 = vector.load %arg8[%c37_80, %c0_81] : memref<328x128xbf16, #tpu.memory_space<vmem>>, vector<288x128xbf16>
    %c7 = arith.constant 7 : index
    %c0_82 = arith.constant 0 : index
    %c0_83 = arith.constant 0 : index
    %101 = vector.load %arg2[%c7, %c0_82, %c0_83] : memref<9x128x128xbf16, #tpu.memory_space<vmem>>, vector<1x128x128xbf16>
    %102 = vector.shape_cast %101 : vector<1x128x128xbf16> to vector<128x128xbf16>
    %cst_84 = arith.constant dense<0.000000e+00> : vector<288x128xf32>
    %103 = tpu.matmul %100, %102, %cst_84 {dimension_numbers = #tpu.dot_dimension_numbers<[1], [0], [0], [1], [0, 0, 1, 1], [], []>} : vector<288x128xbf16>, vector<128x128xbf16>, vector<288x128xf32> -> vector<288x128xf32>
    %c0_85 = arith.constant 0 : index
    %c0_86 = arith.constant 0 : index
    %104 = vector.load %arg9[%c0_85, %c0_86] : memref<288x128xf32, #tpu.memory_space<vmem>>, vector<288x128xf32>
    %105 = arith.addf %104, %103 : vector<288x128xf32>
    %c0_87 = arith.constant 0 : index
    %c0_88 = arith.constant 0 : index
    %106 = vector.load %arg9[%c0_87, %c0_88] : memref<288x128xf32, #tpu.memory_space<vmem>>, vector<288x128xf32>
    tpu.vector_store %arg9[%c0_87, %c0_88], %105 {strides = array<i32>} : memref<288x128xf32, #tpu.memory_space<vmem>>, vector<288x128xf32>,
    %c38 = arith.constant 38 : index
    %c0_89 = arith.constant 0 : index
    %107 = vector.load %arg8[%c38, %c0_89] : memref<328x128xbf16, #tpu.memory_space<vmem>>, vector<288x128xbf16>
    %c8 = arith.constant 8 : index
    %c0_90 = arith.constant 0 : index
    %c0_91 = arith.constant 0 : index
    %108 = vector.load %arg2[%c8, %c0_90, %c0_91] : memref<9x128x128xbf16, #tpu.memory_space<vmem>>, vector<1x128x128xbf16>
    %109 = vector.shape_cast %108 : vector<1x128x128xbf16> to vector<128x128xbf16>
    %cst_92 = arith.constant dense<0.000000e+00> : vector<288x128xf32>
    %110 = tpu.matmul %107, %109, %cst_92 {dimension_numbers = #tpu.dot_dimension_numbers<[1], [0], [0], [1], [0, 0, 1, 1], [], []>} : vector<288x128xbf16>, vector<128x128xbf16>, vector<288x128xf32> -> vector<288x128xf32>
    %c0_93 = arith.constant 0 : index
    %c0_94 = arith.constant 0 : index
    %111 = vector.load %arg9[%c0_93, %c0_94] : memref<288x128xf32, #tpu.memory_space<vmem>>, vector<288x128xf32>
    %112 = arith.addf %111, %110 : vector<288x128xf32>
    %c0_95 = arith.constant 0 : index
    %c0_96 = arith.constant 0 : index
    %113 = vector.load %arg9[%c0_95, %c0_96] : memref<288x128xf32, #tpu.memory_space<vmem>>, vector<288x128xf32>
    tpu.vector_store %arg9[%c0_95, %c0_96], %112 {strides = array<i32>} : memref<288x128xf32, #tpu.memory_space<vmem>>, vector<288x128xf32>,
    %114 = tpu.iota {dimensions = array<i32: 0>} : vector<288x1xi32>
    %c18_i32 = arith.constant 18 : i32
    %c0_i32 = arith.constant 0 : i32
    %115 = arith.cmpi eq, %c18_i32, %c0_i32 : i32
    %c1_i32 = arith.constant 1 : i32
    %116 = arith.select %115, %c1_i32, %c18_i32 : i32
    %117 = vector.broadcast %116 : i32 to vector<288x1xi32>
    %118 = arith.remsi %114, %117 : vector<288x1xi32>
    %c0_i32_97 = arith.constant 0 : i32
    %119 = vector.broadcast %c0_i32_97 : i32 to vector<288x1xi32>
    %120 = arith.cmpi ne, %118, %119 : vector<288x1xi32>
    %c0_i32_98 = arith.constant 0 : i32
    %121 = vector.broadcast %c0_i32_98 : i32 to vector<288x1xi32>
    %122 = arith.cmpi slt, %118, %121 : vector<288x1xi32>
    %c0_i32_99 = arith.constant 0 : i32
    %123 = arith.cmpi slt, %116, %c0_i32_99 : i32
    %124 = vector.broadcast %123 : i1 to vector<288x1xi1>
    %125 = vector.broadcast %124 : vector<288x1xi1> to vector<288x1xi1>
    %126 = arith.xori %122, %125 : vector<288x1xi1>
    %127 = arith.andi %126, %120 : vector<288x1xi1>
    %128 = vector.broadcast %116 : i32 to vector<288x1xi32>
    %129 = arith.addi %118, %128 : vector<288x1xi32>
    %130 = arith.select %127, %129, %118 : vector<288x1xi1>, vector<288x1xi32>
    %c16_i32 = arith.constant 16 : i32
    %131 = vector.broadcast %c16_i32 : i32 to vector<288x1xi32>
    %132 = arith.cmpi slt, %130, %131 : vector<288x1xi32>
    %c0_100 = arith.constant 0 : index
    %c0_101 = arith.constant 0 : index
    %133 = vector.load %arg9[%c0_100, %c0_101] : memref<288x128xf32, #tpu.memory_space<vmem>>, vector<288x128xf32>
    %cst_102 = arith.constant 0.000000e+00 : f32
    %134 = vector.shape_cast %132 : vector<288x1xi1> to vector<288x1xi1>
    %135 = vector.broadcast %134 : vector<288x1xi1> to vector<288x128xi1>
    %136 = vector.broadcast %cst_102 : f32 to vector<288x128xf32>
    %137 = arith.select %135, %133, %136 : vector<288x128xi1>, vector<288x128xf32>
    %138 = arith.truncf %137 : vector<288x128xf32> to vector<288x128xbf16>
    %139 = arith.extf %138 : vector<288x128xbf16> to vector<288x128xf32>
    %cst_103 = arith.constant dense<0.000000e+00> : vector<128xf32>
    %140 = vector.multi_reduction <add>, %139, %cst_103 [0] : vector<288x128xf32> to vector<128xf32>
    %141 = vector.shape_cast %140 : vector<128xf32> to vector<1x128xf32>
    %142 = vector.shape_cast %141 : vector<1x128xf32> to vector<1x1x128xf32>
    %c0_104 = arith.constant 0 : index
    %c0_105 = arith.constant 0 : index
    %c0_106 = arith.constant 0 : index
    %143 = vector.load %arg6[%c0_104, %c0_105, %c0_106] : memref<1x1x128xf32, #tpu.memory_space<vmem>>, vector<1x1x128xf32>
    tpu.vector_store %arg6[%c0_104, %c0_105, %c0_106], %142 {strides = array<i32>} : memref<1x1x128xf32, #tpu.memory_space<vmem>>, vector<1x1x128xf32>,
    %144 = arith.mulf %139, %139 : vector<288x128xf32>
    %cst_107 = arith.constant dense<0.000000e+00> : vector<128xf32>
    %145 = vector.multi_reduction <add>, %144, %cst_107 [0] : vector<288x128xf32> to vector<128xf32>
    %146 = vector.shape_cast %145 : vector<128xf32> to vector<1x128xf32>
    %147 = vector.shape_cast %146 : vector<1x128xf32> to vector<1x1x128xf32>
    %c0_108 = arith.constant 0 : index
    %c0_109 = arith.constant 0 : index
    %c0_110 = arith.constant 0 : index
    %148 = vector.load %arg7[%c0_108, %c0_109, %c0_110] : memref<1x1x128xf32, #tpu.memory_space<vmem>>, vector<1x1x128xf32>
    tpu.vector_store %arg7[%c0_108, %c0_109, %c0_110], %147 {strides = array<i32>} : memref<1x1x128xf32, #tpu.memory_space<vmem>>, vector<1x1x128xf32>,
    %149 = vector.shape_cast %138 : vector<288x128xbf16> to vector<16x18x128xbf16>
    %150 = vector.extract_strided_slice %149 {offsets = [0, 0, 0], sizes = [16, 16, 8], strides = [1, 1, 1]} : vector<16x18x128xbf16> to vector<16x16x8xbf16>
    %151 = vector.shape_cast %150 : vector<16x16x8xbf16> to vector<1x16x16x8xbf16>
    %c0_111 = arith.constant 0 : index
    %c0_112 = arith.constant 0 : index
    %c0_113 = arith.constant 0 : index
    %c0_114 = arith.constant 0 : index
    %152 = vector.load %arg5[%c0_111, %c0_112, %c0_113, %c0_114] : memref<1x16x16x8xbf16, #tpu.memory_space<vmem>>, vector<1x16x16x8xbf16>
    tpu.vector_store %arg5[%c0_111, %c0_112, %c0_113, %c0_114], %151 {strides = array<i32>} : memref<1x16x16x8xbf16, #tpu.memory_space<vmem>>, vector<1x16x16x8xbf16>,
    return
  }
  func.func @transform_0(%arg0: i32) -> (i32, i32, i32, i32) {
    %c0_i32 = arith.constant 0 : i32
    %c0_i32_0 = arith.constant 0 : i32
    %c0_i32_1 = arith.constant 0 : i32
    %c0_i32_2 = arith.constant 0 : i32
    return %arg0, %c0_i32, %c0_i32_0, %c0_i32_1 : i32, i32, i32, i32
  }
  func.func @transform_1(%arg0: i32) -> (i32, i32, i32) {
    %c0_i32 = arith.constant 0 : i32
    %c0_i32_0 = arith.constant 0 : i32
    %c0_i32_1 = arith.constant 0 : i32
    %c0_i32_2 = arith.constant 0 : i32
    return %c0_i32, %c0_i32_0, %c0_i32_1 : i32, i32, i32
  }
  func.func @transform_2(%arg0: i32) -> (i32, i32) {
    %c0_i32 = arith.constant 0 : i32
    %c0_i32_0 = arith.constant 0 : i32
    %c0_i32_1 = arith.constant 0 : i32
    return %c0_i32, %c0_i32_0 : i32, i32
  }
  func.func @transform_3(%arg0: i32) -> (i32, i32) {
    %c0_i32 = arith.constant 0 : i32
    %c0_i32_0 = arith.constant 0 : i32
    %c0_i32_1 = arith.constant 0 : i32
    return %c0_i32, %c0_i32_0 : i32, i32
  }
  func.func @transform_4(%arg0: i32) -> (i32, i32, i32, i32) {
    %c0_i32 = arith.constant 0 : i32
    %c0_i32_0 = arith.constant 0 : i32
    %c0_i32_1 = arith.constant 0 : i32
    %c0_i32_2 = arith.constant 0 : i32
    return %arg0, %c0_i32, %c0_i32_0, %c0_i32_1 : i32, i32, i32, i32
  }
  func.func @transform_5(%arg0: i32) -> (i32, i32, i32) {
    %c0_i32 = arith.constant 0 : i32
    %c0_i32_0 = arith.constant 0 : i32
    %c0_i32_1 = arith.constant 0 : i32
    return %arg0, %c0_i32, %c0_i32_0 : i32, i32, i32
  }
  func.func @transform_6(%arg0: i32) -> (i32, i32, i32) {
    %c0_i32 = arith.constant 0 : i32
    %c0_i32_0 = arith.constant 0 : i32
    %c0_i32_1 = arith.constant 0 : i32
    return %arg0, %c0_i32, %c0_i32_0 : i32, i32, i32
  }
}

module attributes {stable_mosaic.version = 11 : i64} {
  func.func @_conv3x3_stats_kernel(%arg0: i32, %arg1: memref<1x16x16x8xbf16, #tpu.memory_space<vmem>>, %arg2: memref<9x128x128xbf16, #tpu.memory_space<vmem>>, %arg3: memref<1x8xf32, #tpu.memory_space<vmem>>, %arg4: memref<1x8xf32, #tpu.memory_space<vmem>>, %arg5: memref<1x16x16x8xbf16, #tpu.memory_space<vmem>>, %arg6: memref<1x1x128xf32, #tpu.memory_space<vmem>>, %arg7: memref<1x1x128xf32, #tpu.memory_space<vmem>>, %arg8: memref<328x128xbf16, #tpu.memory_space<vmem>>, %arg9: memref<288x128xf32, #tpu.memory_space<vmem>>) attributes {dimension_semantics = [#tpu.dimension_semantics<parallel>], iteration_bounds = array<i64: 2>, scalar_prefetch = 0 : i64, scratch_operands = 2 : i64, tpu.core_type = #tpu.core_type<tc>, window_params = [{transform_indices = @transform_0, window_bounds = array<i64: 1, 16, 16, 8>}, {pipeline_mode = #tpu.pipeline_mode<synchronous>, transform_indices = @transform_1, window_bounds = array<i64: 9, 128, 128>}, {pipeline_mode = #tpu.pipeline_mode<synchronous>, transform_indices = @transform_2, window_bounds = array<i64: 1, 8>}, {pipeline_mode = #tpu.pipeline_mode<synchronous>, transform_indices = @transform_3, window_bounds = array<i64: 1, 8>}, {transform_indices = @transform_4, window_bounds = array<i64: 1, 16, 16, 8>}, {transform_indices = @transform_5, window_bounds = array<i64: 1, 1, 128>}, {transform_indices = @transform_6, window_bounds = array<i64: 1, 1, 128>}]} {
    %cst = arith.constant 0.000000e+00 : bf16
    %0 = vector.broadcast %cst : bf16 to vector<328x128xbf16>
    %c0 = arith.constant 0 : index
    %c0_0 = arith.constant 0 : index
    %1 = vector.load %arg8[%c0, %c0_0] : memref<328x128xbf16, #tpu.memory_space<vmem>>, vector<328x128xbf16>
    tpu.vector_store %arg8[%c0, %c0_0], %0 {strides = array<i32>} : memref<328x128xbf16, #tpu.memory_space<vmem>>, vector<328x128xbf16>,
    %c0_1 = arith.constant 0 : index
    %c0_2 = arith.constant 0 : index
    %c0_3 = arith.constant 0 : index
    %c0_4 = arith.constant 0 : index
    %2 = vector.load %arg1[%c0_1, %c0_2, %c0_3, %c0_4] : memref<1x16x16x8xbf16, #tpu.memory_space<vmem>>, vector<1x16x16x8xbf16>
    %3 = vector.shape_cast %2 : vector<1x16x16x8xbf16> to vector<16x16x8xbf16>
    %4 = arith.extf %3 : vector<16x16x8xbf16> to vector<16x16x8xf32>
    %c0_5 = arith.constant 0 : index
    %c0_6 = arith.constant 0 : index
    %5 = vector.load %arg3[%c0_5, %c0_6] : memref<1x8xf32, #tpu.memory_space<vmem>>, vector<1x8xf32>
    %6 = vector.shape_cast %5 : vector<1x8xf32> to vector<1x1x8xf32>
    %7 = vector.broadcast %6 : vector<1x1x8xf32> to vector<16x16x8xf32>
    %8 = arith.mulf %4, %7 : vector<16x16x8xf32>
    %c0_7 = arith.constant 0 : index
    %c0_8 = arith.constant 0 : index
    %9 = vector.load %arg4[%c0_7, %c0_8] : memref<1x8xf32, #tpu.memory_space<vmem>>, vector<1x8xf32>
    %10 = vector.shape_cast %9 : vector<1x8xf32> to vector<1x1x8xf32>
    %11 = vector.broadcast %10 : vector<1x1x8xf32> to vector<16x16x8xf32>
    %12 = arith.addf %8, %11 : vector<16x16x8xf32>
    %cst_9 = arith.constant 0.000000e+00 : f32
    %13 = vector.broadcast %cst_9 : f32 to vector<16x16x8xf32>
    %14 = arith.subf %13, %12 : vector<16x16x8xf32>
    %15 = math.exp %14 : vector<16x16x8xf32>
    %cst_10 = arith.constant 1.000000e+00 : f32
    %16 = vector.broadcast %cst_10 : f32 to vector<16x16x8xf32>
    %17 = arith.addf %16, %15 : vector<16x16x8xf32>
    %18 = tpu.reciprocal %17 {approx = true} : vector<16x16x8xf32> -> vector<16x16x8xf32>
    %19 = arith.mulf %12, %18 : vector<16x16x8xf32>
    %20 = arith.truncf %19 : vector<16x16x8xf32> to vector<16x16x8xbf16>
    %21 = vector.extract_strided_slice %20 {offsets = [0, 0, 0], sizes = [1, 16, 8], strides = [1, 1, 1]} : vector<16x16x8xbf16> to vector<1x16x8xbf16>
    %22 = vector.shape_cast %21 : vector<1x16x8xbf16> to vector<16x8xbf16>
    %c19 = arith.constant 19 : index
    %c0_11 = arith.constant 0 : index
    %23 = vector.load %arg8[%c19, %c0_11] : memref<328x128xbf16, #tpu.memory_space<vmem>>, vector<16x8xbf16>
    tpu.vector_store %arg8[%c19, %c0_11], %22 {strides = array<i32>} : memref<328x128xbf16, #tpu.memory_space<vmem>>, vector<16x8xbf16>,
    %24 = vector.extract_strided_slice %20 {offsets = [1, 0, 0], sizes = [1, 16, 8], strides = [1, 1, 1]} : vector<16x16x8xbf16> to vector<1x16x8xbf16>
    %25 = vector.shape_cast %24 : vector<1x16x8xbf16> to vector<16x8xbf16>
    %c37 = arith.constant 37 : index
    %c0_12 = arith.constant 0 : index
    %26 = vector.load %arg8[%c37, %c0_12] : memref<328x128xbf16, #tpu.memory_space<vmem>>, vector<16x8xbf16>
    tpu.vector_store %arg8[%c37, %c0_12], %25 {strides = array<i32>} : memref<328x128xbf16, #tpu.memory_space<vmem>>, vector<16x8xbf16>,
    %27 = vector.extract_strided_slice %20 {offsets = [2, 0, 0], sizes = [1, 16, 8], strides = [1, 1, 1]} : vector<16x16x8xbf16> to vector<1x16x8xbf16>
    %28 = vector.shape_cast %27 : vector<1x16x8xbf16> to vector<16x8xbf16>
    %c55 = arith.constant 55 : index
    %c0_13 = arith.constant 0 : index
    %29 = vector.load %arg8[%c55, %c0_13] : memref<328x128xbf16, #tpu.memory_space<vmem>>, vector<16x8xbf16>
    tpu.vector_store %arg8[%c55, %c0_13], %28 {strides = array<i32>} : memref<328x128xbf16, #tpu.memory_space<vmem>>, vector<16x8xbf16>,
    %30 = vector.extract_strided_slice %20 {offsets = [3, 0, 0], sizes = [1, 16, 8], strides = [1, 1, 1]} : vector<16x16x8xbf16> to vector<1x16x8xbf16>
    %31 = vector.shape_cast %30 : vector<1x16x8xbf16> to vector<16x8xbf16>
    %c73 = arith.constant 73 : index
    %c0_14 = arith.constant 0 : index
    %32 = vector.load %arg8[%c73, %c0_14] : memref<328x128xbf16, #tpu.memory_space<vmem>>, vector<16x8xbf16>
    tpu.vector_store %arg8[%c73, %c0_14], %31 {strides = array<i32>} : memref<328x128xbf16, #tpu.memory_space<vmem>>, vector<16x8xbf16>,
    %33 = vector.extract_strided_slice %20 {offsets = [4, 0, 0], sizes = [1, 16, 8], strides = [1, 1, 1]} : vector<16x16x8xbf16> to vector<1x16x8xbf16>
    %34 = vector.shape_cast %33 : vector<1x16x8xbf16> to vector<16x8xbf16>
    %c91 = arith.constant 91 : index
    %c0_15 = arith.constant 0 : index
    %35 = vector.load %arg8[%c91, %c0_15] : memref<328x128xbf16, #tpu.memory_space<vmem>>, vector<16x8xbf16>
    tpu.vector_store %arg8[%c91, %c0_15], %34 {strides = array<i32>} : memref<328x128xbf16, #tpu.memory_space<vmem>>, vector<16x8xbf16>,
    %36 = vector.extract_strided_slice %20 {offsets = [5, 0, 0], sizes = [1, 16, 8], strides = [1, 1, 1]} : vector<16x16x8xbf16> to vector<1x16x8xbf16>
    %37 = vector.shape_cast %36 : vector<1x16x8xbf16> to vector<16x8xbf16>
    %c109 = arith.constant 109 : index
    %c0_16 = arith.constant 0 : index
    %38 = vector.load %arg8[%c109, %c0_16] : memref<328x128xbf16, #tpu.memory_space<vmem>>, vector<16x8xbf16>
    tpu.vector_store %arg8[%c109, %c0_16], %37 {strides = array<i32>} : memref<328x128xbf16, #tpu.memory_space<vmem>>, vector<16x8xbf16>,
    %39 = vector.extract_strided_slice %20 {offsets = [6, 0, 0], sizes = [1, 16, 8], strides = [1, 1, 1]} : vector<16x16x8xbf16> to vector<1x16x8xbf16>
    %40 = vector.shape_cast %39 : vector<1x16x8xbf16> to vector<16x8xbf16>
    %c127 = arith.constant 127 : index
    %c0_17 = arith.constant 0 : index
    %41 = vector.load %arg8[%c127, %c0_17] : memref<328x128xbf16, #tpu.memory_space<vmem>>, vector<16x8xbf16>
    tpu.vector_store %arg8[%c127, %c0_17], %40 {strides = array<i32>} : memref<328x128xbf16, #tpu.memory_space<vmem>>, vector<16x8xbf16>,
    %42 = vector.extract_strided_slice %20 {offsets = [7, 0, 0], sizes = [1, 16, 8], strides = [1, 1, 1]} : vector<16x16x8xbf16> to vector<1x16x8xbf16>
    %43 = vector.shape_cast %42 : vector<1x16x8xbf16> to vector<16x8xbf16>
    %c145 = arith.constant 145 : index
    %c0_18 = arith.constant 0 : index
    %44 = vector.load %arg8[%c145, %c0_18] : memref<328x128xbf16, #tpu.memory_space<vmem>>, vector<16x8xbf16>
    tpu.vector_store %arg8[%c145, %c0_18], %43 {strides = array<i32>} : memref<328x128xbf16, #tpu.memory_space<vmem>>, vector<16x8xbf16>,
    %45 = vector.extract_strided_slice %20 {offsets = [8, 0, 0], sizes = [1, 16, 8], strides = [1, 1, 1]} : vector<16x16x8xbf16> to vector<1x16x8xbf16>
    %46 = vector.shape_cast %45 : vector<1x16x8xbf16> to vector<16x8xbf16>
    %c163 = arith.constant 163 : index
    %c0_19 = arith.constant 0 : index
    %47 = vector.load %arg8[%c163, %c0_19] : memref<328x128xbf16, #tpu.memory_space<vmem>>, vector<16x8xbf16>
    tpu.vector_store %arg8[%c163, %c0_19], %46 {strides = array<i32>} : memref<328x128xbf16, #tpu.memory_space<vmem>>, vector<16x8xbf16>,
    %48 = vector.extract_strided_slice %20 {offsets = [9, 0, 0], sizes = [1, 16, 8], strides = [1, 1, 1]} : vector<16x16x8xbf16> to vector<1x16x8xbf16>
    %49 = vector.shape_cast %48 : vector<1x16x8xbf16> to vector<16x8xbf16>
    %c181 = arith.constant 181 : index
    %c0_20 = arith.constant 0 : index
    %50 = vector.load %arg8[%c181, %c0_20] : memref<328x128xbf16, #tpu.memory_space<vmem>>, vector<16x8xbf16>
    tpu.vector_store %arg8[%c181, %c0_20], %49 {strides = array<i32>} : memref<328x128xbf16, #tpu.memory_space<vmem>>, vector<16x8xbf16>,
    %51 = vector.extract_strided_slice %20 {offsets = [10, 0, 0], sizes = [1, 16, 8], strides = [1, 1, 1]} : vector<16x16x8xbf16> to vector<1x16x8xbf16>
    %52 = vector.shape_cast %51 : vector<1x16x8xbf16> to vector<16x8xbf16>
    %c199 = arith.constant 199 : index
    %c0_21 = arith.constant 0 : index
    %53 = vector.load %arg8[%c199, %c0_21] : memref<328x128xbf16, #tpu.memory_space<vmem>>, vector<16x8xbf16>
    tpu.vector_store %arg8[%c199, %c0_21], %52 {strides = array<i32>} : memref<328x128xbf16, #tpu.memory_space<vmem>>, vector<16x8xbf16>,
    %54 = vector.extract_strided_slice %20 {offsets = [11, 0, 0], sizes = [1, 16, 8], strides = [1, 1, 1]} : vector<16x16x8xbf16> to vector<1x16x8xbf16>
    %55 = vector.shape_cast %54 : vector<1x16x8xbf16> to vector<16x8xbf16>
    %c217 = arith.constant 217 : index
    %c0_22 = arith.constant 0 : index
    %56 = vector.load %arg8[%c217, %c0_22] : memref<328x128xbf16, #tpu.memory_space<vmem>>, vector<16x8xbf16>
    tpu.vector_store %arg8[%c217, %c0_22], %55 {strides = array<i32>} : memref<328x128xbf16, #tpu.memory_space<vmem>>, vector<16x8xbf16>,
    %57 = vector.extract_strided_slice %20 {offsets = [12, 0, 0], sizes = [1, 16, 8], strides = [1, 1, 1]} : vector<16x16x8xbf16> to vector<1x16x8xbf16>
    %58 = vector.shape_cast %57 : vector<1x16x8xbf16> to vector<16x8xbf16>
    %c235 = arith.constant 235 : index
    %c0_23 = arith.constant 0 : index
    %59 = vector.load %arg8[%c235, %c0_23] : memref<328x128xbf16, #tpu.memory_space<vmem>>, vector<16x8xbf16>
    tpu.vector_store %arg8[%c235, %c0_23], %58 {strides = array<i32>} : memref<328x128xbf16, #tpu.memory_space<vmem>>, vector<16x8xbf16>,
    %60 = vector.extract_strided_slice %20 {offsets = [13, 0, 0], sizes = [1, 16, 8], strides = [1, 1, 1]} : vector<16x16x8xbf16> to vector<1x16x8xbf16>
    %61 = vector.shape_cast %60 : vector<1x16x8xbf16> to vector<16x8xbf16>
    %c253 = arith.constant 253 : index
    %c0_24 = arith.constant 0 : index
    %62 = vector.load %arg8[%c253, %c0_24] : memref<328x128xbf16, #tpu.memory_space<vmem>>, vector<16x8xbf16>
    tpu.vector_store %arg8[%c253, %c0_24], %61 {strides = array<i32>} : memref<328x128xbf16, #tpu.memory_space<vmem>>, vector<16x8xbf16>,
    %63 = vector.extract_strided_slice %20 {offsets = [14, 0, 0], sizes = [1, 16, 8], strides = [1, 1, 1]} : vector<16x16x8xbf16> to vector<1x16x8xbf16>
    %64 = vector.shape_cast %63 : vector<1x16x8xbf16> to vector<16x8xbf16>
    %c271 = arith.constant 271 : index
    %c0_25 = arith.constant 0 : index
    %65 = vector.load %arg8[%c271, %c0_25] : memref<328x128xbf16, #tpu.memory_space<vmem>>, vector<16x8xbf16>
    tpu.vector_store %arg8[%c271, %c0_25], %64 {strides = array<i32>} : memref<328x128xbf16, #tpu.memory_space<vmem>>, vector<16x8xbf16>,
    %66 = vector.extract_strided_slice %20 {offsets = [15, 0, 0], sizes = [1, 16, 8], strides = [1, 1, 1]} : vector<16x16x8xbf16> to vector<1x16x8xbf16>
    %67 = vector.shape_cast %66 : vector<1x16x8xbf16> to vector<16x8xbf16>
    %c289 = arith.constant 289 : index
    %c0_26 = arith.constant 0 : index
    %68 = vector.load %arg8[%c289, %c0_26] : memref<328x128xbf16, #tpu.memory_space<vmem>>, vector<16x8xbf16>
    tpu.vector_store %arg8[%c289, %c0_26], %67 {strides = array<i32>} : memref<328x128xbf16, #tpu.memory_space<vmem>>, vector<16x8xbf16>,
    %c0_27 = arith.constant 0 : index
    %c0_28 = arith.constant 0 : index
    %69 = vector.load %arg8[%c0_27, %c0_28] : memref<328x128xbf16, #tpu.memory_space<vmem>>, vector<288x128xbf16>
    %c0_29 = arith.constant 0 : index
    %c0_30 = arith.constant 0 : index
    %c0_31 = arith.constant 0 : index
    %70 = vector.load %arg2[%c0_29, %c0_30, %c0_31] : memref<9x128x128xbf16, #tpu.memory_space<vmem>>, vector<1x128x128xbf16>
    %71 = vector.shape_cast %70 : vector<1x128x128xbf16> to vector<128x128xbf16>
    %cst_32 = arith.constant dense<0.000000e+00> : vector<288x128xf32>
    %72 = tpu.matmul %69, %71, %cst_32 {dimension_numbers = #tpu.dot_dimension_numbers<[1], [0], [0], [1], [0, 0, 1, 1], [], []>} : vector<288x128xbf16>, vector<128x128xbf16>, vector<288x128xf32> -> vector<288x128xf32>
    %c0_33 = arith.constant 0 : index
    %c0_34 = arith.constant 0 : index
    %73 = vector.load %arg9[%c0_33, %c0_34] : memref<288x128xf32, #tpu.memory_space<vmem>>, vector<288x128xf32>
    tpu.vector_store %arg9[%c0_33, %c0_34], %72 {strides = array<i32>} : memref<288x128xf32, #tpu.memory_space<vmem>>, vector<288x128xf32>,
    %c1 = arith.constant 1 : index
    %c0_35 = arith.constant 0 : index
    %74 = vector.load %arg8[%c1, %c0_35] : memref<328x128xbf16, #tpu.memory_space<vmem>>, vector<288x128xbf16>
    %c1_36 = arith.constant 1 : index
    %c0_37 = arith.constant 0 : index
    %c0_38 = arith.constant 0 : index
    %75 = vector.load %arg2[%c1_36, %c0_37, %c0_38] : memref<9x128x128xbf16, #tpu.memory_space<vmem>>, vector<1x128x128xbf16>
    %76 = vector.shape_cast %75 : vector<1x128x128xbf16> to vector<128x128xbf16>
    %cst_39 = arith.constant dense<0.000000e+00> : vector<288x128xf32>
    %77 = tpu.matmul %74, %76, %cst_39 {dimension_numbers = #tpu.dot_dimension_numbers<[1], [0], [0], [1], [0, 0, 1, 1], [], []>} : vector<288x128xbf16>, vector<128x128xbf16>, vector<288x128xf32> -> vector<288x128xf32>
    %c0_40 = arith.constant 0 : index
    %c0_41 = arith.constant 0 : index
    %78 = vector.load %arg9[%c0_40, %c0_41] : memref<288x128xf32, #tpu.memory_space<vmem>>, vector<288x128xf32>
    %79 = arith.addf %78, %77 : vector<288x128xf32>
    %c0_42 = arith.constant 0 : index
    %c0_43 = arith.constant 0 : index
    %80 = vector.load %arg9[%c0_42, %c0_43] : memref<288x128xf32, #tpu.memory_space<vmem>>, vector<288x128xf32>
    tpu.vector_store %arg9[%c0_42, %c0_43], %79 {strides = array<i32>} : memref<288x128xf32, #tpu.memory_space<vmem>>, vector<288x128xf32>,
    %c2 = arith.constant 2 : index
    %c0_44 = arith.constant 0 : index
    %81 = vector.load %arg8[%c2, %c0_44] : memref<328x128xbf16, #tpu.memory_space<vmem>>, vector<288x128xbf16>
    %c2_45 = arith.constant 2 : index
    %c0_46 = arith.constant 0 : index
    %c0_47 = arith.constant 0 : index
    %82 = vector.load %arg2[%c2_45, %c0_46, %c0_47] : memref<9x128x128xbf16, #tpu.memory_space<vmem>>, vector<1x128x128xbf16>
    %83 = vector.shape_cast %82 : vector<1x128x128xbf16> to vector<128x128xbf16>
    %cst_48 = arith.constant dense<0.000000e+00> : vector<288x128xf32>
    %84 = tpu.matmul %81, %83, %cst_48 {dimension_numbers = #tpu.dot_dimension_numbers<[1], [0], [0], [1], [0, 0, 1, 1], [], []>} : vector<288x128xbf16>, vector<128x128xbf16>, vector<288x128xf32> -> vector<288x128xf32>
    %c0_49 = arith.constant 0 : index
    %c0_50 = arith.constant 0 : index
    %85 = vector.load %arg9[%c0_49, %c0_50] : memref<288x128xf32, #tpu.memory_space<vmem>>, vector<288x128xf32>
    %86 = arith.addf %85, %84 : vector<288x128xf32>
    %c0_51 = arith.constant 0 : index
    %c0_52 = arith.constant 0 : index
    %87 = vector.load %arg9[%c0_51, %c0_52] : memref<288x128xf32, #tpu.memory_space<vmem>>, vector<288x128xf32>
    tpu.vector_store %arg9[%c0_51, %c0_52], %86 {strides = array<i32>} : memref<288x128xf32, #tpu.memory_space<vmem>>, vector<288x128xf32>,
    %c18 = arith.constant 18 : index
    %c0_53 = arith.constant 0 : index
    %88 = vector.load %arg8[%c18, %c0_53] : memref<328x128xbf16, #tpu.memory_space<vmem>>, vector<288x128xbf16>
    %c3 = arith.constant 3 : index
    %c0_54 = arith.constant 0 : index
    %c0_55 = arith.constant 0 : index
    %89 = vector.load %arg2[%c3, %c0_54, %c0_55] : memref<9x128x128xbf16, #tpu.memory_space<vmem>>, vector<1x128x128xbf16>
    %90 = vector.shape_cast %89 : vector<1x128x128xbf16> to vector<128x128xbf16>
    %cst_56 = arith.constant dense<0.000000e+00> : vector<288x128xf32>
    %91 = tpu.matmul %88, %90, %cst_56 {dimension_numbers = #tpu.dot_dimension_numbers<[1], [0], [0], [1], [0, 0, 1, 1], [], []>} : vector<288x128xbf16>, vector<128x128xbf16>, vector<288x128xf32> -> vector<288x128xf32>
    %c0_57 = arith.constant 0 : index
    %c0_58 = arith.constant 0 : index
    %92 = vector.load %arg9[%c0_57, %c0_58] : memref<288x128xf32, #tpu.memory_space<vmem>>, vector<288x128xf32>
    %93 = arith.addf %92, %91 : vector<288x128xf32>
    %c0_59 = arith.constant 0 : index
    %c0_60 = arith.constant 0 : index
    %94 = vector.load %arg9[%c0_59, %c0_60] : memref<288x128xf32, #tpu.memory_space<vmem>>, vector<288x128xf32>
    tpu.vector_store %arg9[%c0_59, %c0_60], %93 {strides = array<i32>} : memref<288x128xf32, #tpu.memory_space<vmem>>, vector<288x128xf32>,
    %c19_61 = arith.constant 19 : index
    %c0_62 = arith.constant 0 : index
    %95 = vector.load %arg8[%c19_61, %c0_62] : memref<328x128xbf16, #tpu.memory_space<vmem>>, vector<288x128xbf16>
    %c4 = arith.constant 4 : index
    %c0_63 = arith.constant 0 : index
    %c0_64 = arith.constant 0 : index
    %96 = vector.load %arg2[%c4, %c0_63, %c0_64] : memref<9x128x128xbf16, #tpu.memory_space<vmem>>, vector<1x128x128xbf16>
    %97 = vector.shape_cast %96 : vector<1x128x128xbf16> to vector<128x128xbf16>
    %cst_65 = arith.constant dense<0.000000e+00> : vector<288x128xf32>
    %98 = tpu.matmul %95, %97, %cst_65 {dimension_numbers = #tpu.dot_dimension_numbers<[1], [0], [0], [1], [0, 0, 1, 1], [], []>} : vector<288x128xbf16>, vector<128x128xbf16>, vector<288x128xf32> -> vector<288x128xf32>
    %c0_66 = arith.constant 0 : index
    %c0_67 = arith.constant 0 : index
    %99 = vector.load %arg9[%c0_66, %c0_67] : memref<288x128xf32, #tpu.memory_space<vmem>>, vector<288x128xf32>
    %100 = arith.addf %99, %98 : vector<288x128xf32>
    %c0_68 = arith.constant 0 : index
    %c0_69 = arith.constant 0 : index
    %101 = vector.load %arg9[%c0_68, %c0_69] : memref<288x128xf32, #tpu.memory_space<vmem>>, vector<288x128xf32>
    tpu.vector_store %arg9[%c0_68, %c0_69], %100 {strides = array<i32>} : memref<288x128xf32, #tpu.memory_space<vmem>>, vector<288x128xf32>,
    %c20 = arith.constant 20 : index
    %c0_70 = arith.constant 0 : index
    %102 = vector.load %arg8[%c20, %c0_70] : memref<328x128xbf16, #tpu.memory_space<vmem>>, vector<288x128xbf16>
    %c5 = arith.constant 5 : index
    %c0_71 = arith.constant 0 : index
    %c0_72 = arith.constant 0 : index
    %103 = vector.load %arg2[%c5, %c0_71, %c0_72] : memref<9x128x128xbf16, #tpu.memory_space<vmem>>, vector<1x128x128xbf16>
    %104 = vector.shape_cast %103 : vector<1x128x128xbf16> to vector<128x128xbf16>
    %cst_73 = arith.constant dense<0.000000e+00> : vector<288x128xf32>
    %105 = tpu.matmul %102, %104, %cst_73 {dimension_numbers = #tpu.dot_dimension_numbers<[1], [0], [0], [1], [0, 0, 1, 1], [], []>} : vector<288x128xbf16>, vector<128x128xbf16>, vector<288x128xf32> -> vector<288x128xf32>
    %c0_74 = arith.constant 0 : index
    %c0_75 = arith.constant 0 : index
    %106 = vector.load %arg9[%c0_74, %c0_75] : memref<288x128xf32, #tpu.memory_space<vmem>>, vector<288x128xf32>
    %107 = arith.addf %106, %105 : vector<288x128xf32>
    %c0_76 = arith.constant 0 : index
    %c0_77 = arith.constant 0 : index
    %108 = vector.load %arg9[%c0_76, %c0_77] : memref<288x128xf32, #tpu.memory_space<vmem>>, vector<288x128xf32>
    tpu.vector_store %arg9[%c0_76, %c0_77], %107 {strides = array<i32>} : memref<288x128xf32, #tpu.memory_space<vmem>>, vector<288x128xf32>,
    %c36 = arith.constant 36 : index
    %c0_78 = arith.constant 0 : index
    %109 = vector.load %arg8[%c36, %c0_78] : memref<328x128xbf16, #tpu.memory_space<vmem>>, vector<288x128xbf16>
    %c6 = arith.constant 6 : index
    %c0_79 = arith.constant 0 : index
    %c0_80 = arith.constant 0 : index
    %110 = vector.load %arg2[%c6, %c0_79, %c0_80] : memref<9x128x128xbf16, #tpu.memory_space<vmem>>, vector<1x128x128xbf16>
    %111 = vector.shape_cast %110 : vector<1x128x128xbf16> to vector<128x128xbf16>
    %cst_81 = arith.constant dense<0.000000e+00> : vector<288x128xf32>
    %112 = tpu.matmul %109, %111, %cst_81 {dimension_numbers = #tpu.dot_dimension_numbers<[1], [0], [0], [1], [0, 0, 1, 1], [], []>} : vector<288x128xbf16>, vector<128x128xbf16>, vector<288x128xf32> -> vector<288x128xf32>
    %c0_82 = arith.constant 0 : index
    %c0_83 = arith.constant 0 : index
    %113 = vector.load %arg9[%c0_82, %c0_83] : memref<288x128xf32, #tpu.memory_space<vmem>>, vector<288x128xf32>
    %114 = arith.addf %113, %112 : vector<288x128xf32>
    %c0_84 = arith.constant 0 : index
    %c0_85 = arith.constant 0 : index
    %115 = vector.load %arg9[%c0_84, %c0_85] : memref<288x128xf32, #tpu.memory_space<vmem>>, vector<288x128xf32>
    tpu.vector_store %arg9[%c0_84, %c0_85], %114 {strides = array<i32>} : memref<288x128xf32, #tpu.memory_space<vmem>>, vector<288x128xf32>,
    %c37_86 = arith.constant 37 : index
    %c0_87 = arith.constant 0 : index
    %116 = vector.load %arg8[%c37_86, %c0_87] : memref<328x128xbf16, #tpu.memory_space<vmem>>, vector<288x128xbf16>
    %c7 = arith.constant 7 : index
    %c0_88 = arith.constant 0 : index
    %c0_89 = arith.constant 0 : index
    %117 = vector.load %arg2[%c7, %c0_88, %c0_89] : memref<9x128x128xbf16, #tpu.memory_space<vmem>>, vector<1x128x128xbf16>
    %118 = vector.shape_cast %117 : vector<1x128x128xbf16> to vector<128x128xbf16>
    %cst_90 = arith.constant dense<0.000000e+00> : vector<288x128xf32>
    %119 = tpu.matmul %116, %118, %cst_90 {dimension_numbers = #tpu.dot_dimension_numbers<[1], [0], [0], [1], [0, 0, 1, 1], [], []>} : vector<288x128xbf16>, vector<128x128xbf16>, vector<288x128xf32> -> vector<288x128xf32>
    %c0_91 = arith.constant 0 : index
    %c0_92 = arith.constant 0 : index
    %120 = vector.load %arg9[%c0_91, %c0_92] : memref<288x128xf32, #tpu.memory_space<vmem>>, vector<288x128xf32>
    %121 = arith.addf %120, %119 : vector<288x128xf32>
    %c0_93 = arith.constant 0 : index
    %c0_94 = arith.constant 0 : index
    %122 = vector.load %arg9[%c0_93, %c0_94] : memref<288x128xf32, #tpu.memory_space<vmem>>, vector<288x128xf32>
    tpu.vector_store %arg9[%c0_93, %c0_94], %121 {strides = array<i32>} : memref<288x128xf32, #tpu.memory_space<vmem>>, vector<288x128xf32>,
    %c38 = arith.constant 38 : index
    %c0_95 = arith.constant 0 : index
    %123 = vector.load %arg8[%c38, %c0_95] : memref<328x128xbf16, #tpu.memory_space<vmem>>, vector<288x128xbf16>
    %c8 = arith.constant 8 : index
    %c0_96 = arith.constant 0 : index
    %c0_97 = arith.constant 0 : index
    %124 = vector.load %arg2[%c8, %c0_96, %c0_97] : memref<9x128x128xbf16, #tpu.memory_space<vmem>>, vector<1x128x128xbf16>
    %125 = vector.shape_cast %124 : vector<1x128x128xbf16> to vector<128x128xbf16>
    %cst_98 = arith.constant dense<0.000000e+00> : vector<288x128xf32>
    %126 = tpu.matmul %123, %125, %cst_98 {dimension_numbers = #tpu.dot_dimension_numbers<[1], [0], [0], [1], [0, 0, 1, 1], [], []>} : vector<288x128xbf16>, vector<128x128xbf16>, vector<288x128xf32> -> vector<288x128xf32>
    %c0_99 = arith.constant 0 : index
    %c0_100 = arith.constant 0 : index
    %127 = vector.load %arg9[%c0_99, %c0_100] : memref<288x128xf32, #tpu.memory_space<vmem>>, vector<288x128xf32>
    %128 = arith.addf %127, %126 : vector<288x128xf32>
    %c0_101 = arith.constant 0 : index
    %c0_102 = arith.constant 0 : index
    %129 = vector.load %arg9[%c0_101, %c0_102] : memref<288x128xf32, #tpu.memory_space<vmem>>, vector<288x128xf32>
    tpu.vector_store %arg9[%c0_101, %c0_102], %128 {strides = array<i32>} : memref<288x128xf32, #tpu.memory_space<vmem>>, vector<288x128xf32>,
    %130 = tpu.iota {dimensions = array<i32: 0>} : vector<288x1xi32>
    %c18_i32 = arith.constant 18 : i32
    %c0_i32 = arith.constant 0 : i32
    %131 = arith.cmpi eq, %c18_i32, %c0_i32 : i32
    %c1_i32 = arith.constant 1 : i32
    %132 = arith.select %131, %c1_i32, %c18_i32 : i32
    %133 = vector.broadcast %132 : i32 to vector<288x1xi32>
    %134 = arith.remsi %130, %133 : vector<288x1xi32>
    %c0_i32_103 = arith.constant 0 : i32
    %135 = vector.broadcast %c0_i32_103 : i32 to vector<288x1xi32>
    %136 = arith.cmpi ne, %134, %135 : vector<288x1xi32>
    %c0_i32_104 = arith.constant 0 : i32
    %137 = vector.broadcast %c0_i32_104 : i32 to vector<288x1xi32>
    %138 = arith.cmpi slt, %134, %137 : vector<288x1xi32>
    %c0_i32_105 = arith.constant 0 : i32
    %139 = arith.cmpi slt, %132, %c0_i32_105 : i32
    %140 = vector.broadcast %139 : i1 to vector<288x1xi1>
    %141 = vector.broadcast %140 : vector<288x1xi1> to vector<288x1xi1>
    %142 = arith.xori %138, %141 : vector<288x1xi1>
    %143 = arith.andi %142, %136 : vector<288x1xi1>
    %144 = vector.broadcast %132 : i32 to vector<288x1xi32>
    %145 = arith.addi %134, %144 : vector<288x1xi32>
    %146 = arith.select %143, %145, %134 : vector<288x1xi1>, vector<288x1xi32>
    %c16_i32 = arith.constant 16 : i32
    %147 = vector.broadcast %c16_i32 : i32 to vector<288x1xi32>
    %148 = arith.cmpi slt, %146, %147 : vector<288x1xi32>
    %c0_106 = arith.constant 0 : index
    %c0_107 = arith.constant 0 : index
    %149 = vector.load %arg9[%c0_106, %c0_107] : memref<288x128xf32, #tpu.memory_space<vmem>>, vector<288x128xf32>
    %cst_108 = arith.constant 0.000000e+00 : f32
    %150 = vector.shape_cast %148 : vector<288x1xi1> to vector<288x1xi1>
    %151 = vector.broadcast %150 : vector<288x1xi1> to vector<288x128xi1>
    %152 = vector.broadcast %cst_108 : f32 to vector<288x128xf32>
    %153 = arith.select %151, %149, %152 : vector<288x128xi1>, vector<288x128xf32>
    %154 = arith.truncf %153 : vector<288x128xf32> to vector<288x128xbf16>
    %155 = arith.extf %154 : vector<288x128xbf16> to vector<288x128xf32>
    %cst_109 = arith.constant dense<0.000000e+00> : vector<128xf32>
    %156 = vector.multi_reduction <add>, %155, %cst_109 [0] : vector<288x128xf32> to vector<128xf32>
    %157 = vector.shape_cast %156 : vector<128xf32> to vector<1x128xf32>
    %158 = vector.shape_cast %157 : vector<1x128xf32> to vector<1x1x128xf32>
    %c0_110 = arith.constant 0 : index
    %c0_111 = arith.constant 0 : index
    %c0_112 = arith.constant 0 : index
    %159 = vector.load %arg6[%c0_110, %c0_111, %c0_112] : memref<1x1x128xf32, #tpu.memory_space<vmem>>, vector<1x1x128xf32>
    tpu.vector_store %arg6[%c0_110, %c0_111, %c0_112], %158 {strides = array<i32>} : memref<1x1x128xf32, #tpu.memory_space<vmem>>, vector<1x1x128xf32>,
    %160 = arith.mulf %155, %155 : vector<288x128xf32>
    %cst_113 = arith.constant dense<0.000000e+00> : vector<128xf32>
    %161 = vector.multi_reduction <add>, %160, %cst_113 [0] : vector<288x128xf32> to vector<128xf32>
    %162 = vector.shape_cast %161 : vector<128xf32> to vector<1x128xf32>
    %163 = vector.shape_cast %162 : vector<1x128xf32> to vector<1x1x128xf32>
    %c0_114 = arith.constant 0 : index
    %c0_115 = arith.constant 0 : index
    %c0_116 = arith.constant 0 : index
    %164 = vector.load %arg7[%c0_114, %c0_115, %c0_116] : memref<1x1x128xf32, #tpu.memory_space<vmem>>, vector<1x1x128xf32>
    tpu.vector_store %arg7[%c0_114, %c0_115, %c0_116], %163 {strides = array<i32>} : memref<1x1x128xf32, #tpu.memory_space<vmem>>, vector<1x1x128xf32>,
    %165 = vector.shape_cast %154 : vector<288x128xbf16> to vector<16x18x128xbf16>
    %166 = vector.extract_strided_slice %165 {offsets = [0, 0, 0], sizes = [16, 16, 8], strides = [1, 1, 1]} : vector<16x18x128xbf16> to vector<16x16x8xbf16>
    %167 = vector.shape_cast %166 : vector<16x16x8xbf16> to vector<1x16x16x8xbf16>
    %c0_117 = arith.constant 0 : index
    %c0_118 = arith.constant 0 : index
    %c0_119 = arith.constant 0 : index
    %c0_120 = arith.constant 0 : index
    %168 = vector.load %arg5[%c0_117, %c0_118, %c0_119, %c0_120] : memref<1x16x16x8xbf16, #tpu.memory_space<vmem>>, vector<1x16x16x8xbf16>
    tpu.vector_store %arg5[%c0_117, %c0_118, %c0_119, %c0_120], %167 {strides = array<i32>} : memref<1x16x16x8xbf16, #tpu.memory_space<vmem>>, vector<1x16x16x8xbf16>,
    return
  }
  func.func @transform_0(%arg0: i32) -> (i32, i32, i32, i32) {
    %c0_i32 = arith.constant 0 : i32
    %c0_i32_0 = arith.constant 0 : i32
    %c0_i32_1 = arith.constant 0 : i32
    %c0_i32_2 = arith.constant 0 : i32
    return %arg0, %c0_i32, %c0_i32_0, %c0_i32_1 : i32, i32, i32, i32
  }
  func.func @transform_1(%arg0: i32) -> (i32, i32, i32) {
    %c0_i32 = arith.constant 0 : i32
    %c0_i32_0 = arith.constant 0 : i32
    %c0_i32_1 = arith.constant 0 : i32
    %c0_i32_2 = arith.constant 0 : i32
    return %c0_i32, %c0_i32_0, %c0_i32_1 : i32, i32, i32
  }
  func.func @transform_2(%arg0: i32) -> (i32, i32) {
    %c0_i32 = arith.constant 0 : i32
    %c0_i32_0 = arith.constant 0 : i32
    %c0_i32_1 = arith.constant 0 : i32
    return %c0_i32, %c0_i32_0 : i32, i32
  }
  func.func @transform_3(%arg0: i32) -> (i32, i32) {
    %c0_i32 = arith.constant 0 : i32
    %c0_i32_0 = arith.constant 0 : i32
    %c0_i32_1 = arith.constant 0 : i32
    return %c0_i32, %c0_i32_0 : i32, i32
  }
  func.func @transform_4(%arg0: i32) -> (i32, i32, i32, i32) {
    %c0_i32 = arith.constant 0 : i32
    %c0_i32_0 = arith.constant 0 : i32
    %c0_i32_1 = arith.constant 0 : i32
    %c0_i32_2 = arith.constant 0 : i32
    return %arg0, %c0_i32, %c0_i32_0, %c0_i32_1 : i32, i32, i32, i32
  }
  func.func @transform_5(%arg0: i32) -> (i32, i32, i32) {
    %c0_i32 = arith.constant 0 : i32
    %c0_i32_0 = arith.constant 0 : i32
    %c0_i32_1 = arith.constant 0 : i32
    return %arg0, %c0_i32, %c0_i32_0 : i32, i32, i32
  }
  func.func @transform_6(%arg0: i32) -> (i32, i32, i32) {
    %c0_i32 = arith.constant 0 : i32
    %c0_i32_0 = arith.constant 0 : i32
    %c0_i32_1 = arith.constant 0 : i32
    return %arg0, %c0_i32, %c0_i32_0 : i32, i32, i32
  }
}

module attributes {stable_mosaic.version = 11 : i64} {
  func.func @_bn_res_silu_kernel(%arg0: i32, %arg1: memref<32x128xbf16, #tpu.memory_space<vmem>>, %arg2: memref<32x128xf32, #tpu.memory_space<vmem>>, %arg3: memref<1x128xf32, #tpu.memory_space<vmem>>, %arg4: memref<1x128xf32, #tpu.memory_space<vmem>>, %arg5: memref<32x128xf32, #tpu.memory_space<vmem>>) attributes {dimension_semantics = [#tpu.dimension_semantics<parallel>], iteration_bounds = array<i64: 1>, scalar_prefetch = 0 : i64, scratch_operands = 0 : i64, tpu.core_type = #tpu.core_type<tc>, window_params = [{transform_indices = @transform_0, window_bounds = array<i64: 32, 128>}, {transform_indices = @transform_1, window_bounds = array<i64: 32, 128>}, {pipeline_mode = #tpu.pipeline_mode<synchronous>, transform_indices = @transform_2, window_bounds = array<i64: 1, 128>}, {pipeline_mode = #tpu.pipeline_mode<synchronous>, transform_indices = @transform_3, window_bounds = array<i64: 1, 128>}, {transform_indices = @transform_4, window_bounds = array<i64: 32, 128>}]} {
    %c0 = arith.constant 0 : index
    %c0_0 = arith.constant 0 : index
    %0 = vector.load %arg1[%c0, %c0_0] : memref<32x128xbf16, #tpu.memory_space<vmem>>, vector<32x128xbf16>
    %1 = arith.extf %0 : vector<32x128xbf16> to vector<32x128xf32>
    %c0_1 = arith.constant 0 : index
    %c0_2 = arith.constant 0 : index
    %2 = vector.load %arg3[%c0_1, %c0_2] : memref<1x128xf32, #tpu.memory_space<vmem>>, vector<1x128xf32>
    %3 = vector.broadcast %2 : vector<1x128xf32> to vector<32x128xf32>
    %4 = arith.mulf %1, %3 : vector<32x128xf32>
    %c0_3 = arith.constant 0 : index
    %c0_4 = arith.constant 0 : index
    %5 = vector.load %arg4[%c0_3, %c0_4] : memref<1x128xf32, #tpu.memory_space<vmem>>, vector<1x128xf32>
    %6 = vector.broadcast %5 : vector<1x128xf32> to vector<32x128xf32>
    %7 = arith.addf %4, %6 : vector<32x128xf32>
    %c0_5 = arith.constant 0 : index
    %c0_6 = arith.constant 0 : index
    %8 = vector.load %arg2[%c0_5, %c0_6] : memref<32x128xf32, #tpu.memory_space<vmem>>, vector<32x128xf32>
    %9 = arith.addf %7, %8 : vector<32x128xf32>
    %cst = arith.constant 0.000000e+00 : f32
    %10 = vector.broadcast %cst : f32 to vector<32x128xf32>
    %11 = arith.subf %10, %9 : vector<32x128xf32>
    %12 = math.exp %11 : vector<32x128xf32>
    %cst_7 = arith.constant 1.000000e+00 : f32
    %13 = vector.broadcast %cst_7 : f32 to vector<32x128xf32>
    %14 = arith.addf %13, %12 : vector<32x128xf32>
    %15 = tpu.reciprocal %14 {approx = true} : vector<32x128xf32> -> vector<32x128xf32>
    %16 = arith.mulf %9, %15 : vector<32x128xf32>
    %c0_8 = arith.constant 0 : index
    %c0_9 = arith.constant 0 : index
    %17 = vector.load %arg5[%c0_8, %c0_9] : memref<32x128xf32, #tpu.memory_space<vmem>>, vector<32x128xf32>
    tpu.vector_store %arg5[%c0_8, %c0_9], %16 {strides = array<i32>} : memref<32x128xf32, #tpu.memory_space<vmem>>, vector<32x128xf32>,
    return
  }
  func.func @transform_0(%arg0: i32) -> (i32, i32) {
    %c0_i32 = arith.constant 0 : i32
    %c0_i32_0 = arith.constant 0 : i32
    return %arg0, %c0_i32 : i32, i32
  }
  func.func @transform_1(%arg0: i32) -> (i32, i32) {
    %c0_i32 = arith.constant 0 : i32
    %c0_i32_0 = arith.constant 0 : i32
    return %arg0, %c0_i32 : i32, i32
  }
  func.func @transform_2(%arg0: i32) -> (i32, i32) {
    %c0_i32 = arith.constant 0 : i32
    %c0_i32_0 = arith.constant 0 : i32
    %c0_i32_1 = arith.constant 0 : i32
    return %c0_i32, %c0_i32_0 : i32, i32
  }
  func.func @transform_3(%arg0: i32) -> (i32, i32) {
    %c0_i32 = arith.constant 0 : i32
    %c0_i32_0 = arith.constant 0 : i32
    %c0_i32_1 = arith.constant 0 : i32
    return %c0_i32, %c0_i32_0 : i32, i32
  }
  func.func @transform_4(%arg0: i32) -> (i32, i32) {
    %c0_i32 = arith.constant 0 : i32
    %c0_i32_0 = arith.constant 0 : i32
    return %arg0, %c0_i32 : i32, i32
  }
}

</mosaic_0001>

<bundles_post_ra>
// kernel: tile.10
= control target key start
LH: loop header
LB: loop body
LE: loop exit
PB: predicated region body
PF: predicated region fallthrough
CT: control target
= control target key end

     0   :  { %s28_s0 = inlined_call_operand.vmem [shape: f32[8], index: 0, kind: input, shape index: {}]   ;;  %s29_s1 = inlined_call_operand.vmem [shape: f32[16,8], index: 1, kind: output, shape index: {}]  }
   0x1   :  { %v4_v0 = vld [vmem:[%s28_s0] ss:$0 sm:$0xff] }
   0x2   :  { %5 = vst [vmem:[%s29_s1] sm:$0xff] %v4_v0  ;;  %8 = vst [vmem:[%s29_s1 + $0x8] sm:$0xff] %v4_v0 }

// kernel: tile.11
= control target key start
LH: loop header
LB: loop body
LE: loop exit
PB: predicated region body
PF: predicated region fallthrough
CT: control target
= control target key end

     0   :  { %s131_s10 = smov 120   ;;  %s132_s11 = smov 104   ;;  %vm3_vm0 = vcmask 64512   ;;  %vm9_vm1 = vcmask 1048512   ;;  %vm15_vm2 = vcmask 982912   ;;  %vm21_vm3 = vcmask 917312   ;;  %s207_s0 = inlined_call_operand.vmem [shape: f32[16,8], index: 0, kind: input, shape index: {}]   ;;  %s208_s1 = inlined_call_operand.vmem [shape: f32[1,128], index: 1, kind: output, shape index: {}]  }
   0x1   :  { %v101_v0 = vld [vmem:[%s207_s0 + $0xf] sm:$0x1]   ;;  %v103_v1 = vld [vmem:[%s207_s0 + $0xd] sm:$0x1]   ;;  %v102_v2 = vld [vmem:[%s207_s0 + $0xe] sm:$0x1]  }
   0x2   :  { %7 = vrot.lane.b32.xlu0 %v101_v0, %s131_s10  ;;  %19 = vrot.lane.b32.xlu1 %v103_v1, %s132_s11  ;;  %v104_v3 = vld [vmem:[%s207_s0 + $0xc] sm:$0x1]   ;;  %s133_s16 = smov 112   ;;  %s134_s17 = smov 96   ;;  %v105_v4 = vld [vmem:[%s207_s0 + $0xb] sm:$0x1]  }
   0x3   :  { %v106_v5 = vld [vmem:[%s207_s0 + $0xa] sm:$0x1]   ;;  %v2_v6 = vld [vmem:[%s207_s0] sm:$0x1]   ;;  %s135_s24 = smov 88   ;;  %s136_s25 = smov 80  }
   0x4   :  { %4 = vst.msk [vmem:[#allocation0] sm:$0x1] %vm3_vm0, %v2_v6   ;;  %v107_v7 = vld [vmem:[%s207_s0 + $0x9] sm:$0x1]   ;;  %v108_v8 = vld [vmem:[%s207_s0 + $0x8] sm:$0x1]  }
   0x5   :  { %s137_s30 = smov 72   ;;  %s138_s2 = smov 64   ;;  %v109_v9 = vld [vmem:[%s207_s0 + $0x7] sm:$0x1]   ;;  %v110_v10 = vld [vmem:[%s207_s0 + $0x6] sm:$0x1]  }
   0x6   :  { %13 = vrot.lane.b32.xlu0 %v102_v2, %s133_s16  ;;  %25 = vrot.lane.b32.xlu1 %v104_v3, %s134_s17  ;;  %s139_s7 = smov 56   ;;  %s140_s8 = smov 48   ;;  %v111_v11 = vld [vmem:[%s207_s0 + $0x5] sm:$0x1]   ;;  %v112_v12 = vld [vmem:[%s207_s0 + $0x4] sm:$0x1]  }
   0x7   :  { %s141_s13 = smov 40   ;;  %s142_s14 = smov 32   ;;  %v113_v13 = vld [vmem:[%s207_s0 + $0x3] sm:$0x1]   ;;  %v114_v14 = vld [vmem:[%s207_s0 + $0x2] sm:$0x1]  }
   0x8   :  { %s143_s19 = smov 24   ;;  %s144_s20 = smov 16   ;;  %v115_v15 = vld [vmem:[%s207_s0 + $0x1] sm:$0x1]   ;;  %vm27_vm4 = vcmask 851712   ;;  %vm33_vm5 = vcmask 786112  }
   0x9   :  { %s145_s0 = smov 8   ;;  %vm39_vm6 = vcmask 720512   ;;  %vm45_vm7 = vcmask 654912   ;;  %vm51_vm8 = vcmask 589312   ;;  %vm57_vm9 = vcmask 523712  }
   0xa   :  { %31 = vrot.lane.b32.xlu0 %v105_v4, %s135_s24  ;;  %37 = vrot.lane.b32.xlu1 %v106_v5, %s136_s25  ;;  %vm63_vm10 = vcmask 458112   ;;  %vm69_vm11 = vcmask 392512   ;;  %vm75_vm12 = vcmask 326912   ;;  %vm81_vm13 = vcmask 261312  }
   0xb   :  { %vm87_vm14 = vcmask 195712   ;;  %vm93_vm15 = vcmask 130112  }
   0xe   :  { %43 = vrot.lane.b32.xlu0 %v107_v7, %s137_s30  ;;  %49 = vrot.lane.b32.xlu1 %v108_v8, %s138_s2 }
  0x12   :  { %55 = vrot.lane.b32.xlu0 %v109_v9, %s139_s7  ;;  %61 = vrot.lane.b32.xlu1 %v110_v10, %s140_s8 }
  0x16   :  { %67 = vrot.lane.b32.xlu0 %v111_v11, %s141_s13  ;;  %73 = vrot.lane.b32.xlu1 %v112_v12, %s142_s14 }
  0x1a   :  { %79 = vrot.lane.b32.xlu0 %v113_v13, %s143_s19  ;;  %85 = vrot.lane.b32.xlu1 %v114_v14, %s144_s20 }
  0x1e   :  { %91 = vrot.lane.b32.xlu0 %v115_v15, %s145_s0 }
  0x74   :  { %v8_v16 = vpop.permute.xlu0 %7   ;;  %v20_v17 = vpop.permute.xlu1 %19  }
  0x75   :  { %10 = vst.msk [vmem:[#allocation0] sm:$0x1] %vm9_vm1, %v8_v16  }
  0x78   :  { %v14_v18 = vpop.permute.xlu0 %13   ;;  %v26_v19 = vpop.permute.xlu1 %25  }
  0x79   :  { %16 = vst.msk [vmem:[#allocation0] sm:$0x1] %vm15_vm2, %v14_v18  }
  0x7a   :  { %22 = vst.msk [vmem:[#allocation0] sm:$0x1] %vm21_vm3, %v20_v17  }
  0x7b   :  { %28 = vst.msk [vmem:[#allocation0] sm:$0x1] %vm27_vm4, %v26_v19  }
  0x7c   :  { %v32_v20 = vpop.permute.xlu0 %31   ;;  %v38_v21 = vpop.permute.xlu1 %37  }
  0x7d   :  { %34 = vst.msk [vmem:[#allocation0] sm:$0x1] %vm33_vm5, %v32_v20  }
  0x7e   :  { %40 = vst.msk [vmem:[#allocation0] sm:$0x1] %vm39_vm6, %v38_v21  }
  0x80   :  { %v44_v22 = vpop.permute.xlu0 %43   ;;  %v50_v23 = vpop.permute.xlu1 %49  }
  0x81   :  { %46 = vst.msk [vmem:[#allocation0] sm:$0x1] %vm45_vm7, %v44_v22  }
  0x82   :  { %52 = vst.msk [vmem:[#allocation0] sm:$0x1] %vm51_vm8, %v50_v23  }
  0x84   :  { %v56_v24 = vpop.permute.xlu0 %55   ;;  %v62_v25 = vpop.permute.xlu1 %61  }
  0x85   :  { %58 = vst.msk [vmem:[#allocation0] sm:$0x1] %vm57_vm9, %v56_v24  }
  0x86   :  { %64 = vst.msk [vmem:[#allocation0] sm:$0x1] %vm63_vm10, %v62_v25  }
  0x88   :  { %v68_v26 = vpop.permute.xlu0 %67   ;;  %v74_v27 = vpop.permute.xlu1 %73  }
  0x89   :  { %70 = vst.msk [vmem:[#allocation0] sm:$0x1] %vm69_vm11, %v68_v26  }
  0x8a   :  { %76 = vst.msk [vmem:[#allocation0] sm:$0x1] %vm75_vm12, %v74_v27  }
  0x8c   :  { %v80_v28 = vpop.permute.xlu0 %79   ;;  %v86_v29 = vpop.permute.xlu1 %85  }
  0x8d   :  { %82 = vst.msk [vmem:[#allocation0] sm:$0x1] %vm81_vm13, %v80_v28  }
  0x8e   :  { %88 = vst.msk [vmem:[#allocation0] sm:$0x1] %vm87_vm14, %v86_v29  }
  0x90   :  { %v92_v30 = vpop.permute.xlu0 %91  }
  0x91   :  { %94 = vst.msk [vmem:[#allocation0] sm:$0x1] %vm93_vm15, %v92_v30  }
  0x98   :  { %v98_v31 = vld [vmem:[#allocation0] sm:$0x1] }
  0x99   :  { %100 = vst [vmem:[%s208_s1] sm:$0x1] %v98_v31 }

// kernel: bayes_block_forward.5
= control target key start
LH: loop header
LB: loop body
LE: loop exit
PB: predicated region body
PF: predicated region fallthrough
CT: control target
= control target key end

     0   :  { %s175_s0 = inlined_call_operand.vmem [shape: bf16[32,128], index: 0, kind: input, shape index: {}]   ;;  %s176_s2 = inlined_call_operand.vmem [shape: f32[1,128], index: 2, kind: input, shape index: {}]   ;;  %s177_s3 = inlined_call_operand.vmem [shape: f32[1,128], index: 3, kind: input, shape index: {}]   ;;  %s178_s1 = inlined_call_operand.vmem [shape: f32[32,128], index: 1, kind: input, shape index: {}]   ;;  %s179_s4 = inlined_call_operand.vmem [shape: f32[32,128], index: 4, kind: output, shape index: {}]  }
   0x1   :  { %v90_v0 = vld [vmem:[%s175_s0] sm:$0xff]   ;;  %v97_v4 = vld [vmem:[%s175_s0 + $0x8] sm:$0xff]   ;;  %v49_v16 = vld [vmem:[%s178_s1 + $0x10] sm:$0xff] }
   0x2   :  { %v87_v1 = vld [vmem:[%s176_s2] ss:$0 sm:$0xff]  ;;  %v91_v2 = vunpack.c.l.bf16 %v90_v0  ;;  %v92_v3 = vunpack.c.h.bf16 %v90_v0  ;;  %v95_v6 = vunpack.c.l.bf16 %v97_v4  ;;  %v96_v7 = vunpack.c.h.bf16 %v97_v4  ;;  %v48_v11 = vld [vmem:[%s178_s1 + $0x8] sm:$0xff]  ;;  %v50_v17 = vld [vmem:[%s178_s1 + $0x18] sm:$0xff] }
   0x3   :  { %v88_v5 = vld [vmem:[%s177_s3] ss:$0 sm:$0xff] }
   0x4   :  { %v32_v8 = vmul.f32 %v91_v2, %v87_v1  ;;  %v33_v9 = vmul.f32 %v92_v3, %v87_v1  ;;  %v47_v10 = vld [vmem:[%s178_s1] sm:$0xff]  ;;  %v34_v12 = vmul.f32 %v95_v6, %v87_v1  ;;  %v35_v13 = vmul.f32 %v96_v7, %v87_v1 }
   0x6   :  { %v43_v14 = vadd.f32 %v88_v5, %v32_v8  ;;  %v44_v15 = vadd.f32 %v88_v5, %v33_v9  ;;  %v45_v18 = vadd.f32 %v88_v5, %v34_v12  ;;  %v46_v19 = vadd.f32 %v88_v5, %v35_v13 }
   0x8   :  { %v51_v20 = vadd.f32 %v47_v10, %v43_v14  ;;  %v52_v21 = vadd.f32 %v48_v11, %v44_v15  ;;  %v53_v22 = vadd.f32 %v49_v16, %v45_v18  ;;  %v54_v23 = vadd.f32 %v50_v17, %v46_v19 }
   0xa   :  { %v55_v24 = vsub.f32 0.0, %v51_v20  ;;  %v56_v25 = vsub.f32 0.0, %v52_v21  ;;  %v57_v26 = vsub.f32 0.0, %v53_v22  ;;  %v58_v27 = vsub.f32 0.0, %v54_v23 }
   0xc   :  { %v59_v28 = vmul.f32 1.442695, %v55_v24  ;;  %v61_v29 = vmul.f32 1.442695, %v56_v25  ;;  %v63_v30 = vmul.f32 1.442695, %v57_v26 }
   0xd   :  { %v65_v31 = vmul.f32 1.442695, %v58_v27 }
   0xe   :  { %98 = vpow2.f32 %v59_v28 }
   0xf   :  { %100 = vpow2.f32 %v61_v29 }
  0x10   :  { %102 = vpow2.f32 %v63_v30 }
  0x11   :  { %104 = vpow2.f32 %v65_v31 }
  0x18   :  { %v99_v32 = vpop.eup %98 }
  0x19   :  { %v101_v33 = vpop.eup %100  ;;  %v67_v34 = vadd.f32 1.0, %v99_v32 }
  0x1a   :  { %v103_v35 = vpop.eup %102  ;;  %v68_v36 = vadd.f32 1.0, %v101_v33 }
  0x1b   :  { %v105_v37 = vpop.eup %104  ;;  %106 = vrcp.f32 %v67_v34  ;;  %v69_v38 = vadd.f32 1.0, %v103_v35 }
  0x1c   :  { %108 = vrcp.f32 %v68_v36  ;;  %v70_v39 = vadd.f32 1.0, %v105_v37 }
  0x1d   :  { %110 = vrcp.f32 %v69_v38 }
  0x1e   :  { %112 = vrcp.f32 %v70_v39 }
  0x25   :  { %v107_v40 = vpop.eup %106 }
  0x26   :  { %v109_v41 = vpop.eup %108  ;;  %v75_v42 = vmul.f32 %v107_v40, %v51_v20 }
  0x27   :  { %v111_v43 = vpop.eup %110  ;;  %v76_v44 = vmul.f32 %v109_v41, %v52_v21 }
  0x28   :  { %v113_v45 = vpop.eup %112  ;;  %79 = vst [vmem:[%s179_s4] sm:$0xff] %v75_v42  ;;  %v77_v46 = vmul.f32 %v111_v43, %v53_v22 }
  0x29   :  { %80 = vst [vmem:[%s179_s4 + $0x8] sm:$0xff] %v76_v44  ;;  %v78_v47 = vmul.f32 %v113_v45, %v54_v23 }
  0x2a   :  { %81 = vst [vmem:[%s179_s4 + $0x10] sm:$0xff] %v77_v46 }
  0x2b   :  { %82 = vst [vmem:[%s179_s4 + $0x18] sm:$0xff] %v78_v47 }

// kernel: bayes_block_forward.4
= control target key start
LH: loop header
LB: loop body
LE: loop exit
PB: predicated region body
PF: predicated region fallthrough
CT: control target
= control target key end

     0   :  { %s11173_s21 = smov 0   ;;  %s14061_s0 = inlined_call_operand.vmem [shape: bf16[2,16,16,8], index: 0, kind: input, shape index: {}]   ;;  %s14062_s1 = inlined_call_operand.vmem [shape: bf16[9,128,128], index: 1, kind: input, shape index: {}]   ;;  %s14063_s2 = inlined_call_operand.vmem [shape: f32[1,8], index: 2, kind: input, shape index: {}]   ;;  %s14064_s3 = inlined_call_operand.vmem [shape: f32[1,8], index: 3, kind: input, shape index: {}]   ;;  %s14065_s4 = inlined_call_operand.vmem [shape: bf16[2,16,16,8], index: 4, kind: output, shape index: {0}]   ;;  %s14066_s5 = inlined_call_operand.vmem [shape: f32[2,1,128], index: 5, kind: output, shape index: {1}]   ;;  %s14067_s6 = inlined_call_operand.vmem [shape: f32[2,1,128], index: 6, kind: output, shape index: {2}]  }
   0x1 LB: > { %s9109_s22 = sadd.s32 4294967295, %s11133_s21   ;;  %p9113_p0 = scmp.ge.s32.totalorder %s11133_s21, 1  ;;  %s11133_s21 = sphi %s11173_s21, %s17_s21  }
   0x2   : > { %p217_p1 = scmp.lt.s32.totalorder %s11133_s21, 3 }
   0x4   : > { %p218_p2 = pnand %p9113_p0, %p217_p1 }
   0x6   : > { %221 = sbr.rel (%p218_p2) target bundleno = 817 (0x331), region = 36 }
   0xd   : > { %v10744_v0 = vld [vmem:[%s14062_s1] sm:$0xff]   ;;  %v10745_v1 = vld [vmem:[%s14062_s1 + $0x8] sm:$0xff]   ;;  %v11135_v2 = vmov 0   ;;  %p253_p3 = scmp.lt.s32.totalorder %s9109_s22, 1  ;;  %v10746_v4 = vld [vmem:[%s14062_s1 + $0x10] sm:$0xff]   ;;  %vm691_vm0 = vcmask 60417  }
   0xe   : > { %270 = vst [vmem:[#allocation2] sm:$0xf] %v11135_v2  ;;  %271 = vst [vmem:[#allocation2 + $0x4] sm:$0xf] %v11135_v2  ;;  %9889 = vmatprep.subr.bf16.mxu1 %v10744_v0  ;;  %v10747_v3 = vld [vmem:[%s14062_s1 + $0x100] sm:$0xff]   ;;  %v10749_v5 = vld [vmem:[%s14062_s1 + $0x108] sm:$0xff]  }
   0xf   : > { %272 = vst [vmem:[#allocation2 + $0x8] sm:$0xf] %v11135_v2  ;;  %273 = vst [vmem:[#allocation2 + $0xc] sm:$0xf] %v11135_v2  ;;  %9890 = vmatpush3.bf16.msra.mxu1 %v10744_v0  ;;  %10097 = vmatprep.subr.bf16.mxu0 %v10747_v3  ;;  %v10751_v6 = vld [vmem:[%s14062_s1 + $0x110] sm:$0xff]   ;;  %s14635_s22 = smov (!%p253_p3, %s9109_s22), 1 }
  0x10   : > { %274 = vst [vmem:[#allocation2 + $0x10] sm:$0xf] %v11135_v2  ;;  %275 = vst [vmem:[#allocation2 + $0x14] sm:$0xf] %v11135_v2  ;;  %9891 = vmatprep.subr.bf16.mxu1 %v10745_v1  ;;  %10098 = vmatpush3.bf16.msra.mxu0 %v10747_v3  ;;  %v10748_v7 = vld [vmem:[%s14062_s1 + $0x18] sm:$0xff]   ;;  %s9542_s15 = sshll.u32 %s14635_s22, 7  ;;  %s265_s14 = scalar_lea.vmem %s14066_s5, %s14635_s22 }
  0x11   : > { %276 = vst [vmem:[#allocation2 + $0x18] sm:$0xf] %v11135_v2  ;;  %277 = vst [vmem:[#allocation2 + $0x1c] sm:$0xf] %v11135_v2  ;;  %10099 = vmatprep.subr.bf16.mxu0 %v10749_v5  ;;  %v10753_v8 = vld [vmem:[%s14062_s1 + $0x118] sm:$0xff]   ;;  %v10750_v9 = vld [vmem:[%s14062_s1 + $0x20] sm:$0xff]   ;;  %s11220_s20 = scalar_lea.vmem %s14061_s0, %s9542_s15  ;;  %s268_s18 = scalar_lea.vmem %s14067_s6, %s14635_s22 }
  0x12   : > { %278 = vst [vmem:[#allocation2 + $0x20] sm:$0xf] %v11135_v2  ;;  %279 = vst [vmem:[#allocation2 + $0x24] sm:$0xf] %v11135_v2  ;;  %v10755_v11 = vld [vmem:[%s14062_s1 + $0x120] sm:$0xff]   ;;  %v10752_v12 = vld [vmem:[%s14062_s1 + $0x28] sm:$0xff]  }
  0x13   : > { %280 = vst [vmem:[#allocation2 + $0x28] sm:$0xf] %v11135_v2  ;;  %281 = vst [vmem:[#allocation2 + $0x2c] sm:$0xf] %v11135_v2  ;;  %9892 = vmatpush3.bf16.msra.mxu1 %v10745_v1  ;;  %v9577_v13 = vld [vmem:[%s11220_s20] sm:$0xff]   ;;  %v10757_v15 = vld [vmem:[%s14062_s1 + $0x128] sm:$0xff]  }
  0x14   : > { %282 = vst [vmem:[#allocation2 + $0x30] sm:$0xf] %v11135_v2  ;;  %283 = vst [vmem:[#allocation2 + $0x34] sm:$0xf] %v11135_v2  ;;  %9893 = vmatprep.subr.bf16.mxu1 %v10746_v4  ;;  %10100 = vmatpush3.bf16.msra.mxu0 %v10749_v5  ;;  %v11232_v14 = vld [vmem:[%s14063_s2] ss:$0 sm:$0xff]  ;;  %v9578_v16 = vunpack.c.l.bf16 %v9577_v13  ;;  %v9579_v17 = vunpack.c.h.bf16 %v9577_v13 }
  0x15   : > { %284 = vst [vmem:[#allocation2 + $0x38] sm:$0xf] %v11135_v2  ;;  %285 = vst [vmem:[#allocation2 + $0x3c] sm:$0xf] %v11135_v2  ;;  %10101 = vmatprep.subr.bf16.mxu0 %v10751_v6  ;;  %v10758_v10 = vld [vmem:[#allocation2] sm:$0xff]   ;;  %v10754_v19 = vld [vmem:[%s14062_s1 + $0x30] sm:$0xff]  }
  0x16   : > { %286 = vst [vmem:[#allocation2 + $0x40] sm:$0xf] %v11135_v2  ;;  %287 = vst [vmem:[#allocation2 + $0x44] sm:$0xf] %v11135_v2  ;;  %9905 = vmatprep.mubr.bf16.mxu1 %v10758_v10  ;;  %v11240_v18 = vld [vmem:[%s14064_s3] ss:$0 sm:$0xff]  ;;  %v382_v20 = vmul.f32 %v9578_v16, %v11232_v14  ;;  %v383_v21 = vmul.f32 %v9579_v17, %v11232_v14 }
  0x17   : > { %288 = vst [vmem:[#allocation2 + $0x48] sm:$0xf] %v11135_v2  ;;  %289 = vst [vmem:[#allocation2 + $0x4c] sm:$0xf] %v11135_v2  ;;  %9894 = vmatpush3.bf16.msra.mxu1 %v10746_v4  ;;  %v9640_v22 = vld [vmem:[%s11220_s20 + $0x8] sm:$0xff]   ;;  %v10760_v27 = vld [vmem:[%s14062_s1 + $0x130] sm:$0xff]  }
  0x18   : > { %290 = vst [vmem:[#allocation2 + $0x50] sm:$0xf] %v11135_v2  ;;  %291 = vst [vmem:[#allocation2 + $0x54] sm:$0xf] %v11135_v2  ;;  %9895 = vmatprep.subr.bf16.mxu1 %v10748_v7  ;;  %10102 = vmatpush3.bf16.msra.mxu0 %v10751_v6  ;;  %v9582_v23 = vunpack.c.l.bf16 %v9640_v22  ;;  %v9583_v24 = vunpack.c.h.bf16 %v9640_v22  ;;  %v11249_v25 = vadd.f32 %v11240_v18, %v382_v20  ;;  %v9641_v30 = vld [vmem:[%s11220_s20 + $0x10] sm:$0xff]   ;;  %v10756_v31 = vld [vmem:[%s14062_s1 + $0x38] sm:$0xff]  }
  0x19   : > { %292 = vst [vmem:[#allocation2 + $0x58] sm:$0xf] %v11135_v2  ;;  %293 = vst [vmem:[#allocation2 + $0x5c] sm:$0xf] %v11135_v2  ;;  %10103 = vmatprep.subr.bf16.mxu0 %v10753_v8  ;;  %v11252_v26 = vadd.f32 %v11240_v18, %v383_v21  ;;  %v9586_v34 = vunpack.c.l.bf16 %v9641_v30  ;;  %v9587_v35 = vunpack.c.h.bf16 %v9641_v30  ;;  %v10762_v40 = vld [vmem:[%s14062_s1 + $0x138] sm:$0xff]   ;;  %v11281_v45 = vld [vmem:[%s14062_s1 + $0x40] sm:$0xff]  }
  0x1a   : > { %294 = vst [vmem:[#allocation2 + $0x60] sm:$0xf] %v11135_v2  ;;  %295 = vst [vmem:[#allocation2 + $0x64] sm:$0xf] %v11135_v2  ;;  %v384_v28 = vmul.f32 %v9582_v23, %v11232_v14  ;;  %v385_v29 = vmul.f32 %v9583_v24, %v11232_v14  ;;  %v453_v32 = vsub.f32 0.0, %v11249_v25  ;;  %v9642_v48 = vld [vmem:[%s11220_s20 + $0x18] sm:$0xff]  }
  0x1b   : > { %296 = vst [vmem:[#allocation2 + $0x68] sm:$0xf] %v11135_v2  ;;  %297 = vst [vmem:[#allocation2 + $0x6c] sm:$0xf] %v11135_v2  ;;  %9896 = vmatpush3.bf16.msra.mxu1 %v10748_v7  ;;  %v454_v33 = vsub.f32 0.0, %v11252_v26  ;;  %v386_v41 = vmul.f32 %v9586_v34, %v11232_v14  ;;  %v387_v42 = vmul.f32 %v9587_v35, %v11232_v14  ;;  %v9590_v51 = vunpack.c.l.bf16 %v9642_v48  ;;  %v11295_v55 = vld [vmem:[%s14062_s1 + $0x140] sm:$0xff]  }
  0x1c   : > { %298 = vst [vmem:[#allocation2 + $0x70] sm:$0xf] %v11135_v2  ;;  %299 = vst [vmem:[#allocation2 + $0x74] sm:$0xf] %v11135_v2  ;;  %9897 = vmatprep.subr.bf16.mxu1 %v10750_v9  ;;  %10104 = vmatpush3.bf16.msra.mxu0 %v10753_v8  ;;  %v11266_v36 = vadd.f32 %v11240_v18, %v384_v28  ;;  %v11269_v37 = vadd.f32 %v11240_v18, %v385_v29  ;;  %v485_v38 = vmul.f32 1.442695, %v453_v32 }
  0x1d   : > { %300 = vst [vmem:[#allocation2 + $0x78] sm:$0xf] %v11135_v2  ;;  %301 = vst [vmem:[#allocation2 + $0x7c] sm:$0xf] %v11135_v2  ;;  %10105 = vmatprep.subr.bf16.mxu0 %v10755_v11  ;;  %v487_v39 = vmul.f32 1.442695, %v454_v33  ;;  %v11284_v46 = vadd.f32 %v11240_v18, %v386_v41  ;;  %v11287_v47 = vadd.f32 %v11240_v18, %v387_v42  ;;  %v9591_v54 = vunpack.c.h.bf16 %v9642_v48 }
  0x1e   : > { %302 = vst [vmem:[#allocation2 + $0x80] sm:$0xf] %v11135_v2  ;;  %303 = vst [vmem:[#allocation2 + $0x84] sm:$0xf] %v11135_v2  ;;  %v455_v43 = vsub.f32 0.0, %v11266_v36  ;;  %v456_v44 = vsub.f32 0.0, %v11269_v37  ;;  %10986 = vpow2.f32 %v485_v38  ;;  %v388_v56 = vmul.f32 %v9590_v51, %v11232_v14 }
  0x1f   : > { %304 = vst [vmem:[#allocation2 + $0x88] sm:$0xf] %v11135_v2  ;;  %305 = vst [vmem:[#allocation2 + $0x8c] sm:$0xf] %v11135_v2  ;;  %9898 = vmatpush3.bf16.msra.mxu1 %v10750_v9  ;;  %10988 = vpow2.f32 %v487_v39  ;;  %v457_v52 = vsub.f32 0.0, %v11284_v46  ;;  %v458_v53 = vsub.f32 0.0, %v11287_v47  ;;  %v389_v62 = vmul.f32 %v9591_v54, %v11232_v14 }
  0x20   : > { %306 = vst [vmem:[#allocation2 + $0x90] sm:$0xf] %v11135_v2  ;;  %307 = vst [vmem:[#allocation2 + $0x94] sm:$0xf] %v11135_v2  ;;  %9899 = vmatprep.subr.bf16.mxu1 %v10752_v12  ;;  %10106 = vmatpush3.bf16.msra.mxu0 %v10755_v11  ;;  %v489_v49 = vmul.f32 1.442695, %v455_v43  ;;  %v11301_v61 = vadd.f32 %v11240_v18, %v388_v56 }
  0x21   : > { %308 = vst [vmem:[#allocation2 + $0x98] sm:$0xf] %v11135_v2  ;;  %309 = vst [vmem:[#allocation2 + $0x9c] sm:$0xf] %v11135_v2  ;;  %10107 = vmatprep.subr.bf16.mxu0 %v10757_v15  ;;  %v491_v50 = vmul.f32 1.442695, %v456_v44 }
  0x22   : > { %310 = vst [vmem:[#allocation2 + $0xa0] sm:$0xf] %v11135_v2  ;;  %10990 = vpow2.f32 %v489_v49  ;;  %v9643_v57 = vld [vmem:[%s11220_s20 + $0x20] sm:$0xff]   ;;  %v493_v58 = vmul.f32 1.442695, %v457_v52  ;;  %v459_v1 = vsub.f32 0.0, %v11301_v61  ;;  %v11308_v2 = vadd.f32 %v11240_v18, %v389_v62 }
  0x23   : > { %9900 = vmatpush3.bf16.msra.mxu1 %v10752_v12  ;;  %10992 = vpow2.f32 %v491_v50  ;;  %v495_v59 = vmul.f32 1.442695, %v458_v53  ;;  %v9594_v60 = vunpack.c.l.bf16 %v9643_v57  ;;  %v9595_v63 = vunpack.c.h.bf16 %v9643_v57  ;;  %v9644_v3 = vld [vmem:[%s11220_s20 + $0x28] sm:$0xff]   ;;  %v9645_v11 = vld [vmem:[%s11220_s20 + $0x30] sm:$0xff]   ;;  %v9646_v42 = vld [vmem:[%s11220_s20 + $0x38] sm:$0xff]  }
  0x24   : > { %9901 = vmatprep.subr.bf16.mxu1 %v10754_v19  ;;  %10108 = vmatpush3.bf16.msra.mxu0 %v10757_v15  ;;  %10994 = vpow2.f32 %v493_v58  ;;  %v9598_v6 = vunpack.c.l.bf16 %v9644_v3  ;;  %v9599_v7 = vunpack.c.h.bf16 %v9644_v3  ;;  %v497_v8 = vmul.f32 1.442695, %v459_v1  ;;  %v9647_v54 = vld [vmem:[%s11220_s20 + $0x40] sm:$0xff]  }
  0x25   : > { %10109 = vmatprep.subr.bf16.mxu0 %v10760_v27  ;;  %v390_v0 = vmul.f32 %v9594_v60, %v11232_v14  ;;  %10996 = vpow2.f32 %v495_v59  ;;  %v391_v4 = vmul.f32 %v9595_v63, %v11232_v14  ;;  %v460_v9 = vsub.f32 0.0, %v11308_v2  ;;  %v11346_v63 = vld [vmem:[%s11220_s20 + $0x48] sm:$0xff]  }
  0x26   : > { %v392_v15 = vmul.f32 %v9598_v6, %v11232_v14  ;;  %v9602_v16 = vunpack.c.l.bf16 %v9645_v11  ;;  %v393_v17 = vmul.f32 %v9599_v7, %v11232_v14  ;;  %10998 = vpow2.f32 %v497_v8 }
  0x27   : > { %9902 = vmatpush3.bf16.msra.mxu1 %v10754_v19  ;;  %v11313_v5 = vadd.f32 %v11240_v18, %v390_v0  ;;  %v11317_v10 = vadd.f32 %v11240_v18, %v391_v4  ;;  %v499_v21 = vmul.f32 1.442695, %v460_v9  ;;  %v9603_v32 = vunpack.c.h.bf16 %v9645_v11 }
  0x28   : > { %9903 = vmatprep.subr.bf16.mxu1 %v10756_v31  ;;  %10110 = vmatpush3.bf16.msra.mxu0 %v10760_v27  ;;  %v10987_v12 = vpop.eup %10986  ;;  %v11325_v27 = vadd.f32 %v11240_v18, %v392_v15  ;;  %v394_v28 = vmul.f32 %v9602_v16, %v11232_v14  ;;  %v9606_v49 = vunpack.c.l.bf16 %v9646_v42  ;;  %v9607_v58 = vunpack.c.h.bf16 %v9646_v42 }
  0x29   : > { %10111 = vmatprep.subr.bf16.mxu0 %v10762_v40  ;;  %v461_v13 = vsub.f32 0.0, %v11313_v5  ;;  %v10989_v19 = vpop.eup %10988  ;;  %v549_v20 = vadd.f32 1.0, %v10987_v12  ;;  %v462_v22 = vsub.f32 0.0, %v11317_v10  ;;  %v395_v41 = vmul.f32 %v9603_v32, %v11232_v14 }
  0x2a   : > { %v550_v23 = vadd.f32 1.0, %v10989_v19  ;;  %v463_v35 = vsub.f32 0.0, %v11325_v27  ;;  %v11333_v38 = vadd.f32 %v11240_v18, %v394_v28  ;;  %v396_v60 = vmul.f32 %v9606_v49, %v11232_v14 }
  0x2b   : > { %9904 = vmatpush3.bf16.msra.mxu1 %v10756_v31  ;;  %v501_v24 = vmul.f32 1.442695, %v461_v13  ;;  %11000 = vrcp.f32 %v549_v20  ;;  %v503_v30 = vmul.f32 1.442695, %v462_v22  ;;  %v11329_v31 = vadd.f32 %v11240_v18, %v393_v17 }
  0x2c   : > { %9941 = vmatprep.subr.bf16.mxu1 %v11281_v45  ;;  %10112 = vmatpush3.bf16.msra.mxu0 %v10762_v40  ;;  %v10991_v29 = vpop.eup %10990  ;;  %11002 = vrcp.f32 %v550_v23  ;;  %v505_v44 = vmul.f32 1.442695, %v463_v35  ;;  %v465_v48 = vsub.f32 0.0, %v11333_v38  ;;  %v11340_v53 = vadd.f32 %v11240_v18, %v395_v41 }
  0x2d   : > { %10149 = vmatprep.subr.bf16.mxu0 %v11295_v55  ;;  %v10993_v33 = vpop.eup %10992  ;;  %v551_v34 = vadd.f32 1.0, %v10991_v29  ;;  %11004 = vpow2.f32 %v499_v21  ;;  %v464_v40 = vsub.f32 0.0, %v11329_v31  ;;  %v9610_v62 = vunpack.c.l.bf16 %v9647_v54 }
  0x2e   : > { %v552_v39 = vadd.f32 1.0, %v10993_v33  ;;  %v10995_v43 = vpop.eup %10994  ;;  %v509_v57 = vmul.f32 1.442695, %v465_v48  ;;  %v466_v59 = vsub.f32 0.0, %v11340_v53  ;;  %vm692_vm1 = vsmask.f32 7942 }
  0x2f   : > { %11006 = vrcp.f32 %v551_v34  ;;  %v10997_v50 = vpop.eup %10996  ;;  %v553_v51 = vadd.f32 1.0, %v10995_v43  ;;  %v507_v52 = vmul.f32 1.442695, %v464_v40  ;;  %v397_v0 = vmul.f32 %v9607_v58, %v11232_v14  ;;  %vm11382_vm15 = vmand %vm691_vm0, %vm692_vm1 }
  0x30   : > { %11008 = vrcp.f32 %v552_v39  ;;  %v554_v56 = vadd.f32 1.0, %v10997_v50  ;;  %v9611_v1 = vunpack.c.h.bf16 %v9647_v54  ;;  %v9614_v3 = vunpack.c.l.bf16 %v11346_v63  ;;  %v10999_v4 = vpop.eup %10998 }
  0x31   : > { %11010 = vpow2.f32 %v501_v24  ;;  %vm666_vm2 = vsmask.f32 1280  ;;  %vm667_vm3 = vsmask.f32 5392  ;;  %v511_v6 = vmul.f32 1.442695, %v466_v59 }
  0x32   : > { %11012 = vrcp.f32 %v553_v51  ;;  %v11351_v7 = vadd.f32 %v11240_v18, %v396_v60  ;;  %v398_v8 = vmul.f32 %v9610_v62, %v11232_v14  ;;  %vm699_vm4 = vcmask 58368   ;;  %vm11390_vm12 = vmor %vm666_vm2, %vm667_vm3 }
  0x33   : > { %11014 = vrcp.f32 %v554_v56  ;;  %v555_v9 = vadd.f32 1.0, %v10999_v4  ;;  %v11355_v11 = vadd.f32 %v11240_v18, %v397_v0  ;;  %v399_v12 = vmul.f32 %v9611_v1, %v11232_v14  ;;  %vm11399_vm1 = vmand %vm699_vm4, %vm666_vm2 }
  0x34   : > { %11016 = vpow2.f32 %v503_v30  ;;  %vm734_vm5 = vcmask 60418   ;;  %vm735_vm6 = vsmask.f32 7946  ;;  %v467_v15 = vsub.f32 0.0, %v11351_v7 }
  0x35   : > { %11018 = vpow2.f32 %v505_v44  ;;  %v11001_v13 = vpop.eup %11000  ;;  %v11360_v16 = vadd.f32 %v11240_v18, %v398_v8  ;;  %v9615_v17 = vunpack.c.h.bf16 %v11346_v63  ;;  %vm709_vm7 = vsmask.f32 2304  ;;  %v701_v8 = vld [vmem:[#allocation2 + $0x10] sm:$0x3]  ;;  %vm11407_vm3 = vmand %vm734_vm5, %vm735_vm6 }
  0x36   : > { %11020 = vpow2.f32 %v507_v52  ;;  %v11003_v19 = vpop.eup %11002  ;;  %v613_v20 = vmul.f32 %v11001_v13, %v11249_v25  ;;  %vm710_vm8 = vsmask.f32 6416  ;;  %v468_v21 = vsub.f32 0.0, %v11355_v11 }
  0x37   : > { %11022 = vrcp.f32 %v555_v9  ;;  %v11366_v22 = vadd.f32 %v11240_v18, %v399_v12  ;;  %v11005_v23 = vpop.eup %11004  ;;  %v614_v24 = vmul.f32 %v11003_v19, %v11252_v26  ;;  %vm776_vm9 = vcmask 60419   ;;  %vm11415_vm2 = vmor %vm709_vm7, %vm710_vm8 }
  0x38   : > { %vm777_vm10 = vsmask.f32 7950  ;;  %11024 = vpow2.f32 %v509_v57  ;;  %v513_v28 = vmul.f32 1.442695, %v467_v15  ;;  %v469_v29 = vsub.f32 0.0, %v11360_v16 }
  0x39   : > { %v11007_v30 = vpop.eup %11006  ;;  %v9544_v32 = vpack.c.bf16 %v613_v20, %v613_v20  ;;  %vm14068_vm11 = vcmask 60416   ;;  %v556_v25 = vadd.f32 1.0, %v11005_v23  ;;  %11026 = vpow2.f32 %v511_v6  ;;  %v694_v57 = vld [vmem:[#allocation2 + $0x8] sm:$0xe]  ;;  %vm11425_vm4 = vmand %vm776_vm9, %vm777_vm10 }
  0x3a   : > { %v11370_v33 = vmul.f32 1.442695, %v468_v21  ;;  %v11009_v34 = vpop.eup %11008  ;;  %v9545_v35 = vpack.c.bf16 %v614_v24, %v614_v24  ;;  %v615_v39 = vmul.f32 %v11007_v30, %v11266_v36  ;;  %11028 = vpow2.f32 %v513_v28 }
  0x3b   : > { %v470_v26 = vsub.f32 0.0, %v11366_v22  ;;  %v11011_v40 = vpop.eup %11010  ;;  %v670_v41 = vshrl.u32 %v9544_v32, 16  ;;  %v673_v42 = vshll.u32 %v9544_v32, 16  ;;  %v616_v43 = vmul.f32 %v11009_v34, %v11269_v37 }
  0x3c   : > { %11030 = vrcp.f32 %v556_v25  ;;  %v11013_v44 = vpop.eup %11012  ;;  %v679_v48 = vshrl.u32 %v9545_v35, 16  ;;  %v682_v49 = vshll.u32 %v9545_v35, 16  ;;  %v9546_v50 = vpack.c.bf16 %v615_v39, %v615_v39  ;;  %v737_v35 = vld [vmem:[#allocation2 + $0x10] sm:$0xc] }
  0x3d   : > { %v11375_v51 = vadd.f32 1.0, %v11011_v40  ;;  %v11015_v52 = vpop.eup %11014  ;;  %v672_v54 = vrot.slane %v670_v41, 6  ;;  %v675_v56 = vrot.slane %v673_v42, 7  ;;  %v9547_v36 = vpack.c.bf16 %v616_v43, %v616_v43  ;;  %v743_v43 = vld [vmem:[#allocation2 + $0x18] sm:$0x7] }
  0x3e   : > { %v617_v58 = vmul.f32 %v11013_v44, %v11284_v46  ;;  %vm751_vm13 = vsmask.f32 3328  ;;  %vm752_vm14 = vsmask.f32 7440  ;;  %v11378_v59 = vpop.eup %11016  ;;  %v681_v60 = vrot.slane %v679_v48, 6 }
  0x3f   : > { %v684_v37 = vrot.slane %v682_v49, 7  ;;  %v713_v0 = vshrl.u32 %v9546_v50, 16  ;;  %v716_v1 = vshll.u32 %v9546_v50, 16  ;;  %v11386_v4 = vpop.eup %11018  ;;  %v676_v6 = vor.u32 %v675_v56, %v672_v54  ;;  %v779_v49 = vld [vmem:[#allocation2 + $0x18] sm:$0x8]  ;;  %vm11453_vm10 = vmor %vm751_vm13, %vm752_vm14 }
  0x40   : > { %v722_v9 = vshrl.u32 %v9547_v36, 16  ;;  %v725_v12 = vshll.u32 %v9547_v36, 16  ;;  %v618_v13 = vmul.f32 %v11015_v52, %v11287_v47  ;;  %vm816_vm0 = vsmask.f32 7938  ;;  %v11395_v15 = vpop.eup %11020  ;;  %vm11467_vm14 = vmand %vm14068_vm11, %vm751_vm13 }
  0x41   : > { %v685_v19 = vor.u32 %v684_v37, %v681_v60  ;;  %v715_v21 = vrot.slane %v713_v0, 5  ;;  %v718_v23 = vrot.slane %v716_v1, 6  ;;  %v9548_v24 = vpack.c.bf16 %v617_v58, %v617_v58  ;;  %v11023_v28 = vpop.eup %11022 }
  0x42   : > { %v677_v30 = vrot.slane %v676_v6, 4  ;;  %v695_v32 = vsel %vm11382_vm15, %v676_v6, %v694_v57  ;;  %v724_v25 = vrot.slane %v722_v9, 5  ;;  %v727_v47 = vrot.slane %v725_v12, 6  ;;  %v11411_v39 = vpop.eup %11024 }
  0x43   : > { %696 = vst [vmem:[#allocation2 + $0x8] sm:$0xe] %v695_v32  ;;  %v687_v40 = vrot.slane %v685_v19, 4  ;;  %v719_v42 = vor.u32 %v718_v23, %v715_v21  ;;  %v9549_v44 = vpack.c.bf16 %v618_v13, %v618_v13  ;;  %v755_v48 = vshll.u32 %v9548_v24, 16  ;;  %v11419_v50 = vpop.eup %11026 }
  0x44   : > { %v686_v52 = vsel %vm11390_vm12, %v677_v30, %v685_v19  ;;  %v728_v54 = vor.u32 %v727_v47, %v724_v25  ;;  %v758_v56 = vshrl.u32 %v9548_v24, 16  ;;  %v619_v36 = vmul.f32 %v11023_v28, %v11301_v61  ;;  %v11430_v58 = vpop.eup %11028  ;;  %v785_v47 = vld [vmem:[#allocation2 + $0x20] sm:$0xf] }
  0x45   : > { %698 = vst.msk [vmem:[#allocation2 + $0xc] sm:$0xf] %vm14068_vm11, %v686_v52  ;;  %v702_v60 = vsel %vm11399_vm1, %v687_v40, %v701_v8  ;;  %v720_v37 = vrot.slane %v719_v42, 4  ;;  %v738_v0 = vsel %vm11407_vm3, %v719_v42, %v737_v35  ;;  %vm14180_vm5 = vcmask 59392  }
  0x46   : > { %vm11439_vm6 = vmand %vm14180_vm5, %vm709_vm7  ;;  %v757_v6 = vrot.slane %v755_v48, 5  ;;  %v11031_v9 = vpop.eup %11030  ;;  %703 = vst [vmem:[#allocation2 + $0x10] sm:$0x3] %v702_v60  ;;  %v730_v61 = vrot.slane %v728_v54, 4  ;;  %v760_v12 = vrot.slane %v758_v56, 4  ;;  %v764_v13 = vshll.u32 %v9549_v44, 16 }
  0x47   : > { %739 = vst [vmem:[#allocation2 + $0x10] sm:$0xc] %v738_v0  ;;  %v768_v19 = vshrl.u32 %v9549_v44, 16  ;;  %vm793_vm8 = vsmask.f32 256  ;;  %v729_v8 = vsel %vm11415_vm2, %v720_v37, %v728_v54  ;;  %v9550_v23 = vpack.c.bf16 %v619_v36, %v619_v36  ;;  %v11460_v44 = vld [vmem:[%s11220_s20 + $0x50] sm:$0xff]   ;;  %vm11477_vm5 = vmand %vm14068_vm11, %vm816_vm0 }
  0x48   : > { %vm794_vm9 = vsmask.f32 4368  ;;  %v780_v21 = vsel %vm11425_vm4, %v757_v6, %v779_v49  ;;  %11032 = vrcp.f32 %v11375_v51  ;;  %vm822_vm7 = vcmask 57344   ;;  %740 = vst.msk [vmem:[#allocation2 + $0x14] sm:$0xf] %vm14068_vm11, %v729_v8  ;;  %v10768_v48 = vld [vmem:[%s14062_s1 + $0x48] sm:$0xff]  }
  0x49   : > { %v744_v24 = vsel %vm11439_vm6, %v730_v61, %v743_v43  ;;  %v761_v28 = vor.u32 %v760_v12, %v757_v6  ;;  %v766_v30 = vrot.slane %v764_v13, 5  ;;  %781 = vst [vmem:[#allocation2 + $0x18] sm:$0x8] %v780_v21  ;;  %v770_v32 = vrot.slane %v768_v19, 4  ;;  %v818_v54 = vld [vmem:[#allocation2 + $0x24] sm:$0xf]  ;;  %vm11514_vm0 = vmor %vm793_vm8, %vm794_vm9 }
  0x4a   : > { %745 = vst [vmem:[#allocation2 + $0x18] sm:$0x7] %v744_v24  ;;  %v797_v35 = vshrl.u32 %v9550_v23, 16  ;;  %v800_v51 = vshll.u32 %v9550_v23, 16  ;;  %v620_v40 = vmul.f32 %v11031_v9, %v11308_v2  ;;  %v558_v42 = vadd.f32 1.0, %v11378_v59  ;;  %v10776_v8 = vld [vmem:[%s14062_s1 + $0x50] sm:$0xff]   ;;  %vm11523_vm13 = vmand %vm822_vm7, %vm793_vm8 }
  0x4b   : > { %v762_v43 = vrot.slane %v761_v28, 4  ;;  %v771_v49 = vor.u32 %v770_v32, %v766_v30  ;;  %v559_v56 = vadd.f32 1.0, %v11386_v4  ;;  %11034 = vpow2.f32 %v11370_v33  ;;  %v10845_v59 = vld [vmem:[%s14062_s1 + $0xa0] sm:$0xff]  }
  0x4c   : > { %v11473_v2 = vrot.slane %v797_v35, 7  ;;  %v9551_v36 = vpack.c.bf16 %v620_v40, %v620_v40  ;;  %11036 = vrcp.f32 %v558_v42  ;;  %v560_v60 = vadd.f32 1.0, %v11395_v15  ;;  %v10761_v37 = vld [vmem:[#allocation2 + $0x8] sm:$0xff]  }
  0x4d   : > { %v767_v0 = vsel %vm11453_vm10, %v762_v43, %v766_v30  ;;  %v772_v6 = vrot.slane %v771_v49, 4  ;;  %11038 = vrcp.f32 %v559_v56  ;;  %v400_v33 = vmul.f32 %v9614_v3, %v11232_v14  ;;  %v10764_v4 = vld [vmem:[#allocation2 + $0x8] sm:$0xfe]   ;;  %9906 = vmatmul.mubr.bf16.vlgmr.msra.gmra.mrb[0].mxu1 %v10761_v37  ;;  %v11532_v37 = vld [vmem:[%s11220_s20 + $0x58] sm:$0xff]  }
  0x4e   : > { %782 = vst.msk [vmem:[#allocation2 + $0x1c] sm:$0xf] %vm14068_vm11, %v767_v0  ;;  %v802_v9 = vor.u32 %v800_v51, %v11473_v2  ;;  %11040 = vrcp.f32 %v560_v60  ;;  %v401_v15 = vmul.f32 %v9615_v17, %v11232_v14  ;;  %v9618_v61 = vunpack.c.l.bf16 %v11460_v44  ;;  %9942 = vmatpush3.bf16.msra.mxu1 %v11281_v45  ;;  %v824_v30 = vld [vmem:[#allocation2 + $0x2c] sm:$0x1] }
  0x4f   : > { %v786_v12 = vsel %vm11467_vm14, %v772_v6, %v785_v47  ;;  %v803_v13 = vrot.slane %v11473_v2, 4  ;;  %v805_v3 = vshrl.u32 %v9551_v36, 16  ;;  %v808_v19 = vshll.u32 %v9551_v36, 16  ;;  %v10763_v21 = vld [vmem:[#allocation2 + $0x10] sm:$0xff]   ;;  %9943 = vmatprep.subr.bf16.mxu1 %v10768_v48  ;;  %v10852_v2 = vld [vmem:[%s14062_s1 + $0xa8] sm:$0xff]  }
  0x50   : > { %v3517_v23 = vshrl.u32 %v10764_v4, 16  ;;  %787 = vst [vmem:[#allocation2 + $0x20] sm:$0xf] %v786_v12  ;;  %v819_v63 = vsel %vm11477_vm5, %v802_v9, %v818_v54  ;;  %v11503_v17 = vadd.f32 %v11240_v18, %v400_v33  ;;  %v10765_v24 = vld [vmem:[#allocation2 + $0x10] sm:$0xff]   ;;  %v3520_v28 = vshll.u32 %v10764_v4, 16  ;;  %9909 = vmatprep.mubr.bf16.mxu1 %v10763_v21 }
  0x51   : > { %820 = vst [vmem:[#allocation2 + $0x24] sm:$0xf] %v819_v63  ;;  %v11506_v32 = vadd.f32 %v11240_v18, %v401_v15  ;;  %v9619_v47 = vunpack.c.h.bf16 %v11460_v44  ;;  %v11510_v45 = vmul.f32 %v9618_v61, %v11232_v14  ;;  %v807_v42 = vrot.slane %v805_v3, 7 }
  0x52   : > { %v11033_v35 = vpop.eup %11032  ;;  %v3519_v51 = vrot.slane %v3517_v23, 1  ;;  %v561_v43 = vadd.f32 1.0, %v11411_v39  ;;  %v562_v18 = vadd.f32 1.0, %v11419_v50  ;;  %v3522_v49 = vrot.slane %v3520_v28, 2  ;;  %9944 = vmatpush3.bf16.msra.mxu1 %v10768_v48  ;;  %v10783_v39 = vld [vmem:[%s14062_s1 + $0x58] sm:$0xff]  }
  0x53   : > { %v3525_v54 = vshrl.u32 %v10765_v24, 16  ;;  %v3528_v56 = vshll.u32 %v10765_v24, 16  ;;  %v621_v14 = vmul.f32 %v11033_v35, %v11313_v5  ;;  %v810_v36 = vor.u32 %v808_v19, %v807_v42  ;;  %9945 = vmatprep.subr.bf16.mxu1 %v10776_v8  ;;  %v10790_v24 = vld [vmem:[%s14062_s1 + $0x60] sm:$0xff]  }
  0x54   : > { %v812_v60 = vrot.slane %v807_v42, 4  ;;  %11042 = vrcp.f32 %v561_v43  ;;  %v563_v50 = vadd.f32 1.0, %v11430_v58  ;;  %v3523_v5 = vor.u32 %v3522_v49, %v3519_v51 }
  0x55   : > { %v11035_v0 = vpop.eup %11034  ;;  %v3527_v6 = vrot.slane %v3525_v54, 1  ;;  %v3530_v33 = vrot.slane %v3528_v56, 2  ;;  %v10767_v4 = vld [vmem:[#allocation2 + $0x18] sm:$0xff]   ;;  %v9552_v15 = vpack.c.bf16 %v621_v14, %v621_v14  ;;  %v811_v61 = vsel %vm11514_vm0, %v803_v13, %v810_v36  ;;  %v854_v56 = vld [vmem:[#allocation2 + $0x2c] sm:$0xe] }
  0x56   : > { %v10769_v9 = vld [vmem:[#allocation2 + $0x18] sm:$0xff]   ;;  %v11037_v48 = vpop.eup %11036  ;;  %v825_v12 = vsel %vm11523_vm13, %v812_v60, %v824_v30  ;;  %11044 = vrcp.f32 %v562_v18  ;;  %v564_v3 = vadd.f32 1.0, %v11035_v0  ;;  %9910 = vmatmul.mubr.bf16.gmra.mrb[4].mxu1 %v10767_v4  ;;  %821 = vst.msk [vmem:[#allocation2 + $0x28] sm:$0xf] %vm14068_vm11, %v811_v61  ;;  %v9622_v51 = vunpack.c.l.bf16 %v11532_v37 }
  0x57   : > { %v11039_v58 = vpop.eup %11038  ;;  %v3531_v19 = vor.u32 %v3530_v33, %v3527_v6  ;;  %v3534_v21 = vshrl.u32 %v10769_v9, 16  ;;  %v3537_v23 = vshll.u32 %v10769_v9, 16  ;;  %826 = vst [vmem:[#allocation2 + $0x2c] sm:$0x1] %v825_v12  ;;  %v622_v63 = vmul.f32 %v11037_v48, %v11317_v10  ;;  %9946 = vmatpush3.bf16.msra.mxu1 %v10776_v8 }
  0x58   : > { %v11041_v13 = vpop.eup %11040  ;;  %v10771_v28 = vld [vmem:[#allocation2 + $0x20] sm:$0xff]   ;;  %v833_v35 = vshrl.u32 %v9552_v15, 16  ;;  %v623_v30 = vmul.f32 %v11039_v58, %v11325_v27  ;;  %11046 = vrcp.f32 %v563_v50  ;;  %vm14193_vm8 = vsmask.f32 6400  ;;  %9947 = vmatprep.subr.bf16.mxu1 %v10783_v39 }
  0x59   : > { %v3532_v42 = vsel %vm14193_vm8, %v3523_v5, %v3531_v19  ;;  %v3536_v43 = vrot.slane %v3534_v21, 1  ;;  %v3539_v18 = vrot.slane %v3537_v23, 2  ;;  %v10772_v49 = vld [vmem:[#allocation2 + $0x20] sm:$0xff]   ;;  %v836_v54 = vshll.u32 %v9552_v15, 16  ;;  %9913 = vmatprep.mubr.bf16.mxu1 %v10771_v28  ;;  %v10770_v5 = vld [vmem:[%s14062_s1 + $0x148] sm:$0xff]   ;;  %vm14194_vm9 = vmmov %vm14193_vm8 }
  0x5a   : > { %10113 = vmatprep.mubr.bf16.mxu0 %v3532_v42  ;;  %v835_v10 = vrot.slane %v833_v35, 6  ;;  %v9553_v14 = vpack.c.bf16 %v622_v63, %v622_v63  ;;  %v9554_v36 = vpack.c.bf16 %v623_v30, %v623_v30  ;;  %v624_v8 = vmul.f32 %v11041_v13, %v11329_v31  ;;  %v10798_v15 = vld [vmem:[%s14062_s1 + $0x68] sm:$0xff]   ;;  %v10773_v21 = vld [vmem:[%s14062_s1 + $0x150] sm:$0xff]   ;;  %vm14195_vm7 = vmmov %vm14193_vm8 }
  0x5b   : > { %v3540_v60 = vor.u32 %v3539_v18, %v3536_v43  ;;  %v3543_v27 = vshrl.u32 %v10772_v49, 16  ;;  %v3546_v50 = vshll.u32 %v10772_v49, 16  ;;  %v838_v0 = vrot.slane %v836_v54, 7  ;;  %9948 = vmatpush3.bf16.msra.mxu1 %v10783_v39  ;;  %v858_v35 = vld [vmem:[#allocation2 + $0x34] sm:$0x3] }
  0x5c   : > { %v842_v6 = vshrl.u32 %v9553_v14, 16  ;;  %v845_v33 = vshll.u32 %v9553_v14, 16  ;;  %v867_v4 = vshrl.u32 %v9554_v36, 16  ;;  %v870_v9 = vshll.u32 %v9554_v36, 16  ;;  %9949 = vmatprep.subr.bf16.mxu1 %v10790_v24  ;;  %v888_v42 = vld [vmem:[#allocation2 + $0x34] sm:$0xc] }
  0x5d   : > { %v3541_v48 = vsel %vm14194_vm9, %v3531_v19, %v3540_v60  ;;  %v3545_v31 = vrot.slane %v3543_v27, 1  ;;  %v3548_v61 = vrot.slane %v3546_v50, 2  ;;  %v839_v12 = vor.u32 %v838_v0, %v835_v10  ;;  %v10804_v36 = vld [vmem:[%s14062_s1 + $0x70] sm:$0xff]   ;;  %vm14196_vm9 = vmmov %vm14195_vm7 }
  0x5e   : > { %v11043_v58 = vpop.eup %11042  ;;  %10114 = vmatmul.mubr.bf16.vlgmr.msra.gmra.mrb[0].mxu0 %v3541_v48  ;;  %v844_v23 = vrot.slane %v842_v6, 6  ;;  %v847_v63 = vrot.slane %v845_v33, 7  ;;  %v9555_v13 = vpack.c.bf16 %v624_v8, %v624_v8  ;;  %11048 = vrcp.f32 %v564_v3  ;;  %v10777_v33 = vld [vmem:[%s14062_s1 + $0x158] sm:$0xff]  }
  0x5f   : > { %10150 = vmatpush3.bf16.msra.mxu0 %v11295_v55  ;;  %v11558_v39 = vor.u32 %v3548_v61, %v3545_v31  ;;  %v855_v19 = vsel %vm11382_vm15, %v839_v12, %v854_v56  ;;  %v840_v28 = vrot.slane %v839_v12, 4  ;;  %v869_v30 = vrot.slane %v867_v4, 5  ;;  %9950 = vmatpush3.bf16.msra.mxu1 %v10790_v24 }
  0x60   : > { %v11045_v43 = vpop.eup %11044  ;;  %10151 = vmatprep.subr.bf16.mxu0 %v10770_v5  ;;  %856 = vst [vmem:[#allocation2 + $0x2c] sm:$0xe] %v855_v19  ;;  %v848_v18 = vor.u32 %v847_v63, %v844_v23  ;;  %v872_v49 = vrot.slane %v870_v9, 6  ;;  %v625_v54 = vmul.f32 %v11043_v58, %v11333_v38  ;;  %v876_v10 = vshrl.u32 %v9555_v13, 16  ;;  %9951 = vmatprep.subr.bf16.mxu1 %v10798_v15  ;;  %v10810_v23 = vld [vmem:[%s14062_s1 + $0x78] sm:$0xff]   ;;  %v11590_v63 = vld [vmem:[%s14062_s1 + $0x160] sm:$0xff]  }
  0x61   : > { %v3550_v55 = vsel %vm14195_vm7, %v3540_v60, %v11558_v39  ;;  %v879_v3 = vshll.u32 %v9555_v13, 16  ;;  %v626_v14 = vmul.f32 %v11045_v43, %v11340_v53  ;;  %v517_v56 = vmul.f32 1.442695, %v469_v29  ;;  %v11573_v60 = vld [vmem:[#allocation2 + $0x8] sm:$0xfc]  }
  0x62   : > { %v11047_v8 = vpop.eup %11046  ;;  %10117 = vmatprep.mubr.bf16.mxu0 %v3550_v55  ;;  %v849_v38 = vsel %vm11390_vm12, %v840_v28, %v848_v18  ;;  %v850_v24 = vrot.slane %v848_v18, 4  ;;  %v873_v27 = vor.u32 %v872_v49, %v869_v30  ;;  %v878_v50 = vrot.slane %v876_v10, 5  ;;  %v11600_v43 = vld [vmem:[%s14063_s2] ss:$0 sm:$0xff] }
  0x63   : > { %10152 = vmatpush3.bf16.msra.mxu0 %v10770_v5  ;;  %857 = vst.msk [vmem:[#allocation2 + $0x30] sm:$0xf] %vm14068_vm11, %v849_v38  ;;  %v881_v53 = vrot.slane %v879_v3, 6  ;;  %v9556_v29 = vpack.c.bf16 %v625_v54, %v625_v54  ;;  %v9557_v0 = vpack.c.bf16 %v626_v14, %v626_v14  ;;  %v627_v6 = vmul.f32 %v11047_v8, %v11351_v7  ;;  %v892_v5 = vld [vmem:[#allocation2 + $0x3c] sm:$0x7] }
  0x64   : > { %10153 = vmatprep.subr.bf16.mxu0 %v10773_v21  ;;  %v859_v4 = vsel %vm11399_vm1, %v850_v24, %v858_v35  ;;  %v889_v9 = vsel %vm11407_vm3, %v873_v27, %v888_v42  ;;  %v874_v48 = vrot.slane %v873_v27, 4  ;;  %11050 = vpow2.f32 %v517_v56  ;;  %9952 = vmatpush3.bf16.msra.mxu1 %v10798_v15  ;;  %v922_v7 = vld [vmem:[#allocation2 + $0x3c] sm:$0x8] }
  0x65   : > { %860 = vst [vmem:[#allocation2 + $0x34] sm:$0x3] %v859_v4  ;;  %890 = vst [vmem:[#allocation2 + $0x34] sm:$0xc] %v889_v9  ;;  %v882_v31 = vor.u32 %v881_v53, %v878_v50  ;;  %v901_v61 = vshll.u32 %v9556_v29, 16  ;;  %v904_v12 = vshrl.u32 %v9556_v29, 16  ;;  %9953 = vmatprep.subr.bf16.mxu1 %v10804_v36  ;;  %v9558_v19 = vpack.c.bf16 %v627_v6, %v627_v6 }
  0x66   : > { %v910_v58 = vshll.u32 %v9557_v0, 16  ;;  %v914_v13 = vshrl.u32 %v9557_v0, 16  ;;  %v519_v15 = vmul.f32 1.442695, %v470_v26  ;;  %v4185_v28 = vrot.slane %v11573_v60, 2  ;;  %v10784_v29 = vld [vmem:[%s14062_s1 + $0x168] sm:$0xff]  }
  0x67   : > { %v10774_v35 = vld [vmem:[#allocation2 + $0x28] sm:$0xff]   ;;  %10154 = vmatpush3.bf16.msra.mxu0 %v10773_v21  ;;  %v883_v30 = vsel %vm11415_vm2, %v874_v48, %v882_v31  ;;  %v884_v42 = vrot.slane %v882_v31, 4  ;;  %v403_v18 = vmul.f32 %v11600_v43, %v9619_v47  ;;  %v11608_v26 = vld [vmem:[%s14064_s3] ss:$0 sm:$0xff]  ;;  %v903_v10 = vrot.slane %v901_v61, 5 }
  0x68   : > { %v11612_v21 = vadd.f32 %v11608_v26, %v11510_v45  ;;  %v11049_v49 = vpop.eup %11048  ;;  %v10775_v54 = vld [vmem:[#allocation2 + $0x28] sm:$0xff]   ;;  %10155 = vmatprep.subr.bf16.mxu0 %v10777_v33  ;;  %891 = vst.msk [vmem:[#allocation2 + $0x38] sm:$0xf] %vm14068_vm11, %v883_v30  ;;  %v906_v55 = vrot.slane %v904_v12, 4  ;;  %v912_v3 = vrot.slane %v910_v58, 5  ;;  %v916_v44 = vrot.slane %v914_v13, 4  ;;  %9954 = vmatpush3.bf16.msra.mxu1 %v10804_v36 }
  0x69   : > { %v10818_v47 = vld [vmem:[%s14062_s1 + $0x80] sm:$0xff]   ;;  %9914 = vmatmul.mubr.bf16.gmra.mrb[8].mxu1 %v10774_v35  ;;  %v893_v14 = vsel %vm11439_vm6, %v884_v42, %v892_v5  ;;  %v628_v45 = vmul.f32 %v11049_v49, %v11355_v11  ;;  %v935_v56 = vshrl.u32 %v9558_v19, 16  ;;  %v938_v8 = vshll.u32 %v9558_v19, 16  ;;  %9955 = vmatprep.subr.bf16.mxu1 %v10810_v23  ;;  %v954_v53 = vld [vmem:[#allocation2 + $0x48] sm:$0xf]  ;;  %v11633_v13 = vld [vmem:[#allocation2 + $0x10] sm:$0xff]  }
  0x6a   : > { %v3552_v38 = vshrl.u32 %v10775_v54, 16  ;;  %v3555_v24 = vshll.u32 %v10775_v54, 16  ;;  %894 = vst [vmem:[#allocation2 + $0x3c] sm:$0x7] %v893_v14  ;;  %v923_v27 = vsel %vm11425_vm4, %v903_v10, %v922_v7  ;;  %v907_v36 = vor.u32 %v906_v55, %v903_v10  ;;  %v926_v50 = vld [vmem:[#allocation2 + $0x44] sm:$0xf] }
  0x6b   : > { %10156 = vmatpush3.bf16.msra.mxu0 %v10777_v33  ;;  %924 = vst [vmem:[#allocation2 + $0x3c] sm:$0x8] %v923_v27  ;;  %v917_v0 = vor.u32 %v916_v44, %v912_v3  ;;  %v9559_v11 = vpack.c.bf16 %v628_v45, %v628_v45  ;;  %v937_v6 = vrot.slane %v935_v56, 7  ;;  %11052 = vpow2.f32 %v519_v15  ;;  %v958_v10 = vld [vmem:[#allocation2 + $0x50] sm:$0x1] }
  0x6c   : > { %v3554_v4 = vrot.slane %v3552_v38, 1  ;;  %v3557_v9 = vrot.slane %v3555_v24, 2  ;;  %v10778_v48 = vld [vmem:[#allocation2 + $0x30] sm:$0xff]   ;;  %10157 = vmatprep.subr.bf16.mxu0 %v11590_v63  ;;  %v11628_v31 = vadd.f32 %v11608_v26, %v403_v18  ;;  %v404_v33 = vmul.f32 %v11600_v43, %v9622_v51  ;;  %9956 = vmatpush3.bf16.msra.mxu1 %v10810_v23 }
  0x6d   : > { %v10779_v5 = vld [vmem:[#allocation2 + $0x30] sm:$0xff]   ;;  %v908_v61 = vrot.slane %v907_v36, 4  ;;  %v918_v7 = vrot.slane %v917_v0, 4  ;;  %v940_v12 = vor.u32 %v938_v8, %v937_v6  ;;  %v941_v58 = vrot.slane %v937_v6, 4  ;;  %9993 = vmatprep.subr.bf16.mxu1 %v10818_v47  ;;  %9917 = vmatprep.mubr.bf16.mxu1 %v10778_v48  ;;  %v11648_v47 = vld [vmem:[#allocation2 + $0x18] sm:$0xff]   ;;  %v11667_v48 = vld [vmem:[%s11220_s20 + $0x60] sm:$0xff]  }
  0x6e   : > { %vm4184_vm8 = vcmask 1045504   ;;  %v11051_v19 = vpop.eup %11050  ;;  %v3558_v15 = vor.u32 %v3557_v9, %v3554_v4  ;;  %v3561_v35 = vshrl.u32 %v10779_v5, 16  ;;  %v3564_v30 = vshll.u32 %v10779_v5, 16  ;;  %v10787_v18 = vld [vmem:[%s14062_s1 + $0x170] sm:$0xff]  }
  0x6f   : > { %v943_v42 = vshrl.u32 %v9559_v11, 16  ;;  %10158 = vmatpush3.bf16.msra.mxu0 %v11590_v63  ;;  %v913_v51 = vsel %vm11453_vm10, %v908_v61, %v912_v3  ;;  %v927_v23 = vsel %vm11467_vm14, %v918_v7, %v926_v50  ;;  %v946_v49 = vshll.u32 %v9559_v11, 16 }
  0x70   : > { %v955_v54 = vsel %vm11477_vm5, %v940_v12, %v954_v53  ;;  %v3559_v55 = vsel %vm14196_vm9, %v11558_v39, %v3558_v15  ;;  %v3563_v44 = vrot.slane %v3561_v35, 1  ;;  %v3566_v63 = vrot.slane %v3564_v30, 2  ;;  %10159 = vmatprep.subr.bf16.mxu0 %v10784_v29  ;;  %925 = vst.msk [vmem:[#allocation2 + $0x40] sm:$0xf] %vm14068_vm11, %v913_v51  ;;  %928 = vst [vmem:[#allocation2 + $0x44] sm:$0xf] %v927_v23 }
  0x71   : > { %v945_v3 = vrot.slane %v943_v42, 7  ;;  %956 = vst [vmem:[#allocation2 + $0x48] sm:$0xf] %v955_v54  ;;  %10118 = vmatmul.mubr.bf16.gmra.mrb[4].mxu0 %v3559_v55  ;;  %v565_v14 = vadd.f32 1.0, %v11051_v19  ;;  %v4186_v45 = vrot.slane %v11633_v13, 2  ;;  %v471_v56 = vsub.f32 0.0, %v11503_v17  ;;  %vm14197_vm9 = vmmov %vm14195_vm7 }
  0x72   : > { %v472_v8 = vsub.f32 0.0, %v11506_v32  ;;  %v3567_v38 = vor.u32 %v3566_v63, %v3563_v44  ;;  %v10781_v39 = vld [vmem:[#allocation2 + $0x38] sm:$0xff]   ;;  %v9623_v36 = vunpack.c.h.bf16 %v11532_v37  ;;  %v11658_v6 = vadd.f32 %v11608_v26, %v404_v33  ;;  %v11671_v12 = vld [vmem:[#allocation2 + $0x20] sm:$0xff]   ;;  %v11679_v30 = vld [vmem:[#allocation2 + $0x28] sm:$0xff]  }
  0x73   : > { %v948_v24 = vor.u32 %v946_v49, %v945_v3  ;;  %v950_v27 = vrot.slane %v945_v3, 4  ;;  %v10782_v50 = vld [vmem:[#allocation2 + $0x38] sm:$0xff]   ;;  %10160 = vmatpush3.bf16.msra.mxu0 %v10784_v29  ;;  %11054 = vrcp.f32 %v565_v14  ;;  %v521_v0 = vmul.f32 1.442695, %v471_v56  ;;  %9918 = vmatmul.mubr.bf16.gmra.mrb[12].mxu1 %v10781_v39  ;;  %v11676_v13 = vld [vmem:[%s14062_s1 + $0x180] sm:$0xff]   ;;  %v11684_v23 = vld [vmem:[%s11220_s20 + $0x68] sm:$0xff]  }
  0x74   : > { %v10791_v53 = vld [vmem:[%s14062_s1 + $0x178] sm:$0xff]   ;;  %v523_v11 = vmul.f32 1.442695, %v472_v8  ;;  %v3568_v4 = vsel %vm14195_vm7, %v3558_v15, %v3567_v38  ;;  %10161 = vmatprep.subr.bf16.mxu0 %v10787_v18  ;;  %v4188_v29 = vrot.slane %v11648_v47, 2  ;;  %v3570_v61 = vshrl.u32 %v10782_v50, 16 }
  0x75   : > { %v949_v9 = vsel %vm11514_vm0, %v941_v58, %v948_v24  ;;  %v959_v37 = vsel %vm11523_vm13, %v950_v27, %v958_v10  ;;  %v11053_v5 = vpop.eup %11052  ;;  %10121 = vmatprep.mubr.bf16.mxu0 %v3568_v4  ;;  %v3573_v7 = vshll.u32 %v10782_v50, 16  ;;  %11056 = vpow2.f32 %v521_v0 }
  0x76   : > { %957 = vst.msk [vmem:[#allocation2 + $0x4c] sm:$0xf] %vm14068_vm11, %v949_v9  ;;  %960 = vst [vmem:[#allocation2 + $0x50] sm:$0x1] %v959_v37  ;;  %v473_v33 = vsub.f32 0.0, %v11612_v21  ;;  %v566_v58 = vadd.f32 1.0, %v11053_v5  ;;  %11058 = vpow2.f32 %v523_v11  ;;  %v9626_v42 = vunpack.c.l.bf16 %v11667_v48 }
  0x77   : > { %v474_v19 = vsub.f32 0.0, %v11628_v31  ;;  %v3572_v15 = vrot.slane %v3570_v61, 1  ;;  %v3575_v35 = vrot.slane %v3573_v7, 2  ;;  %10162 = vmatpush3.bf16.msra.mxu0 %v10787_v18  ;;  %v405_v51 = vmul.f32 %v11600_v43, %v9623_v36  ;;  %v10785_v49 = vld [vmem:[#allocation2 + $0x40] sm:$0xff]  }
  0x78   : > { %10163 = vmatprep.subr.bf16.mxu0 %v10791_v53  ;;  %11060 = vrcp.f32 %v566_v58  ;;  %v11689_v54 = vsel %vm4184_vm8, %v4185_v28, %v4186_v45  ;;  %v11694_v18 = vsel %vm4184_vm8, %v4186_v45, %v4188_v29  ;;  %v10786_v55 = vld [vmem:[#allocation2 + $0x40] sm:$0xff]   ;;  %v475_v44 = vsub.f32 0.0, %v11658_v6  ;;  %9921 = vmatprep.mubr.bf16.mxu1 %v10785_v49 }
  0x79   : > { %v3576_v10 = vor.u32 %v3575_v35, %v3572_v15  ;;  %v406_v63 = vmul.f32 %v11600_v43, %v9626_v42  ;;  %v11699_v3 = vadd.f32 %v11608_v26, %v405_v51  ;;  %v525_v14 = vmul.f32 1.442695, %v473_v33 }
  0x7a   : > { %v527_v60 = vmul.f32 1.442695, %v474_v19  ;;  %v4190_v28 = vrot.slane %v11671_v12, 2  ;;  %v9627_v56 = vunpack.c.h.bf16 %v11667_v48  ;;  %v3579_v45 = vshrl.u32 %v10786_v55, 16 }
  0x7b   : > { %v3577_v8 = vsel %vm14197_vm9, %v3567_v38, %v3576_v10  ;;  %v3582_v39 = vshll.u32 %v10786_v55, 16  ;;  %10164 = vmatpush3.bf16.msra.mxu0 %v10791_v53  ;;  %v529_v24 = vmul.f32 1.442695, %v475_v44  ;;  %11062 = vpow2.f32 %v525_v14  ;;  %vm14198_vm9 = vmmov %vm14195_vm7 }
  0x7c   : > { %10122 = vmatmul.mubr.bf16.gmra.mrb[8].mxu0 %v3577_v8  ;;  %10201 = vmatprep.subr.bf16.mxu0 %v11676_v13  ;;  %v11706_v36 = vadd.f32 %v11608_v26, %v406_v63  ;;  %v476_v50 = vsub.f32 0.0, %v11699_v3  ;;  %v9630_v0 = vunpack.c.l.bf16 %v11684_v23  ;;  %v3581_v4 = vrot.slane %v3579_v45, 1  ;;  %v11721_v63 = vld [vmem:[#allocation2 + $0x30] sm:$0xff]  }
  0x7d   : > { %v10788_v27 = vld [vmem:[#allocation2 + $0x48] sm:$0xff]   ;;  %v11055_v11 = vpop.eup %11054  ;;  %v3584_v9 = vrot.slane %v3582_v39, 2  ;;  %11064 = vpow2.f32 %v527_v60  ;;  %v4192_v53 = vrot.slane %v11679_v30, 2  ;;  %v11718_v19 = vsel %vm4184_vm8, %v4188_v29, %v4190_v28 }
  0x7e   : > { %v10789_v38 = vld [vmem:[#allocation2 + $0x48] sm:$0xff]   ;;  %9922 = vmatmul.mubr.bf16.gmra.mrb[16].mxu1 %v10788_v27  ;;  %v629_v37 = vmul.f32 %v11055_v11, %v11360_v16  ;;  %11066 = vpow2.f32 %v529_v24  ;;  %v477_v48 = vsub.f32 0.0, %v11706_v36  ;;  %v531_v5 = vmul.f32 1.442695, %v476_v50  ;;  %v988_v50 = vld [vmem:[#allocation2 + $0x50] sm:$0xe] }
  0x7f   : > { %v11057_v61 = vpop.eup %11056  ;;  %v3585_v7 = vor.u32 %v3584_v9, %v3581_v4  ;;  %v3588_v33 = vshrl.u32 %v10789_v38, 16  ;;  %v3591_v58 = vshll.u32 %v10789_v38, 16  ;;  %v407_v29 = vmul.f32 %v11600_v43, %v9627_v56 }
  0x80   : > { %v11059_v15 = vpop.eup %11058  ;;  %v9560_v35 = vpack.c.bf16 %v629_v37, %v629_v37  ;;  %v567_v42 = vadd.f32 1.0, %v11057_v61  ;;  %11068 = vpow2.f32 %v531_v5  ;;  %v533_v16 = vmul.f32 1.442695, %v477_v48  ;;  %v11741_v48 = vld [vmem:[#allocation2 + $0x38] sm:$0xff]  }
  0x81   : > { %v3586_v51 = vsel %vm14195_vm7, %v3576_v10, %v3585_v7  ;;  %v3590_v49 = vrot.slane %v3588_v33, 1  ;;  %v3593_v55 = vrot.slane %v3591_v58, 2  ;;  %v568_v44 = vadd.f32 1.0, %v11059_v15  ;;  %v11729_v10 = vld [vmem:[%s11220_s20 + $0x70] sm:$0xff]  }
  0x82   : > { %v11061_v14 = vpop.eup %11060  ;;  %10125 = vmatprep.mubr.bf16.mxu0 %v3586_v51  ;;  %v967_v60 = vshrl.u32 %v9560_v35, 16  ;;  %v970_v47 = vshll.u32 %v9560_v35, 16  ;;  %11070 = vrcp.f32 %v567_v42  ;;  %v408_v39 = vmul.f32 %v11600_v43, %v9630_v0 }
  0x83   : > { %v11724_v8 = vor.u32 %v3593_v55, %v3590_v49  ;;  %v630_v45 = vmul.f32 %v11061_v14, %v11366_v22  ;;  %11072 = vrcp.f32 %v568_v44  ;;  %v11732_v11 = vadd.f32 %v11608_v26, %v407_v29  ;;  %v992_v29 = vld [vmem:[#allocation2 + $0x58] sm:$0x3] }
  0x84   : > { %v969_v24 = vrot.slane %v967_v60, 6  ;;  %v972_v27 = vrot.slane %v970_v47, 7  ;;  %11074 = vpow2.f32 %v533_v16  ;;  %v4194_v9 = vrot.slane %v11721_v63, 2  ;;  %v11749_v60 = vld [vmem:[#allocation2 + $0x40] sm:$0xff]  }
  0x85   : > { %v3595_v4 = vsel %vm14198_vm9, %v3585_v7, %v11724_v8  ;;  %v9561_v56 = vpack.c.bf16 %v630_v45, %v630_v45  ;;  %v11738_v22 = vadd.f32 %v11608_v26, %v408_v39  ;;  %v11063_v38 = vpop.eup %11062  ;;  %v478_v37 = vsub.f32 0.0, %v11732_v11 }
  0x86   : > { %10126 = vmatmul.mubr.bf16.gmra.mrb[12].mxu0 %v3595_v4  ;;  %v973_v0 = vor.u32 %v972_v27, %v969_v24  ;;  %v9631_v5 = vunpack.c.h.bf16 %v11684_v23  ;;  %v9634_v61 = vunpack.c.l.bf16 %v11729_v10  ;;  %v569_v15 = vadd.f32 1.0, %v11063_v38 }
  0x87   : > { %v11065_v33 = vpop.eup %11064  ;;  %v976_v58 = vshrl.u32 %v9561_v56, 16  ;;  %v979_v7 = vshll.u32 %v9561_v56, 16  ;;  %10165 = vmatprep.mubr.bf16.mxu0 %v11689_v54  ;;  %v479_v35 = vsub.f32 0.0, %v11738_v22  ;;  %v535_v55 = vmul.f32 1.442695, %v478_v37  ;;  %v10803_v56 = vld [vmem:[%s14062_s1 + $0x188] sm:$0xff]  }
  0x88   : > { %v11067_v42 = vpop.eup %11066  ;;  %v974_v16 = vrot.slane %v973_v0, 4  ;;  %v989_v51 = vsel %vm11382_vm15, %v973_v0, %v988_v50  ;;  %v570_v49 = vadd.f32 1.0, %v11065_v33  ;;  %11076 = vrcp.f32 %v569_v15 }
  0x89   : > { %v978_v44 = vrot.slane %v976_v58, 6  ;;  %v981_v14 = vrot.slane %v979_v7, 7  ;;  %990 = vst [vmem:[#allocation2 + $0x50] sm:$0xe] %v989_v51  ;;  %v571_v23 = vadd.f32 1.0, %v11067_v42  ;;  %v11756_v54 = vsel %vm4184_vm8, %v4190_v28, %v4192_v53 }
  0x8a   : > { %v11069_v47 = vpop.eup %11068  ;;  %11078 = vrcp.f32 %v570_v49  ;;  %v537_v45 = vmul.f32 1.442695, %v479_v35  ;;  %v409_v39 = vmul.f32 %v11600_v43, %v9631_v5  ;;  %v410_v50 = vmul.f32 %v11600_v43, %v9634_v61 }
  0x8b   : > { %v982_v24 = vor.u32 %v981_v14, %v978_v44  ;;  %11080 = vrcp.f32 %v571_v23  ;;  %v572_v27 = vadd.f32 1.0, %v11069_v47  ;;  %v4196_v38 = vrot.slane %v11741_v48, 2  ;;  %v1022_v23 = vld [vmem:[#allocation2 + $0x58] sm:$0xc] }
  0x8c   : > { %v11071_v4 = vpop.eup %11070  ;;  %11082 = vpow2.f32 %v535_v55  ;;  %v11765_v12 = vadd.f32 %v11608_v26, %v409_v39  ;;  %v9635_v28 = vunpack.c.h.bf16 %v11729_v10  ;;  %v11775_v48 = vadd.f32 %v11608_v26, %v410_v50 }
  0x8d   : > { %v11073_v0 = vpop.eup %11072  ;;  %v983_v37 = vsel %vm11390_vm12, %v974_v16, %v982_v24  ;;  %v631_v5 = vmul.f32 %v11071_v4, %v11503_v17  ;;  %v984_v61 = vrot.slane %v982_v24, 4  ;;  %11084 = vrcp.f32 %v572_v27 }
  0x8e   : > { %v11075_v33 = vpop.eup %11074  ;;  %991 = vst.msk [vmem:[#allocation2 + $0x54] sm:$0xf] %vm14068_vm11, %v983_v37  ;;  %v632_v58 = vmul.f32 %v11073_v0, %v11506_v32  ;;  %10166 = vmatmul.mubr.bf16.vlgmr.msra.gmra.mrb[0].mxu0 %v11694_v18  ;;  %v480_v10 = vsub.f32 0.0, %v11765_v12  ;;  %v4198_v7 = vrot.slane %v11749_v60, 2  ;;  %11086 = vpow2.f32 %v537_v45  ;;  %v10809_v18 = vld [vmem:[%s14062_s1 + $0x190] sm:$0xff]   ;;  %v10815_v37 = vld [vmem:[%s14062_s1 + $0x198] sm:$0xff]  }
  0x8f   : > { %v993_v15 = vsel %vm11399_vm1, %v984_v61, %v992_v29  ;;  %v9562_v17 = vpack.c.bf16 %v631_v5, %v631_v5  ;;  %10202 = vmatpush3.bf16.msra.mxu0 %v11676_v13  ;;  %10169 = vmatprep.mubr.bf16.mxu0 %v11718_v19  ;;  %v573_v35 = vadd.f32 1.0, %v11075_v33  ;;  %v481_v42 = vsub.f32 0.0, %v11775_v48  ;;  %v11793_v19 = vld [vmem:[#allocation2 + $0x48] sm:$0xff]   ;;  %v1026_v0 = vld [vmem:[#allocation2 + $0x60] sm:$0x7] }
  0x90   : > { %994 = vst [vmem:[#allocation2 + $0x58] sm:$0x3] %v993_v15  ;;  %v9563_v32 = vpack.c.bf16 %v632_v58, %v632_v58  ;;  %10203 = vmatprep.subr.bf16.mxu0 %v10803_v56  ;;  %v539_v16 = vmul.f32 1.442695, %v480_v10  ;;  %v411_v51 = vmul.f32 %v11600_v43, %v9635_v28  ;;  %v4195_v13 = vsel %vm4184_vm8, %v4192_v53, %v4194_v9 }
  0x91   : > { %v1001_v49 = vshrl.u32 %v9562_v17, 16  ;;  %v1004_v55 = vshll.u32 %v9562_v17, 16  ;;  %11088 = vrcp.f32 %v573_v35  ;;  %v541_v47 = vmul.f32 1.442695, %v481_v42  ;;  %v1056_v17 = vld [vmem:[#allocation2 + $0x60] sm:$0x8] }
  0x92   : > { %v1010_v44 = vshrl.u32 %v9563_v32, 16  ;;  %v1013_v14 = vshll.u32 %v9563_v32, 16  ;;  %11090 = vpow2.f32 %v539_v16  ;;  %v11077_v29 = vpop.eup %11076  ;;  %v11798_v43 = vsel %vm4184_vm8, %v4194_v9, %v4196_v38 }
  0x93   : > { %v1003_v45 = vrot.slane %v1001_v49, 5  ;;  %v1006_v39 = vrot.slane %v1004_v55, 6  ;;  %10204 = vmatpush3.bf16.msra.mxu0 %v10803_v56  ;;  %v11801_v30 = vadd.f32 %v11608_v26, %v411_v51  ;;  %v633_v50 = vmul.f32 %v11077_v29, %v11612_v21 }
  0x94   : > { %v11079_v53 = vpop.eup %11078  ;;  %v1012_v24 = vrot.slane %v1010_v44, 5  ;;  %v1015_v27 = vrot.slane %v1013_v14, 6  ;;  %10205 = vmatprep.subr.bf16.mxu0 %v10809_v18  ;;  %v11807_v4 = vsel %vm4184_vm8, %v4196_v38, %v4198_v7  ;;  %11092 = vpow2.f32 %v541_v47 }
  0x95   : > { %v11081_v56 = vpop.eup %11080  ;;  %v10792_v28 = vld [vmem:[#allocation2 + $0x50] sm:$0xff]   ;;  %v1007_v63 = vor.u32 %v1006_v39, %v1003_v45  ;;  %v634_v9 = vmul.f32 %v11079_v53, %v11628_v31  ;;  %v4200_v26 = vrot.slane %v11793_v19, 2  ;;  %v9564_v61 = vpack.c.bf16 %v633_v50, %v633_v50 }
  0x96   : > { %v11083_v21 = vpop.eup %11082  ;;  %v1016_v5 = vor.u32 %v1015_v27, %v1012_v24  ;;  %v635_v33 = vmul.f32 %v11081_v56, %v11658_v6  ;;  %10170 = vmatmul.mubr.bf16.gmra.mrb[4].mxu0 %v11756_v54  ;;  %v482_v38 = vsub.f32 0.0, %v11801_v30  ;;  %9925 = vmatprep.mubr.bf16.mxu1 %v10792_v28  ;;  %v10822_v6 = vld [vmem:[%s14062_s1 + $0x1a0] sm:$0xff]   ;;  %v1088_v24 = vld [vmem:[#allocation2 + $0x6c] sm:$0xf]  ;;  %v1060_v28 = vld [vmem:[#allocation2 + $0x68] sm:$0xf] }
  0x97   : > { %v11085_v58 = vpop.eup %11084  ;;  %v1008_v31 = vrot.slane %v1007_v63, 4  ;;  %v1023_v10 = vsel %vm11407_vm3, %v1007_v63, %v1022_v23  ;;  %v9565_v15 = vpack.c.bf16 %v634_v9, %v634_v9  ;;  %10173 = vmatprep.mubr.bf16.mxu0 %v4195_v13  ;;  %v574_v35 = vadd.f32 1.0, %v11083_v21  ;;  %10206 = vmatpush3.bf16.msra.mxu0 %v10809_v18 }
  0x98   : > { %1024 = vst [vmem:[#allocation2 + $0x58] sm:$0xc] %v1023_v10  ;;  %v1018_v32 = vrot.slane %v1016_v5, 4  ;;  %v1035_v42 = vshll.u32 %v9564_v61, 16  ;;  %v1038_v16 = vshrl.u32 %v9564_v61, 16  ;;  %v9566_v51 = vpack.c.bf16 %v635_v33, %v635_v33  ;;  %v11087_v54 = vpop.eup %11086  ;;  %10207 = vmatprep.subr.bf16.mxu0 %v10815_v37  ;;  %v10828_v33 = vld [vmem:[%s14062_s1 + $0x1a8] sm:$0xff]  }
  0x99   : > { %v1017_v49 = vsel %vm11415_vm2, %v1008_v31, %v1016_v5  ;;  %v1044_v55 = vshll.u32 %v9565_v15, 16  ;;  %v1048_v44 = vshrl.u32 %v9565_v15, 16  ;;  %v636_v14 = vmul.f32 %v11085_v58, %v11699_v3  ;;  %v1092_v15 = vld [vmem:[#allocation2 + $0x74] sm:$0x1] }
  0x9a   : > { %1025 = vst.msk [vmem:[#allocation2 + $0x5c] sm:$0xf] %vm14068_vm11, %v1017_v49  ;;  %v1027_v13 = vsel %vm11439_vm6, %v1018_v32, %v1026_v0  ;;  %v1037_v23 = vrot.slane %v1035_v42, 5  ;;  %v1040_v18 = vrot.slane %v1038_v16, 4  ;;  %v1069_v47 = vshrl.u32 %v9566_v51, 16  ;;  %v10819_v16 = vld [vmem:[#allocation2 + $0x50] sm:$0xff]  }
  0x9b   : > { %v11089_v29 = vpop.eup %11088  ;;  %1028 = vst [vmem:[#allocation2 + $0x60] sm:$0x7] %v1027_v13  ;;  %v1046_v45 = vrot.slane %v1044_v55, 5  ;;  %v1050_v39 = vrot.slane %v1048_v44, 4  ;;  %v1072_v53 = vshll.u32 %v9566_v51, 16  ;;  %v9567_v27 = vpack.c.bf16 %v636_v14, %v636_v14  ;;  %10208 = vmatpush3.bf16.msra.mxu0 %v10815_v37  ;;  %v10834_v51 = vld [vmem:[%s14062_s1 + $0x1b0] sm:$0xff]  }
  0x9c   : > { %v11091_v50 = vpop.eup %11090  ;;  %v1041_v56 = vor.u32 %v1040_v18, %v1037_v23  ;;  %v1057_v3 = vsel %vm11425_vm4, %v1037_v23, %v1056_v17  ;;  %v1071_v63 = vrot.slane %v1069_v47, 7  ;;  %v637_v9 = vmul.f32 %v11089_v29, %v11706_v36  ;;  %10209 = vmatprep.subr.bf16.mxu0 %v10822_v6  ;;  %v1122_v13 = vld [vmem:[#allocation2 + $0x74] sm:$0xe] }
  0x9d   : > { %1058 = vst [vmem:[#allocation2 + $0x60] sm:$0x8] %v1057_v3  ;;  %v1051_v0 = vor.u32 %v1050_v39, %v1046_v45  ;;  %v1077_v21 = vshrl.u32 %v9567_v27, 16  ;;  %v1080_v5 = vshll.u32 %v9567_v27, 16  ;;  %v575_v61 = vadd.f32 1.0, %v11087_v54 }
  0x9e   : > { %v1042_v58 = vrot.slane %v1041_v56, 4  ;;  %v1074_v31 = vor.u32 %v1072_v53, %v1071_v63  ;;  %v1075_v10 = vrot.slane %v1071_v63, 4  ;;  %v9568_v17 = vpack.c.bf16 %v637_v9, %v637_v9  ;;  %10174 = vmatmul.mubr.bf16.gmra.mrb[8].mxu0 %v11798_v43  ;;  %v11093_v32 = vpop.eup %11092  ;;  %v11872_v56 = vld [vmem:[%s14062_s1 + $0x1c0] sm:$0xff]  }
  0x9f   : > { %v1052_v36 = vrot.slane %v1051_v0, 4  ;;  %v1079_v37 = vrot.slane %v1077_v21, 7  ;;  %11094 = vrcp.f32 %v574_v35  ;;  %v576_v42 = vadd.f32 1.0, %v11091_v50  ;;  %10177 = vmatprep.mubr.bf16.mxu0 %v11807_v4  ;;  %10210 = vmatpush3.bf16.msra.mxu0 %v10822_v6 }
  0xa0   : > { %v1047_v54 = vsel %vm11453_vm10, %v1042_v58, %v1046_v45  ;;  %v1089_v49 = vsel %vm11477_vm5, %v1074_v31, %v1088_v24  ;;  %v1101_v55 = vshrl.u32 %v9568_v17, 16  ;;  %v1104_v43 = vshll.u32 %v9568_v17, 16  ;;  %10211 = vmatprep.subr.bf16.mxu0 %v10828_v33  ;;  %v11880_v58 = vld [vmem:[%s11220_s20 + $0x78] sm:$0xff]   ;;  %s13240_s20 = scalar_lea.vmem %s14065_s4, %s9542_s15 }
  0xa1   : > { %v10796_v44 = vld [vmem:[#allocation2 + $0x58] sm:$0xff]   ;;  %1059 = vst.msk [vmem:[#allocation2 + $0x64] sm:$0xf] %vm14068_vm11, %v1047_v54  ;;  %v1061_v4 = vsel %vm11467_vm14, %v1052_v36, %v1060_v28  ;;  %1090 = vst [vmem:[#allocation2 + $0x6c] sm:$0xf] %v1089_v49  ;;  %v1082_v35 = vor.u32 %v1080_v5, %v1079_v37  ;;  %v1084_v14 = vrot.slane %v1079_v37, 4  ;;  %11096 = vrcp.f32 %v575_v61 }
  0xa2   : > { %1062 = vst [vmem:[#allocation2 + $0x68] sm:$0xf] %v1061_v4  ;;  %v1103_v23 = vrot.slane %v1101_v55, 6  ;;  %v1106_v18 = vrot.slane %v1104_v43, 7  ;;  %v577_v47 = vadd.f32 1.0, %v11093_v32  ;;  %11098 = vrcp.f32 %v576_v42  ;;  %9926 = vmatmul.mubr.bf16.gmra.mrb[20].mxu1 %v10796_v44  ;;  %v10821_v53 = vld [vmem:[#allocation2 + $0x58] sm:$0xff]  }
  0xa3   : > { %v1083_v6 = vsel %vm11514_vm0, %v1075_v10, %v1082_v35  ;;  %v1093_v29 = vsel %vm11523_vm13, %v1084_v14, %v1092_v15  ;;  %v543_v45 = vmul.f32 1.442695, %v482_v38  ;;  %v4201_v39 = vsel %vm4184_vm8, %v4198_v7, %v4200_v26  ;;  %10212 = vmatpush3.bf16.msra.mxu0 %v10828_v33  ;;  %v10840_v38 = vld [vmem:[%s14062_s1 + $0x1b8] sm:$0xff]  }
  0xa4   : > { %1091 = vst.msk [vmem:[#allocation2 + $0x70] sm:$0xf] %vm14068_vm11, %v1083_v6  ;;  %1094 = vst [vmem:[#allocation2 + $0x74] sm:$0x1] %v1093_v29  ;;  %v11858_v24 = vor.u32 %v1106_v18, %v1103_v23  ;;  %11100 = vrcp.f32 %v577_v47  ;;  %v4202_v27 = vrot.slane %v10819_v16, 2  ;;  %10213 = vmatprep.subr.bf16.mxu0 %v10834_v51  ;;  %v4204_v50 = vrot.slane %v10821_v53, 2 }
  0xa5   : > { %11102 = vpow2.f32 %v543_v45  ;;  %v1126_v44 = vld [vmem:[#allocation2 + $0x7c] sm:$0x3]  ;;  %v1156_v4 = vld [vmem:[#allocation2 + $0x7c] sm:$0xc]  ;;  %v1190_v29 = vld [vmem:[#allocation2 + $0x84] sm:$0x8] }
  0xa6   : > { %v1123_v60 = vsel %vm11382_vm15, %v11858_v24, %v1122_v13  ;;  %10178 = vmatmul.mubr.bf16.gmra.mrb[12].mxu0 %v4201_v39  ;;  %v4203_v7 = vsel %vm4184_vm8, %v4200_v26, %v4202_v27  ;;  %v4205_v0 = vsel %vm4184_vm8, %v4202_v27, %v4204_v50  ;;  %v1108_v42 = vrot.slane %v11858_v24, 4 }
  0xa7   : > { %1124 = vst [vmem:[#allocation2 + $0x74] sm:$0xe] %v1123_v60  ;;  %10181 = vmatprep.mubr.bf16.mxu0 %v4203_v7  ;;  %10214 = vmatpush3.bf16.msra.mxu0 %v10834_v51  ;;  %v9639_v7 = vunpack.c.h.bf16 %v11880_v58  ;;  %vm2444_vm15 = vcmask 1046528  }
  0xa8   : > { %v10799_v3 = vld [vmem:[#allocation2 + $0x60] sm:$0xff]   ;;  %10215 = vmatprep.subr.bf16.mxu0 %v10840_v38 }
  0xa9   : > { %v11095_v28 = vpop.eup %11094  ;;  %v10801_v63 = vld [vmem:[#allocation2 + $0x68] sm:$0xff]   ;;  %9929 = vmatprep.mubr.bf16.mxu1 %v10799_v3  ;;  %v10824_v9 = vld [vmem:[#allocation2 + $0x60] sm:$0xff]  }
  0xaa   : > { %v638_v62 = vmul.f32 %v11095_v28, %v11732_v11  ;;  %v11875_v19 = vld [vmem:[#allocation2 + $0x68] sm:$0xff]   ;;  %9930 = vmatmul.mubr.bf16.gmra.mrb[24].mxu1 %v10801_v63  ;;  %v4206_v33 = vrot.slane %v10824_v9, 2  ;;  %v1160_v3 = vld [vmem:[#allocation2 + $0x84] sm:$0x7] }
  0xab   : > { %v11097_v26 = vpop.eup %11096  ;;  %10216 = vmatpush3.bf16.msra.mxu0 %v10840_v38  ;;  %v4208_v10 = vrot.slane %v11875_v19, 2 }
  0xac   : > { %v11099_v21 = vpop.eup %11098  ;;  %v639_v5 = vmul.f32 %v11097_v26, %v11738_v22  ;;  %v9569_v61 = vpack.c.bf16 %v638_v62, %v638_v62  ;;  %10253 = vmatprep.subr.bf16.mxu0 %v11872_v56  ;;  %v4207_v37 = vsel %vm4184_vm8, %v4204_v50, %v4206_v33 }
  0xad   : > { %v640_v31 = vmul.f32 %v11099_v21, %v11765_v12  ;;  %v9638_v12 = vunpack.c.l.bf16 %v11880_v58  ;;  %v4209_v45 = vsel %vm4184_vm8, %v4206_v33, %v4208_v10  ;;  %v11117_v58 = vld [vmem:[%s14064_s3] ss:$0 sm:$0xff] }
  0xae   : > { %v11101_v11 = vpop.eup %11100  ;;  %v10805_v15 = vld [vmem:[#allocation2 + $0x70] sm:$0xff]   ;;  %v1110_v17 = vshrl.u32 %v9569_v61, 16  ;;  %v1113_v32 = vshll.u32 %v9569_v61, 16  ;;  %v9570_v36 = vpack.c.bf16 %v639_v5, %v639_v5  ;;  %10182 = vmatmul.mubr.bf16.gmra.mrb[16].mxu0 %v4205_v0  ;;  %v11116_v5 = vld [vmem:[%s14063_s2] ss:$0 sm:$0xff] }
  0xaf   : > { %v11103_v22 = vpop.eup %11102  ;;  %v641_v16 = vmul.f32 %v11101_v11, %v11775_v48  ;;  %v9571_v51 = vpack.c.bf16 %v640_v31, %v640_v31  ;;  %10185 = vmatprep.mubr.bf16.mxu0 %v4207_v37  ;;  %9933 = vmatprep.mubr.bf16.mxu1 %v10805_v15  ;;  %v11889_v18 = vld [vmem:[#allocation2 + $0x70] sm:$0xff]   ;;  %v412_v20 = vmul.f32 %v11116_v5, %v9638_v12 }
  0xb0   : > { %v1112_v54 = vrot.slane %v1110_v17, 6  ;;  %v1115_v49 = vrot.slane %v1113_v32, 7  ;;  %v1135_v55 = vshrl.u32 %v9570_v36, 16  ;;  %v1138_v43 = vshll.u32 %v9570_v36, 16 }
  0xb1   : > { %v1144_v35 = vshrl.u32 %v9571_v51, 16  ;;  %v1147_v14 = vshll.u32 %v9571_v51, 16  ;;  %v9572_v13 = vpack.c.bf16 %v641_v16, %v641_v16  ;;  %v578_v23 = vadd.f32 1.0, %v11103_v22 }
  0xb2   : > { %v1116_v47 = vor.u32 %v1115_v49, %v1112_v54  ;;  %v1137_v6 = vrot.slane %v1135_v55, 5  ;;  %v1140_v48 = vrot.slane %v1138_v43, 6  ;;  %v4210_v63 = vrot.slane %v11889_v18, 2  ;;  %v10816_v55 = vld [vmem:[#allocation2] sm:$0xff]  }
  0xb3   : > { %v1146_v39 = vrot.slane %v1144_v35, 5  ;;  %v1149_v53 = vrot.slane %v1147_v14, 6  ;;  %v1169_v24 = vshll.u32 %v9572_v13, 16  ;;  %11104 = vrcp.f32 %v578_v23  ;;  %v10817_v23 = vld [vmem:[#allocation2 + $0x8] sm:$0xff]  }
  0xb4   : > { %v1117_v27 = vsel %vm11390_vm12, %v1108_v42, %v1116_v47  ;;  %v1118_v38 = vrot.slane %v1116_v47, 4  ;;  %v1141_v60 = vor.u32 %v1140_v48, %v1137_v6  ;;  %v1172_v46 = vshrl.u32 %v9572_v13, 16  ;;  %v1194_v6 = vld [vmem:[#allocation2 + $0x8c] sm:$0xf] }
  0xb5   : > { %1125 = vst.msk [vmem:[#allocation2 + $0x78] sm:$0xf] %vm14068_vm11, %v1117_v27  ;;  %v1150_v50 = vor.u32 %v1149_v53, %v1146_v39  ;;  %v1171_v28 = vrot.slane %v1169_v24, 5  ;;  %v4211_v21 = vsel %vm4184_vm8, %v4208_v10, %v4210_v63  ;;  %v413_v61 = vmul.f32 %v11116_v5, %v9639_v7  ;;  %v10820_v27 = vld [vmem:[#allocation2 + $0x10] sm:$0xff]  }
  0xb6   : > { %v1127_v62 = vsel %vm11399_vm1, %v1118_v38, %v1126_v44  ;;  %v1157_v9 = vsel %vm11407_vm3, %v1141_v60, %v1156_v4  ;;  %v1142_v19 = vrot.slane %v1141_v60, 4  ;;  %10186 = vmatmul.mubr.bf16.gmra.mrb[20].mxu0 %v4209_v45  ;;  %v1174_v57 = vrot.slane %v1172_v46, 4  ;;  %v10823_v60 = vld [vmem:[#allocation2 + $0x18] sm:$0xff]  }
  0xb7   : > { %1128 = vst [vmem:[#allocation2 + $0x7c] sm:$0x3] %v1127_v62  ;;  %1158 = vst [vmem:[#allocation2 + $0x7c] sm:$0xc] %v1157_v9  ;;  %v1152_v26 = vrot.slane %v1150_v50, 4  ;;  %v1191_v0 = vsel %vm11425_vm4, %v1171_v28, %v1190_v29  ;;  %10189 = vmatprep.mubr.bf16.mxu0 %v4211_v21  ;;  %v11915_v31 = vadd.f32 %v11117_v58, %v412_v20  ;;  %v1801_v18 = vshll.u32 %v10816_v55, 16 }
  0xb8   : > { %v1151_v34 = vsel %vm11415_vm2, %v1142_v19, %v1150_v50  ;;  %1192 = vst [vmem:[#allocation2 + $0x84] sm:$0x8] %v1191_v0  ;;  %v11917_v10 = vadd.f32 %v11117_v58, %v413_v61  ;;  %v1175_v32 = vor.u32 %v1174_v57, %v1171_v28  ;;  %v1799_v29 = vshrl.u32 %v10816_v55, 16  ;;  %v10825_v0 = vld [vmem:[#allocation2 + $0x20] sm:$0xff]   ;;  %v11932_v21 = vld [vmem:[#allocation2 + $0x28] sm:$0xff]   ;;  %vm14199_vm2 = vmmov %vm14195_vm7 }
  0xb9   : > { %1159 = vst.msk [vmem:[#allocation2 + $0x80] sm:$0xf] %vm14068_vm11, %v1151_v34  ;;  %v1161_v33 = vsel %vm11439_vm6, %v1152_v26, %v1160_v3  ;;  %v483_v11 = vsub.f32 0.0, %v11915_v31  ;;  %v1803_v39 = vrot.slane %v1801_v18, 1  ;;  %v1806_v53 = vshll.u32 %v10817_v23, 16  ;;  %vm14200_vm4 = vmmov %vm14199_vm2 }
  0xba   : > { %1162 = vst [vmem:[#allocation2 + $0x84] sm:$0x7] %v1161_v33  ;;  %v484_v1 = vsub.f32 0.0, %v11917_v10  ;;  %v1176_v12 = vrot.slane %v1175_v32, 4  ;;  %vm1797_vm12 = vsmask.f32 7424  ;;  %vm14201_vm6 = vmmov %vm14199_vm2 }
  0xbb   : > { %v545_v37 = vmul.f32 1.442695, %v483_v11  ;;  %v1804_v50 = vor.u32 %v1803_v39, %v1799_v29  ;;  %v1808_v3 = vrot.slane %v1806_v53, 1  ;;  %v1814_v28 = vshll.u32 %v10820_v27, 16  ;;  %v1222_v18 = vld [vmem:[#allocation2 + $0x90] sm:$0xf] }
  0xbc   : > { %v547_v42 = vmul.f32 1.442695, %v484_v1  ;;  %v1822_v62 = vshll.u32 %v10823_v60, 16  ;;  %v1818_v19 = vshrl.u32 %v10820_v27, 16  ;;  %v1826_v58 = vshrl.u32 %v10823_v60, 16 }
  0xbd   : > { %v11105_v41 = vpop.eup %11104  ;;  %11106 = vpow2.f32 %v545_v37  ;;  %v1809_v52 = vsel %vm1797_vm12, %v1804_v50, %v1808_v3  ;;  %v1816_v26 = vrot.slane %v1814_v28, 1  ;;  %v1838_v11 = vshll.u32 %v11932_v21, 16 }
  0xbe   : > { %v10807_v15 = vld [vmem:[#allocation2 + $0x78] sm:$0xff]   ;;  %v642_v17 = vmul.f32 %v11105_v41, %v11801_v30  ;;  %11108 = vpow2.f32 %v547_v42  ;;  %v1824_v20 = vrot.slane %v1822_v62, 1  ;;  %v1830_v41 = vshll.u32 %v10825_v0, 16 }
  0xbf   : > { %v10832_v36 = vld [vmem:[#allocation2 + $0x78] sm:$0xff]   ;;  %9934 = vmatmul.mubr.bf16.gmra.mrb[28].mxu1 %v10807_v15  ;;  %v1820_v61 = vor.u32 %v1818_v19, %v1816_v26  ;;  %v1834_v37 = vshrl.u32 %v10825_v0, 16  ;;  %v1840_v55 = vrot.slane %v1838_v11, 1  ;;  %v10847_v19 = vld [vmem:[#allocation2 + $0x10] sm:$0xfc]   ;;  %vm5924_vm3 = vcmask 1044480  }
  0xc0   : > { %v9573_v22 = vpack.c.bf16 %v642_v17, %v642_v17  ;;  %v4212_v51 = vrot.slane %v10832_v36, 2  ;;  %v10826_v36 = vld [vmem:[%s14062_s1 + $0x88] sm:$0xff]   ;;  %vm5255_vm1 = vsmask.f32 5376 }
  0xc1   : > { %v10811_v16 = vld [vmem:[#allocation2 + $0x80] sm:$0xff]   ;;  %v1825_v1 = vsel %vm1797_vm12, %v1820_v61, %v1824_v20 }
  0xc2   : > { %v1178_v54 = vshll.u32 %v9573_v22, 16  ;;  %v1182_v49 = vshrl.u32 %v9573_v22, 16  ;;  %v10836_v43 = vld [vmem:[#allocation2 + $0x80] sm:$0xff]   ;;  %9937 = vmatprep.mubr.bf16.mxu1 %v10811_v16  ;;  %v4213_v30 = vsel %vm4184_vm8, %v4210_v63, %v4212_v51  ;;  %v1810_v63 = vshrl.u32 %v10817_v23, 16 }
  0xc3   : > { %10190 = vmatmul.mubr.bf16.gmra.mrb[24].mxu0 %v4213_v30  ;;  %v4214_v35 = vrot.slane %v10836_v43, 2  ;;  %v1832_v16 = vrot.slane %v1830_v41, 1  ;;  %v10835_v43 = vld [vmem:[#allocation2 + $0x38] sm:$0xff]  }
  0xc4   : > { %v1180_v44 = vrot.slane %v1178_v54, 5  ;;  %v1184_v4 = vrot.slane %v1182_v49, 4  ;;  %v1812_v5 = vor.u32 %v1810_v63, %v1808_v3  ;;  %v1828_v49 = vor.u32 %v1826_v58, %v1824_v20 }
  0xc5   : > { %v4215_v47 = vsel %vm4184_vm8, %v4212_v51, %v4214_v35  ;;  %v10831_v51 = vld [vmem:[#allocation2 + $0x30] sm:$0xff]   ;;  %v1854_v39 = vshll.u32 %v10835_v43, 16  ;;  %v4720_v58 = vrot.slane %v10847_v19, 2 }
  0xc6   : > { %v1181_v14 = vsel %vm11453_vm10, %v1176_v12, %v1180_v44  ;;  %v1185_v13 = vor.u32 %v1184_v4, %v1180_v44  ;;  %10193 = vmatprep.mubr.bf16.mxu0 %v4215_v47  ;;  %v1817_v17 = vsel %vm1797_vm12, %v1812_v5, %v1816_v26  ;;  %v10833_v12 = vld [vmem:[%s14062_s1 + $0x90] sm:$0xff]   ;;  %v1836_v44 = vor.u32 %v1834_v37, %v1832_v16  ;;  %v1226_v47 = vld [vmem:[#allocation2 + $0x98] sm:$0x1]  ;;  %vm14202_vm10 = vmmov %vm14199_vm2 }
  0xc7   : > { %1193 = vst.msk [vmem:[#allocation2 + $0x88] sm:$0xf] %vm14068_vm11, %v1181_v14  ;;  %v11107_v24 = vpop.eup %11106  ;;  %v1842_v14 = vshrl.u32 %v11932_v21, 16  ;;  %v1850_v27 = vshrl.u32 %v10831_v51, 16  ;;  %v1856_v62 = vrot.slane %v1854_v39, 1  ;;  %v10848_v26 = vld [vmem:[#allocation2 + $0x18] sm:$0xff]  }
  0xc8   : > { %v1186_v48 = vrot.slane %v1185_v13, 4  ;;  %v11109_v25 = vpop.eup %11108  ;;  %v579_v38 = vadd.f32 1.0, %v11107_v24  ;;  %v10837_v13 = vld [vmem:[#allocation2 + $0x40] sm:$0xff]   ;;  %v1858_v21 = vshrl.u32 %v10835_v43, 16  ;;  %v4721_v11 = vrot.slane %v10848_v26, 2 }
  0xc9   : > { %v580_v7 = vadd.f32 1.0, %v11109_v25  ;;  %v1841_v25 = vsel %vm1797_vm12, %v1836_v44, %v1840_v55  ;;  %v1844_v63 = vor.u32 %v1842_v14, %v1840_v55  ;;  %v1866_v5 = vshrl.u32 %v10837_v13, 16  ;;  %v10853_v14 = vld [vmem:[#allocation2 + $0x68] sm:$0xff]  }
  0xca   : > { %v1195_v45 = vsel %vm11467_vm14, %v1186_v48, %v1194_v6  ;;  %11110 = vrcp.f32 %v579_v38  ;;  %v1846_v6 = vshll.u32 %v10831_v51, 16  ;;  %v10839_v48 = vld [vmem:[%s14062_s1 + $0x98] sm:$0xff]   ;;  %vm14203_vm14 = vmmov %vm14199_vm2 }
  0xcb   : > { %1196 = vst [vmem:[#allocation2 + $0x8c] sm:$0xf] %v1195_v45  ;;  %11112 = vrcp.f32 %v580_v7  ;;  %v1833_v45 = vsel %vm1797_vm12, %v1828_v49, %v1832_v16  ;;  %v10851_v16 = vld [vmem:[#allocation2 + $0x20] sm:$0xff]   ;;  %v10864_v49 = vld [vmem:[%s14062_s1 + $0xb8] sm:$0xff]  }
  0xcc   : > { %v1848_v50 = vrot.slane %v1846_v6, 1 }
  0xce   : > { %v1852_v40 = vor.u32 %v1850_v27, %v1848_v50  ;;  %v1849_v0 = vsel %vm1797_vm12, %v1844_v63, %v1848_v50  ;;  %v10863_v50 = vld [vmem:[%s14062_s1 + $0x1d0] sm:$0xff]  }
  0xd0   : > { %v1857_v20 = vsel %vm1797_vm12, %v1852_v40, %v1856_v62 }
  0xd2   : > { %v10813_v9 = vld [vmem:[#allocation2 + $0x88] sm:$0xff]  }
  0xd3   : > { %v11930_v46 = vld [vmem:[#allocation2 + $0x88] sm:$0xff]   ;;  %9938 = vmatmul.mubr.bf16.gmra.mrb[32].mxu1 %v10813_v9  ;;  %v1862_v9 = vshll.u32 %v10837_v13, 16 }
  0xd4   : > { %9957 = vmatprep.mubr.bf16.mxu1 %v1809_v52  ;;  %v4216_v34 = vrot.slane %v11930_v46, 2  ;;  %v11111_v57 = vpop.eup %11110  ;;  %v10841_v52 = vld [vmem:[#allocation2 + $0x48] sm:$0xff]  }
  0xd5   : > { %v11113_v15 = vpop.eup %11112  ;;  %v643_v32 = vmul.f32 %v11111_v57, %v11915_v31  ;;  %v11118_v31 = vld [vmem:[%s14062_s1 + $0x80] sm:$0xff]   ;;  %v1864_v61 = vrot.slane %v1862_v9, 1  ;;  %v10843_v57 = vld [vmem:[#allocation2 + $0x50] sm:$0xff]   ;;  %v1874_v43 = vshrl.u32 %v10841_v52, 16 }
  0xd6   : > { %v4217_v33 = vsel %vm4184_vm8, %v4214_v35, %v4216_v34  ;;  %v644_v22 = vmul.f32 %v11113_v15, %v11917_v10  ;;  %v1860_v15 = vor.u32 %v1858_v21, %v1856_v62 }
  0xd7   : > { %10194 = vmatmul.mubr.bf16.gmra.mrb[28].mxu0 %v4217_v33  ;;  %v9574_v42 = vpack.c.bf16 %v643_v32, %v643_v32  ;;  %v1870_v33 = vshll.u32 %v10841_v52, 16  ;;  %v10846_v32 = vld [vmem:[#allocation2 + $0x58] sm:$0xff]  }
  0xd8   : > { %v9575_v54 = vpack.c.bf16 %v644_v22, %v644_v22  ;;  %v1865_v55 = vsel %vm1797_vm12, %v1860_v15, %v1864_v61  ;;  %v1886_v44 = vshll.u32 %v10846_v32, 16  ;;  %v1890_v27 = vshrl.u32 %v10846_v32, 16 }
  0xd9   : > { %v1203_v30 = vshrl.u32 %v9574_v42, 16  ;;  %v1206_v10 = vshll.u32 %v9574_v42, 16  ;;  %v1872_v37 = vrot.slane %v1870_v33, 1 }
  0xda   : > { %v1211_v4 = vshrl.u32 %v9575_v54, 16  ;;  %v1214_v35 = vshll.u32 %v9575_v54, 16  ;;  %v4722_v54 = vsel %vm4184_vm8, %v4720_v58, %v4721_v11  ;;  %v1888_v6 = vrot.slane %v1886_v44, 1  ;;  %v10861_v58 = vld [vmem:[#allocation2 + $0x80] sm:$0xff]  }
  0xdb   : > { %9958 = vmatmul.mubr.bf16.vlgmr.msra.gmra.mrb[0].mxu1 %v1817_v17  ;;  %v1205_v23 = vrot.slane %v1203_v30, 7 }
  0xdc   : > { %9994 = vmatpush3.bf16.msra.mxu1 %v11118_v31  ;;  %9961 = vmatprep.mubr.bf16.mxu1 %v1825_v1  ;;  %v1213_v29 = vrot.slane %v1211_v4, 7  ;;  %v10858_v1 = vld [vmem:[%s14062_s1 + $0xb0] sm:$0xff]   ;;  %v10854_v31 = vld [vmem:[#allocation2 + $0x28] sm:$0xff]   ;;  %v4723_v4 = vrot.slane %v10851_v16, 2  ;;  %v1892_v9 = vor.u32 %v1890_v27, %v1888_v6  ;;  %v10870_v27 = vld [vmem:[#allocation2] sm:$0xfe]  }
  0xdd   : > { %9995 = vmatprep.subr.bf16.mxu1 %v10826_v36  ;;  %v1208_v53 = vor.u32 %v1206_v10, %v1205_v23  ;;  %v1209_v24 = vrot.slane %v1205_v23, 4  ;;  %v10850_v10 = vld [vmem:[#allocation2 + $0x60] sm:$0xff]   ;;  %v4725_v13 = vrot.slane %v10854_v31, 2  ;;  %v1876_v23 = vor.u32 %v1874_v43, %v1872_v37  ;;  %v10868_v16 = vld [vmem:[#allocation2 + $0x50] sm:$0xff]  }
  0xde   : > { %v1216_v38 = vor.u32 %v1214_v35, %v1213_v29  ;;  %v1218_v60 = vrot.slane %v1213_v29, 4  ;;  %v10860_v29 = vld [vmem:[#allocation2 + $0x38] sm:$0xff]   ;;  %v4724_v39 = vsel %vm4184_vm8, %v4721_v11, %v4723_v4  ;;  %v10876_v11 = vld [vmem:[%s14062_s1 + $0x1e0] sm:$0xff]   ;;  %v1930_v43 = vshrl.u32 %v10861_v58, 16 }
  0xdf   : > { %v1223_v7 = vsel %vm11477_vm5, %v1208_v53, %v1222_v18  ;;  %v10856_v18 = vld [vmem:[#allocation2 + $0x30] sm:$0xff]   ;;  %v4726_v53 = vsel %vm4184_vm8, %v4723_v4, %v4725_v13  ;;  %v4729_v62 = vrot.slane %v10860_v29, 2  ;;  %vm14204_vm5 = vmmov %vm14199_vm2 }
  0xe0   : > { %9996 = vmatpush3.bf16.msra.mxu1 %v10826_v36  ;;  %v1217_v3 = vsel %vm11514_vm0, %v1209_v24, %v1216_v38  ;;  %1224 = vst [vmem:[#allocation2 + $0x90] sm:$0xf] %v1223_v7  ;;  %v1227_v28 = vsel %vm11523_vm13, %v1218_v60, %v1226_v47  ;;  %v1868_v36 = vor.u32 %v1866_v5, %v1864_v61  ;;  %v10857_v24 = vld [vmem:[%s14062_s1 + $0x1c8] sm:$0xff]   ;;  %v1902_v38 = vshll.u32 %v10853_v14, 16  ;;  %vm14205_vm13 = vmmov %vm14199_vm2 }
  0xe1   : > { %9997 = vmatprep.subr.bf16.mxu1 %v10833_v12  ;;  %1225 = vst.msk [vmem:[#allocation2 + $0x94] sm:$0xf] %vm14068_vm11, %v1217_v3  ;;  %1228 = vst [vmem:[#allocation2 + $0x98] sm:$0x1] %v1227_v28  ;;  %v1898_v7 = vshrl.u32 %v10850_v10, 16  ;;  %v10855_v28 = vld [vmem:[#allocation2 + $0x70] sm:$0xff]  }
  0xe2   : > { %v1873_v46 = vsel %vm1797_vm12, %v1868_v36, %v1872_v37  ;;  %v4727_v63 = vrot.slane %v10856_v18, 2  ;;  %v1904_v52 = vrot.slane %v1902_v38, 1  ;;  %v1910_v40 = vshll.u32 %v10855_v28, 16  ;;  %v10865_v36 = vld [vmem:[#allocation2 + $0x88] sm:$0xff]   ;;  %vm14206_vm0 = vmmov %vm14199_vm2 }
  0xe3   : > { %9962 = vmatmul.mubr.bf16.gmra.mrb[4].mxu1 %v1833_v45  ;;  %v11989_v45 = vld [vmem:[%s14062_s1 + $0xc0] sm:$0xff]   ;;  %vm14208_vm7 = vmmov %vm14206_vm0 }
  0xe4   : > { %9965 = vmatprep.mubr.bf16.mxu1 %v1841_v25  ;;  %9998 = vmatpush3.bf16.msra.mxu1 %v10833_v12  ;;  %v1878_v12 = vshll.u32 %v10843_v57, 16  ;;  %v4728_v26 = vsel %vm4184_vm8, %v4725_v13, %v4727_v63  ;;  %v4730_v21 = vsel %vm4184_vm8, %v4727_v63, %v4729_v62  ;;  %v1912_v15 = vrot.slane %v1910_v40, 1  ;;  %v10874_v40 = vld [vmem:[#allocation2 + $0x10] sm:$0xff]  }
  0xe5   : > { %9999 = vmatprep.subr.bf16.mxu1 %v10839_v48 }
  0xe6   : > { %v1880_v35 = vrot.slane %v1878_v12, 1 }
  0xe7   : > { %v10867_v44 = vld [vmem:[#allocation2 + $0x90] ss:$0 sps:$4 sm:$0x11]  }
  0xe8   : > { %10000 = vmatpush3.bf16.msra.mxu1 %v10839_v48  ;;  %v10842_v41 = vld [vmem:[#allocation2 + $0x90] sm:$0xff]   ;;  %v10844_v17 = vld [vmem:[#allocation2 + $0x98] ss:$0 sps:$4 sm:$0x33]   ;;  %v1894_v48 = vshll.u32 %v10850_v10, 16  ;;  %v1881_v25 = vsel %vm1797_vm12, %v1876_v23, %v1880_v35  ;;  %v10875_v23 = vld [vmem:[#allocation2 + $0x60] sm:$0xff]  }
  0xe9   : > { %10001 = vmatprep.subr.bf16.mxu1 %v10845_v59  ;;  %v4218_v22 = vrot.slane %v10842_v41, 2  ;;  %v4220_v42 = vrot.slane %v10844_v17, 2  ;;  %v10888_v10 = vld [vmem:[%s14062_s1 + $0x1f0] sm:$0xff]   ;;  %v4739_v38 = vrot.slane %v10875_v23, 2 }
  0xea   : > { %v1896_v3 = vrot.slane %v1894_v48, 1  ;;  %v10894_v48 = vld [vmem:[%s14062_s1 + $0x1f8] sm:$0xff]  }
  0xeb   : > { %9966 = vmatmul.mubr.bf16.gmra.mrb[8].mxu1 %v1849_v0  ;;  %v4219_v51 = vsel %vm4184_vm8, %v4216_v34, %v4218_v22  ;;  %v4221_v30 = vsel %vm4184_vm8, %v4218_v22, %v4220_v42  ;;  %v1882_v34 = vshrl.u32 %v10843_v57, 16  ;;  %v10866_v0 = vld [vmem:[#allocation2 + $0x48] sm:$0xff]   ;;  %v1914_v57 = vshrl.u32 %v10855_v28, 16 }
  0xec   : > { %9969 = vmatprep.mubr.bf16.mxu1 %v1857_v20  ;;  %10002 = vmatpush3.bf16.msra.mxu1 %v10845_v59  ;;  %v10859_v59 = vld [vmem:[#allocation2 + $0x78] sm:$0xff]   ;;  %v1900_v19 = vor.u32 %v1898_v7, %v1896_v3  ;;  %v1897_v5 = vsel %vm1797_vm12, %v1892_v9, %v1896_v3  ;;  %v1906_v20 = vshrl.u32 %v10853_v14, 16  ;;  %v4733_v17 = vrot.slane %v10866_v0, 2  ;;  %v12033_v7 = vld [vmem:[%s14062_s1 + $0x200] sm:$0xff]  }
  0xed   : > { %10003 = vmatprep.subr.bf16.mxu1 %v10852_v2  ;;  %10197 = vmatprep.mubr.bf16.mxu0 %v4219_v51  ;;  %v1884_v47 = vor.u32 %v1882_v34, %v1880_v35  ;;  %v1918_v61 = vshll.u32 %v10859_v59, 16  ;;  %v1916_v37 = vor.u32 %v1914_v57, %v1912_v15  ;;  %v1926_v22 = vshll.u32 %v10861_v58, 16  ;;  %v10873_v51 = vld [vmem:[#allocation2 + $0x58] sm:$0xff]   ;;  %v10890_v58 = vld [vmem:[#allocation2 + $0x88] sm:$0xff]  }
  0xee   : > { %10198 = vmatmul.mubr.bf16.gmra.mrb[32].mxu0 %v4221_v30  ;;  %v1905_v33 = vsel %vm1797_vm12, %v1900_v19, %v1904_v52  ;;  %v1908_v32 = vor.u32 %v1906_v20, %v1904_v52  ;;  %v1934_v30 = vshll.u32 %v10865_v36, 16  ;;  %v4735_v34 = vrot.slane %v10868_v16, 2  ;;  %v10879_v20 = vld [vmem:[#allocation2 + $0x20] sm:$0xff]   ;;  %v10901_v16 = vld [vmem:[#allocation2 + $0x10] sm:$0xfc]  }
  0xef   : > { %10217 = vmatprep.mubr.bf16.mxu0 %v4722_v54  ;;  %v1889_v60 = vsel %vm1797_vm12, %v1884_v47, %v1888_v6  ;;  %v10882_v54 = vld [vmem:[%s14062_s1 + $0x1e8] sm:$0xff]   ;;  %v4737_v4 = vrot.slane %v10873_v51, 2  ;;  %v2445_v28 = vrot.slane %v10870_v27, 1  ;;  %v10885_v51 = vld [vmem:[#allocation2 + $0x30] sm:$0xff]  }
  0xf0   : > { %10004 = vmatpush3.bf16.msra.mxu1 %v10852_v2  ;;  %v10862_v2 = vld [vmem:[#allocation2 + $0x40] sm:$0xff]   ;;  %v1913_v31 = vsel %vm1797_vm12, %v1908_v32, %v1912_v15  ;;  %v1936_v13 = vrot.slane %v1934_v30, 1  ;;  %v4736_v18 = vsel %vm4184_vm8, %v4733_v17, %v4735_v34  ;;  %v10878_v47 = vld [vmem:[#allocation2 + $0x68] sm:$0xff]  }
  0xf1   : > { %10005 = vmatprep.subr.bf16.mxu1 %v10858_v1  ;;  %v4731_v41 = vrot.slane %v10862_v2, 2  ;;  %v4738_v6 = vsel %vm4184_vm8, %v4735_v34, %v4737_v4  ;;  %v4740_v9 = vsel %vm4184_vm8, %v4737_v4, %v4739_v38  ;;  %v10877_v2 = vld [vmem:[#allocation2 + $0x18] sm:$0xff]  }
  0xf3   : > { %9970 = vmatmul.mubr.bf16.gmra.mrb[12].mxu1 %v1865_v55  ;;  %v4732_v42 = vsel %vm4184_vm8, %v4729_v62, %v4731_v41  ;;  %v4734_v12 = vsel %vm4184_vm8, %v4731_v41, %v4733_v17  ;;  %v10881_v62 = vld [vmem:[#allocation2 + $0x70] sm:$0xff]   ;;  %v10880_v17 = vld [vmem:[%s14062_s1 + $0xc8] sm:$0xff]  }
  0xf4   : > { %9973 = vmatprep.mubr.bf16.mxu1 %v1873_v46  ;;  %10006 = vmatpush3.bf16.msra.mxu1 %v10858_v1  ;;  %v1920_v1 = vrot.slane %v1918_v61, 1  ;;  %v1928_v46 = vrot.slane %v1926_v22, 1  ;;  %v4743_v0 = vrot.slane %v10881_v62, 2 }
  0xf5   : > { %10007 = vmatprep.subr.bf16.mxu1 %v10864_v49 }
  0xf6   : > { %10218 = vmatmul.mubr.bf16.vlgmr.msra.gmra.mrb[0].mxu0 %v4724_v39  ;;  %v1921_v55 = vsel %vm1797_vm12, %v1916_v37, %v1920_v1  ;;  %v1932_v14 = vor.u32 %v1930_v43, %v1928_v46  ;;  %v1938_v39 = vshrl.u32 %v10865_v36, 16  ;;  %v10887_v36 = vld [vmem:[%s14062_s1 + $0xd0] sm:$0xff]   ;;  %v4749_v37 = vrot.slane %v10890_v58, 2 }
  0xf7   : > { %10254 = vmatpush3.bf16.msra.mxu0 %v11872_v56  ;;  %10221 = vmatprep.mubr.bf16.mxu0 %v4726_v53  ;;  %v10869_v56 = vld [vmem:[%s14062_s1 + $0x1d8] sm:$0xff]   ;;  %v1942_v53 = vshll.u32 %v10867_v44, 16 }
  0xf8   : > { %10008 = vmatpush3.bf16.msra.mxu1 %v10864_v49  ;;  %10255 = vmatprep.subr.bf16.mxu0 %v10857_v24  ;;  %v1922_v49 = vshrl.u32 %v10859_v59, 16  ;;  %v10884_v59 = vld [vmem:[#allocation2 + $0x78] sm:$0xff]  }
  0xf9   : > { %10045 = vmatprep.subr.bf16.mxu1 %v11989_v45  ;;  %v1944_v3 = vrot.slane %v1942_v53, 1 }
  0xfa   : > { %v1924_v35 = vor.u32 %v1922_v49, %v1920_v1  ;;  %v2452_v1 = vrot.slane %v10879_v20, 1 }
  0xfb   : > { %9974 = vmatmul.mubr.bf16.gmra.mrb[16].mxu1 %v1881_v25  ;;  %10256 = vmatpush3.bf16.msra.mxu0 %v10857_v24  ;;  %v10871_v24 = vld [vmem:[#allocation2 + $0x8] sm:$0xff]   ;;  %v1937_v25 = vsel %vm1797_vm12, %v1932_v14, %v1936_v13 }
  0xfc   : > { %9977 = vmatprep.mubr.bf16.mxu1 %v1889_v60  ;;  %10257 = vmatprep.subr.bf16.mxu0 %v10863_v50  ;;  %v1929_v29 = vsel %vm1797_vm12, %v1924_v35, %v1928_v46  ;;  %v4741_v60 = vrot.slane %v10878_v47, 2  ;;  %v2446_v63 = vrot.slane %v10871_v24, 1  ;;  %v5260_v46 = vshll.u32 %v10901_v16, 16  ;;  %v10898_v35 = vld [vmem:[#allocation2 + $0xa0] ss:$0 sps:$4 sm:$0x33]  }
  0xfd   : > { %v10891_v47 = vld [vmem:[#allocation2 + $0x40] sm:$0xff]  }
  0xfe   : > { %10222 = vmatmul.mubr.bf16.gmra.mrb[4].mxu0 %v4728_v26  ;;  %v4742_v52 = vsel %vm4184_vm8, %v4739_v38, %v4741_v60  ;;  %v2447_v26 = vsel %vm2444_vm15, %v2445_v28, %v2446_v63  ;;  %v4744_v61 = vsel %vm4184_vm8, %v4741_v60, %v4743_v0  ;;  %v5262_v24 = vrot.slane %v5260_v46, 3  ;;  %v10908_v38 = vld [vmem:[#allocation2 + $0x28] sm:$0xff]  }
  0xff   : > { %10225 = vmatprep.mubr.bf16.mxu0 %v4730_v21  ;;  %10258 = vmatpush3.bf16.msra.mxu0 %v10863_v50  ;;  %v1940_v50 = vor.u32 %v1938_v39, %v1936_v13  ;;  %v2448_v21 = vrot.slane %v10874_v40, 1  ;;  %v2456_v13 = vrot.slane %v10885_v51, 1  ;;  %v12065_v39 = vld [vmem:[#allocation2 + $0x48] sm:$0xff]   ;;  %v2460_v40 = vrot.slane %v10891_v47, 1 }
 0x100   : > { %10259 = vmatprep.subr.bf16.mxu0 %v10869_v56  ;;  %v10906_v28 = vld [vmem:[%s14062_s1 + $0xe8] sm:$0xff]  }
 0x101   : > { %v1945_v19 = vsel %vm1797_vm12, %v1940_v50, %v1944_v3  ;;  %v2449_v41 = vsel %vm2444_vm15, %v2446_v63, %v2448_v21  ;;  %v4755_v3 = vrot.slane %v10898_v35, 2 }
 0x103   : > { %9978 = vmatmul.mubr.bf16.gmra.mrb[20].mxu1 %v1897_v5  ;;  %10260 = vmatpush3.bf16.msra.mxu0 %v10869_v56  ;;  %v4745_v56 = vrot.slane %v10884_v59, 2  ;;  %v2450_v5 = vrot.slane %v10877_v2, 1  ;;  %v5283_v59 = vshrl.u32 %v10908_v38, 16  ;;  %v2462_v2 = vrot.slane %v12065_v39, 1 }
 0x104   : > { %9981 = vmatprep.mubr.bf16.mxu1 %v1905_v33  ;;  %10261 = vmatprep.subr.bf16.mxu0 %v10876_v11  ;;  %v10886_v33 = vld [vmem:[#allocation2 + $0x80] sm:$0xff]  }
 0x105   : > { %v4746_v57 = vsel %vm4184_vm8, %v4743_v0, %v4745_v56  ;;  %v2451_v15 = vsel %vm2444_vm15, %v2448_v21, %v2450_v5  ;;  %v4747_v32 = vrot.slane %v10886_v33, 2  ;;  %v2453_v43 = vsel %vm2444_vm15, %v2450_v5, %v2452_v1  ;;  %v10912_v0 = vld [vmem:[%s14062_s1 + $0xf0] sm:$0xff]  }
 0x106   : > { %10226 = vmatmul.mubr.bf16.gmra.mrb[8].mxu0 %v4732_v42  ;;  %v10902_v42 = vld [vmem:[#allocation2 + $0x18] sm:$0xff]  }
 0x107   : > { %10229 = vmatprep.mubr.bf16.mxu0 %v4734_v12  ;;  %10262 = vmatpush3.bf16.msra.mxu0 %v10876_v11  ;;  %v10883_v11 = vld [vmem:[#allocation2 + $0x28] sm:$0xff]   ;;  %v4748_v12 = vsel %vm4184_vm8, %v4745_v56, %v4747_v32  ;;  %v4750_v49 = vsel %vm4184_vm8, %v4747_v32, %v4749_v37  ;;  %v5265_v44 = vshrl.u32 %v10902_v42, 16  ;;  %v5268_v14 = vshll.u32 %v10902_v42, 16  ;;  %v10897_v56 = vld [vmem:[#allocation2 + $0x50] sm:$0xff]  }
 0x108   : > { %10263 = vmatprep.subr.bf16.mxu0 %v10882_v54  ;;  %v2454_v22 = vrot.slane %v10883_v11, 1  ;;  %v12080_v11 = vld [vmem:[#allocation2 + $0x58] sm:$0xff]   ;;  %v2463_v32 = vsel %vm2444_vm15, %v2460_v40, %v2462_v2 }
 0x109   : > { %v5270_v27 = vrot.slane %v5268_v14, 3  ;;  %v2466_v51 = vrot.slane %v12080_v11, 1  ;;  %v12097_v14 = vld [vmem:[%s14062_s1 + $0x100] sm:$0xff]   ;;  %v10931_v11 = vld [vmem:[#allocation2 + $0x68] sm:$0xff]  }
 0x10a   : > { %v2455_v30 = vsel %vm2444_vm15, %v2452_v1, %v2454_v22  ;;  %v2457_v60 = vsel %vm2444_vm15, %v2454_v22, %v2456_v13 }
 0x10b   : > { %9982 = vmatmul.mubr.bf16.gmra.mrb[24].mxu1 %v1913_v31  ;;  %10264 = vmatpush3.bf16.msra.mxu0 %v10882_v54  ;;  %v10892_v54 = vld [vmem:[#allocation2 + $0x90] sm:$0xff]   ;;  %v12052_v31 = vld [vmem:[#allocation2 + $0x38] sm:$0xff]  }
 0x10c   : > { %9985 = vmatprep.mubr.bf16.mxu1 %v1921_v55  ;;  %10265 = vmatprep.subr.bf16.mxu0 %v10888_v10  ;;  %v10896_v55 = vld [vmem:[#allocation2 + $0x98] sm:$0xff]   ;;  %v4751_v34 = vrot.slane %v10892_v54, 2  ;;  %v2458_v23 = vrot.slane %v12052_v31, 1  ;;  %v10916_v54 = vld [vmem:[#allocation2 + $0x40] sm:$0xff]  }
 0x10d   : > { %v4753_v4 = vrot.slane %v10896_v55, 2  ;;  %v10920_v55 = vld [vmem:[#allocation2 + $0x48] sm:$0xff]   ;;  %v5310_v35 = vshrl.u32 %v10916_v54, 16 }
 0x10e   : > { %10230 = vmatmul.mubr.bf16.gmra.mrb[12].mxu0 %v4736_v18  ;;  %v10899_v18 = vld [vmem:[%s14062_s1 + $0xe0] sm:$0xff]   ;;  %v2459_v50 = vsel %vm2444_vm15, %v2456_v13, %v2458_v23 }
 0x10f   : > { %10233 = vmatprep.mubr.bf16.mxu0 %v4738_v6  ;;  %10266 = vmatpush3.bf16.msra.mxu0 %v10888_v10  ;;  %v5257_v10 = vshrl.u32 %v10901_v16, 16  ;;  %v4752_v6 = vsel %vm4184_vm8, %v4749_v37, %v4751_v34  ;;  %v4754_v53 = vsel %vm4184_vm8, %v4751_v34, %v4753_v4  ;;  %v4756_v21 = vsel %vm4184_vm8, %v4753_v4, %v4755_v3  ;;  %v10904_v34 = vld [vmem:[#allocation2 + $0x60] sm:$0xff]   ;;  %v10907_v4 = vld [vmem:[#allocation2 + $0x68] sm:$0xff]   ;;  %v10926_v3 = vld [vmem:[#allocation2 + $0x58] sm:$0xff]  }
 0x110   : > { %10267 = vmatprep.subr.bf16.mxu0 %v10894_v48  ;;  %v2464_v16 = vrot.slane %v10897_v56, 1  ;;  %v2470_v39 = vrot.slane %v10907_v4, 1  ;;  %v10944_v4 = vld [vmem:[%s14062_s1 + $0x238] sm:$0xff]   ;;  %vm14207_vm8 = vmmov %vm14206_vm0 }
 0x112   : > { %v2465_v46 = vsel %vm2444_vm15, %v2462_v2, %v2464_v16  ;;  %v5340_v2 = vshll.u32 %v10926_v3, 16 }
 0x113   : > { %9986 = vmatmul.mubr.bf16.gmra.mrb[28].mxu1 %v1929_v29  ;;  %10268 = vmatpush3.bf16.msra.mxu0 %v10894_v48  ;;  %v5259_v48 = vrot.slane %v5257_v10, 2  ;;  %v10905_v29 = vld [vmem:[#allocation2 + $0x20] sm:$0xff]  }
 0x114   : > { %9989 = vmatprep.mubr.bf16.mxu1 %v1937_v25  ;;  %10305 = vmatprep.subr.bf16.mxu0 %v12033_v7  ;;  %v5267_v25 = vrot.slane %v5265_v44, 2  ;;  %v5274_v63 = vshrl.u32 %v10905_v29, 16  ;;  %v5277_v62 = vshll.u32 %v10905_v29, 16  ;;  %v2467_v44 = vsel %vm2444_vm15, %v2464_v16, %v2466_v51 }
 0x115   : > { %v2468_v29 = vrot.slane %v10904_v34, 1 }
 0x116   : > { %10234 = vmatmul.mubr.bf16.gmra.mrb[16].mxu0 %v4740_v9  ;;  %v5263_v9 = vor.u32 %v5262_v24, %v5259_v48  ;;  %v5276_v5 = vrot.slane %v5274_v63, 2  ;;  %v5279_v20 = vrot.slane %v5277_v62, 3  ;;  %v5322_v48 = vshll.u32 %v10920_v55, 16  ;;  %v10909_v63 = vld [vmem:[#allocation2 + $0x70] sm:$0xff]  }
 0x117   : > { %10237 = vmatprep.mubr.bf16.mxu0 %v4742_v52  ;;  %v5271_v52 = vor.u32 %v5270_v27, %v5267_v25  ;;  %v10922_v27 = vld [vmem:[#allocation2 + $0x50] sm:$0xff]   ;;  %v2471_v62 = vsel %vm2444_vm15, %v2468_v29, %v2470_v39  ;;  %v2472_v56 = vrot.slane %v10909_v63, 1 }
 0x118   : > { %v5280_v1 = vor.u32 %v5279_v20, %v5276_v5 }
 0x119   : > { %v5272_v33 = vsel %vm5255_vm1, %v5263_v9, %v5271_v52  ;;  %v10913_v9 = vld [vmem:[#allocation2 + $0x78] sm:$0xff]  }
 0x11a   : > { %v5281_v31 = vsel %vm5255_vm1, %v5271_v52, %v5280_v1 }
 0x11b   : > { %9990 = vmatmul.mubr.bf16.gmra.mrb[32].mxu1 %v1945_v19  ;;  %v5286_v19 = vshll.u32 %v10908_v38, 16  ;;  %v10923_v38 = vld [vmem:[%s14062_s1 + $0x218] sm:$0xff]  }
 0x11c   : > { %10009 = vmatprep.mubr.bf16.mxu1 %v2447_v26  ;;  %v10910_v26 = vld [vmem:[#allocation2 + $0x30] sm:$0xff]  }
 0x11d   : > { %v5288_v58 = vrot.slane %v5286_v19, 3  ;;  %v5331_v19 = vshll.u32 %v10922_v27, 16 }
 0x11e   : > { %10238 = vmatmul.mubr.bf16.gmra.mrb[20].mxu0 %v4744_v61  ;;  %v10914_v61 = vld [vmem:[#allocation2 + $0x38] sm:$0xff]  }
 0x11f   : > { %10241 = vmatprep.mubr.bf16.mxu0 %v4746_v57  ;;  %v5285_v57 = vrot.slane %v5283_v59, 2  ;;  %v5301_v37 = vshrl.u32 %v10914_v61, 16  ;;  %v5304_v22 = vshll.u32 %v10914_v61, 16  ;;  %v5328_v59 = vshrl.u32 %v10922_v27, 16 }
 0x120   : > { %v5333_v61 = vrot.slane %v5331_v19, 3 }
 0x121   : > { %v5289_v42 = vor.u32 %v5288_v58, %v5285_v57  ;;  %v5306_v10 = vrot.slane %v5304_v22, 3  ;;  %v5330_v20 = vrot.slane %v5328_v59, 2  ;;  %v10927_v59 = vld [vmem:[#allocation2 + $0x18] sm:$0xff]  }
 0x123   : > { %10010 = vmatmul.mubr.bf16.vlgmr.msra.gmra.mrb[0].mxu1 %v2449_v41  ;;  %v2461_v41 = vsel %vm2444_vm15, %v2458_v23, %v2460_v40  ;;  %v5313_v23 = vshll.u32 %v10916_v54, 16  ;;  %v10939_v54 = vld [vmem:[%s14062_s1 + $0x230] sm:$0xff]  }
 0x124   : > { %10046 = vmatpush3.bf16.msra.mxu1 %v11989_v45  ;;  %10013 = vmatprep.mubr.bf16.mxu1 %v2451_v15  ;;  %v10893_v45 = vld [vmem:[%s14062_s1 + $0xd8] sm:$0xff]   ;;  %v5292_v15 = vshrl.u32 %v10910_v26, 16 }
 0x125   : > { %10047 = vmatprep.subr.bf16.mxu1 %v10880_v17 }
 0x126   : > { %10242 = vmatmul.mubr.bf16.gmra.mrb[24].mxu0 %v4748_v12  ;;  %v5294_v12 = vrot.slane %v5292_v15, 2  ;;  %v10934_v15 = vld [vmem:[%s14062_s1 + $0x228] sm:$0xff]  }
 0x127   : > { %10245 = vmatprep.mubr.bf16.mxu0 %v4750_v49 }
 0x128   : > { %10048 = vmatpush3.bf16.msra.mxu1 %v10880_v17  ;;  %v10918_v17 = vld [vmem:[%s14062_s1 + $0xf8] sm:$0xff]  }
 0x129   : > { %10049 = vmatprep.subr.bf16.mxu1 %v10887_v36 }
 0x12b   : > { %10014 = vmatmul.mubr.bf16.gmra.mrb[4].mxu1 %v2453_v43  ;;  %v5290_v43 = vsel %vm5255_vm1, %v5280_v1, %v5289_v42 }
 0x12c   : > { %10017 = vmatprep.mubr.bf16.mxu1 %v2455_v30  ;;  %10050 = vmatpush3.bf16.msra.mxu1 %v10887_v36  ;;  %v5295_v36 = vshll.u32 %v10910_v26, 16  ;;  %v5303_v30 = vrot.slane %v5301_v37, 2  ;;  %v5337_v26 = vshrl.u32 %v10926_v3, 16  ;;  %v5334_v37 = vor.u32 %v5333_v61, %v5330_v20  ;;  %v10938_v3 = vld [vmem:[#allocation2 + $0x80] sm:$0xff]  }
 0x12d   : > { %10051 = vmatprep.subr.bf16.mxu1 %v10893_v45  ;;  %v2983_v20 = vrot.slane %v10927_v59, 1 }
 0x12e   : > { %10246 = vmatmul.mubr.bf16.gmra.mrb[28].mxu0 %v4752_v6  ;;  %v5297_v49 = vrot.slane %v5295_v36, 3  ;;  %v5307_v47 = vor.u32 %v5306_v10, %v5303_v30  ;;  %v10917_v6 = vld [vmem:[%s14062_s1 + $0x210] sm:$0xff]   ;;  %v5339_v58 = vrot.slane %v5337_v26, 2  ;;  %v10919_v36 = vld [vmem:[#allocation2 + $0x88] sm:$0xff]  }
 0x12f   : > { %10249 = vmatprep.mubr.bf16.mxu0 %v4754_v53  ;;  %v5312_v53 = vrot.slane %v5310_v35, 2  ;;  %v10933_v30 = vld [vmem:[#allocation2 + $0x70] sm:$0xff]  }
 0x130   : > { %10052 = vmatpush3.bf16.msra.mxu1 %v10893_v45  ;;  %v10911_v45 = vld [vmem:[%s14062_s1 + $0x208] sm:$0xff]   ;;  %v5298_v13 = vor.u32 %v5297_v49, %v5294_v12  ;;  %v5358_v12 = vshll.u32 %v10931_v11, 16  ;;  %v2478_v49 = vrot.slane %v10919_v36, 1 }
 0x131   : > { %10053 = vmatprep.subr.bf16.mxu1 %v10899_v18  ;;  %v10932_v36 = vld [vmem:[#allocation2 + $0x28] sm:$0xff]  }
 0x132   : > { %v5299_v24 = vsel %vm5255_vm1, %v5289_v42, %v5298_v13  ;;  %v5360_v34 = vrot.slane %v5358_v12, 3 }
 0x133   : > { %10018 = vmatmul.mubr.bf16.gmra.mrb[8].mxu1 %v2457_v60  ;;  %v5308_v60 = vsel %vm5255_vm1, %v5298_v13, %v5307_v47  ;;  %v10921_v13 = vld [vmem:[#allocation2 + $0x90] ss:$0 sps:$4 sm:$0x11]  }
 0x134   : > { %10021 = vmatprep.mubr.bf16.mxu1 %v2459_v50  ;;  %10054 = vmatpush3.bf16.msra.mxu1 %v10899_v18  ;;  %v5319_v18 = vshrl.u32 %v10920_v55, 16  ;;  %v5324_v50 = vrot.slane %v5322_v48, 3  ;;  %v5364_v48 = vshrl.u32 %v10933_v30, 16 }
 0x135   : > { %10055 = vmatprep.subr.bf16.mxu1 %v10906_v28 }
 0x136   : > { %10250 = vmatmul.mubr.bf16.gmra.mrb[32].mxu0 %v4756_v21  ;;  %v5321_v25 = vrot.slane %v5319_v18, 2  ;;  %v2474_v21 = vrot.slane %v10913_v9, 1  ;;  %v10924_v18 = vld [vmem:[#allocation2 + $0x8] sm:$0xfe]  }
 0x137   : > { %10269 = vmatprep.mubr.bf16.mxu0 %v5272_v33  ;;  %v10928_v33 = vld [vmem:[#allocation2 + $0x60] sm:$0xff]   ;;  %v10941_v9 = vld [vmem:[#allocation2 + $0x88] sm:$0xff]  }
 0x138   : > { %10056 = vmatpush3.bf16.msra.mxu1 %v10906_v28  ;;  %v2469_v28 = vsel %vm2444_vm15, %v2466_v51, %v2468_v29  ;;  %v5325_v40 = vor.u32 %v5324_v50, %v5321_v25  ;;  %v2475_v1 = vsel %vm2444_vm15, %v2472_v56, %v2474_v21  ;;  %v5346_v22 = vshrl.u32 %v10928_v33, 16 }
 0x139   : > { %10057 = vmatprep.subr.bf16.mxu1 %v10912_v0  ;;  %v5349_v42 = vshll.u32 %v10928_v33, 16  ;;  %v5355_v51 = vshrl.u32 %v10931_v11, 16  ;;  %v5367_v29 = vshll.u32 %v10933_v30, 16  ;;  %v2980_v25 = vrot.slane %v10924_v18, 1  ;;  %v10940_v18 = vld [vmem:[#allocation2 + $0x40] sm:$0xff]  }
 0x13a   : > { %v5335_v55 = vsel %vm5255_vm1, %v5325_v40, %v5334_v37 }
 0x13b   : > { %10022 = vmatmul.mubr.bf16.gmra.mrb[12].mxu1 %v2461_v41  ;;  %v5342_v41 = vrot.slane %v5340_v2, 3  ;;  %v5369_v50 = vrot.slane %v5367_v29, 3  ;;  %v5382_v2 = vshrl.u32 %v10938_v3, 16 }
 0x13c   : > { %10025 = vmatprep.mubr.bf16.mxu1 %v2463_v32  ;;  %10058 = vmatpush3.bf16.msra.mxu1 %v10912_v0  ;;  %v10929_v0 = vld [vmem:[%s14062_s1 + $0x220] sm:$0xff]  }
 0x13d   : > { %10059 = vmatprep.subr.bf16.mxu1 %v10918_v17  ;;  %v10915_v32 = vld [vmem:[#allocation2 + $0x80] sm:$0xff]   ;;  %v5343_v16 = vor.u32 %v5342_v41, %v5339_v58  ;;  %v10943_v41 = vld [vmem:[#allocation2 + $0x90] sm:$0xff]  }
 0x13e   : > { %10270 = vmatmul.mubr.bf16.vlgmr.msra.gmra.mrb[0].mxu0 %v5281_v31  ;;  %v2476_v31 = vrot.slane %v10915_v32, 1  ;;  %v10946_v32 = vld [vmem:[#allocation2 + $0x98] sm:$0xff]  }
 0x13f   : > { %10306 = vmatpush3.bf16.msra.mxu0 %v12033_v7  ;;  %10273 = vmatprep.mubr.bf16.mxu0 %v5290_v43  ;;  %v5315_v7 = vrot.slane %v5313_v23, 3  ;;  %v5348_v43 = vrot.slane %v5346_v22, 2  ;;  %v5344_v10 = vsel %vm5255_vm1, %v5334_v37, %v5343_v16  ;;  %v10935_v22 = vld [vmem:[#allocation2 + $0x30] sm:$0xff]  }
 0x140   : > { %10060 = vmatpush3.bf16.msra.mxu1 %v10918_v17  ;;  %10307 = vmatprep.subr.bf16.mxu0 %v10911_v45  ;;  %v2473_v17 = vsel %vm2444_vm15, %v2470_v39, %v2472_v56  ;;  %v2477_v35 = vsel %vm2444_vm15, %v2474_v21, %v2476_v31  ;;  %v2479_v23 = vsel %vm2444_vm15, %v2476_v31, %v2478_v49  ;;  %v5391_v21 = vshrl.u32 %v10941_v9, 16 }
 0x141   : > { %10357 = vmatprep.subr.bf16.mxu1 %v12097_v14  ;;  %v5316_v52 = vor.u32 %v5315_v7, %v5312_v53  ;;  %v2480_v7 = vrot.slane %v10921_v13, 1  ;;  %v5412_v31 = vshll.u32 %v10946_v32, 16 }
 0x143   : > { %10026 = vmatmul.mubr.bf16.gmra.mrb[16].mxu1 %v2465_v46  ;;  %10308 = vmatpush3.bf16.msra.mxu0 %v10911_v45  ;;  %v5317_v5 = vsel %vm5255_vm1, %v5307_v47, %v5316_v52  ;;  %v5326_v57 = vsel %vm5255_vm1, %v5316_v52, %v5325_v40  ;;  %v5351_v45 = vrot.slane %v5349_v42, 3  ;;  %v5357_v46 = vrot.slane %v5355_v51, 2  ;;  %v10925_v47 = vld [vmem:[#allocation2 + $0x10] sm:$0xff]   ;;  %v10930_v40 = vld [vmem:[#allocation2 + $0x20] sm:$0xff]  }
 0x144   : > { %10029 = vmatprep.mubr.bf16.mxu1 %v2467_v44  ;;  %10309 = vmatprep.subr.bf16.mxu0 %v10917_v6  ;;  %v10936_v44 = vld [vmem:[#allocation2 + $0x78] sm:$0xff]   ;;  %v2981_v27 = vrot.slane %v10925_v47, 1  ;;  %v2481_v52 = vsel %vm2444_vm15, %v2478_v49, %v2480_v7  ;;  %v2985_v61 = vrot.slane %v10930_v40, 1  ;;  %v5403_v51 = vshll.u32 %v10943_v41, 16 }
 0x145   : > { %v5361_v39 = vor.u32 %v5360_v34, %v5357_v46  ;;  %v5373_v53 = vshrl.u32 %v10936_v44, 16  ;;  %v2987_v49 = vrot.slane %v10932_v36, 1  ;;  %v10948_v46 = vld [vmem:[#allocation2 + $0xa0] ss:$0 sps:$4 sm:$0x77]   ;;  %v10957_v36 = vld [vmem:[#allocation2 + $0x30] sm:$0xff]  }
 0x146   : > { %10274 = vmatmul.mubr.bf16.gmra.mrb[4].mxu0 %v5299_v24  ;;  %v5376_v24 = vshll.u32 %v10936_v44, 16  ;;  %v2982_v19 = vsel %vm2444_vm15, %v2980_v25, %v2981_v27  ;;  %v2986_v37 = vsel %vm2444_vm15, %v2983_v20, %v2985_v61 }
 0x147   : > { %10277 = vmatprep.mubr.bf16.mxu0 %v5308_v60  ;;  %10310 = vmatpush3.bf16.msra.mxu0 %v10917_v6  ;;  %v5352_v6 = vor.u32 %v5351_v45, %v5348_v43  ;;  %v5366_v60 = vrot.slane %v5364_v48, 2  ;;  %v5375_v63 = vrot.slane %v5373_v53, 2  ;;  %v2989_v43 = vrot.slane %v10935_v22, 1  ;;  %v10959_v22 = vld [vmem:[#allocation2 + $0x38] sm:$0xff]  }
 0x148   : > { %10311 = vmatprep.subr.bf16.mxu0 %v10923_v38  ;;  %v5421_v48 = vshll.u32 %v10948_v46, 16  ;;  %v2993_v53 = vrot.slane %v10940_v18, 1 }
 0x149   : > { %v5370_v26 = vor.u32 %v5369_v50, %v5366_v60  ;;  %v2990_v13 = vsel %vm2444_vm15, %v2987_v49, %v2989_v43  ;;  %v10950_v60 = vld [vmem:[#allocation2 + $0x10] sm:$0xf8]   ;;  %v10951_v50 = vld [vmem:[#allocation2 + $0x18] sm:$0xff]  }
 0x14a   : > { %v5925_v59 = vrot.slane %v10950_v60, 3 }
 0x14b   : > { %10030 = vmatmul.mubr.bf16.gmra.mrb[20].mxu1 %v2469_v28  ;;  %10312 = vmatpush3.bf16.msra.mxu0 %v10923_v38  ;;  %v5353_v38 = vsel %vm5255_vm1, %v5343_v16, %v5352_v6  ;;  %v5362_v28 = vsel %vm5255_vm1, %v5352_v6, %v5361_v39  ;;  %v5371_v33 = vsel %vm5255_vm1, %v5361_v39, %v5370_v26  ;;  %v5400_v16 = vshrl.u32 %v10943_v41, 16 }
 0x14c   : > { %10033 = vmatprep.mubr.bf16.mxu1 %v2471_v62  ;;  %10313 = vmatprep.subr.bf16.mxu0 %v10929_v0  ;;  %v5378_v62 = vrot.slane %v5376_v24, 3  ;;  %v5418_v6 = vshrl.u32 %v10948_v46, 16  ;;  %v11122_v24 = vld [vmem:[%s14062_s1 + $0x118] sm:$0xff]  }
 0x14d   : > { %v5402_v30 = vrot.slane %v5400_v16, 2  ;;  %v10952_v16 = vld [vmem:[#allocation2 + $0x68] sm:$0xff]  }
 0x14e   : > { %10278 = vmatmul.mubr.bf16.gmra.mrb[8].mxu0 %v5317_v5  ;;  %v5379_v56 = vor.u32 %v5378_v62, %v5375_v63  ;;  %v5394_v5 = vshll.u32 %v10941_v9, 16  ;;  %v5420_v25 = vrot.slane %v5418_v6, 2  ;;  %v10945_v62 = vld [vmem:[#allocation2 + $0x50] sm:$0xff]   ;;  %v11123_v9 = vld [vmem:[%s14062_s1 + $0x120] sm:$0xff]  }
 0x14f   : > { %10281 = vmatprep.mubr.bf16.mxu0 %v5326_v57  ;;  %10314 = vmatpush3.bf16.msra.mxu0 %v10929_v0  ;;  %v5385_v0 = vshll.u32 %v10938_v3, 16  ;;  %v5384_v57 = vrot.slane %v5382_v2, 2  ;;  %v11124_v2 = vld [vmem:[%s14062_s1 + $0x128] sm:$0xff]  }
 0x150   : > { %10315 = vmatprep.subr.bf16.mxu0 %v10934_v15  ;;  %v5380_v11 = vsel %vm5255_vm1, %v5370_v26, %v5379_v56  ;;  %v2997_v26 = vrot.slane %v10945_v62, 1 }
 0x151   : > { %v5387_v58 = vrot.slane %v5385_v0, 3 }
 0x153   : > { %10034 = vmatmul.mubr.bf16.gmra.mrb[24].mxu1 %v2473_v17  ;;  %10316 = vmatpush3.bf16.msra.mxu0 %v10934_v15  ;;  %v5393_v15 = vrot.slane %v5391_v21, 2  ;;  %v5396_v17 = vrot.slane %v5394_v5, 3  ;;  %v5388_v42 = vor.u32 %v5387_v58, %v5384_v57  ;;  %v10955_v5 = vld [vmem:[#allocation2 + $0x28] sm:$0xff]   ;;  %v10949_v57 = vld [vmem:[#allocation2 + $0x60] sm:$0xff]   ;;  %v11125_v58 = vld [vmem:[%s14062_s1 + $0x130] sm:$0xff]  }
 0x154   : > { %10037 = vmatprep.mubr.bf16.mxu1 %v2475_v1  ;;  %10317 = vmatprep.subr.bf16.mxu0 %v10939_v54  ;;  %v2984_v1 = vsel %vm2444_vm15, %v2981_v27, %v2983_v20  ;;  %v5423_v27 = vrot.slane %v5421_v48, 3  ;;  %v10967_v48 = vld [vmem:[#allocation2 + $0x58] sm:$0xff]  }
 0x155   : > { %v5397_v12 = vor.u32 %v5396_v17, %v5393_v15  ;;  %v5389_v45 = vsel %vm5255_vm1, %v5379_v56, %v5388_v42  ;;  %v10953_v56 = vld [vmem:[#allocation2 + $0x20] sm:$0xff]   ;;  %v3001_v17 = vrot.slane %v10949_v57, 1 }
 0x156   : > { %10282 = vmatmul.mubr.bf16.gmra.mrb[12].mxu0 %v5335_v55  ;;  %v11120_v55 = vld [vmem:[%s14062_s1 + $0x108] sm:$0xff]   ;;  %v5928_v41 = vrot.slane %v10953_v56, 3 }
 0x157   : > { %10285 = vmatprep.mubr.bf16.mxu0 %v5344_v10  ;;  %10318 = vmatpush3.bf16.msra.mxu0 %v10939_v54  ;;  %v5409_v54 = vshrl.u32 %v10946_v32, 16  ;;  %v5405_v10 = vrot.slane %v5403_v51, 3  ;;  %v5398_v34 = vsel %vm5255_vm1, %v5388_v42, %v5397_v12  ;;  %v11126_v32 = vld [vmem:[%s14062_s1 + $0x138] sm:$0xff]  }
 0x158   : > { %10319 = vmatprep.subr.bf16.mxu0 %v10944_v4 }
 0x159   : > { %v5411_v44 = vrot.slane %v5409_v54, 2  ;;  %v5406_v47 = vor.u32 %v5405_v10, %v5402_v30  ;;  %v5932_v54 = vrot.slane %v10957_v36, 3  ;;  %v10963_v10 = vld [vmem:[#allocation2 + $0x48] sm:$0xff]  }
 0x15b   : > { %10038 = vmatmul.mubr.bf16.gmra.mrb[28].mxu1 %v2477_v35  ;;  %10320 = vmatpush3.bf16.msra.mxu0 %v10944_v4  ;;  %v5414_v4 = vrot.slane %v5412_v31, 3  ;;  %v2988_v35 = vsel %vm2444_vm15, %v2985_v61, %v2987_v49  ;;  %v5407_v7 = vsel %vm5255_vm1, %v5397_v12, %v5406_v47  ;;  %v10947_v61 = vld [vmem:[#allocation2 + $0x58] sm:$0xff]   ;;  %v10954_v12 = vld [vmem:[#allocation2 + $0x70] sm:$0xff]   ;;  %v5934_v31 = vrot.slane %v10959_v22, 3 }
 0x15c   : > { %10041 = vmatprep.mubr.bf16.mxu1 %v2479_v23  ;;  %v11121_v23 = vld [vmem:[%s14062_s1 + $0x110] sm:$0xff]   ;;  %v2999_v15 = vrot.slane %v10947_v61, 1  ;;  %v3003_v49 = vrot.slane %v10952_v16, 1 }
 0x15d   : > { %v5415_v29 = vor.u32 %v5414_v4, %v5411_v44  ;;  %v5935_v30 = vsel %vm5924_vm3, %v5932_v54, %v5934_v31  ;;  %v10958_v4 = vld [vmem:[#allocation2 + $0x80] sm:$0xff]  }
 0x15e   : > { %10286 = vmatmul.mubr.bf16.gmra.mrb[16].mxu0 %v5353_v38  ;;  %v3000_v42 = vsel %vm2444_vm15, %v2997_v26, %v2999_v15  ;;  %v3002_v51 = vsel %vm2444_vm15, %v2999_v15, %v3001_v17  ;;  %v3004_v46 = vsel %vm2444_vm15, %v3001_v17, %v3003_v49  ;;  %v10975_v17 = vld [vmem:[#allocation2 + $0x78] sm:$0xff]  }
 0x15f   : > { %10289 = vmatprep.mubr.bf16.mxu0 %v5362_v28  ;;  %v5416_v38 = vsel %vm5255_vm1, %v5406_v47, %v5415_v29  ;;  %v10942_v28 = vld [vmem:[#allocation2 + $0x48] sm:$0xff]   ;;  %v10965_v47 = vld [vmem:[#allocation2 + $0x50] sm:$0xff]  }
 0x160   : > { %v2995_v40 = vrot.slane %v10942_v28, 1 }
 0x162   : > { %v2996_v20 = vsel %vm2444_vm15, %v2993_v53, %v2995_v40 }
 0x163   : > { %10042 = vmatmul.mubr.bf16.gmra.mrb[32].mxu1 %v2481_v52  ;;  %v5424_v52 = vor.u32 %v5423_v27, %v5420_v25  ;;  %v5940_v25 = vrot.slane %v10965_v47, 3  ;;  %v5942_v27 = vrot.slane %v10967_v48, 3  ;;  %v10978_v47 = vld [vmem:[#allocation2 + $0x80] sm:$0xff]  }
 0x164   : > { %10061 = vmatprep.mubr.bf16.mxu1 %v2982_v19  ;;  %v5926_v19 = vrot.slane %v10951_v50, 3 }
 0x165   : > { %v5425_v0 = vsel %vm5255_vm1, %v5415_v29, %v5424_v52  ;;  %v5943_v62 = vsel %vm5924_vm3, %v5940_v25, %v5942_v27 }
 0x166   : > { %10290 = vmatmul.mubr.bf16.gmra.mrb[20].mxu0 %v5371_v33  ;;  %v5927_v21 = vsel %vm5924_vm3, %v5925_v59, %v5926_v19  ;;  %v2998_v33 = vsel %vm2444_vm15, %v2995_v40, %v2997_v26  ;;  %v10964_v59 = vld [vmem:[#allocation2 + $0x98] ss:$0 sps:$4 sm:$0x11]  }
 0x167   : > { %10293 = vmatprep.mubr.bf16.mxu0 %v5380_v11  ;;  %v5930_v11 = vrot.slane %v10955_v5, 3  ;;  %v3015_v5 = vrot.slane %v10964_v59, 1 }
 0x16b   : > { %10062 = vmatmul.mubr.bf16.vlgmr.msra.gmra.mrb[0].mxu1 %v2984_v1  ;;  %v5929_v1 = vsel %vm5924_vm3, %v5926_v19, %v5928_v41  ;;  %v10968_v19 = vld [vmem:[#allocation2 + $0x58] sm:$0xff]  }
 0x16c   : > { %10365 = vmatpush3.bf16.msra.mxu1 %v12097_v14  ;;  %10065 = vmatprep.mubr.bf16.mxu1 %v2986_v37  ;;  %v10937_v14 = vld [vmem:[#allocation2 + $0x38] sm:$0xff]   ;;  %v5931_v37 = vsel %vm5924_vm3, %v5928_v41, %v5930_v11  ;;  %v3609_v61 = vshll.u32 %v10968_v19, 16 }
 0x16d   : > { %10358 = vmatprep.subr.bf16.mxu1 %v11120_v55  ;;  %v2991_v39 = vrot.slane %v10937_v14, 1  ;;  %v5938_v14 = vrot.slane %v10963_v10, 3 }
 0x16e   : > { %10294 = vmatmul.mubr.bf16.gmra.mrb[24].mxu0 %v5389_v45  ;;  %v10961_v45 = vld [vmem:[#allocation2 + $0x40] sm:$0xff]   ;;  %v3611_v36 = vrot.slane %v3609_v61, 2 }
 0x16f   : > { %10297 = vmatprep.mubr.bf16.mxu0 %v5398_v34  ;;  %v2992_v3 = vsel %vm2444_vm15, %v2989_v43, %v2991_v39  ;;  %v2994_v63 = vsel %vm2444_vm15, %v2991_v39, %v2993_v53  ;;  %v5933_v43 = vsel %vm5924_vm3, %v5930_v11, %v5932_v54  ;;  %v10956_v34 = vld [vmem:[#allocation2 + $0x78] sm:$0xff]   ;;  %v10960_v39 = vld [vmem:[#allocation2 + $0x88] sm:$0xff]   ;;  %v5941_v28 = vsel %vm5924_vm3, %v5938_v14, %v5940_v25  ;;  %v10973_v11 = vld [vmem:[#allocation2 + $0x70] sm:$0xff]  }
 0x170   : > { %10366 = vmatpush3.bf16.msra.mxu1 %v11120_v55  ;;  %v3005_v55 = vrot.slane %v10954_v12, 1  ;;  %v5948_v12 = vrot.slane %v10973_v11, 3  ;;  %v5950_v54 = vrot.slane %v10975_v17, 3  ;;  %v3654_v25 = vshll.u32 %v10978_v47, 16 }
 0x171   : > { %10359 = vmatprep.subr.bf16.mxu1 %v11121_v23 }
 0x172   : > { %v3006_v44 = vsel %vm2444_vm15, %v3003_v49, %v3005_v55  ;;  %v3656_v59 = vrot.slane %v3654_v25, 2 }
 0x173   : > { %10066 = vmatmul.mubr.bf16.gmra.mrb[4].mxu1 %v2988_v35  ;;  %v5936_v35 = vrot.slane %v10961_v45, 3 }
 0x174   : > { %10069 = vmatprep.mubr.bf16.mxu1 %v2990_v13  ;;  %10367 = vmatpush3.bf16.msra.mxu1 %v11121_v23  ;;  %v3007_v13 = vrot.slane %v10956_v34, 1  ;;  %v3009_v23 = vrot.slane %v10958_v4, 1  ;;  %v10979_v34 = vld [vmem:[#allocation2 + $0x88] sm:$0xff]  }
 0x175   : > { %10360 = vmatprep.subr.bf16.mxu1 %v11122_v24  ;;  %v5937_v18 = vsel %vm5924_vm3, %v5934_v31, %v5936_v35  ;;  %v5939_v6 = vsel %vm5924_vm3, %v5936_v35, %v5938_v14  ;;  %v10976_v14 = vld [vmem:[#allocation2 + $0x78] sm:$0xff]   ;;  %v5954_v48 = vrot.slane %v10979_v34, 3 }
 0x176   : > { %10298 = vmatmul.mubr.bf16.gmra.mrb[28].mxu0 %v5407_v7  ;;  %v3008_v29 = vsel %vm2444_vm15, %v3005_v55, %v3007_v13  ;;  %v3010_v53 = vsel %vm2444_vm15, %v3007_v13, %v3009_v23  ;;  %v10966_v7 = vld [vmem:[#allocation2 + $0x50] sm:$0xff]  }
 0x177   : > { %10301 = vmatprep.mubr.bf16.mxu0 %v5416_v38  ;;  %v3011_v38 = vrot.slane %v10960_v39, 1  ;;  %v3597_v50 = vshrl.u32 %v10966_v7, 16  ;;  %v3642_v39 = vshrl.u32 %v10976_v14, 16 }
 0x178   : > { %10368 = vmatpush3.bf16.msra.mxu1 %v11122_v24  ;;  %v10962_v24 = vld [vmem:[#allocation2 + $0x90] sm:$0xff]  }
 0x179   : > { %10361 = vmatprep.subr.bf16.mxu1 %v11123_v9  ;;  %v3013_v60 = vrot.slane %v10962_v24, 1  ;;  %v3012_v52 = vsel %vm2444_vm15, %v3009_v23, %v3011_v38  ;;  %v3599_v26 = vrot.slane %v3597_v50, 1  ;;  %v10983_v50 = vld [vmem:[#allocation2 + $0x98] sm:$0xff]  }
 0x17b   : > { %10070 = vmatmul.mubr.bf16.gmra.mrb[8].mxu1 %v2992_v3  ;;  %v3600_v3 = vshll.u32 %v10966_v7, 16  ;;  %v3014_v40 = vsel %vm2444_vm15, %v3011_v38, %v3013_v60  ;;  %v3651_v7 = vshrl.u32 %v10978_v47, 16  ;;  %v10981_v38 = vld [vmem:[#allocation2 + $0x90] sm:$0xff]  }
 0x17c   : > { %10073 = vmatprep.mubr.bf16.mxu1 %v2994_v63  ;;  %10369 = vmatpush3.bf16.msra.mxu1 %v11123_v9  ;;  %v10969_v63 = vld [vmem:[#allocation2 + $0x60] sm:$0xff]   ;;  %v10971_v9 = vld [vmem:[#allocation2 + $0x68] sm:$0xff]  }
 0x17d   : > { %10362 = vmatprep.subr.bf16.mxu1 %v11124_v2  ;;  %v5944_v56 = vrot.slane %v10969_v63, 3 }
 0x17e   : > { %10302 = vmatmul.mubr.bf16.gmra.mrb[32].mxu0 %v5425_v0  ;;  %v10970_v0 = vld [vmem:[#allocation2 + $0x60] sm:$0xff]  }
 0x17f   : > { %10321 = vmatprep.mubr.bf16.mxu0 %v5927_v21  ;;  %v5946_v21 = vrot.slane %v10971_v9, 3  ;;  %v3615_v57 = vshrl.u32 %v10970_v0, 16  ;;  %v5945_v41 = vsel %vm5924_vm3, %v5942_v27, %v5944_v56 }
 0x180   : > { %10370 = vmatpush3.bf16.msra.mxu1 %v11124_v2  ;;  %v3602_v2 = vrot.slane %v3600_v3, 2 }
 0x181   : > { %10363 = vmatprep.subr.bf16.mxu1 %v11125_v58  ;;  %v5947_v15 = vsel %vm5924_vm3, %v5944_v56, %v5946_v21  ;;  %v5949_v10 = vsel %vm5924_vm3, %v5946_v21, %v5948_v12 }
 0x183   : > { %10074 = vmatmul.mubr.bf16.gmra.mrb[12].mxu1 %v2996_v20  ;;  %v3606_v20 = vshrl.u32 %v10968_v19, 16  ;;  %v10982_v19 = vld [vmem:[#allocation2 + $0x90] sm:$0xff]  }
 0x184   : > { %10077 = vmatprep.mubr.bf16.mxu1 %v2998_v33  ;;  %10371 = vmatpush3.bf16.msra.mxu1 %v11125_v58  ;;  %v3603_v33 = vor.u32 %v3602_v2, %v3599_v26  ;;  %v3618_v58 = vshll.u32 %v10970_v0, 16  ;;  %v5958_v26 = vrot.slane %v10983_v50, 3 }
 0x185   : > { %10364 = vmatprep.subr.bf16.mxu1 %v11126_v32 }
 0x186   : > { %10322 = vmatmul.mubr.bf16.vlgmr.msra.gmra.mrb[0].mxu0 %v5929_v1  ;;  %v3608_v1 = vrot.slane %v3606_v20, 1  ;;  %v3604_v22 = vsel %vm14199_vm2, %v11724_v8, %v3603_v33  ;;  %v3620_v16 = vrot.slane %v3618_v58, 2  ;;  %v5951_v8 = vsel %vm5924_vm3, %v5948_v12, %v5950_v54 }
 0x187   : > { %10325 = vmatprep.mubr.bf16.mxu0 %v5931_v37  ;;  %v10972_v37 = vld [vmem:[#allocation2 + $0x68] sm:$0xff]   ;;  %v3672_v20 = vshll.u32 %v10982_v19, 16 }
 0x188   : > { %10372 = vmatpush3.bf16.msra.mxu1 %v11126_v32  ;;  %v3016_v32 = vsel %vm2444_vm15, %v3013_v60, %v3015_v5  ;;  %v3612_v31 = vor.u32 %v3611_v36, %v3608_v1  ;;  %v3624_v49 = vshrl.u32 %v10972_v37, 16  ;;  %v3627_v55 = vshll.u32 %v10972_v37, 16 }
 0x189   : > { %v3669_v5 = vshrl.u32 %v10982_v19, 16  ;;  %v3674_v1 = vrot.slane %v3672_v20, 2 }
 0x18a   : > { %v3626_v4 = vrot.slane %v3624_v49, 1  ;;  %v3629_v35 = vrot.slane %v3627_v55, 2 }
 0x18b   : > { %10078 = vmatmul.mubr.bf16.gmra.mrb[16].mxu1 %v3000_v42  ;;  %v3617_v42 = vrot.slane %v3615_v57, 1 }
 0x18c   : > { %10081 = vmatprep.mubr.bf16.mxu1 %v3002_v51  ;;  %v10974_v51 = vld [vmem:[#allocation2 + $0x70] sm:$0xff]  }
 0x18d   : > { %v3633_v45 = vshrl.u32 %v10974_v51, 16 }
 0x18e   : > { %10326 = vmatmul.mubr.bf16.gmra.mrb[4].mxu0 %v5933_v43  ;;  %v3621_v43 = vor.u32 %v3620_v16, %v3617_v42 }
 0x18f   : > { %10329 = vmatprep.mubr.bf16.mxu0 %v5935_v30  ;;  %v3636_v30 = vshll.u32 %v10974_v51, 16  ;;  %v3635_v23 = vrot.slane %v3633_v45, 1  ;;  %v6313_v45 = vlaneseq }
 0x190   : > { %v3622_v13 = vsel %vm14201_vm6, %v3612_v31, %v3621_v43 }
 0x193   : > { %10082 = vmatmul.mubr.bf16.gmra.mrb[20].mxu1 %v3004_v46  ;;  %v10977_v46 = vld [vmem:[#allocation2 + $0x80] sm:$0xff]  }
 0x194   : > { %10085 = vmatprep.mubr.bf16.mxu1 %v3006_v44  ;;  %v3613_v44 = vsel %vm14200_vm4, %v3603_v33, %v3612_v31  ;;  %v10985_v33 = vld [vmem:[#allocation2 + $0xa0] ss:$0 sps:$4 sm:$0x77]  }
 0x195   : > { %v5960_v36 = vrot.slane %v10985_v33, 3 }
 0x196   : > { %10330 = vmatmul.mubr.bf16.gmra.mrb[8].mxu0 %v5937_v18  ;;  %v3638_v18 = vrot.slane %v3636_v30, 2  ;;  %v12210_v30 = vshrl.u32 %v6313_v45, 7 }
 0x197   : > { %10333 = vmatprep.mubr.bf16.mxu0 %v5939_v6  ;;  %v5952_v6 = vrot.slane %v10977_v46, 3  ;;  %v5961_v51 = vsel %vm5924_vm3, %v5958_v26, %v5960_v36 }
 0x198   : > { %v3639_v24 = vor.u32 %v3638_v18, %v3635_v23  ;;  %14209 = vst [vmem:[#allocation4_spill] sm:$0xff] %v12210_v30  ;;  %v6317_v46 = vadd.s32 24, %v12210_v30  ;;  %v6320_v47 = vadd.s32 48, %v12210_v30  ;;  %v12298_v36 = vadd.s32 88, %v12210_v30 }
 0x199   : > { %v5953_v27 = vsel %vm5924_vm3, %v5950_v54, %v5952_v6  ;;  %v5955_v60 = vsel %vm5924_vm3, %v5952_v6, %v5954_v48 }
 0x19b   : > { %10086 = vmatmul.mubr.bf16.gmra.mrb[24].mxu1 %v3008_v29  ;;  %v3630_v29 = vor.u32 %v3629_v35, %v3626_v4  ;;  %v12219_v4 = vmul.u32.u64.low 3817748708, %v12210_v30  ;;  %v12220_v35 = vmul.u32.u64.high 3817748708, %v12210_v30, %v12219_v4 }
 0x19c   : > { %10089 = vmatprep.mubr.bf16.mxu1 %v3010_v53  ;;  %v3645_v53 = vshll.u32 %v10976_v14, 16  ;;  %v12351_v4 = vadd.s32 112, %v12210_v30 }
 0x19d   : > { %v3631_v3 = vsel %vm14202_vm10, %v3621_v43, %v3630_v29  ;;  %v3640_v9 = vsel %vm14203_vm14, %v3630_v29, %v3639_v24 }
 0x19e   : > { %10334 = vmatmul.mubr.bf16.gmra.mrb[12].mxu0 %v5941_v28  ;;  %v3644_v28 = vrot.slane %v3642_v39, 1  ;;  %v3647_v63 = vrot.slane %v3645_v53, 2  ;;  %v12232_v39 = vmul.u32.u64.low 3817748708, %v6320_v47  ;;  %v12233_v53 = vmul.u32.u64.high 3817748708, %v6320_v47, %v12232_v39 }
 0x19f   : > { %10337 = vmatprep.mubr.bf16.mxu0 %v5943_v62  ;;  %v10980_v62 = vld [vmem:[#allocation2 + $0x88] sm:$0xff]  }
 0x1a0   : > { %v3648_v2 = vor.u32 %v3647_v63, %v3644_v28  ;;  %v3660_v0 = vshrl.u32 %v10980_v62, 16  ;;  %v3663_v56 = vshll.u32 %v10980_v62, 16 }
 0x1a2   : > { %v3649_v58 = vsel %vm14204_vm5, %v3639_v24, %v3648_v2  ;;  %v3665_v11 = vrot.slane %v3663_v56, 2  ;;  %v12236_v24 = vadd.s32 32, %v12210_v30 }
 0x1a3   : > { %10090 = vmatmul.mubr.bf16.gmra.mrb[28].mxu1 %v3012_v52  ;;  %v3653_v52 = vrot.slane %v3651_v7, 1  ;;  %v12239_v7 = vadd.s32 56, %v12210_v30 }
 0x1a4   : > { %10093 = vmatprep.mubr.bf16.mxu1 %v3014_v40  ;;  %v5956_v40 = vrot.slane %v10981_v38, 3  ;;  %v12243_v38 = vadd.s32 40, %v12210_v30 }
 0x1a5   : > { %v3657_v21 = vor.u32 %v3656_v59, %v3653_v52  ;;  %v12250_v63 = vmul.u32.u64.low 3817748708, %v12239_v7  ;;  %v12251_v62 = vmul.u32.u64.high 3817748708, %v12239_v7, %v12250_v63 }
 0x1a6   : > { %10338 = vmatmul.mubr.bf16.gmra.mrb[16].mxu0 %v5945_v41  ;;  %v5957_v61 = vsel %vm5924_vm3, %v5954_v48, %v5956_v40  ;;  %v5959_v57 = vsel %vm5924_vm3, %v5956_v40, %v5958_v26  ;;  %v3662_v41 = vrot.slane %v3660_v0, 1  ;;  %v6356_v48 = vshrl.u32 %v12220_v35, 4 }
 0x1a7   : > { %10341 = vmatprep.mubr.bf16.mxu0 %v5947_v15  ;;  %v10984_v15 = vld [vmem:[#allocation2 + $0x98] ss:$0 sps:$4 sm:$0x33]   ;;  %v3658_v17 = vsel %vm14205_vm13, %v3648_v2, %v3657_v21  ;;  %v12256_v59 = vmul.u32.u64.low 3817748708, %v12243_v38  ;;  %v12257_v19 = vmul.u32.u64.high 3817748708, %v12243_v38, %v12256_v59  ;;  %v12260_v40 = vadd.s32 80, %v12210_v30 }
 0x1a8   : > { %v3666_v37 = vor.u32 %v3665_v11, %v3662_v41  ;;  %v3681_v42 = vshll.u32 %v10984_v15, 16  ;;  %v12263_v26 = vadd.s32 64, %v12210_v30  ;;  %v6422_v0 = vshrl.u32 %v12233_v53, 4 }
 0x1a9   : > { %v14374_v11 = vmov 0 }
 0x1aa   : > { %v3667_v12 = vsel %vm14206_vm0, %v3657_v21, %v3666_v37  ;;  %v3683_v31 = vrot.slane %v3681_v42, 2 }
 0x1ab   : > { %10094 = vmatmul.mubr.bf16.gmra.mrb[32].mxu1 %v3016_v32  ;;  %v3671_v32 = vrot.slane %v3669_v5, 1  ;;  %v12276_v5 = vmul.u32.u64.low 3817748708, %v12260_v40  ;;  %v12277_v20 = vmul.u32.u64.high 3817748708, %v12260_v40, %v12276_v5 }
 0x1ac   : > { %10129 = vmatprep.mubr.bf16.mxu1 %v3604_v22  ;;  %v3678_v22 = vshrl.u32 %v10984_v15, 16  ;;  %v6423_v15 = vmul.u32 18, %v6422_v0  ;;  %v12418_v0 = vadd.s32 144, %v12210_v30 }
 0x1ad   : > { %v3675_v16 = vor.u32 %v3674_v1, %v3671_v32  ;;  %v6433_v32 = vshrl.u32 %v12251_v62, 4  ;;  %v6411_v1 = vshrl.u32 %v12257_v19, 4  ;;  %v6466_v35 = vshrl.u32 %v12277_v20, 4 }
 0x1ae   : > { %10342 = vmatmul.mubr.bf16.gmra.mrb[20].mxu0 %v5949_v10  ;;  %v3680_v54 = vrot.slane %v3678_v22, 1  ;;  %v6316_v10 = vadd.s32 16, %v12210_v30  ;;  %v12306_v22 = vadd.s32 72, %v12210_v30  ;;  %v12401_v62 = vadd.s32 120, %v12210_v30 }
 0x1af   : > { %10345 = vmatprep.mubr.bf16.mxu0 %v5951_v8  ;;  %v3676_v49 = vsel %vm14207_vm8, %v3666_v37, %v3675_v16 }
 0x1b0   : > { %v3684_v55 = vor.u32 %v3683_v31, %v3680_v54  ;;  %v12214_v8 = vmul.u32.u64.low 3817748708, %v6316_v10  ;;  %v12215_v34 = vmul.u32.u64.high 3817748708, %v6316_v10, %v12214_v8  ;;  %v11137_v54 = vmov 1935823168  }
 0x1b1   : > { %v12323_v31 = vunpack.c.l.s4 %v11137_v54  ;;  %v6412_v8 = vmul.u32 18, %v6411_v1 }
 0x1b2   : > { %v3685_v43 = vsel %vm14208_vm7, %v3675_v16, %v3684_v55  ;;  %v6378_v6 = vshrl.u32 %v12215_v34, 4  ;;  %v14212_v16 = vmov 0 }
 0x1b3   : > { %10130 = vmatmul.mubr.bf16.vlgmr.msra.gmra.mrb[16].mxu1 %v3613_v44  ;;  %v6315_v44 = vadd.s32 8, %v12210_v30 }
 0x1b4   : > { %10133 = vmatprep.mubr.bf16.mxu1 %v3622_v13  ;;  %v12222_v14 = vmul.u32.u64.low 3817748708, %v6317_v46  ;;  %v12223_v13 = vmul.u32.u64.high 3817748708, %v6317_v46, %v12222_v14  ;;  %v6379_v25 = vmul.u32 18, %v6378_v6 }
 0x1b5   : > { %v12225_v23 = vmul.u32.u64.low 3817748708, %v6315_v44  ;;  %v12226_v18 = vmul.u32.u64.high 3817748708, %v6315_v44, %v12225_v23 }
 0x1b6   : > { %10346 = vmatmul.mubr.bf16.gmra.mrb[24].mxu0 %v5953_v27  ;;  %v6389_v29 = vshrl.u32 %v12223_v13, 4  ;;  %v12356_v13 = vmul.u32.u64.low 3817748708, %v12306_v22  ;;  %v12357_v23 = vmul.u32.u64.high 3817748708, %v12306_v22, %v12356_v13 }
 0x1b7   : > { %10349 = vmatprep.mubr.bf16.mxu0 %v5955_v60  ;;  %v6367_v27 = vshrl.u32 %v12226_v18, 4  ;;  %v6357_v60 = vmul.u32 18, %v6356_v48  ;;  %v12371_v48 = vadd.s32 96, %v12210_v30 }
 0x1b8   : > { %v6390_v50 = vmul.u32 18, %v6389_v29  ;;  %v8176_v29 = vunpack.c.0.s8 %v12323_v31  ;;  %v12456_v54 = vmul.u32.u64.low 3817748708, %v12418_v0  ;;  %v12457_v31 = vmul.u32.u64.high 3817748708, %v12418_v0, %v12456_v54 }
 0x1b9   : > { %v6368_v52 = vmul.u32 18, %v6367_v27  ;;  %v12266_v2 = vsub.s32 %v12210_v30, %v6357_v60  ;;  %v12387_v27 = vmul.u32.u64.low 3817748708, %v12351_v4  ;;  %v12388_v60 = vmul.u32.u64.high 3817748708, %v12351_v4, %v12387_v27 }
 0x1ba   : > { %v12271_v56 = vsub.s32 %v6317_v46, %v6390_v50  ;;  %v14217_v46 = vmov 0 }
 0x1bb   : > { %10134 = vmatmul.mubr.bf16.gmra.mrb[20].mxu1 %v3631_v3  ;;  %v12246_v3 = vmul.u32.u64.low 3817748708, %v12236_v24  ;;  %v12247_v28 = vmul.u32.u64.high 3817748708, %v12236_v24, %v12246_v3  ;;  %v12273_v21 = vsub.s32 %v6315_v44, %v6368_v52  ;;  %vm6746_vm15 = vcmp.ne.s32.totalorder %v12266_v2, 0 }
 0x1bc   : > { %10137 = vmatprep.mubr.bf16.mxu1 %v3640_v9  ;;  %v12253_v9 = vsub.s32 %v6316_v10, %v6379_v25  ;;  %vm6782_vm1 = vcmp.lt.s32.totalorder %v12266_v2, 0  ;;  %vm6749_vm2 = vcmp.ne.s32.totalorder %v12271_v56, 0  ;;  %vm6785_vm4 = vcmp.lt.s32.totalorder %v12271_v56, 0 }
 0x1bd   : > { %v12301_v37 = vadd.s32 18, %v12266_v2  ;;  %vm6747_vm6 = vcmp.ne.s32.totalorder %v12273_v21, 0  ;;  %vm6783_vm10 = vcmp.lt.s32.totalorder %v12273_v21, 0  ;;  %vm12316_vm14 = vmand %vm6782_vm1, %vm6746_vm15  ;;  %v12334_v55 = vadd.s32 18, %v12273_v21 }
 0x1be   : > { %10350 = vmatmul.mubr.bf16.gmra.mrb[28].mxu0 %v5957_v61  ;;  %vm6748_vm9 = vcmp.ne.s32.totalorder %v12253_v9, 0  ;;  %vm6784_vm12 = vcmp.lt.s32.totalorder %v12253_v9, 0  ;;  %v12280_v61 = vmul.u32.u64.low 3817748708, %v12263_v26  ;;  %v12281_v33 = vmul.u32.u64.high 3817748708, %v12263_v26, %v12280_v61  ;;  %vm12329_vm5 = vmand %vm6785_vm4, %vm6749_vm2 }
 0x1bf   : > { %10353 = vmatprep.mubr.bf16.mxu0 %v5959_v57  ;;  %v12284_v57 = vadd.s32 18, %v12253_v9  ;;  %vm12288_vm3 = vmand %vm6784_vm12, %vm6748_vm9  ;;  %v14213_v16 = vsel %vm12316_vm14, 4294967295, %v14212_v16  ;;  %v6434_v10 = vmul.u32 18, %v6433_v32  ;;  %v12394_v3 = vsub.s32 %v12243_v38, %v6412_v8 }
 0x1c0   : > { %vm12342_vm13 = vmand %vm6783_vm10, %vm6747_vm6  ;;  %v12347_v34 = vmul.u32.u64.low 3817748708, %v12298_v36  ;;  %v12348_v44 = vmul.u32.u64.high 3817748708, %v12298_v36, %v12347_v34  ;;  %v6444_v14 = vshrl.u32 %v12281_v33, 4  ;;  %v12404_v52 = vadd.s32 104, %v12210_v30 }
 0x1c1   : > { %v14218_v46 = vsel %vm12342_vm13, 4294967295, %v14217_v46  ;;  %v12382_v25 = vsub.s32 %v12239_v7, %v6434_v10  ;;  %14223 = vst [vmem:[#allocation10_spill] sm:$0xff] %v12394_v3  ;;  %v12397_v63 = vmul.u32.u64.low 3817748708, %v12371_v48  ;;  %v12398_v7 = vmul.u32.u64.high 3817748708, %v12371_v48, %v12397_v63 }
 0x1c2   : > { %v6477_v19 = vshrl.u32 %v12348_v44, 4  ;;  %vm6751_vm1 = vcmp.ne.s32.totalorder %v12394_v3, 0  ;;  %v6455_v61 = vshrl.u32 %v12357_v23, 4  ;;  %vm6787_vm2 = vcmp.lt.s32.totalorder %v12394_v3, 0 }
 0x1c3   : > { %10138 = vmatmul.mubr.bf16.gmra.mrb[24].mxu1 %v3649_v58  ;;  %v11136_v58 = vmov 1966171168   ;;  %14221 = vst [vmem:[#allocation8_spill] sm:$0xff] %v12382_v25  ;;  %vm6753_vm12 = vcmp.ne.s32.totalorder %v12382_v25, 0  ;;  %vm6789_vm15 = vcmp.lt.s32.totalorder %v12382_v25, 0  ;;  %v12414_v38 = vadd.s32 18, %v12382_v25  ;;  %vm12490_vm11 = vmand %vm6787_vm2, %vm6751_vm1 }
 0x1c4   : > { %10141 = vmatprep.mubr.bf16.mxu1 %v3658_v17  ;;  %v7300_v41 = vunpack.c.l.s4 %v11136_v58  ;;  %v6400_v17 = vshrl.u32 %v12247_v28, 4  ;;  %v6467_v28 = vmul.u32 18, %v6466_v35  ;;  %v14229_v32 = vmov 0 }
 0x1c5   : > { %14225 = vst [vmem:[#allocation12_spill] sm:$0xff] %v12414_v38  ;;  %v12429_v33 = vmul.u32.u64.low 3817748708, %v12401_v62  ;;  %v12430_v58 = vmul.u32.u64.high 3817748708, %v12401_v62, %v12429_v33  ;;  %v6478_v1 = vmul.u32 18, %v6477_v19  ;;  %v12470_v8 = vadd.s32 136, %v12210_v30 }
 0x1c6   : > { %10354 = vmatmul.mubr.bf16.gmra.mrb[32].mxu0 %v5961_v51  ;;  %v12321_v51 = vadd.s32 18, %v12271_v56  ;;  %v6401_v45 = vmul.u32 18, %v6400_v17  ;;  %v12422_v5 = vsub.s32 %v12260_v40, %v6467_v28  ;;  %v12438_v17 = vadd.s32 18, %v12394_v3 }
 0x1c7   : > { %v12441_v40 = vadd.s32 128, %v12210_v30  ;;  %v6456_v10 = vmul.u32 18, %v6455_v61  ;;  %v14235_v34 = vmov 0  ;;  %v6488_v35 = vshrl.u32 %v12398_v7, 4 }
 0x1c8   : > { %v12379_v53 = vsub.s32 %v12236_v24, %v6401_v45  ;;  %v6445_v24 = vmul.u32 18, %v6444_v14  ;;  %14226 = vst [vmem:[#allocation13_spill] sm:$0xff] %v12422_v5  ;;  %14228 = vst [vmem:[#allocation15_spill] sm:$0xff] %v12438_v17  ;;  %v14232_v45 = vmov 0  ;;  %vm6756_vm10 = vcmp.ne.s32.totalorder %v12422_v5, 0 }
 0x1c9   : > { %v12481_v44 = vadd.s32 18, %v12422_v5  ;;  %v14239_v14 = vmov 0  ;;  %v12495_v13 = vmul.u32.u64.low 3817748708, %v12441_v40  ;;  %v12496_v23 = vmul.u32.u64.high 3817748708, %v12441_v40, %v12495_v13 }
 0x1ca   : > { %14220 = vst [vmem:[#allocation7_spill] sm:$0xff] %v12379_v53  ;;  %vm6750_vm7 = vcmp.ne.s32.totalorder %v12379_v53, 0  ;;  %vm6786_vm9 = vcmp.lt.s32.totalorder %v12379_v53, 0  ;;  %v12409_v59 = vadd.s32 18, %v12379_v53  ;;  %v12425_v20 = vsub.s32 %v12263_v26, %v6445_v24 }
 0x1cb   : > { %10142 = vmatmul.mubr.bf16.gmra.mrb[28].mxu1 %v3667_v12  ;;  %v7301_v12 = vunpack.c.0.s8 %v7300_v41  ;;  %v12444_v26 = vadd.s32 152, %v12210_v30  ;;  %vm12463_vm6 = vmand %vm6786_vm9, %vm6750_vm7  ;;  %14238 = vst [vmem:[#allocation19_spill] sm:$0xff] %v12481_v44  ;;  %v14240_v14 = vsel %vm12490_vm11, 4294967295, %v14239_v14  ;;  %v12503_v28 = vsub.s32 %v8176_v29, %v12210_v30 }
 0x1cc   : > { %10145 = vmatprep.mubr.bf16.mxu1 %v3676_v49  ;;  %14224 = vst [vmem:[#allocation11_spill] sm:$0xff] %v12409_v59  ;;  %14227 = vst [vmem:[#allocation14_spill] sm:$0xff] %v12425_v20  ;;  %v14233_v45 = vsel %vm12463_vm6, 4294967295, %v14232_v45  ;;  %vm6754_vm7 = vcmp.ne.s32.totalorder %v12425_v20, 0  ;;  %vm6790_vm9 = vcmp.lt.s32.totalorder %v12425_v20, 0  ;;  %v14243_v24 = vmov 0 }
 0x1cd   : > { %v12368_v6 = vsub.s32 %v7301_v12, %v12210_v30  ;;  %v6510_v12 = vshrl.u32 %v12388_v60, 4  ;;  %14234 = vst [vmem:[#allocation17_spill] sm:$0xff] %v14233_v45  ;;  %14241 = vst [vmem:[#allocation20_spill] sm:$0xff] %v14240_v14  ;;  %v12499_v27 = vmul.u32.u64.low 3817748708, %v12444_v26  ;;  %v12500_v60 = vmul.u32.u64.high 3817748708, %v12444_v26, %v12499_v27 }
 0x1ce   : > { %14242 = vst [vmem:[#allocation21_spill] sm:$0xff] %v12503_v28  ;;  %v12512_v63 = vadd.s32 18, %v12425_v20  ;;  %v12515_v7 = vsub.s32 %v12298_v36, %v6478_v1  ;;  %v14248_v29 = vmov 0  ;;  %v12528_v33 = vsub.s32 %v12306_v22, %v6456_v10 }
 0x1cf   : > { %14219 = vst [vmem:[#allocation6_spill] sm:$0xff] %v12368_v6  ;;  %v6511_v19 = vmul.u32 18, %v6510_v12  ;;  %v6489_v1 = vmul.u32 18, %v6488_v35  ;;  %v6521_v12 = vshrl.u32 %v12430_v58, 4  ;;  %v12553_v35 = vadd.s32 176, %v12210_v30 }
 0x1d0   : > { %14246 = vst [vmem:[#allocation23_spill] sm:$0xff] %v12512_v63  ;;  %14247 = vst [vmem:[#allocation24_spill] sm:$0xff] %v12515_v7  ;;  %vm6757_vm1 = vcmp.ne.s32.totalorder %v12515_v7, 0  ;;  %vm6793_vm2 = vcmp.lt.s32.totalorder %v12515_v7, 0  ;;  %v12566_v10 = vadd.s32 18, %v12515_v7  ;;  %v12570_v27 = vadd.s32 160, %v12210_v30 }
 0x1d1   : > { %v12574_v58 = vsub.s32 %v12371_v48, %v6489_v1  ;;  %v6522_v22 = vmul.u32 18, %v6521_v12  ;;  %v12579_v36 = vmul.u32.u64.low 3817748708, %v12553_v35  ;;  %v12580_v61 = vmul.u32.u64.high 3817748708, %v12553_v35, %v12579_v36 }
 0x1d2   : > { %14252 = vst [vmem:[#allocation27_spill] sm:$0xff] %v12566_v10  ;;  %v12583_v39 = vadd.s32 18, %v12528_v33  ;;  %v14272_v17 = vmov 0 }
 0x1d3   : > { %10146 = vmatmul.mubr.bf16.gmra.mrb[32].mxu1 %v3685_v43  ;;  %v12336_v43 = vsub.s32 %v6320_v47, %v6423_v15  ;;  %v12433_v41 = vmul.u32.u64.low 3817748708, %v12404_v52  ;;  %v12434_v15 = vmul.u32.u64.high 3817748708, %v12404_v52, %v12433_v41  ;;  %14253 = vst [vmem:[#allocation28_spill] sm:$0xff] %v12574_v58  ;;  %v12587_v47 = vadd.s32 184, %v12210_v30 }
 0x1d4   : > { %v12531_v41 = vmul.u32.u64.low 3817748708, %v12470_v8  ;;  %v12532_v54 = vmul.u32.u64.high 3817748708, %v12470_v8, %v12531_v41  ;;  %v12603_v12 = vsub.s32 %v12401_v62, %v6522_v22 }
 0x1d5   : > { %14216 = vst [vmem:[#allocation5_spill] sm:$0xff] %v12336_v43  ;;  %vm6752_vm0 = vcmp.ne.s32.totalorder %v12336_v43, 0  ;;  %vm6788_vm8 = vcmp.lt.s32.totalorder %v12336_v43, 0  ;;  %v12391_v50 = vadd.s32 18, %v12336_v43  ;;  %v6499_v13 = vshrl.u32 %v12434_v15, 4 }
 0x1d6   : > { %vm12450_vm4 = vmand %vm6788_vm8, %vm6752_vm0  ;;  %vm6792_vm0 = vcmp.lt.s32.totalorder %v12422_v5, 0  ;;  %v12561_v15 = vsub.s32 %v12351_v4, %v6511_v19  ;;  %v6554_v41 = vshrl.u32 %v12457_v31, 4  ;;  %v6532_v19 = vshrl.u32 %v12496_v23, 4 }
 0x1d7   : > { %14222 = vst [vmem:[#allocation9_spill] sm:$0xff] %v12391_v50  ;;  %v14230_v32 = vsel %vm12450_vm4, 4294967295, %v14229_v32  ;;  %vm12476_vm8 = vmand %vm6789_vm15, %vm6753_vm12  ;;  %v6500_v4 = vmul.u32 18, %v6499_v13  ;;  %v6565_v31 = vshrl.u32 %v12500_v60, 4  ;;  %v6543_v48 = vshrl.u32 %v12532_v54, 4 }
 0x1d8   : > { %14231 = vst [vmem:[#allocation16_spill] sm:$0xff] %v14230_v32  ;;  %v14236_v34 = vsel %vm12476_vm8, 4294967295, %v14235_v34  ;;  %vm12507_vm12 = vmand %vm6792_vm0, %vm6756_vm10  ;;  %vm6755_vm10 = vcmp.ne.s32.totalorder %v12528_v33, 0  ;;  %v6555_v18 = vmul.u32 18, %v6554_v41  ;;  %v12595_v60 = vadd.s32 168, %v12210_v30 }
 0x1d9   : > { %14237 = vst [vmem:[#allocation18_spill] sm:$0xff] %v14236_v34  ;;  %v14244_v24 = vsel %vm12507_vm12, 4294967295, %v14243_v24  ;;  %vm12523_vm15 = vmand %vm6790_vm9, %vm6754_vm7  ;;  %v12591_v1 = vmul.u32.u64.low 3817748708, %v12570_v27  ;;  %v12592_v23 = vmul.u32.u64.high 3817748708, %v12570_v27, %v12591_v1  ;;  %v12599_v36 = vadd.s32 18, %v12561_v15 }
 0x1da   : > { %14245 = vst [vmem:[#allocation22_spill] sm:$0xff] %v14244_v24  ;;  %v14249_v29 = vsel %vm12523_vm15, 4294967295, %v14248_v29  ;;  %14251 = vst [vmem:[#allocation26_spill] sm:$0xff] %v12561_v15  ;;  %v12607_v54 = vsub.s32 %v12404_v52, %v6500_v4  ;;  %v6533_v13 = vmul.u32 18, %v6532_v19  ;;  %v6566_v41 = vmul.u32 18, %v6565_v31 }
 0x1db   : > { %14250 = vst [vmem:[#allocation25_spill] sm:$0xff] %v14249_v29  ;;  %v12610_v1 = vadd.s32 18, %v12574_v58  ;;  %v12613_v42 = vsub.s32 %v12418_v0, %v6555_v18  ;;  %v12616_v28 = vmul.u32.u64.low 3817748708, %v12587_v47  ;;  %v12617_v20 = vmul.u32.u64.high 3817748708, %v12587_v47, %v12616_v28  ;;  %vm12642_vm9 = vmand %vm6793_vm2, %vm6757_vm1 }
 0x1dc   : > { %14254 = vst [vmem:[#allocation29_spill] sm:$0xff] %v12607_v54  ;;  %v6544_v63 = vmul.u32 18, %v6543_v48  ;;  %v12620_v62 = vmul.u32.u64.low 3817748708, %v12595_v60  ;;  %v12621_v22 = vmul.u32.u64.high 3817748708, %v12595_v60, %v12620_v62  ;;  %v12624_v52 = vadd.s32 208, %v12210_v30 }
 0x1dd   : > { %14255 = vst [vmem:[#allocation30_spill] sm:$0xff] %v12610_v1  ;;  %14256 = vst [vmem:[#allocation31_spill] sm:$0xff] %v12613_v42  ;;  %v12631_v18 = vadd.s32 18, %v12603_v12  ;;  %v12634_v0 = vadd.s32 192, %v12210_v30  ;;  %v12648_v31 = vsub.s32 %v12441_v40, %v6533_v13  ;;  %v12651_v48 = vsub.s32 %v12444_v26, %v6566_v41 }
 0x1de   : > { %v6598_v62 = vshrl.u32 %v12580_v61, 4  ;;  %vm14261_vm7 = vcmp.lt.s32.totalorder %v12528_v33, 0  ;;  %v12666_v40 = vadd.s32 18, %v12607_v54  ;;  %v12670_v26 = vadd.s32 216, %v12210_v30 }
 0x1df   : > { %14259 = vst [vmem:[#allocation32_spill] sm:$0xff] %v12648_v31  ;;  %14260 = vst [vmem:[#allocation33_spill] sm:$0xff] %v12651_v48  ;;  %vm14265_vm15 = vcmp.ne.s32.totalorder %v12561_v15, 0  ;;  %vm14266_vm12 = vcmp.lt.s32.totalorder %v12561_v15, 0  ;;  %v14267_v13 = vmov 0  ;;  %v12683_v41 = vsub.s32 %v12470_v8, %v6544_v63 }
 0x1e0   : > { %vm12660_vm1 = vmand %vm14261_vm7, %vm6755_vm10  ;;  %v6576_v44 = vshrl.u32 %v12592_v23, 4  ;;  %v12687_v24 = vmul.u32.u64.low 3817748708, %v12624_v52  ;;  %v12688_v3 = vmul.u32.u64.high 3817748708, %v12624_v52, %v12687_v24  ;;  %vm14270_vm7 = vcmp.ne.s32.totalorder %v12574_v58, 0 }
 0x1e1   : > { %vm12678_vm10 = vmand %vm14266_vm12, %vm14265_vm15  ;;  %14269 = vst [vmem:[#allocation35_spill] sm:$0xff] %v12683_v41  ;;  %vm14271_vm0 = vcmp.lt.s32.totalorder %v12574_v58, 0  ;;  %vm6800_vm12 = vcmp.lt.s32.totalorder %v12613_v42, 0  ;;  %v12700_v14 = vmul.u32.u64.low 3817748708, %v12634_v0  ;;  %v12701_v8 = vmul.u32.u64.high 3817748708, %v12634_v0, %v12700_v14 }
 0x1e2   : > { %v14268_v13 = vsel %vm12678_vm10, 4294967295, %v14267_v13  ;;  %vm12694_vm2 = vmand %vm14271_vm0, %vm14270_vm7  ;;  %v12704_v63 = vadd.s32 200, %v12210_v30  ;;  %vm14274_vm15 = vcmp.ne.s32.totalorder %v12603_v12, 0  ;;  %vm14275_vm11 = vcmp.lt.s32.totalorder %v12603_v12, 0 }
 0x1e3   : > { %v14273_v17 = vsel %vm12694_vm2, 4294967295, %v14272_v17  ;;  %vm12710_vm8 = vmand %vm14275_vm11, %vm14274_vm15  ;;  %v14276_v24 = vmov 0  ;;  %vm6762_vm0 = vcmp.ne.s32.totalorder %v12648_v31, 0  ;;  %v6599_v23 = vmul.u32 18, %v6598_v62 }
 0x1e4   : > { %v14277_v24 = vsel %vm12710_vm8, 4294967295, %v14276_v24  ;;  %vm14278_vm4 = vcmp.ne.s32.totalorder %v12607_v54, 0  ;;  %vm14279_vm13 = vcmp.lt.s32.totalorder %v12607_v54, 0  ;;  %v14280_v14 = vmov 0 }
 0x1e5   : > { %vm12721_vm14 = vmand %vm14279_vm13, %vm14278_vm4  ;;  %vm6801_vm11 = vcmp.lt.s32.totalorder %v12651_v48, 0  ;;  %v6609_v25 = vshrl.u32 %v12617_v20, 4  ;;  %v12728_v38 = vmul.u32.u64.low 3817748708, %v12670_v26  ;;  %v12729_v34 = vmul.u32.u64.high 3817748708, %v12670_v26, %v12728_v38 }
 0x1e6   : > { %v14281_v14 = vsel %vm12721_vm14, 4294967295, %v14280_v14  ;;  %vm14282_vm15 = vcmp.ne.s32.totalorder %v12613_v42, 0  ;;  %v14283_v62 = vmov 0  ;;  %vm6763_vm7 = vcmp.ne.s32.totalorder %v12683_v41, 0 }
 0x1e7   : > { %vm12733_vm6 = vmand %vm6800_vm12, %vm14282_vm15  ;;  %vm6799_vm13 = vcmp.lt.s32.totalorder %v12683_v41, 0  ;;  %v6577_v53 = vmul.u32 18, %v6576_v44  ;;  %v6587_v59 = vshrl.u32 %v12621_v22, 4  ;;  %v12743_v20 = vadd.s32 18, %v12613_v42 }
 0x1e8   : > { %v14284_v62 = vsel %vm12733_vm6, 4294967295, %v14283_v62  ;;  %vm14288_vm4 = vcmp.lt.s32.totalorder %v12648_v31, 0  ;;  %v14289_v38 = vmov 0  ;;  %v12754_v43 = vadd.s32 18, %v12648_v31 }
 0x1e9   : > { %14285 = vst [vmem:[#allocation36_spill] sm:$0xff] %v14284_v62  ;;  %14287 = vst [vmem:[#allocation38_spill] sm:$0xff] %v12743_v20  ;;  %v12757_v44 = vmul.u32.u64.low 3817748708, %v12704_v63  ;;  %v12758_v50 = vmul.u32.u64.high 3817748708, %v12704_v63, %v12757_v44  ;;  %vm14294_vm15 = vcmp.ne.s32.totalorder %v12651_v48, 0  ;;  %v14295_v32 = vmov 0 }
 0x1ea   : > { %vm12749_vm12 = vmand %vm14288_vm4, %vm6762_vm0  ;;  %14292 = vst [vmem:[#allocation40_spill] sm:$0xff] %v12754_v43  ;;  %v12775_v6 = vadd.s32 18, %v12651_v48  ;;  %v12778_v44 = vadd.s32 18, %v12683_v41  ;;  %v12812_v15 = vsub.s32 %v12570_v27, %v6577_v53  ;;  %v6588_v10 = vmul.u32 18, %v6587_v59 }
 0x1eb   : > { %v14290_v38 = vsel %vm12749_vm12, 4294967295, %v14289_v38  ;;  %vm12770_vm0 = vmand %vm6801_vm11, %vm14294_vm15  ;;  %v6642_v58 = vshrl.u32 %v12688_v3, 4  ;;  %v6620_v53 = vshrl.u32 %v12701_v8, 4  ;;  %v6653_v8 = vshrl.u32 %v12729_v34, 4 }
 0x1ec   : > { %14291 = vst [vmem:[#allocation39_spill] sm:$0xff] %v14290_v38  ;;  %v14296_v32 = vsel %vm12770_vm0, 4294967295, %v14295_v32  ;;  %14298 = vst [vmem:[#allocation43_spill] sm:$0xff] %v12775_v6  ;;  %v12848_v3 = vsub.s32 %v12595_v60, %v6588_v10  ;;  %v6342_v1 = vadd.s32 224, %v12210_v30  ;;  %v6631_v38 = vshrl.u32 %v12758_v50, 4 }
 0x1ed   : > { %14297 = vst [vmem:[#allocation42_spill] sm:$0xff] %v14296_v32  ;;  %14299 = vst [vmem:[#allocation44_spill] sm:$0xff] %v12778_v44  ;;  %v6643_v59 = vmul.u32 18, %v6642_v58  ;;  %v6621_v43 = vmul.u32 18, %v6620_v53  ;;  %v6345_v10 = vadd.s32 248, %v12210_v30  ;;  %v12867_v60 = vadd.s32 18, %v12812_v15 }
 0x1ee   : > { %vm12801_vm11 = vmand %vm6799_vm13, %vm6763_vm7  ;;  %14304 = vst [vmem:[#allocation47_spill] sm:$0xff] %v12812_v15  ;;  %v12860_v34 = vmul.u32.u64.low 3817748708, %v6342_v1  ;;  %v12861_v44 = vmul.u32.u64.high 3817748708, %v6342_v1, %v12860_v34  ;;  %v6654_v50 = vmul.u32 18, %v6653_v8  ;;  %vm14315_vm15 = vcmp.ne.s32.totalorder %v12812_v15, 0 }
 0x1ef   : > { %14307 = vst [vmem:[#allocation50_spill] sm:$0xff] %v12848_v3  ;;  %14308 = vst [vmem:[#allocation51_spill] sm:$0xff] %v12867_v60  ;;  %v12874_v53 = vsub.s32 %v12624_v52, %v6643_v59  ;;  %v6343_v34 = vadd.s32 232, %v12210_v30  ;;  %v12882_v6 = vsub.s32 %v12634_v0, %v6621_v43  ;;  %v6632_v32 = vmul.u32 18, %v6631_v38  ;;  %v14420_v60 = vld [vmem:[#allocation20_spill] sm:$0xff] }
 0x1f0   : > { %v14312_v52 = vmov 0  ;;  %v14317_v43 = vmov 0  ;;  %v12910_v38 = vadd.s32 18, %v12848_v3 }
 0x1f1   : > { %14309 = vst [vmem:[#allocation52_spill] sm:$0xff] %v12874_v53  ;;  %14310 = vst [vmem:[#allocation53_spill] sm:$0xff] %v12882_v6  ;;  %v12895_v59 = vmul.u32.u64.low 3817748708, %v6343_v34  ;;  %v12896_v8 = vmul.u32.u64.high 3817748708, %v6343_v34, %v12895_v59 }
 0x1f2   : > { %14321 = vst [vmem:[#allocation57_spill] sm:$0xff] %v12910_v38  ;;  %v14325_v59 = vmov 0 }
 0x23e   : > { %v12626_v4 = vpop.f32.mrb[0].mxu1 }
 0x23f   : > { %v12636_v28 = vpop.f32.mrb[1].mxu1 }
 0x240   : > { %v12654_v29 = vpop.f32.mrb[2].mxu1 }
 0x241   : > { %v12672_v61 = vpop.f32.mrb[3].mxu1 }
 0x242   : > { %14264 = vst [vmem:[#allocation34_spill] sm:$0xff] %v12672_v61 }
 0x246   : > { %v12740_v45 = vpop.f32.mrb[4].mxu1 }
 0x247   : > { %14286 = vst [vmem:[#allocation37_spill] sm:$0xff] %v12740_v45  ;;  %v12760_v22 = vpop.f32.mrb[5].mxu1 }
 0x248   : > { %14293 = vst [vmem:[#allocation41_spill] sm:$0xff] %v12760_v22  ;;  %v12781_v22 = vsub.s32 %v12553_v35, %v6599_v23  ;;  %v12783_v61 = vpop.f32.mrb[6].mxu1  ;;  %v14301_v35 = vmov 0  ;;  %v6610_v23 = vmul.u32 18, %v6609_v25  ;;  %v6344_v25 = vadd.s32 240, %v12210_v30 }
 0x249   : > { %v14302_v35 = vsel %vm12801_vm11, 4294967295, %v14301_v35  ;;  %v12805_v45 = vpop.f32.mrb[7].mxu1  ;;  %vm14316_vm11 = vcmp.lt.s32.totalorder %v12812_v15, 0 }
 0x24a   : > { %14300 = vst [vmem:[#allocation45_spill] sm:$0xff] %v12781_v22  ;;  %14303 = vst [vmem:[#allocation46_spill] sm:$0xff] %v14302_v35  ;;  %vm6768_vm7 = vcmp.ne.s32.totalorder %v12781_v22, 0  ;;  %v12839_v27 = vadd.s32 18, %v12781_v22  ;;  %v12842_v7 = vsub.s32 %v12587_v47, %v6610_v23  ;;  %vm14311_vm13 = vcmp.lt.s32.totalorder %v12781_v22, 0 }
 0x24b   : > { %v12854_v41 = vmul.u32.u64.low 3817748708, %v6344_v25  ;;  %v12855_v47 = vmul.u32.u64.high 3817748708, %v6344_v25, %v12854_v41  ;;  %v12876_v35 = vmul.u32.u64.low 3817748708, %v6345_v10  ;;  %v12877_v48 = vmul.u32.u64.high 3817748708, %v6345_v10, %v12876_v35  ;;  %vm12889_vm4 = vmand %vm14311_vm13, %vm6768_vm7 }
 0x24c   : > { %14305 = vst [vmem:[#allocation48_spill] sm:$0xff] %v12839_v27  ;;  %14306 = vst [vmem:[#allocation49_spill] sm:$0xff] %v12842_v7  ;;  %v14313_v52 = vsel %vm12889_vm4, 4294967295, %v14312_v52  ;;  %v6664_v35 = vshrl.u32 %v12861_v44, 4  ;;  %v12907_v0 = vadd.s32 18, %v12842_v7  ;;  %vm14323_vm7 = vcmp.ne.s32.totalorder %v12842_v7, 0 }
 0x24d   : > { %v6686_v42 = vshrl.u32 %v12855_v47, 4  ;;  %14314 = vst [vmem:[#allocation54_spill] sm:$0xff] %v14313_v52  ;;  %vm12902_vm0 = vmand %vm14316_vm11, %vm14315_vm15  ;;  %v12913_v47 = vsub.s32 %v12670_v26, %v6654_v50  ;;  %vm14324_vm13 = vcmp.lt.s32.totalorder %v12842_v7, 0  ;;  %v6697_v62 = vshrl.u32 %v12877_v48, 4  ;;  %v14427_v7 = vld [vmem:[#allocation22_spill] sm:$0xff] }
 0x24e   : > { %v12851_v31 = vpop.f32.mrb[8].mxu1  ;;  %v14318_v43 = vsel %vm12902_vm0, 4294967295, %v14317_v43  ;;  %14320 = vst [vmem:[#allocation56_spill] sm:$0xff] %v12907_v0  ;;  %vm12919_vm12 = vmand %vm14324_vm13, %vm14323_vm7  ;;  %v6665_v20 = vmul.u32 18, %v6664_v35  ;;  %v14331_v50 = vsel %vm12329_vm5, %v12321_v51, %v12271_v56  ;;  %vm14335_vm13 = vcmp.lt.s32.totalorder %v12848_v3, 0 }
 0x24f   : > { %v12857_v23 = vpop.f32.mrb[9].mxu1  ;;  %14319 = vst [vmem:[#allocation55_spill] sm:$0xff] %v14318_v43  ;;  %14322 = vst [vmem:[#allocation58_spill] sm:$0xff] %v12913_v47  ;;  %v6687_v44 = vmul.u32 18, %v6686_v42  ;;  %v14326_v59 = vsel %vm12919_vm12, 4294967295, %v14325_v59  ;;  %v14328_v42 = vsel %vm12288_vm3, %v12284_v57, %v12253_v9  ;;  %vm12942_vm7 = vcmp.lt.s32.totalorder %v14331_v50, 16 }
 0x250   : > { %v12864_v58 = vpop.f32.mrb[10].mxu1  ;;  %14327 = vst [vmem:[#allocation59_spill] sm:$0xff] %v14326_v59  ;;  %vm12933_vm6 = vcmp.lt.s32.totalorder %v14328_v42, 16  ;;  %vm14334_vm3 = vcmp.ne.s32.totalorder %v12848_v3, 0  ;;  %v14336_v9 = vmov 0  ;;  %v12959_v57 = vadd.s32 18, %v12874_v53 }
 0x251   : > { %v12871_v41 = vpop.f32.mrb[11].mxu1  ;;  %vm12954_vm15 = vmand %vm14335_vm13, %vm14334_vm3  ;;  %v12963_v56 = vsub.s32 %v12704_v63, %v6632_v32  ;;  %vm14342_vm11 = vnez %v14213_v16  ;;  %vm14346_vm3 = vnez %v14218_v46  ;;  %v12986_v32 = vsub.s32 %v6344_v25, %v6687_v44 }
 0x252   : > { %v14337_v9 = vsel %vm12954_vm15, 4294967295, %v14336_v9  ;;  %14339 = vst [vmem:[#allocation61_spill] sm:$0xff] %v12959_v57  ;;  %v14343_v49 = vsel %vm14342_vm11, %v12301_v37, %v12266_v2  ;;  %v14347_v42 = vsel %vm14346_vm3, %v12334_v55, %v12273_v21  ;;  %v6698_v16 = vmul.u32 18, %v6697_v62  ;;  %v14413_v57 = vld [vmem:[#allocation18_spill] sm:$0xff] }
 0x253   : > { %14338 = vst [vmem:[#allocation60_spill] sm:$0xff] %v14337_v9  ;;  %14340 = vst [vmem:[#allocation62_spill] sm:$0xff] %v12963_v56  ;;  %vm12972_vm4 = vcmp.lt.s32.totalorder %v14343_v49, 16  ;;  %vm12981_vm13 = vcmp.lt.s32.totalorder %v14347_v42, 16  ;;  %v6675_v2 = vshrl.u32 %v12896_v8, 4  ;;  %vm14352_vm11 = vcmp.ne.s32.totalorder %v12874_v53, 0 }
 0x254   : > { %14350 = vst [vmem:[#allocation64_spill] sm:$0xff] %v12986_v32  ;;  %vm14353_vm3 = vcmp.lt.s32.totalorder %v12874_v53, 0  ;;  %v14354_v21 = vmov 0  ;;  %vm6773_vm5 = vcmp.ne.s32.totalorder %v12913_v47, 0  ;;  %vm6809_vm8 = vcmp.lt.s32.totalorder %v12913_v47, 0 }
 0x255   : > { %vm12999_vm14 = vmand %vm14353_vm3, %vm14352_vm11  ;;  %v13005_v55 = vsub.s32 %v6342_v1, %v6665_v20  ;;  %v13018_v8 = vadd.s32 18, %v12882_v6  ;;  %v13020_v44 = vsub.s32 %v6345_v10, %v6698_v16  ;;  %vm14361_vm11 = vcmp.ne.s32.totalorder %v12882_v6, 0 }
 0x256   : > { %v12926_v54 = vpop.f32.mrb[12].mxu1  ;;  %v14355_v21 = vsel %vm12999_vm14, 4294967295, %v14354_v21  ;;  %vm14362_vm3 = vcmp.lt.s32.totalorder %v12882_v6, 0  ;;  %v14363_v1 = vmov 0  ;;  %v13031_v20 = vadd.s32 18, %v12913_v47  ;;  %vm13039_vm2 = vmand %vm6809_vm8, %vm6773_vm5 }
 0x257   : > { %v12965_v51 = vpop.f32.mrb[13].mxu1  ;;  %14356 = vst [vmem:[#allocation66_spill] sm:$0xff] %v14355_v21  ;;  %14357 = vst [vmem:[#allocation67_spill] sm:$0xff] %v13005_v55  ;;  %vm6807_vm15 = vcmp.lt.s32.totalorder %v12963_v56, 0  ;;  %v6676_v49 = vmul.u32 18, %v6675_v2  ;;  %v14367_v42 = vmov 0 }
 0x258   : > { %14341 = vst [vmem:[#allocation63_spill] sm:$0xff] %v12965_v51  ;;  %v12989_v37 = vpop.f32.mrb[14].mxu1  ;;  %14359 = vst [vmem:[#allocation69_spill] sm:$0xff] %v13018_v8  ;;  %v14368_v42 = vsel %vm13039_vm2, 4294967295, %v14367_v42  ;;  %v13046_v16 = vadd.s32 272, %v12210_v30  ;;  %v13049_v25 = vadd.s32 18, %v12963_v56 }
 0x259   : > { %14351 = vst [vmem:[#allocation65_spill] sm:$0xff] %v12989_v37  ;;  %v13007_v63 = vpop.f32.mrb[15].mxu1  ;;  %14360 = vst [vmem:[#allocation70_spill] sm:$0xff] %v13020_v44  ;;  %v10323_v46 = vpop.f32.mrb[0].mxu0  ;;  %vm6810_vm10 = vcmp.lt.s32.totalorder %v13005_v55, 0  ;;  %v13053_v2 = vsub.s32 %v6343_v34, %v6676_v49  ;;  %vm14373_vm8 = vcmp.ne.s32.totalorder %v12963_v56, 0 }
 0x25a   : > { %14358 = vst [vmem:[#allocation68_spill] sm:$0xff] %v13007_v63  ;;  %vm13026_vm0 = vmand %vm14362_vm3, %vm14361_vm11  ;;  %vm6776_vm11 = vcmp.ne.s32.totalorder %v12986_v32, 0  ;;  %v10373_v10 = vadd.f32 %v10323_v46, %v12626_v4  ;;  %v6062_v62 = vpop.f32.mrb[1].mxu0  ;;  %v13063_v30 = vadd.s32 18, %v12986_v32  ;;  %vm6813_vm12 = vcmp.lt.s32.totalorder %v13020_v44, 0 }
 0x25b   : > { %v14364_v1 = vsel %vm13026_vm0, 4294967295, %v14363_v1  ;;  %14366 = vst [vmem:[#allocation72_spill] sm:$0xff] %v13031_v20  ;;  %14369 = vst [vmem:[#allocation73_spill] sm:$0xff] %v14368_v42  ;;  %v10374_v53 = vadd.f32 %v6062_v62, %v12636_v28  ;;  %v10324_v34 = vpop.f32.mrb[2].mxu0  ;;  %v14379_v49 = vmov 0  ;;  %v13085_v28 = vadd.s32 18, %v13005_v55 }
 0x25c   : > { %14365 = vst [vmem:[#allocation71_spill] sm:$0xff] %v14364_v1  ;;  %14370 = vst [vmem:[#allocation74_spill] sm:$0xff] %v13046_v16  ;;  %v10375_v62 = vadd.f32 %v10324_v34, %v12654_v29  ;;  %v6065_v1 = vpop.f32.mrb[3].mxu0  ;;  %vm14383_vm3 = vcmp.ne.s32.totalorder %v13005_v55, 0  ;;  %v14384_v46 = vmov 0  ;;  %v13097_v4 = vadd.s32 18, %v13020_v44 }
 0x25d   : > { %14371 = vst [vmem:[#allocation75_spill] sm:$0xff] %v13049_v25  ;;  %14372 = vst [vmem:[#allocation76_spill] sm:$0xff] %v13053_v2  ;;  %v13100_v47 = vmul.u32.u64.low 3817748708, %v13046_v16  ;;  %v13101_v20 = vmul.u32.u64.high 3817748708, %v13046_v16, %v13100_v47  ;;  %v14389_v42 = vld [vmem:[#allocation34_spill] sm:$0xff]  ;;  %v14391_v34 = vmov 0 }
 0x25e   : > { %vm13058_vm5 = vmand %vm6807_vm15, %vm14373_vm8  ;;  %14377 = vst [vmem:[#allocation78_spill] sm:$0xff] %v13063_v30  ;;  %vm14378_vm15 = vcmp.lt.s32.totalorder %v12986_v32, 0  ;;  %v10376_v6 = vadd.f32 %v6065_v1, %v14389_v42  ;;  %v7072_v47 = vsel %vm12933_vm6, %v10373_v10, 0.0  ;;  %v7073_v1 = vsel %vm12942_vm7, %v10375_v62, 0.0  ;;  %v14401_v62 = vld [vmem:[#allocation9_spill] sm:$0xff] }
 0x25f   : > { %v14375_v11 = vsel %vm13058_vm5, 4294967295, %v14374_v11  ;;  %vm13080_vm8 = vmand %vm14378_vm15, %vm6776_vm11  ;;  %14382 = vst [vmem:[#allocation80_spill] sm:$0xff] %v13085_v28  ;;  %vm6811_vm15 = vcmp.lt.s32.totalorder %v13053_v2, 0  ;;  %v13126_v29 = vadd.s32 18, %v13053_v2  ;;  %v7070_v16 = vsel %vm12972_vm4, %v10374_v53, 0.0  ;;  %v14399_v28 = vld [vmem:[#allocation16_spill] sm:$0xff] }
 0x260   : > { %14376 = vst [vmem:[#allocation77_spill] sm:$0xff] %v14375_v11  ;;  %v14380_v49 = vsel %vm13080_vm8, 4294967295, %v14379_v49  ;;  %vm13092_vm0 = vmand %vm6810_vm10, %vm14383_vm3  ;;  %vm14390_vm10 = vcmp.ne.s32.totalorder %v13020_v44, 0  ;;  %vm6775_vm3 = vcmp.ne.s32.totalorder %v13053_v2, 0  ;;  %v9523_v56 = vpack.c.bf16 %v7073_v1, %v7073_v1  ;;  %v14406_v30 = vld [vmem:[#allocation17_spill] sm:$0xff]  ;;  %v14409_v11 = vld [vmem:[#allocation7_spill] sm:$0xff] }
 0x261   : > { %14381 = vst [vmem:[#allocation79_spill] sm:$0xff] %v14380_v49  ;;  %v14385_v46 = vsel %vm13092_vm0, 4294967295, %v14384_v46  ;;  %14387 = vst [vmem:[#allocation82_spill] sm:$0xff] %v13097_v4  ;;  %v7071_v26 = vsel %vm12981_vm13, %v10376_v6, 0.0  ;;  %v14395_v48 = vmov 0  ;;  %v14398_v6 = vld [vmem:[#allocation6_spill] sm:$0xff]  ;;  %vm14407_vm7 = vnez %v14406_v30 }
 0x262   : > { %14386 = vst [vmem:[#allocation81_spill] sm:$0xff] %v14385_v46  ;;  %14388 = vst [vmem:[#allocation83_spill] sm:$0xff] %v13101_v20  ;;  %v7107_v20 = vpack.c.bf16 %v7073_v1, %v7072_v47  ;;  %v7106_v10 = vpack.c.bf16 %v7071_v26, %v7070_v16  ;;  %v9522_v25 = vpack.c.bf16 %v7071_v26, %v7071_v26  ;;  %v10327_v1 = vpop.f32.mrb[4].mxu0  ;;  %v14402_v46 = vld [vmem:[#allocation5_spill] sm:$0xff]  ;;  %v14408_v49 = vld [vmem:[#allocation11_spill] sm:$0xff] }
 0x263   : > { %vm13111_vm11 = vmand %vm6813_vm12, %vm14390_vm10  ;;  %14394 = vst [vmem:[#allocation84_spill] sm:$0xff] %v13126_v29  ;;  %v7361_v16 = vrot.slane %v9523_v56, %v14398_v6  ;;  %vm14400_vm12 = vnez %v14399_v28  ;;  %vm14414_vm10 = vnez %v14413_v57 }
 0x264   : > { %v14392_v34 = vsel %vm13111_vm11, 4294967295, %v14391_v34  ;;  %vm13140_vm6 = vmand %vm6811_vm15, %vm6775_vm3  ;;  %v7126_v53 = vunpack.c.l.bf16 %v7107_v20  ;;  %v13144_v47 = vunpack.c.h.bf16 %v7107_v20  ;;  %v7354_v50 = vrot.slane %v7107_v20, %v14398_v6 }
 0x265   : > { %14393 = vst [vmem:[#allocation34_spill] sm:$0xff] %v14392_v34  ;;  %v14396_v48 = vsel %vm13140_vm6, 4294967295, %v14395_v48  ;;  %v7124_v26 = vunpack.c.l.bf16 %v7106_v10  ;;  %v7125_v42 = vunpack.c.h.bf16 %v7106_v10  ;;  %v7305_v35 = vrot.slane %v7106_v10, %v14398_v6  ;;  %v6078_v34 = vpop.f32.mrb[5].mxu0 }
 0x266   : > { %14397 = vst [vmem:[#allocation85_spill] sm:$0xff] %v14396_v48  ;;  %v7312_v55 = vrot.slane %v9522_v25, %v14398_v6  ;;  %v14403_v44 = vsel %vm14400_vm12, %v14401_v62, %v14402_v46  ;;  %v7204_v20 = vmul.f32 %v7126_v53, %v7126_v53  ;;  %v7362_v32 = vcombine.high %v7354_v50, %v7354_v50  ;;  %v10328_v28 = vpop.f32.mrb[6].mxu0 }
 0x267   : > { %vm13155_vm4 = vcmp.lt.s32.totalorder %v14403_v44, 16  ;;  %v7363_v56 = vcombine.high %v7361_v16, %v7361_v16  ;;  %v14410_v10 = vsel %vm14407_vm7, %v14408_v49, %v14409_v11  ;;  %v7370_v46 = vrot.slane %v7354_v50, %v14398_v6  ;;  %v14415_v11 = vld [vmem:[#allocation12_spill] sm:$0xff]  ;;  %v6081_v15 = vpop.f32.mrb[7].mxu0 }
 0x268   : > { %vm13164_vm13 = vcmp.lt.s32.totalorder %v14410_v10, 16  ;;  %v13174_v62 = vrot.slane %v7361_v16, %v14398_v6  ;;  %v7160_v8 = vadd.f32 %v7125_v42, %v7124_v26  ;;  %v7202_v30 = vmul.f32 %v7124_v26, %v7124_v26  ;;  %v14416_v49 = vld [vmem:[#allocation8_spill] sm:$0xff] }
 0x269   : > { %v14417_v10 = vsel %vm14414_vm10, %v14415_v11, %v14416_v49  ;;  %v7384_v48 = vrot.slane %v7362_v32, %v14398_v6  ;;  %v7391_v44 = vrot.slane %v7363_v56, %v14398_v6  ;;  %v7203_v50 = vmul.f32 %v7125_v42, %v7125_v42  ;;  %v14422_v11 = vld [vmem:[#allocation15_spill] sm:$0xff]  ;;  %v14423_v49 = vld [vmem:[#allocation10_spill] sm:$0xff]  ;;  %v10331_v9 = vpop.f32.mrb[8].mxu0 }
 0x26a   : > { %vm13181_vm3 = vcmp.lt.s32.totalorder %v14417_v10, 16  ;;  %v7313_v2 = vcombine.high %v7305_v35, %v7305_v35  ;;  %v7205_v16 = vmul.f32 %v13144_v47, %v13144_v47  ;;  %v7392_v26 = vcombine.high %v7370_v46, %v7370_v46  ;;  %v6094_v59 = vpop.f32.mrb[9].mxu0 }
 0x26b   : > { %v7161_v29 = vadd.f32 %v7160_v8, %v7126_v53  ;;  %v7314_v57 = vcombine.high %v7312_v55, %v7312_v55  ;;  %vm14421_vm15 = vnez %v14420_v60  ;;  %v7394_v32 = vcombine.high %v7384_v48, %v7384_v48  ;;  %v14434_v53 = vld [vmem:[#allocation25_spill] sm:$0xff]  ;;  %v10332_v22 = vpop.f32.mrb[10].mxu0 }
 0x26c   : > { %v14424_v10 = vsel %vm14421_vm15, %v14422_v11, %v14423_v49  ;;  %v7395_v3 = vcombine.high %v7391_v44, %v7391_v44  ;;  %v7238_v56 = vadd.f32 %v7203_v50, %v7202_v30  ;;  %v7321_v42 = vrot.slane %v7305_v35, %v14398_v6  ;;  %v14429_v30 = vld [vmem:[#allocation19_spill] sm:$0xff]  ;;  %v14430_v50 = vld [vmem:[#allocation13_spill] sm:$0xff]  ;;  %v13229_v51 = vpop.f32.mrb[11].mxu0 }
 0x26d   : > { %vm13194_vm12 = vcmp.lt.s32.totalorder %v14424_v10, 16  ;;  %v8221_v38 = vcombine.low %v7392_v26, %v13174_v62  ;;  %v7328_v46 = vrot.slane %v7312_v55, %v14398_v6  ;;  %v7335_v8 = vrot.slane %v7313_v2, %v14398_v6 }
 0x26e   : > { %v7342_v60 = vrot.slane %v7314_v57, %v14398_v6  ;;  %v8220_v11 = vcombine.low %v7384_v48, %v7394_v32  ;;  %v7239_v49 = vadd.f32 %v7238_v56, %v7204_v20  ;;  %v7343_v10 = vcombine.high %v7321_v42, %v7321_v42  ;;  %v14436_v48 = vld [vmem:[#allocation23_spill] sm:$0xff]  ;;  %v14437_v20 = vld [vmem:[#allocation14_spill] sm:$0xff]  ;;  %v14441_v56 = vld [vmem:[#allocation21_spill] sm:$0xff] }
 0x26f   : > { %vm14428_vm7 = vnez %v14427_v7  ;;  %v13214_v55 = vcombine.low %v7391_v44, %v7395_v3  ;;  %v7344_v2 = vcombine.high %v7328_v46, %v7328_v46  ;;  %v7345_v57 = vcombine.high %v7335_v8, %v7335_v8  ;;  %v14442_v44 = vld [vmem:[#allocation37_spill] sm:$0xff] }
 0x270   : > { %v14431_v35 = vsel %vm14428_vm7, %v14429_v30, %v14430_v50  ;;  %v7346_v0 = vcombine.high %v7342_v60, %v7342_v60  ;;  %vm14435_vm15 = vnez %v14434_v53  ;;  %v8228_v30 = vrot.slane %v8220_v11, %v14441_v56  ;;  %v14443_v53 = vld [vmem:[#allocation41_spill] sm:$0xff] }
 0x271   : > { %vm13210_vm10 = vcmp.lt.s32.totalorder %v14431_v35, 16  ;;  %v14438_v32 = vsel %vm14435_vm15, %v14436_v48, %v14437_v20  ;;  %v8235_v50 = vrot.slane %v8221_v38, %v14441_v56  ;;  %v8172_v3 = vcombine.low %v7321_v42, %v7343_v10 }
 0x272   : > { %vm13221_vm0 = vcmp.lt.s32.totalorder %v14438_v32, 16  ;;  %v10377_v35 = vadd.f32 %v10327_v1, %v14442_v44  ;;  %v8173_v27 = vcombine.low %v7335_v8, %v7345_v57  ;;  %v8196_v52 = vcombine.low %v7328_v46, %v7344_v2 }
 0x273   : > { %v8197_v63 = vcombine.low %v7342_v60, %v7346_v0  ;;  %v10378_v37 = vadd.f32 %v6078_v34, %v14443_v53  ;;  %v8236_v48 = vcombine.low %v8228_v30, %v8235_v50  ;;  %v8180_v20 = vrot.slane %v8172_v3, %v14441_v56 }
 0x274   : > { %v7076_v32 = vsel %vm13155_vm4, %v10377_v35, 0.0  ;;  %v10379_v11 = vadd.f32 %v10328_v28, %v12783_v61  ;;  %v8187_v0 = vrot.slane %v8173_v27, %v14441_v56  ;;  %v8204_v38 = vrot.slane %v8196_v52, %v14441_v56 }
 0x275   : > { %v8211_v34 = vrot.slane %v8197_v63, %v14441_v56  ;;  %v7074_v1 = vsel %vm13164_vm13, %v10378_v37, 0.0  ;;  %v8243_v4 = vrot.slane %v8236_v48, %v14441_v56  ;;  %v10380_v28 = vadd.f32 %v6081_v15, %v12805_v45  ;;  %v13262_v45 = vpop.f32.mrb[12].mxu0 }
 0x276   : > { %v7077_v61 = vsel %vm13181_vm3, %v10379_v11, 0.0  ;;  %v7162_v42 = vadd.f32 %v7161_v29, %v13144_v47  ;;  %v8188_v46 = vcombine.low %v8180_v20, %v8187_v0  ;;  %vm14444_vm4 = vcmask 60416   ;;  %v13268_v43 = vpop.f32.mrb[13].mxu0 }
 0x277   : > { %v8212_v8 = vcombine.low %v8204_v38, %v8211_v34  ;;  %v7109_v60 = vpack.c.bf16 %v7077_v61, %v7076_v32  ;;  %v9525_v27 = vpack.c.bf16 %v7077_v61, %v7077_v61  ;;  %8974 = vst.msk [vmem:[%s13240_s20 + $0x8] sm:$0xf] %vm14444_vm4, %v8243_v4  ;;  %v7075_v52 = vsel %vm13194_vm12, %v10380_v28, 0.0  ;;  %v13281_v57 = vpop.f32.mrb[14].mxu0  ;;  %vm14450_vm3 = vmmov %vm14444_vm4 }
 0x278   : > { %v7240_v63 = vadd.f32 %v7239_v49, %v7205_v16  ;;  %v13257_v37 = vadd.f32 %v10331_v9, %v12851_v31  ;;  %v13260_v21 = vadd.f32 %v6094_v59, %v12857_v23  ;;  %v8195_v15 = vrot.slane %v8188_v46, %v14441_v56  ;;  %v14445_v23 = vld [vmem:[#allocation27_spill] sm:$0xff]  ;;  %v14446_v59 = vld [vmem:[#allocation24_spill] sm:$0xff]  ;;  %vm14451_vm12 = vmmov %vm14450_vm3  ;;  %v13296_v44 = vpop.f32.mrb[15].mxu0 }
 0x279   : > { %v8219_v29 = vrot.slane %v8212_v8, %v14441_v56  ;;  %v7130_v47 = vunpack.c.l.bf16 %v7109_v60  ;;  %v13266_v25 = vunpack.c.h.bf16 %v7109_v60  ;;  %v7452_v16 = vrot.slane %v7109_v60, %v14398_v6  ;;  %vm14462_vm15 = vmmov %vm14450_vm3 }
 0x27a   : > { %v7459_v31 = vrot.slane %v9525_v27, %v14398_v6  ;;  %v7108_v9 = vpack.c.bf16 %v7075_v52, %v7074_v1  ;;  %v9524_v49 = vpack.c.bf16 %v7075_v52, %v7075_v52  ;;  %v14447_v10 = vsel %vm12642_vm9, %v14445_v23, %v14446_v59  ;;  %8972 = vst.msk [vmem:[%s13240_s20] sm:$0xf] %vm14450_vm3, %v8195_v15 }
 0x27b   : > { %vm13277_vm13 = vcmp.lt.s32.totalorder %v14447_v10, 16  ;;  %v8252_v30 = vrot.slane %v13214_v55, %v14441_v56  ;;  %8973 = vst.msk [vmem:[%s13240_s20 + $0x4] sm:$0xf] %vm14451_vm12, %v8219_v29  ;;  %v7208_v50 = vmul.f32 %v7130_v47, %v7130_v47  ;;  %v13291_v19 = vmul.f32 %v13266_v25, %v13266_v25  ;;  %vm14469_vm12 = vmmov %vm14450_vm3 }
 0x27c   : > { %v7080_v3 = vsel %vm13210_vm10, %v13257_v37, 0.0  ;;  %v7460_v35 = vcombine.high %v7452_v16, %v7452_v16  ;;  %v7461_v53 = vcombine.high %v7459_v31, %v7459_v31  ;;  %v7475_v48 = vrot.slane %v7459_v31, %v14398_v6  ;;  %v13310_v37 = vpop.f32.mrb[16].mxu0  ;;  %vm14461_vm10 = vmmov %vm14450_vm3 }
 0x27d   : > { %v7078_v55 = vsel %vm13221_vm0, %v13260_v21, 0.0  ;;  %v7128_v20 = vunpack.c.l.bf16 %v7108_v9  ;;  %v7129_v32 = vunpack.c.h.bf16 %v7108_v9  ;;  %v7403_v11 = vrot.slane %v7108_v9, %v14398_v6  ;;  %v13314_v9 = vpop.f32.mrb[17].mxu0 }
 0x27e   : > { %v7410_v0 = vrot.slane %v9524_v49, %v14398_v6  ;;  %v7468_v38 = vrot.slane %v7452_v16, %v14398_v6  ;;  %v7482_v26 = vrot.slane %v7460_v35, %v14398_v6  ;;  %v7490_v34 = vcombine.high %v7475_v48, %v7475_v48  ;;  %v13329_v59 = vpop.f32.mrb[18].mxu0 }
 0x27f   : > { %v10383_v1 = vadd.f32 %v10332_v22, %v12864_v58  ;;  %v13308_v4 = vrot.slane %v7461_v53, %v14398_v6  ;;  %v7163_v61 = vadd.f32 %v7162_v42, %v7128_v20  ;;  %v7206_v28 = vmul.f32 %v7128_v20, %v7128_v20  ;;  %v13331_v20 = vpop.f32.mrb[19].mxu0 }
 0x280   : > { %v7411_v46 = vcombine.high %v7403_v11, %v7403_v11  ;;  %v7491_v8 = vcombine.high %v7482_v26, %v7482_v26  ;;  %v8317_v60 = vcombine.low %v7475_v48, %v7490_v34  ;;  %v7207_v27 = vmul.f32 %v7129_v32, %v7129_v32 }
 0x281   : > { %v7412_v52 = vcombine.high %v7410_v0, %v7410_v0  ;;  %v7164_v15 = vadd.f32 %v7163_v61, %v7129_v32  ;;  %v7241_v29 = vadd.f32 %v7240_v63, %v7206_v28  ;;  %v7419_v16 = vrot.slane %v7403_v11, %v14398_v6 }
 0x282   : > { %v7426_v31 = vrot.slane %v7410_v0, %v14398_v6  ;;  %v8316_v22 = vcombine.low %v7491_v8, %v13308_v4  ;;  %v8331_v58 = vrot.slane %v8317_v60, %v14441_v56  ;;  %v7433_v42 = vrot.slane %v7411_v46, %v14398_v6 }
 0x283   : > { %v7440_v49 = vrot.slane %v7412_v52, %v14398_v6  ;;  %v14452_v23 = vsel %vm12660_vm1, %v12583_v39, %v12528_v33  ;;  %v7165_v10 = vadd.f32 %v7164_v15, %v7130_v47  ;;  %v7242_v35 = vadd.f32 %v7241_v29, %v7207_v27 }
 0x284   : > { %vm13325_vm9 = vcmp.lt.s32.totalorder %v14452_v23, 16  ;;  %v7441_v53 = vcombine.high %v7419_v16, %v7419_v16  ;;  %v7442_v48 = vcombine.high %v7426_v31, %v7426_v31  ;;  %v8324_v32 = vrot.slane %v8316_v22, %v14441_v56 }
 0x285   : > { %v7443_v11 = vcombine.high %v7433_v42, %v7433_v42  ;;  %v7444_v0 = vcombine.high %v7440_v49, %v7440_v49  ;;  %v14455_v5 = vcombine.high %v13174_v62, %v13174_v62  ;;  %v7243_v33 = vadd.f32 %v7242_v35, %v7208_v50  ;;  %v14457_v62 = vld [vmem:[#allocation26_spill] sm:$0xff] }
 0x286   : > { %v8268_v34 = vcombine.low %v7441_v53, %v7426_v31  ;;  %v8292_v61 = vcombine.low %v7442_v48, %v7468_v38  ;;  %v7081_v28 = vsel %vm13277_vm13, %v10383_v1, 0.0  ;;  %v8332_v47 = vcombine.low %v8324_v32, %v8331_v58  ;;  %v13354_v31 = vpop.f32.mrb[20].mxu0  ;;  %v13369_v35 = vpop.f32.mrb[16].mxu1 }
 0x287   : > { %v8245_v39 = vcombine.low %v14455_v5, %v7419_v16  ;;  %v8269_v8 = vcombine.low %v7443_v11, %v7440_v49  ;;  %v8293_v60 = vcombine.low %v7444_v0, %v7482_v26  ;;  %v7111_v15 = vpack.c.bf16 %v7081_v28, %v7080_v3  ;;  %v13362_v58 = vpop.f32.mrb[21].mxu0  ;;  %v13379_v5 = vpop.f32.mrb[17].mxu1 }
 0x288   : > { %v8276_v27 = vrot.slane %v8268_v34, %v14441_v56  ;;  %v8300_v52 = vrot.slane %v8292_v61, %v14441_v56  ;;  %v9527_v29 = vpack.c.bf16 %v7081_v28, %v7081_v28  ;;  %vm14456_vm1 = vnez %v14268_v13  ;;  %v13371_v53 = vpop.f32.mrb[22].mxu0  ;;  %v14464_v28 = vld [vmem:[#allocation30_spill] sm:$0xff] }
 0x289   : > { %v8259_v46 = vrot.slane %v8245_v39, %v14441_v56  ;;  %v14458_v50 = vsel %vm14456_vm1, %v12599_v36, %v14457_v62  ;;  %v8339_v38 = vrot.slane %v8332_v47, %v14441_v56  ;;  %v8283_v26 = vrot.slane %v8269_v8, %v14441_v56  ;;  %v13381_v39 = vpop.f32.mrb[23].mxu0  ;;  %v14465_v47 = vld [vmem:[#allocation28_spill] sm:$0xff] }
 0x28a   : > { %vm13347_vm7 = vcmp.lt.s32.totalorder %v14458_v50, 16  ;;  %v8307_v16 = vrot.slane %v8293_v60, %v14441_v56  ;;  %v13356_v3 = vunpack.c.l.bf16 %v7111_v15  ;;  %v13358_v22 = vunpack.c.h.bf16 %v7111_v15  ;;  %v13400_v60 = vpop.f32.mrb[18].mxu1 }
 0x28b   : > { %v8260_v1 = vcombine.low %v8252_v30, %v8259_v46  ;;  %v7548_v13 = vrot.slane %v7111_v15, %v14398_v6  ;;  %v7555_v36 = vrot.slane %v9527_v29, %v14398_v6  ;;  %8978 = vst.msk [vmem:[%s13240_s20 + $0x18] sm:$0xf] %vm14461_vm10, %v8339_v38  ;;  %v8284_v42 = vcombine.low %v8276_v27, %v8283_v26  ;;  %v13407_v62 = vpop.f32.mrb[19].mxu1 }
 0x28c   : > { %v8308_v49 = vcombine.low %v8300_v52, %v8307_v16  ;;  %v10384_v23 = vadd.f32 %v13229_v51, %v12871_v41  ;;  %v7492_v48 = vcombine.high %v13308_v4, %v13308_v4  ;;  %v13377_v32 = vmul.f32 %v13356_v3, %v13356_v3 }
 0x28d   : > { %v8267_v30 = vrot.slane %v8260_v1, %v14441_v56  ;;  %v7556_v11 = vcombine.high %v7548_v13, %v7548_v13  ;;  %v7557_v0 = vcombine.high %v7555_v36, %v7555_v36  ;;  %v8291_v41 = vrot.slane %v8284_v42, %v14441_v56 }
 0x28e   : > { %v8315_v51 = vrot.slane %v8308_v49, %v14441_v56  ;;  %v7564_v34 = vrot.slane %v7548_v13, %v14398_v6  ;;  %v13389_v61 = vrot.slane %v7555_v36, %v14398_v6  ;;  %vm14463_vm4 = vnez %v14273_v17 }
 0x28f   : > { %8975 = vst.msk [vmem:[%s13240_s20 + $0xc] sm:$0xf] %vm14462_vm15, %v8267_v30  ;;  %v14466_v46 = vsel %vm14463_vm4, %v14464_v28, %v14465_v47  ;;  %v7578_v27 = vrot.slane %v7556_v11, %v14398_v6  ;;  %v7585_v52 = vrot.slane %v7557_v0, %v14398_v6  ;;  %v7079_v15 = vsel %vm13325_vm9, %v10384_v23, 0.0  ;;  %v13455_v11 = vpop.f32.mrb[20].mxu1 }
 0x290   : > { %vm13396_vm13 = vcmp.lt.s32.totalorder %v14466_v46, 16  ;;  %v7166_v29 = vadd.f32 %v7165_v10, %v13266_v25  ;;  %8976 = vst.msk [vmem:[%s13240_s20 + $0x10] sm:$0xf] %vm14450_vm3, %v8291_v41  ;;  %v13415_v17 = vmul.f32 %v13358_v22, %v13358_v22  ;;  %v7586_v50 = vcombine.high %v7564_v34, %v7564_v34  ;;  %v13460_v47 = vpop.f32.mrb[21].mxu1 }
 0x291   : > { %8977 = vst.msk [vmem:[%s13240_s20 + $0x14] sm:$0xf] %vm14469_vm12, %v8315_v51  ;;  %v7110_v38 = vpack.c.bf16 %v7079_v15, %v7078_v55  ;;  %v7244_v63 = vadd.f32 %v7243_v33, %v13291_v19  ;;  %v7588_v1 = vcombine.high %v7578_v27, %v7578_v27  ;;  %v7589_v25 = vcombine.high %v7585_v52, %v7585_v52  ;;  %v14475_v33 = vld [vmem:[#allocation29_spill] sm:$0xff] }
 0x292   : > { %v9526_v10 = vpack.c.bf16 %v7079_v15, %v7079_v15  ;;  %v10385_v26 = vadd.f32 %v13262_v45, %v12926_v54  ;;  %vm14470_vm9 = vnez %v14277_v24  ;;  %v8388_v7 = vcombine.low %v7564_v34, %v7586_v50  ;;  %v13443_v24 = vpop.f32.mrb[24].mxu0 }
 0x293   : > { %v14471_v16 = vsel %vm14470_vm9, %v12631_v18, %v12603_v12  ;;  %v7132_v21 = vunpack.c.l.bf16 %v7110_v38  ;;  %v7133_v55 = vunpack.c.h.bf16 %v7110_v38  ;;  %v7500_v19 = vrot.slane %v7110_v38, %v14398_v6  ;;  %v13450_v42 = vpop.f32.mrb[25].mxu0 }
 0x294   : > { %vm13429_vm1 = vcmp.lt.s32.totalorder %v14471_v16, 16  ;;  %vm14474_vm0 = vnez %v14281_v14  ;;  %v8389_v18 = vcombine.low %v7578_v27, %v7588_v1  ;;  %v13447_v45 = vcombine.low %v7585_v52, %v7589_v25  ;;  %v13457_v0 = vpop.f32.mrb[26].mxu0  ;;  %v14479_v25 = vld [vmem:[#allocation63_spill] sm:$0xff] }
 0x295   : > { %v14476_v36 = vsel %vm14474_vm0, %v12666_v40, %v14475_v33  ;;  %v7507_v30 = vrot.slane %v9526_v10, %v14398_v6  ;;  %v8396_v14 = vrot.slane %v8388_v7, %v14441_v56  ;;  %v7167_v49 = vadd.f32 %v7166_v29, %v7132_v21  ;;  %v13462_v46 = vpop.f32.mrb[27].mxu0  ;;  %v13466_v29 = vpop.f32.mrb[22].mxu1 }
 0x296   : > { %vm13439_vm10 = vcmp.lt.s32.totalorder %v14476_v36, 16  ;;  %v7210_v40 = vmul.f32 %v7132_v21, %v7132_v21  ;;  %v7084_v23 = vsel %vm13347_vm7, %v10385_v26, 0.0  ;;  %v8403_v41 = vrot.slane %v8389_v18, %v14441_v56  ;;  %v13472_v26 = vpop.f32.mrb[23].mxu1  ;;  %vm14481_vm7 = vmmov %vm14450_vm3 }
 0x297   : > { %v7211_v51 = vmul.f32 %v7133_v55, %v7133_v55  ;;  %v7508_v34 = vcombine.high %v7500_v19, %v7500_v19  ;;  %v7509_v28 = vcombine.high %v7507_v30, %v7507_v30  ;;  %v7168_v27 = vadd.f32 %v7167_v49, %v7133_v55  ;;  %v13484_v49 = vpop.f32.mrb[28].mxu0 }
 0x298   : > { %v7245_v52 = vadd.f32 %v7244_v63, %v7210_v40  ;;  %v7516_v15 = vrot.slane %v7500_v19, %v14398_v6  ;;  %v7523_v2 = vrot.slane %v7507_v30, %v14398_v6  ;;  %v8404_v50 = vcombine.low %v8396_v14, %v8403_v41  ;;  %v14480_v14 = vld [vmem:[#allocation65_spill] sm:$0xff]  ;;  %v13492_v8 = vpop.f32.mrb[29].mxu0 }
 0x299   : > { %v7530_v38 = vrot.slane %v7508_v34, %v14398_v6  ;;  %v7537_v1 = vrot.slane %v7509_v28, %v14398_v6  ;;  %v10386_v10 = vadd.f32 %v13268_v43, %v14479_v25  ;;  %v7169_v16 = vadd.f32 %v7168_v27, %v13356_v3  ;;  %v13499_v27 = vpop.f32.mrb[24].mxu1 }
 0x29a   : > { %v7246_v63 = vadd.f32 %v7245_v52, %v7211_v51  ;;  %v7538_v7 = vcombine.high %v7516_v15, %v7516_v15  ;;  %v7539_v21 = vcombine.high %v7523_v2, %v7523_v2  ;;  %v8411_v55 = vrot.slane %v8404_v50, %v14441_v56  ;;  %v14482_v51 = vld [vmem:[#allocation68_spill] sm:$0xff]  ;;  %v13501_v52 = vpop.f32.mrb[30].mxu0  ;;  %v13506_v50 = vpop.f32.mrb[25].mxu1 }
 0x29b   : > { %v7540_v19 = vcombine.high %v7537_v1, %v7537_v1  ;;  %v8340_v33 = vcombine.low %v7492_v48, %v7530_v38  ;;  %v7082_v36 = vsel %vm13396_vm13, %v10386_v10, 0.0  ;;  %v10387_v3 = vadd.f32 %v13281_v57, %v14480_v14  ;;  %14483 = vst [vmem:[#allocation6_spill] sm:$0xff] %v13501_v52  ;;  %v13508_v38 = vpop.f32.mrb[31].mxu0  ;;  %v13516_v10 = vpop.f32.mrb[26].mxu1  ;;  %v14488_v14 = vld [vmem:[#allocation31_spill] sm:$0xff]  ;;  %vm14492_vm13 = vmmov %vm14450_vm3 }
 0x29c   : > { %v7247_v18 = vadd.f32 %v7246_v63, %v13377_v32  ;;  %v8341_v43 = vcombine.low %v7516_v15, %v7538_v7  ;;  %v8364_v30 = vcombine.low %v7523_v2, %v7539_v21  ;;  %8981 = vst.msk [vmem:[%s13240_s20 + $0x24] sm:$0xf] %vm14481_vm7, %v8411_v55  ;;  %v10388_v4 = vadd.f32 %v13296_v44, %v14482_v51  ;;  %v13519_v7 = vpop.f32.mrb[27].mxu1 }
 0x29d   : > { %v8348_v40 = vrot.slane %v8340_v33, %v14441_v56  ;;  %v8365_v41 = vcombine.low %v7537_v1, %v7540_v19  ;;  %v7170_v48 = vadd.f32 %v7169_v16, %v13358_v22  ;;  %v7085_v57 = vsel %vm13429_vm1, %v10387_v3, 0.0  ;;  %14484 = vst [vmem:[#allocation16_spill] sm:$0xff] %v13508_v38 }
 0x29e   : > { %v8355_v32 = vrot.slane %v8341_v43, %v14441_v56  ;;  %v8372_v34 = vrot.slane %v8364_v30, %v14441_v56  ;;  %v7248_v28 = vadd.f32 %v7247_v18, %v13415_v17  ;;  %v7113_v44 = vpack.c.bf16 %v7085_v57, %v7084_v23  ;;  %v14485_v43 = vld [vmem:[#allocation36_spill] sm:$0xff]  ;;  %v14487_v30 = vld [vmem:[#allocation38_spill] sm:$0xff] }
 0x29f   : > { %v8379_v15 = vrot.slane %v8365_v41, %v14441_v56  ;;  %v9529_v2 = vpack.c.bf16 %v7085_v57, %v7085_v57  ;;  %v7083_v22 = vsel %vm13439_vm10, %v10388_v4, 0.0  ;;  %v13514_v25 = vadd.f32 %v13310_v37, %v13369_v35 }
 0x2a0   : > { %v8356_v1 = vcombine.low %v8348_v40, %v8355_v32  ;;  %v7112_v17 = vpack.c.bf16 %v7083_v22, %v7082_v36  ;;  %v7138_v16 = vunpack.c.l.bf16 %v7113_v44  ;;  %v7646_v54 = vrot.slane %v7113_v44, %v14398_v6 }
 0x2a1   : > { %v8380_v23 = vcombine.low %v8372_v34, %v8379_v15  ;;  %v9528_v63 = vpack.c.bf16 %v7083_v22, %v7083_v22  ;;  %v7653_v55 = vrot.slane %v9529_v2, %v14398_v6  ;;  %v13524_v35 = vunpack.c.h.bf16 %v7113_v44  ;;  %v13539_v34 = vpop.f32.mrb[32].mxu0  ;;  %v14494_v22 = vld [vmem:[#allocation42_spill] sm:$0xff] }
 0x2a2   : > { %v8363_v21 = vrot.slane %v8356_v1, %v14441_v56  ;;  %v7136_v19 = vunpack.c.l.bf16 %v7112_v17  ;;  %v7137_v33 = vunpack.c.h.bf16 %v7112_v17  ;;  %v7216_v36 = vmul.f32 %v7138_v16, %v7138_v16  ;;  %14493 = vst [vmem:[#allocation9_spill] sm:$0xff] %v13539_v34  ;;  %v14496_v1 = vld [vmem:[#allocation43_spill] sm:$0xff] }
 0x2a3   : > { %v8387_v37 = vrot.slane %v8380_v23, %v14441_v56  ;;  %v7654_v18 = vcombine.high %v7646_v54, %v7646_v54  ;;  %vm14486_vm15 = vnez %v14485_v43  ;;  %v7655_v41 = vcombine.high %v7653_v55, %v7653_v55  ;;  %v14497_v23 = vld [vmem:[#allocation33_spill] sm:$0xff]  ;;  %v13560_v43 = vpop.f32.mrb[28].mxu1 }
 0x2a4   : > { %v14489_v3 = vsel %vm14486_vm15, %v14487_v30, %v14488_v14  ;;  %8979 = vst.msk [vmem:[%s13240_s20 + $0x1c] sm:$0xf] %vm14492_vm13, %v8363_v21  ;;  %v7662_v51 = vrot.slane %v7646_v54, %v14398_v6  ;;  %v7669_v4 = vrot.slane %v7653_v55, %v14398_v6  ;;  %v7171_v32 = vadd.f32 %v7170_v48, %v7136_v19  ;;  %v13554_v48 = vpop.f32.mrb[33].mxu0  ;;  %vm14522_vm15 = vmmov %vm14450_vm3 }
 0x2a5   : > { %vm13531_vm4 = vcmp.lt.s32.totalorder %v14489_v3, 16  ;;  %8980 = vst.msk [vmem:[%s13240_s20 + $0x20] sm:$0xf] %vm14450_vm3, %v8387_v37  ;;  %v7676_v57 = vrot.slane %v7654_v18, %v14398_v6  ;;  %v7214_v15 = vmul.f32 %v7136_v19, %v7136_v19  ;;  %v7215_v44 = vmul.f32 %v7137_v33, %v7137_v33  ;;  %14501 = vst [vmem:[#allocation5_spill] sm:$0xff] %v13554_v48 }
 0x2a6   : > { %v7597_v2 = vrot.slane %v7112_v17, %v14398_v6  ;;  %vm14495_vm12 = vnez %v14494_v22  ;;  %v13557_v55 = vrot.slane %v7655_v41, %v14398_v6  ;;  %v7684_v37 = vcombine.high %v7662_v51, %v7662_v51  ;;  %v13562_v17 = vpop.f32.mrb[34].mxu0  ;;  %vm14524_vm13 = vmmov %vm14450_vm3 }
 0x2a7   : > { %v14498_v21 = vsel %vm14495_vm12, %v14496_v1, %v14497_v23  ;;  %v7172_v18 = vadd.f32 %v7171_v32, %v7137_v33  ;;  %v7604_v19 = vrot.slane %v9528_v63, %v14398_v6  ;;  %14502 = vst [vmem:[#allocation17_spill] sm:$0xff] %v13562_v17  ;;  %v7685_v30 = vcombine.high %v7676_v57, %v7676_v57  ;;  %v14503_v1 = vld [vmem:[#allocation46_spill] sm:$0xff]  ;;  %v14505_v23 = vld [vmem:[#allocation44_spill] sm:$0xff]  ;;  %v13574_v33 = vpop.f32.mrb[29].mxu1  ;;  %v13576_v63 = vpop.f32.mrb[35].mxu0 }
 0x2a8   : > { %vm13550_vm9 = vcmp.lt.s32.totalorder %v14498_v21, 16  ;;  %v7249_v14 = vadd.f32 %v7248_v28, %v7214_v15  ;;  %v7605_v3 = vcombine.high %v7597_v2, %v7597_v2  ;;  %v7613_v22 = vrot.slane %v7597_v2, %v14398_v6  ;;  %v14506_v21 = vld [vmem:[#allocation35_spill] sm:$0xff]  ;;  %14510 = vst [vmem:[#allocation11_spill] sm:$0xff] %v13576_v63  ;;  %v14514_v17 = vld [vmem:[#allocation32_spill] sm:$0xff] }
 0x2a9   : > { %vm14504_vm1 = vnez %v14503_v1  ;;  %v7217_v32 = vmul.f32 %v13524_v35, %v13524_v35  ;;  %v8484_v28 = vcombine.low %v7684_v37, %v7669_v4  ;;  %v7173_v15 = vadd.f32 %v7172_v18, %v7138_v16  ;;  %v14511_v2 = vld [vmem:[#allocation39_spill] sm:$0xff]  ;;  %v14513_v1 = vld [vmem:[#allocation40_spill] sm:$0xff] }
 0x2aa   : > { %v14507_v13 = vsel %vm14504_vm1, %v14505_v23, %v14506_v21  ;;  %v7606_v12 = vcombine.high %v7604_v19, %v7604_v19  ;;  %vm14512_vm10 = vnez %v14511_v2  ;;  %v13589_v23 = vpop.f32.mrb[30].mxu1  ;;  %v8485_v21 = vcombine.low %v7685_v30, %v13557_v55 }
 0x2ab   : > { %vm13570_vm0 = vcmp.lt.s32.totalorder %v14507_v13, 16  ;;  %v14515_v48 = vsel %vm14512_vm10, %v14513_v1, %v14514_v17  ;;  %14518 = vst [vmem:[#allocation7_spill] sm:$0xff] %v13589_v23  ;;  %v7250_v63 = vadd.f32 %v7249_v14, %v7215_v44  ;;  %v7620_v34 = vrot.slane %v7604_v19, %v14398_v6  ;;  %v13594_v16 = vpop.f32.mrb[31].mxu1 }
 0x2ac   : > { %vm13585_vm7 = vcmp.lt.s32.totalorder %v14515_v48, 16  ;;  %v7627_v4 = vrot.slane %v7605_v3, %v14398_v6  ;;  %14519 = vst [vmem:[#allocation18_spill] sm:$0xff] %v13594_v16  ;;  %v8492_v37 = vrot.slane %v8484_v28, %v14441_v56  ;;  %v7634_v18 = vrot.slane %v7606_v12, %v14398_v6 }
 0x2ad   : > { %v7635_v17 = vcombine.high %v7613_v22, %v7613_v22  ;;  %v14520_v48 = vcombine.high %v13389_v61, %v13389_v61  ;;  %v8499_v1 = vrot.slane %v8485_v21, %v14441_v56  ;;  %v7251_v38 = vadd.f32 %v7250_v63, %v7216_v36 }
 0x2ae   : > { %v7636_v30 = vcombine.high %v7620_v34, %v7620_v34  ;;  %v7637_v44 = vcombine.high %v7627_v4, %v7627_v4  ;;  %v7686_v19 = vcombine.high %v13557_v55, %v13557_v55  ;;  %v7638_v14 = vcombine.high %v7634_v18, %v7634_v18 }
 0x2af   : > { %v8413_v2 = vcombine.low %v14520_v48, %v7613_v22  ;;  %v8437_v16 = vcombine.low %v7635_v17, %v7620_v34  ;;  %v8500_v28 = vcombine.low %v8492_v37, %v8499_v1  ;;  %v10390_v23 = vadd.f32 %v13314_v9, %v13379_v5  ;;  %v13615_v34 = vpop.f32.mrb[32].mxu1 }
 0x2b0   : > { %v8436_v52 = vcombine.low %v7627_v4, %v7637_v44  ;;  %v8460_v12 = vcombine.low %v7636_v30, %v7662_v51  ;;  %v14521_v61 = vrot.slane %v13447_v45, %v14441_v56  ;;  %v8461_v22 = vcombine.low %v7638_v14, %v7676_v57  ;;  %v13621_v45 = vpop.f32.mrb[33].mxu1 }
 0x2b1   : > { %v8427_v3 = vrot.slane %v8413_v2, %v14441_v56  ;;  %v7088_v63 = vsel %vm13531_vm4, %v13514_v25, 0.0  ;;  %v10391_v21 = vadd.f32 %v13329_v59, %v13400_v60  ;;  %v8507_v51 = vrot.slane %v8500_v28, %v14441_v56  ;;  %v13629_v40 = vpop.f32.mrb[34].mxu1  ;;  %vm14523_vm4 = vmmov %vm14450_vm3 }
 0x2b2   : > { %v8444_v4 = vrot.slane %v8436_v52, %v14441_v56  ;;  %v8451_v9 = vrot.slane %v8437_v16, %v14441_v56  ;;  %v8468_v5 = vrot.slane %v8460_v12, %v14441_v56  ;;  %v8475_v25 = vrot.slane %v8461_v22, %v14441_v56  ;;  %v13634_v17 = vpop.f32.mrb[35].mxu1 }
 0x2b3   : > { %v8428_v36 = vcombine.low %v14521_v61, %v8427_v3  ;;  %v7089_v59 = vsel %vm13550_vm9, %v10391_v21, 0.0  ;;  %v10392_v60 = vadd.f32 %v13331_v20, %v13407_v62  ;;  %8985 = vst.msk [vmem:[%s13240_s20 + $0x34] sm:$0xf] %vm14522_vm15, %v8507_v51  ;;  %v7174_v18 = vadd.f32 %v7173_v15, %v13524_v35  ;;  %v14527_v21 = vld [vmem:[#allocation48_spill] sm:$0xff]  ;;  %v14528_v51 = vld [vmem:[#allocation45_spill] sm:$0xff] }
 0x2b4   : > { %v8452_v52 = vcombine.low %v8444_v4, %v8451_v9  ;;  %v7115_v16 = vpack.c.bf16 %v7089_v59, %v7088_v63  ;;  %v9531_v37 = vpack.c.bf16 %v7089_v59, %v7089_v59  ;;  %v8476_v48 = vcombine.low %v8468_v5, %v8475_v25  ;;  %v14525_v63 = vld [vmem:[#allocation54_spill] sm:$0xff]  ;;  %v14532_v5 = vld [vmem:[#allocation59_spill] sm:$0xff]  ;;  %v14535_v25 = vld [vmem:[#allocation49_spill] sm:$0xff] }
 0x2b5   : > { %v8435_v57 = vrot.slane %v8428_v36, %v14441_v56  ;;  %v7087_v54 = vsel %vm13570_vm0, %v10392_v60, 0.0  ;;  %v7252_v20 = vadd.f32 %v7251_v38, %v7217_v32  ;;  %v13642_v62 = vadd.f32 %v13354_v31, %v13455_v11 }
 0x2b6   : > { %v8459_v2 = vrot.slane %v8452_v52, %v14441_v56  ;;  %v7086_v1 = vsel %vm13585_vm7, %v10390_v23, 0.0  ;;  %v7142_v35 = vunpack.c.l.bf16 %v7115_v16  ;;  %v7742_v15 = vrot.slane %v7115_v16, %v14398_v6 }
 0x2b7   : > { %8982 = vst.msk [vmem:[%s13240_s20 + $0x28] sm:$0xf] %vm14523_vm4, %v8435_v57  ;;  %v8483_v30 = vrot.slane %v8476_v48, %v14441_v56  ;;  %v7749_v44 = vrot.slane %v9531_v37, %v14398_v6  ;;  %v7114_v41 = vpack.c.bf16 %v7087_v54, %v7086_v1  ;;  %v9530_v14 = vpack.c.bf16 %v7087_v54, %v7087_v54  ;;  %v14534_v57 = vld [vmem:[#allocation56_spill] sm:$0xff] }
 0x2b8   : > { %8983 = vst.msk [vmem:[%s13240_s20 + $0x2c] sm:$0xf] %vm14524_vm13, %v8459_v2  ;;  %v13652_v38 = vunpack.c.h.bf16 %v7115_v16  ;;  %v7220_v31 = vmul.f32 %v7142_v35, %v7142_v35  ;;  %v7750_v11 = vcombine.high %v7742_v15, %v7742_v15  ;;  %v7758_v32 = vrot.slane %v7742_v15, %v14398_v6 }
 0x2b9   : > { %8984 = vst.msk [vmem:[%s13240_s20 + $0x30] sm:$0xf] %vm14450_vm3, %v8483_v30  ;;  %v7751_v13 = vcombine.high %v7749_v44, %v7749_v44  ;;  %v7765_v23 = vrot.slane %v7749_v44, %v14398_v6  ;;  %v7140_v3 = vunpack.c.l.bf16 %v7114_v41  ;;  %v7141_v28 = vunpack.c.h.bf16 %v7114_v41 }
 0x2ba   : > { %v7772_v12 = vrot.slane %v7750_v11, %v14398_v6  ;;  %v7780_v61 = vcombine.high %v7758_v32, %v7758_v32  ;;  %v7694_v36 = vrot.slane %v7114_v41, %v14398_v6  ;;  %v7701_v22 = vrot.slane %v9530_v14, %v14398_v6 }
 0x2bb   : > { %vm14526_vm12 = vnez %v14525_v63  ;;  %vm14533_vm1 = vnez %v14532_v5  ;;  %v7779_v52 = vrot.slane %v7751_v13, %v14398_v6  ;;  %v7781_v16 = vcombine.high %v7765_v23, %v7765_v23  ;;  %v14541_v13 = vld [vmem:[#allocation57_spill] sm:$0xff]  ;;  %v14546_v5 = vld [vmem:[#allocation55_spill] sm:$0xff] }
 0x2bc   : > { %v14529_v4 = vsel %vm14526_vm12, %v14527_v21, %v14528_v51  ;;  %v14536_v59 = vsel %vm14533_vm1, %v14534_v57, %v14535_v25  ;;  %v7175_v37 = vadd.f32 %v7174_v18, %v7140_v3  ;;  %v7218_v48 = vmul.f32 %v7140_v3, %v7140_v3  ;;  %v14542_v18 = vld [vmem:[#allocation50_spill] sm:$0xff]  ;;  %v14549_v57 = vld [vmem:[#allocation47_spill] sm:$0xff]  ;;  %vm14567_vm1 = vmmov %vm14450_vm3 }
 0x2bd   : > { %vm13666_vm9 = vcmp.lt.s32.totalorder %v14529_v4, 16  ;;  %vm13675_vm0 = vcmp.lt.s32.totalorder %v14536_v59, 16  ;;  %v7782_v54 = vcombine.high %v7772_v12, %v7772_v12  ;;  %v8556_v2 = vcombine.low %v7758_v32, %v7780_v61  ;;  %v14539_v4 = vld [vmem:[#allocation60_spill] sm:$0xff] }
 0x2be   : > { %v7219_v1 = vmul.f32 %v7141_v28, %v7141_v28  ;;  %v7702_v15 = vcombine.high %v7694_v36, %v7694_v36  ;;  %v7783_v30 = vcombine.high %v7779_v52, %v7779_v52  ;;  %v8580_v44 = vcombine.low %v7765_v23, %v7781_v16 }
 0x2bf   : > { %v7176_v41 = vadd.f32 %v7175_v37, %v7141_v28  ;;  %v7253_v14 = vadd.f32 %v7252_v20, %v7218_v48  ;;  %v7221_v11 = vmul.f32 %v13652_v38, %v13652_v38  ;;  %v8557_v63 = vcombine.low %v7772_v12, %v7782_v54  ;;  %v14548_v12 = vld [vmem:[#allocation51_spill] sm:$0xff] }
 0x2c0   : > { %v7703_v21 = vcombine.high %v7701_v22, %v7701_v22  ;;  %v7710_v51 = vrot.slane %v7694_v36, %v14398_v6  ;;  %vm14540_vm10 = vnez %v14539_v4  ;;  %v8564_v23 = vrot.slane %v8556_v2, %v14441_v56 }
 0x2c1   : > { %v14543_v3 = vsel %vm14540_vm10, %v14541_v13, %v14542_v18  ;;  %v8581_v28 = vcombine.low %v7779_v52, %v7783_v30  ;;  %v7177_v20 = vadd.f32 %v7176_v41, %v7142_v35  ;;  %v7254_v61 = vadd.f32 %v7253_v14, %v7219_v1 }
 0x2c2   : > { %vm13688_vm7 = vcmp.lt.s32.totalorder %v14543_v3, 16  ;;  %vm14547_vm15 = vnez %v14546_v5  ;;  %v8571_v59 = vrot.slane %v8557_v63, %v14441_v56  ;;  %v8588_v16 = vrot.slane %v8580_v44, %v14441_v56  ;;  %v14554_v44 = vld [vmem:[#allocation61_spill] sm:$0xff] }
 0x2c3   : > { %v14550_v25 = vsel %vm14547_vm15, %v14548_v12, %v14549_v57  ;;  %v7717_v37 = vrot.slane %v7701_v22, %v14398_v6  ;;  %v7724_v48 = vrot.slane %v7702_v15, %v14398_v6  ;;  %v8595_v35 = vrot.slane %v8581_v28, %v14441_v56  ;;  %v14555_v22 = vld [vmem:[#allocation52_spill] sm:$0xff] }
 0x2c4   : > { %vm13698_vm4 = vcmp.lt.s32.totalorder %v14550_v25, 16  ;;  %v7255_v52 = vadd.f32 %v7254_v61, %v7220_v31  ;;  %v7731_v54 = vrot.slane %v7703_v21, %v14398_v6  ;;  %v7732_v2 = vcombine.high %v7710_v51, %v7710_v51 }
 0x2c5   : > { %v8572_v1 = vcombine.low %v8564_v23, %v8571_v59  ;;  %v7733_v30 = vcombine.high %v7717_v37, %v7717_v37  ;;  %v7734_v41 = vcombine.high %v7724_v48, %v7724_v48  ;;  %v8508_v14 = vcombine.low %v7686_v19, %v7724_v48  ;;  %v14562_v48 = vld [vmem:[#allocation69_spill] sm:$0xff] }
 0x2c6   : > { %v14556_v4 = vsel %vm12999_vm14, %v14554_v44, %v14555_v22  ;;  %v8596_v31 = vcombine.low %v8588_v16, %v8595_v35  ;;  %v8509_v21 = vcombine.low %v7710_v51, %v7732_v2  ;;  %v10394_v13 = vadd.f32 %v13362_v58, %v13460_v47  ;;  %vm14559_vm14 = vmmov %vm14450_vm3  ;;  %v14563_v35 = vld [vmem:[#allocation53_spill] sm:$0xff] }
 0x2c7   : > { %vm13716_vm13 = vcmp.lt.s32.totalorder %v14556_v4, 16  ;;  %v10395_v18 = vadd.f32 %v13371_v53, %v13466_v29  ;;  %v8579_v55 = vrot.slane %v8572_v1, %v14441_v56  ;;  %v8516_v19 = vrot.slane %v8508_v14, %v14441_v56  ;;  %v14570_v4 = vld [vmem:[#allocation72_spill] sm:$0xff] }
 0x2c8   : > { %v8532_v3 = vcombine.low %v7734_v41, %v7731_v54  ;;  %v8533_v23 = vcombine.low %v7717_v37, %v7733_v30  ;;  %v8603_v28 = vrot.slane %v8596_v31, %v14441_v56  ;;  %v8523_v61 = vrot.slane %v8509_v21, %v14441_v56  ;;  %v14560_v37 = vld [vmem:[#allocation71_spill] sm:$0xff]  ;;  %v14571_v31 = vld [vmem:[#allocation58_spill] sm:$0xff] }
 0x2c9   : > { %v7092_v51 = vsel %vm13666_vm9, %v13642_v62, 0.0  ;;  %v7093_v58 = vsel %vm13675_vm0, %v10395_v18, 0.0  ;;  %8988 = vst.msk [vmem:[%s13240_s20 + $0x40] sm:$0xf] %vm14559_vm14, %v8579_v55  ;;  %v10396_v57 = vadd.f32 %v13381_v39, %v13472_v26  ;;  %v7178_v62 = vadd.f32 %v7177_v20, %v13652_v38  ;;  %vm14568_vm0 = vmmov %vm14567_vm1  ;;  %v14576_v55 = vld [vmem:[#allocation75_spill] sm:$0xff] }
 0x2ca   : > { %v8540_v53 = vrot.slane %v8532_v3, %v14441_v56  ;;  %v8547_v47 = vrot.slane %v8533_v23, %v14441_v56  ;;  %v7117_v29 = vpack.c.bf16 %v7093_v58, %v7092_v51  ;;  %v9533_v5 = vpack.c.bf16 %v7093_v58, %v7093_v58  ;;  %8989 = vst.msk [vmem:[%s13240_s20 + $0x44] sm:$0xf] %vm14450_vm3, %v8603_v28  ;;  %vm14588_vm15 = vmmov %vm14568_vm0 }
 0x2cb   : > { %v8524_v12 = vcombine.low %v8516_v19, %v8523_v61  ;;  %v7256_v9 = vadd.f32 %v7255_v52, %v7221_v11  ;;  %vm14561_vm12 = vnez %v14560_v37  ;;  %v7091_v38 = vsel %vm13688_vm7, %v10396_v57, 0.0  ;;  %v14577_v19 = vld [vmem:[#allocation62_spill] sm:$0xff]  ;;  %vm14615_vm3 = vmmov %vm14568_vm0 }
 0x2cc   : > { %v8548_v60 = vcombine.low %v8540_v53, %v8547_v47  ;;  %v7146_v25 = vunpack.c.l.bf16 %v7117_v29  ;;  %v13742_v59 = vunpack.c.h.bf16 %v7117_v29  ;;  %v7840_v16 = vrot.slane %v7117_v29, %v14398_v6 }
 0x2cd   : > { %v14564_v54 = vsel %vm14561_vm12, %v14562_v48, %v14563_v35  ;;  %v8531_v39 = vrot.slane %v8524_v12, %v14441_v56  ;;  %v7847_v26 = vrot.slane %v9533_v5, %v14398_v6  ;;  %v13760_v11 = vadd.f32 %v13443_v24, %v13499_v27  ;;  %vm14616_vm12 = vmmov %vm14568_vm0 }
 0x2ce   : > { %vm13750_vm9 = vcmp.lt.s32.totalorder %v14564_v54, 16  ;;  %v8555_v20 = vrot.slane %v8548_v60, %v14441_v56  ;;  %v7090_v52 = vsel %vm13698_vm4, %v10394_v13, 0.0  ;;  %v7224_v1 = vmul.f32 %v7146_v25, %v7146_v25  ;;  %vm14589_vm4 = vmmov %vm14568_vm0 }
 0x2cf   : > { %v7848_v30 = vcombine.high %v7840_v16, %v7840_v16  ;;  %8986 = vst.msk [vmem:[%s13240_s20 + $0x38] sm:$0xf] %vm14567_vm1, %v8531_v39  ;;  %v7849_v41 = vcombine.high %v7847_v26, %v7847_v26  ;;  %v7856_v14 = vrot.slane %v7840_v16, %v14398_v6  ;;  %v13769_v63 = vrot.slane %v7847_v26, %v14398_v6  ;;  %vm14623_vm1 = vmmov %vm14568_vm0 }
 0x2d0   : > { %v7116_v32 = vpack.c.bf16 %v7091_v38, %v7090_v52  ;;  %8987 = vst.msk [vmem:[%s13240_s20 + $0x3c] sm:$0xf] %vm14568_vm0, %v8555_v20  ;;  %v7225_v24 = vmul.f32 %v13742_v59, %v13742_v59  ;;  %v9532_v36 = vpack.c.bf16 %v7091_v38, %v7091_v38  ;;  %v10398_v44 = vadd.f32 %v13450_v42, %v13506_v50 }
 0x2d1   : > { %v7870_v27 = vrot.slane %v7848_v30, %v14398_v6  ;;  %v14572_v21 = vsel %vm13039_vm2, %v14570_v4, %v14571_v31  ;;  %v14578_v3 = vsel %vm13058_vm5, %v14576_v55, %v14577_v19  ;;  %v13797_v42 = vrot.slane %v7849_v41, %v14398_v6  ;;  %vm14581_vm2 = vmmov %vm14568_vm0 }
 0x2d2   : > { %vm13783_vm10 = vcmp.lt.s32.totalorder %v14572_v21, 16  ;;  %vm13792_vm7 = vcmp.lt.s32.totalorder %v14578_v3, 16  ;;  %v7878_v50 = vcombine.high %v7856_v14, %v7856_v14  ;;  %v7144_v28 = vunpack.c.l.bf16 %v7116_v32 }
 0x2d3   : > { %v7096_v61 = vsel %vm13716_vm13, %v13760_v11, 0.0  ;;  %v7880_v51 = vcombine.high %v7870_v27, %v7870_v27  ;;  %v7145_v58 = vunpack.c.h.bf16 %v7116_v32  ;;  %v7791_v53 = vrot.slane %v7116_v32, %v14398_v6 }
 0x2d4   : > { %v7798_v47 = vrot.slane %v9532_v36, %v14398_v6  ;;  %v7879_v29 = vcombine.high %v13769_v63, %v13769_v63  ;;  %v8652_v5 = vcombine.low %v7878_v50, %v13769_v63  ;;  %v7179_v12 = vadd.f32 %v7178_v62, %v7144_v28 }
 0x2d5   : > { %v7222_v57 = vmul.f32 %v7144_v28, %v7144_v28  ;;  %v8653_v60 = vcombine.low %v7880_v51, %v13797_v42  ;;  %v7223_v16 = vmul.f32 %v7145_v58, %v7145_v58  ;;  %v7799_v37 = vcombine.high %v7791_v53, %v7791_v53 }
 0x2d6   : > { %v7800_v48 = vcombine.high %v7798_v47, %v7798_v47  ;;  %v8660_v15 = vrot.slane %v8652_v5, %v14441_v56  ;;  %v7180_v35 = vadd.f32 %v7179_v12, %v7145_v58  ;;  %v7807_v39 = vrot.slane %v7791_v53, %v14398_v6 }
 0x2d7   : > { %v7257_v54 = vadd.f32 %v7256_v9, %v7222_v57  ;;  %v8667_v26 = vrot.slane %v8653_v60, %v14441_v56  ;;  %v7814_v38 = vrot.slane %v7798_v47, %v14398_v6  ;;  %v7821_v11 = vrot.slane %v7799_v37, %v14398_v6 }
 0x2d8   : > { %v7828_v62 = vrot.slane %v7800_v48, %v14398_v6  ;;  %v7181_v20 = vadd.f32 %v7180_v35, %v7146_v25  ;;  %v7829_v30 = vcombine.high %v7807_v39, %v7807_v39  ;;  %v7094_v41 = vsel %vm13750_vm9, %v10398_v44, 0.0  ;;  %v14583_v35 = vld [vmem:[#allocation78_spill] sm:$0xff]  ;;  %vm14618_vm9 = vmmov %vm14568_vm0 }
 0x2d9   : > { %v7258_v52 = vadd.f32 %v7257_v54, %v7223_v16  ;;  %v8668_v32 = vcombine.low %v8660_v15, %v8667_v26  ;;  %v7830_v27 = vcombine.high %v7814_v38, %v7814_v38  ;;  %v7831_v9 = vcombine.high %v7821_v11, %v7821_v11  ;;  %v14584_v54 = vld [vmem:[#allocation64_spill] sm:$0xff] }
 0x2da   : > { %v7832_v36 = vcombine.high %v7828_v62, %v7828_v62  ;;  %v8605_v4 = vcombine.low %v7829_v30, %v7814_v38  ;;  %v10399_v31 = vadd.f32 %v13457_v0, %v13516_v10  ;;  %v10400_v21 = vadd.f32 %v13462_v46, %v13519_v7 }
 0x2db   : > { %v7259_v22 = vadd.f32 %v7258_v52, %v7224_v1  ;;  %v8675_v25 = vrot.slane %v8668_v32, %v14441_v56  ;;  %v8604_v18 = vcombine.low %v7821_v11, %v7831_v9  ;;  %v8629_v19 = vcombine.low %v7830_v27, %v7856_v14  ;;  %v14591_v9 = vld [vmem:[#allocation82_spill] sm:$0xff] }
 0x2dc   : > { %v8628_v55 = vcombine.low %v7828_v62, %v7832_v36  ;;  %v8619_v2 = vrot.slane %v8605_v4, %v14441_v56  ;;  %v7097_v44 = vsel %vm13783_vm10, %v10399_v31, 0.0  ;;  %v7095_v1 = vsel %vm13792_vm7, %v10400_v21, 0.0  ;;  %v14592_v36 = vld [vmem:[#allocation70_spill] sm:$0xff]  ;;  %vm14625_vm7 = vmmov %vm14623_vm1 }
 0x2dd   : > { %v7182_v3 = vadd.f32 %v7181_v20, %v13742_v59  ;;  %8992 = vst.msk [vmem:[%s13240_s20 + $0x50] sm:$0xf] %vm14581_vm2, %v8675_v25  ;;  %v8612_v0 = vrot.slane %v8604_v18, %v14441_v56  ;;  %v8643_v10 = vrot.slane %v8629_v19, %v14441_v56  ;;  %v7119_v7 = vpack.c.bf16 %v7097_v44, %v7096_v61  ;;  %vm14626_vm2 = vmmov %vm14623_vm1 }
 0x2de   : > { %v8636_v46 = vrot.slane %v8628_v55, %v14441_v56  ;;  %v7881_v14 = vcombine.high %v13797_v42, %v13797_v42  ;;  %v9535_v50 = vpack.c.bf16 %v7097_v44, %v7097_v44  ;;  %v7118_v13 = vpack.c.bf16 %v7095_v1, %v7094_v41 }
 0x2df   : > { %v7260_v28 = vadd.f32 %v7259_v22, %v7225_v24  ;;  %v8620_v51 = vcombine.low %v8612_v0, %v8619_v2  ;;  %v7150_v58 = vunpack.c.l.bf16 %v7119_v7  ;;  %v13834_v59 = vunpack.c.h.bf16 %v7119_v7  ;;  %v14598_v0 = vld [vmem:[#allocation76_spill] sm:$0xff] }
 0x2e0   : > { %v8644_v23 = vcombine.low %v8636_v46, %v8643_v10  ;;  %v7937_v53 = vrot.slane %v7119_v7, %v14398_v6  ;;  %v7944_v47 = vrot.slane %v9535_v50, %v14398_v6  ;;  %v7148_v5 = vunpack.c.l.bf16 %v7118_v13 }
 0x2e1   : > { %v7149_v12 = vunpack.c.h.bf16 %v7118_v13  ;;  %v8627_v61 = vrot.slane %v8620_v51, %v14441_v56  ;;  %v7228_v57 = vmul.f32 %v7150_v58, %v7150_v58  ;;  %v9534_v60 = vpack.c.bf16 %v7095_v1, %v7095_v1  ;;  %v14602_v51 = vld [vmem:[#allocation81_spill] sm:$0xff] }
 0x2e2   : > { %v8651_v42 = vrot.slane %v8644_v23, %v14441_v56  ;;  %v7229_v24 = vmul.f32 %v13834_v59, %v13834_v59  ;;  %v7946_v16 = vcombine.high %v7944_v47, %v7944_v47  ;;  %v7953_v37 = vrot.slane %v7937_v53, %v14398_v6  ;;  %v14604_v23 = vld [vmem:[#allocation80_spill] sm:$0xff] }
 0x2e3   : > { %v7960_v48 = vrot.slane %v7944_v47, %v14398_v6  ;;  %v14585_v39 = vsel %vm13080_vm8, %v14583_v35, %v14584_v54  ;;  %8990 = vst.msk [vmem:[%s13240_s20 + $0x48] sm:$0xf] %vm14588_vm15, %v8627_v61  ;;  %v7945_v38 = vcombine.high %v7937_v53, %v7937_v53  ;;  %v7183_v11 = vadd.f32 %v7182_v3, %v7148_v5  ;;  %v14597_v3 = vld [vmem:[#allocation84_spill] sm:$0xff]  ;;  %v14605_v53 = vld [vmem:[#allocation67_spill] sm:$0xff] }
 0x2e4   : > { %vm13849_vm5 = vcmp.lt.s32.totalorder %v14585_v39, 16  ;;  %8991 = vst.msk [vmem:[%s13240_s20 + $0x4c] sm:$0xf] %vm14589_vm4, %v8651_v42  ;;  %v7226_v62 = vmul.f32 %v7148_v5, %v7148_v5  ;;  %v7889_v20 = vrot.slane %v7118_v13, %v14398_v6  ;;  %v7974_v52 = vrot.slane %v7946_v16, %v14398_v6 }
 0x2e5   : > { %v7975_v30 = vcombine.high %v7953_v37, %v7953_v37  ;;  %v7976_v41 = vcombine.high %v7960_v48, %v7960_v48  ;;  %v7227_v32 = vmul.f32 %v7149_v12, %v7149_v12  ;;  %v14593_v22 = vsel %vm13111_vm11, %v14591_v9, %v14592_v36  ;;  %v14612_v36 = vld [vmem:[#allocation16_spill] sm:$0xff] }
 0x2e6   : > { %vm13864_vm8 = vcmp.lt.s32.totalorder %v14593_v22, 16  ;;  %v7184_v31 = vadd.f32 %v7183_v11, %v7149_v12  ;;  %v7261_v21 = vadd.f32 %v7260_v28, %v7226_v62  ;;  %v7896_v25 = vrot.slane %v9534_v60, %v14398_v6 }
 0x2e7   : > { %v7897_v18 = vcombine.high %v7889_v20, %v7889_v20  ;;  %v7977_v55 = vcombine.high %v7974_v52, %v7974_v52  ;;  %v8725_v19 = vcombine.low %v7953_v37, %v7975_v30  ;;  %v8748_v2 = vcombine.low %v7960_v48, %v7976_v41  ;;  %v14610_v41 = vld [vmem:[#allocation6_spill] sm:$0xff] }
 0x2e8   : > { %v7905_v44 = vrot.slane %v7889_v20, %v14398_v6  ;;  %v14599_v46 = vsel %vm13140_vm6, %v14597_v3, %v14598_v0  ;;  %v7185_v7 = vadd.f32 %v7184_v31, %v7150_v58  ;;  %v7262_v50 = vadd.f32 %v7261_v21, %v7227_v32  ;;  %vm14613_vm6 = vmmov %vm14568_vm0  ;;  %v14614_v3 = vld [vmem:[#allocation9_spill] sm:$0xff] }
 0x2e9   : > { %vm13875_vm11 = vcmp.lt.s32.totalorder %v14599_v46, 16  ;;  %v7898_v13 = vcombine.high %v7896_v25, %v7896_v25  ;;  %v7912_v28 = vrot.slane %v7896_v25, %v14398_v6  ;;  %vm14603_vm13 = vnez %v14602_v51 }
 0x2ea   : > { %v14606_v47 = vsel %vm14603_vm13, %v14604_v23, %v14605_v53  ;;  %v7967_v12 = vrot.slane %v7945_v38, %v14398_v6  ;;  %v8749_v61 = vcombine.low %v7974_v52, %v7977_v55  ;;  %v8756_v42 = vrot.slane %v8748_v2, %v14441_v56 }
 0x2eb   : > { %vm13885_vm14 = vcmp.lt.s32.totalorder %v14606_v47, 16  ;;  %v7919_v58 = vrot.slane %v7897_v18, %v14398_v6  ;;  %v7263_v60 = vadd.f32 %v7262_v50, %v7228_v57  ;;  %v7926_v16 = vrot.slane %v7898_v13, %v14398_v6 }
 0x2ec   : > { %v7927_v37 = vcombine.high %v7912_v28, %v7912_v28  ;;  %v8676_v48 = vcombine.low %v7879_v29, %v7905_v44  ;;  %v8763_v15 = vrot.slane %v8749_v61, %v14441_v56  ;;  %v10401_v39 = vadd.f32 %v13484_v49, %v13560_v43  ;;  %v14609_v43 = vld [vmem:[#allocation7_spill] sm:$0xff] }
 0x2ed   : > { %v7928_v35 = vcombine.high %v7919_v58, %v7919_v58  ;;  %v8677_v54 = vcombine.low %v7881_v14, %v7919_v58  ;;  %v8739_v38 = vrot.slane %v8725_v19, %v14441_v56  ;;  %v7929_v11 = vcombine.high %v7926_v16, %v7926_v16 }
 0x2ee   : > { %v8701_v62 = vcombine.low %v7912_v28, %v7927_v37  ;;  %v10402_v57 = vadd.f32 %v13492_v8, %v13574_v33  ;;  %v8764_v20 = vcombine.low %v8756_v42, %v8763_v15  ;;  %v8684_v52 = vrot.slane %v8676_v48, %v14441_v56  ;;  %v14611_v33 = vld [vmem:[#allocation18_spill] sm:$0xff]  ;;  %v14617_v28 = vld [vmem:[#allocation83_spill] sm:$0xff] }
 0x2ef   : > { %v8691_v63 = vrot.slane %v8677_v54, %v14441_v56  ;;  %v8700_v29 = vcombine.low %v7928_v35, %v7926_v16  ;;  %v8724_v14 = vcombine.low %v7929_v11, %v7967_v12  ;;  %v7100_v49 = vsel %vm13849_vm5, %v10401_v39, 0.0 }
 0x2f0   : > { %v8715_v30 = vrot.slane %v8701_v62, %v14441_v56  ;;  %v10403_v32 = vadd.f32 %v14610_v41, %v14609_v43  ;;  %v8771_v27 = vrot.slane %v8764_v20, %v14441_v56  ;;  %v10404_v22 = vadd.f32 %v14612_v36, %v14611_v33  ;;  %v14619_v33 = vld [vmem:[#allocation4_spill] sm:$0xff] }
 0x2f1   : > { %v8692_v9 = vcombine.low %v8684_v52, %v8691_v63  ;;  %v8708_v8 = vrot.slane %v8700_v29, %v14441_v56  ;;  %v8732_v31 = vrot.slane %v8724_v14, %v14441_v56  ;;  %v7186_v26 = vadd.f32 %v7185_v7, %v13834_v59 }
 0x2f2   : > { %v7101_v21 = vsel %vm13864_vm8, %v10403_v32, 0.0  ;;  %v7264_v25 = vadd.f32 %v7263_v60, %v7229_v24  ;;  %8996 = vst.msk [vmem:[%s13240_s20 + $0x60] sm:$0xf] %vm14613_vm6, %v8771_v27  ;;  %v7099_v1 = vsel %vm13875_vm11, %v10404_v22, 0.0  ;;  %v13924_v4 = vadd.f32 %v14614_v3, %v13615_v34 }
 0x2f3   : > { %v8699_v18 = vrot.slane %v8692_v9, %v14441_v56  ;;  %v8716_v55 = vcombine.low %v8708_v8, %v8715_v30  ;;  %v7121_v19 = vpack.c.bf16 %v7101_v21, %v7100_v49  ;;  %v9537_v2 = vpack.c.bf16 %v7101_v21, %v7101_v21 }
 0x2f4   : > { %v8740_v44 = vcombine.low %v8732_v31, %v8739_v38  ;;  %v7098_v24 = vsel %vm13885_vm14, %v10402_v57, 0.0  ;;  %v9536_v50 = vpack.c.bf16 %v7099_v1, %v7099_v1  ;;  %v6730_v51 = vshrl.u32 %v14617_v28, 4 }
 0x2f5   : > { %v8723_v59 = vrot.slane %v8716_v55, %v14441_v56  ;;  %8993 = vst.msk [vmem:[%s13240_s20 + $0x54] sm:$0xf] %vm14615_vm3, %v8699_v18  ;;  %v8034_v0 = vrot.slane %v7121_v19, %v14398_v6  ;;  %v13934_v7 = vrot.slane %v9537_v2, %v14398_v6  ;;  %v7120_v10 = vpack.c.bf16 %v7099_v1, %v7098_v24  ;;  %v14620_v55 = vld [vmem:[#allocation5_spill] sm:$0xff]  ;;  %v14622_v24 = vld [vmem:[#allocation74_spill] sm:$0xff] }
 0x2f6   : > { %v8747_v46 = vrot.slane %v8740_v44, %v14441_v56  ;;  %v7154_v23 = vunpack.c.l.bf16 %v7121_v19  ;;  %v7992_v58 = vrot.slane %v9536_v50, %v14398_v6  ;;  %v6731_v35 = vmul.u32 18, %v6730_v51  ;;  %v14621_v44 = vld [vmem:[#allocation17_spill] sm:$0xff] }
 0x2f7   : > { %8994 = vst.msk [vmem:[%s13240_s20 + $0x58] sm:$0xf] %vm14616_vm12, %v8723_v59  ;;  %v8042_v34 = vcombine.high %v8034_v0, %v8034_v0  ;;  %v8050_v13 = vrot.slane %v8034_v0, %v14398_v6  ;;  %v13944_v53 = vrot.slane %v13934_v7, %v14398_v6  ;;  %v7152_v47 = vunpack.c.l.bf16 %v7120_v10 }
 0x2f8   : > { %8995 = vst.msk [vmem:[%s13240_s20 + $0x5c] sm:$0xf] %vm14618_vm9, %v8747_v46  ;;  %v7153_v5 = vunpack.c.h.bf16 %v7120_v10  ;;  %v7985_v42 = vrot.slane %v7120_v10, %v14398_v6  ;;  %v7994_v11 = vcombine.high %v7992_v58, %v7992_v58  ;;  %v7232_v62 = vmul.f32 %v7154_v23, %v7154_v23 }
 0x2f9   : > { %v8064_v12 = vrot.slane %v8042_v34, %v14398_v6  ;;  %v8072_v61 = vcombine.high %v8050_v13, %v8050_v13  ;;  %v7187_v60 = vadd.f32 %v7186_v26, %v7152_v47  ;;  %v7230_v16 = vmul.f32 %v7152_v47, %v7152_v47 }
 0x2fa   : > { %v7993_v15 = vcombine.high %v7985_v42, %v7985_v42  ;;  %v7231_v39 = vmul.f32 %v7153_v5, %v7153_v5  ;;  %v8001_v20 = vrot.slane %v7985_v42, %v14398_v6  ;;  %v8008_v52 = vrot.slane %v7992_v58, %v14398_v6 }
 0x2fb   : > { %v8074_v37 = vcombine.high %v8064_v12, %v8064_v12  ;;  %v8821_v48 = vcombine.low %v8072_v61, %v13944_v53  ;;  %v7188_v54 = vadd.f32 %v7187_v60, %v7153_v5  ;;  %v7265_v38 = vadd.f32 %v7264_v25, %v7230_v16 }
 0x2fc   : > { %v8015_v30 = vrot.slane %v7993_v15, %v14398_v6  ;;  %v8022_v14 = vrot.slane %v7994_v11, %v14398_v6  ;;  %v8023_v41 = vcombine.high %v8001_v20, %v8001_v20  ;;  %v8024_v32 = vcombine.high %v8008_v52, %v8008_v52 }
 0x2fd   : > { %v8820_v57 = vcombine.low %v8064_v12, %v8074_v37  ;;  %v7189_v63 = vadd.f32 %v7188_v54, %v7154_v23  ;;  %v7266_v29 = vadd.f32 %v7265_v38, %v7231_v39  ;;  %v8835_v43 = vrot.slane %v8821_v48, %v14441_v56 }
 0x2fe   : > { %v8025_v9 = vcombine.high %v8015_v30, %v8015_v30  ;;  %v8026_v8 = vcombine.high %v8022_v14, %v8022_v14  ;;  %v6346_v36 = vadd.s32 256, %v14619_v33  ;;  %v7155_v22 = vunpack.c.h.bf16 %v7121_v19 }
 0x2ff   : > { %v8828_v49 = vrot.slane %v8820_v57, %v14441_v56  ;;  %v7267_v27 = vadd.f32 %v7266_v29, %v7232_v62  ;;  %v8772_v21 = vcombine.low %v8001_v20, %v8023_v41  ;;  %v8797_v26 = vcombine.low %v8024_v32, %v8050_v13  ;;  %v14624_v13 = vld [vmem:[#allocation11_spill] sm:$0xff] }
 0x300   : > { %v8773_v25 = vcombine.low %v8015_v30, %v8025_v9  ;;  %v8796_v18 = vcombine.low %v8022_v14, %v8026_v8  ;;  %v13959_v2 = vadd.f32 %v14620_v55, %v13621_v45  ;;  %v10407_v1 = vadd.f32 %v14621_v44, %v13629_v40 }
 0x301   : > { %v8836_v31 = vcombine.low %v8828_v49, %v8835_v43  ;;  %v8780_v59 = vrot.slane %v8772_v21, %v14441_v56  ;;  %v6732_v0 = vsub.s32 %v14622_v24, %v6731_v35  ;;  %v8811_v10 = vrot.slane %v8797_v26, %v14441_v56 }
 0x302   : > { %v8787_v19 = vrot.slane %v8773_v25, %v14441_v56  ;;  %v8804_v46 = vrot.slane %v8796_v18, %v14441_v56  ;;  %v6349_v50 = vadd.s32 280, %v14619_v33  ;;  %v7233_v34 = vmul.f32 %v7155_v22, %v7155_v22 }
 0x303   : > { %v8843_v3 = vrot.slane %v8836_v31, %v14441_v56  ;;  %v13972_v45 = vmul.u32.u64.low 3817748708, %v6346_v36  ;;  %v13973_v40 = vmul.u32.u64.high 3817748708, %v6346_v36, %v13972_v45  ;;  %v10408_v28 = vadd.f32 %v14624_v13, %v13634_v17 }
 0x304   : > { %v8788_v51 = vcombine.low %v8780_v59, %v8787_v19  ;;  %v8812_v23 = vcombine.low %v8804_v46, %v8811_v10  ;;  %v13977_v47 = vmul.u32.u64.low 3817748708, %v6349_v50  ;;  %v13978_v5 = vmul.u32.u64.high 3817748708, %v6349_v50, %v13977_v47 }
 0x305   : > { %8999 = vst.msk [vmem:[%s13240_s20 + $0x6c] sm:$0xf] %vm14623_vm1, %v8843_v3  ;;  %v6347_v12 = vadd.s32 264, %v14619_v33  ;;  %v13981_v61 = vadd.f32 %v7189_v63, %v7155_v22  ;;  %v13983_v42 = vadd.f32 %v7267_v27, %v7233_v34  ;;  %vm6780_vm0 = vcmp.ne.s32.totalorder %v6732_v0, 0 }
 0x306   : > { %v8795_v58 = vrot.slane %v8788_v51, %v14441_v56  ;;  %v8819_v60 = vrot.slane %v8812_v23, %v14441_v56  ;;  %vm6816_vm10 = vcmp.lt.s32.totalorder %v6732_v0, 0  ;;  %v6708_v16 = vshrl.u32 %v13973_v40, 4 }
 0x307   : > { %v13988_v17 = vmul.u32.u64.low 3817748708, %v6347_v12  ;;  %v13989_v37 = vmul.u32.u64.high 3817748708, %v6347_v12, %v13988_v17  ;;  %v6888_v48 = vadd.s32 18, %v6732_v0  ;;  %v6741_v15 = vshrl.u32 %v13978_v5, 4  ;;  %vm13996_vm5 = vmand %vm6816_vm10, %vm6780_vm0 }
 0x308   : > { %8997 = vst.msk [vmem:[%s13240_s20 + $0x64] sm:$0xf] %vm14625_vm7, %v8795_v58  ;;  %v6709_v54 = vmul.u32 18, %v6708_v16  ;;  %v8043_v43 = vcombine.high %v13934_v7, %v13934_v7  ;;  %v8073_v24 = vcombine.high %v13944_v53, %v13944_v53  ;;  %vm14631_vm7 = vmmov %vm14626_vm2 }
 0x309   : > { %8998 = vst.msk [vmem:[%s13240_s20 + $0x68] sm:$0xf] %vm14626_vm2, %v8819_v60  ;;  %v6742_v39 = vmul.u32 18, %v6741_v15  ;;  %v6719_v11 = vshrl.u32 %v13989_v37, 4  ;;  %v6924_v62 = vsel %vm13996_vm5, %v6888_v48, %v6732_v0  ;;  %vm14632_vm5 = vmmov %vm14626_vm2 }
 0x30a   : > { %v6710_v38 = vsub.s32 %v6346_v36, %v6709_v54  ;;  %vm6960_vm14 = vcmp.lt.s32.totalorder %v6924_v62, 16  ;;  %v8071_v31 = vrot.slane %v8043_v43, %v14398_v6 }
 0x30b   : > { %v6743_v57 = vsub.s32 %v6349_v50, %v6742_v39  ;;  %v6720_v52 = vmul.u32 18, %v6719_v11  ;;  %v7104_v41 = vsel %vm6960_vm14, %v13924_v4, 0.0 }
 0x30c   : > { %vm6778_vm15 = vcmp.ne.s32.totalorder %v6710_v38, 0  ;;  %vm6814_vm4 = vcmp.lt.s32.totalorder %v6710_v38, 0  ;;  %v6886_v20 = vadd.s32 18, %v6710_v38  ;;  %v8075_v0 = vcombine.high %v8071_v31, %v8071_v31 }
 0x30d   : > { %vm14003_vm8 = vmand %vm6814_vm4, %vm6778_vm15  ;;  %vm6781_vm11 = vcmp.ne.s32.totalorder %v6743_v57, 0  ;;  %vm6817_vm13 = vcmp.lt.s32.totalorder %v6743_v57, 0  ;;  %v6889_v29 = vadd.s32 18, %v6743_v57  ;;  %v6721_v30 = vsub.s32 %v6347_v12, %v6720_v52 }
 0x30e   : > { %vm6853_vm6 = vmand %vm6817_vm13, %vm6781_vm11  ;;  %v6922_v49 = vsel %vm14003_vm8, %v6886_v20, %v6710_v38 }
 0x30f   : > { %v6925_v14 = vsel %vm6853_vm6, %v6889_v29, %v6743_v57  ;;  %vm6779_vm12 = vcmp.ne.s32.totalorder %v6721_v30, 0  ;;  %vm6815_vm9 = vcmp.lt.s32.totalorder %v6721_v30, 0  ;;  %v6887_v27 = vadd.s32 18, %v6721_v30  ;;  %vm14633_vm15 = vmmov %vm14626_vm2 }
 0x310   : > { %vm6961_vm3 = vcmp.lt.s32.totalorder %v6925_v14, 16  ;;  %vm6851_vm1 = vmand %vm6815_vm9, %vm6779_vm12  ;;  %vm6958_vm0 = vcmp.lt.s32.totalorder %v6922_v49, 16 }
 0x311   : > { %v7105_v32 = vsel %vm6961_vm3, %v10407_v1, 0.0  ;;  %v6923_v33 = vsel %vm6851_vm1, %v6887_v27, %v6721_v30  ;;  %v7102_v21 = vsel %vm6958_vm0, %v13959_v2, 0.0 }
 0x312   : > { %v7123_v9 = vpack.c.bf16 %v7105_v32, %v7104_v41  ;;  %v9539_v8 = vpack.c.bf16 %v7105_v32, %v7105_v32  ;;  %vm6959_vm10 = vcmp.lt.s32.totalorder %v6923_v33, 16 }
 0x313   : > { %v7103_v55 = vsel %vm6959_vm10, %v10408_v28, 0.0 }
 0x314   : > { %v8131_v36 = vrot.slane %v7123_v9, %v14398_v6  ;;  %v8138_v22 = vrot.slane %v9539_v8, %v14398_v6  ;;  %v7158_v25 = vunpack.c.l.bf16 %v7123_v9  ;;  %v7159_v44 = vunpack.c.h.bf16 %v7123_v9 }
 0x315   : > { %v7122_v3 = vpack.c.bf16 %v7103_v55, %v7102_v21  ;;  %v9538_v59 = vpack.c.bf16 %v7103_v55, %v7103_v55 }
 0x316   : > { %v8139_v26 = vcombine.high %v8131_v36, %v8131_v36  ;;  %v8140_v7 = vcombine.high %v8138_v22, %v8138_v22  ;;  %v8147_v4 = vrot.slane %v8131_v36, %v14398_v6  ;;  %v8154_v18 = vrot.slane %v8138_v22, %v14398_v6 }
 0x317   : > { %v7156_v10 = vunpack.c.l.bf16 %v7122_v3  ;;  %v7157_v50 = vunpack.c.h.bf16 %v7122_v3  ;;  %v8083_v34 = vrot.slane %v7122_v3, %v14398_v6  ;;  %v7236_v45 = vmul.f32 %v7158_v25, %v7158_v25 }
 0x318   : > { %v8161_v1 = vrot.slane %v8139_v26, %v14398_v6  ;;  %v8168_v19 = vrot.slane %v8140_v7, %v14398_v6  ;;  %v8170_v2 = vcombine.high %v8154_v18, %v8154_v18  ;;  %v8169_v40 = vcombine.high %v8147_v4, %v8147_v4 }
 0x319   : > { %v8090_v28 = vrot.slane %v9538_v59, %v14398_v6  ;;  %v7237_v51 = vmul.f32 %v7159_v44, %v7159_v44  ;;  %v7191_v47 = vadd.f32 %v13981_v61, %v7156_v10  ;;  %v7234_v5 = vmul.f32 %v7156_v10, %v7156_v10 }
 0x31a   : > { %v8171_v46 = vcombine.high %v8161_v1, %v8161_v1  ;;  %v8917_v13 = vcombine.low %v8154_v18, %v8170_v2  ;;  %v7235_v12 = vmul.f32 %v7157_v50, %v7157_v50  ;;  %v8091_v58 = vcombine.high %v8083_v34, %v8083_v34 }
 0x31b   : > { %v8092_v60 = vcombine.high %v8090_v28, %v8090_v28  ;;  %v7192_v17 = vadd.f32 %v7191_v47, %v7157_v50  ;;  %v7269_v37 = vadd.f32 %v13983_v42, %v7234_v5  ;;  %v8099_v48 = vrot.slane %v8083_v34, %v14398_v6 }
 0x31c   : > { %v8916_v23 = vcombine.low %v8171_v46, %v8168_v19  ;;  %v8931_v53 = vrot.slane %v8917_v13, %v14441_v56  ;;  %v8893_v15 = vcombine.low %v8147_v4, %v8169_v40  ;;  %v8106_v35 = vrot.slane %v8090_v28, %v14398_v6 }
 0x31d   : > { %v8113_v54 = vrot.slane %v8091_v58, %v14398_v6  ;;  %v8120_v61 = vrot.slane %v8092_v60, %v14398_v6  ;;  %v7193_v38 = vadd.f32 %v7192_v17, %v7158_v25  ;;  %v7270_v11 = vadd.f32 %v7269_v37, %v7235_v12 }
 0x31e   : > { %v8924_v16 = vrot.slane %v8916_v23, %v14441_v56  ;;  %v8121_v62 = vcombine.high %v8099_v48, %v8099_v48  ;;  %v8844_v52 = vcombine.low %v8073_v24, %v8099_v48  ;;  %v8907_v32 = vrot.slane %v8893_v15, %v14441_v56 }
 0x31f   : > { %v8122_v57 = vcombine.high %v8113_v54, %v8113_v54  ;;  %v8123_v20 = vcombine.high %v8120_v61, %v8120_v61  ;;  %v8845_v63 = vcombine.low %v8075_v0, %v8113_v54  ;;  %v7194_v29 = vadd.f32 %v7193_v38, %v7159_v44 }
 0x320   : > { %v8932_v39 = vcombine.low %v8924_v16, %v8931_v53  ;;  %v7271_v30 = vadd.f32 %v7270_v11, %v7236_v45  ;;  %v8868_v14 = vcombine.low %v8121_v62, %v8106_v35  ;;  %v8852_v49 = vrot.slane %v8844_v52, %v14441_v56 }
 0x321   : > { %v8859_v43 = vrot.slane %v8845_v63, %v14441_v56  ;;  %v8869_v41 = vcombine.low %v8122_v57, %v8120_v61  ;;  %v8892_v6 = vcombine.low %v8123_v20, %v8161_v1  ;;  %v7195_v27 = vrot.slane %v7194_v29, 4 }
 0x322   : > { %v8939_v42 = vrot.slane %v8932_v39, %v14441_v56  ;;  %v7272_v9 = vadd.f32 %v7271_v30, %v7237_v51  ;;  %v8876_v33 = vrot.slane %v8868_v14, %v14441_v56 }
 0x323   : > { %v8860_v8 = vcombine.low %v8852_v49, %v8859_v43  ;;  %v8883_v36 = vrot.slane %v8869_v41, %v14441_v56  ;;  %v8900_v22 = vrot.slane %v8892_v6, %v14441_v56  ;;  %v7196_v31 = vadd.f32 %v7195_v27, %v7194_v29 }
 0x324   : > { %9003 = vst.msk [vmem:[%s13240_s20 + $0x7c] sm:$0xf] %vm14631_vm7, %v8939_v42  ;;  %v7273_v21 = vrot.slane %v7272_v9, 4 }
 0x325   : > { %v8867_v26 = vrot.slane %v8860_v8, %v14441_v56  ;;  %v8884_v7 = vcombine.low %v8876_v33, %v8883_v36  ;;  %v8908_v25 = vcombine.low %v8900_v22, %v8907_v32  ;;  %v7197_v4 = vrot.slane %v7196_v31, 2 }
 0x326   : > { %v7274_v18 = vadd.f32 %v7273_v21, %v7272_v9 }
 0x327   : > { %v8891_v55 = vrot.slane %v8884_v7, %v14441_v56  ;;  %v8915_v44 = vrot.slane %v8908_v25, %v14441_v56  ;;  %9000 = vst.msk [vmem:[%s13240_s20 + $0x70] sm:$0xf] %vm14626_vm2, %v8867_v26  ;;  %v7198_v1 = vadd.f32 %v7197_v4, %v7196_v31 }
 0x328   : > { %v7275_v3 = vrot.slane %v7274_v18, 2 }
 0x329   : > { %9001 = vst.msk [vmem:[%s13240_s20 + $0x74] sm:$0xf] %vm14632_vm5, %v8891_v55  ;;  %v7199_v59 = vrot.slane %v7198_v1, 1 }
 0x32a   : > { %9002 = vst.msk [vmem:[%s13240_s20 + $0x78] sm:$0xf] %vm14633_vm15, %v8915_v44  ;;  %v7276_v24 = vadd.f32 %v7275_v3, %v7274_v18 }
 0x32b   : > { %v7200_v0 = vadd.f32 %v7199_v59, %v7198_v1 }
 0x32c   : > { %v7277_v19 = vrot.slane %v7276_v24, 1 }
 0x32d   : > { %7201 = vst [vmem:[%s265_s14] sm:$0x1] %v7200_v0 }
 0x32e   : > { %v7278_v56 = vadd.f32 %v7277_v19, %v7276_v24 }
 0x330   : > { %7279 = vst [vmem:[%s268_s18] sm:$0x1] %v7278_v56 }
 0x331 PF: > { %s17_s21 = sadd.s32 1, %s11133_s21  }
 0x332   : > { %p14_p4 = scmp.ge.s32.totalorder %s17_s21, 4  }
 0x334   :  { %16 = sbr.rel (!%p14_p4) target bundleno = 1 (0x1), region = 98 }

// kernel: bayes_block_forward.3
= control target key start
LH: loop header
LB: loop body
LE: loop exit
PB: predicated region body
PF: predicated region fallthrough
CT: control target
= control target key end

     0   :  { %s10657_s21 = smov 0   ;;  %s13233_s0 = inlined_call_operand.vmem [shape: f32[2,16,16,8], index: 0, kind: input, shape index: {}]   ;;  %s13234_s1 = inlined_call_operand.vmem [shape: bf16[9,128,128], index: 1, kind: input, shape index: {}]   ;;  %s13235_s2 = inlined_call_operand.vmem [shape: f32[1,8], index: 2, kind: input, shape index: {}]   ;;  %s13236_s3 = inlined_call_operand.vmem [shape: f32[1,8], index: 3, kind: input, shape index: {}]   ;;  %s13237_s4 = inlined_call_operand.vmem [shape: bf16[2,16,16,8], index: 4, kind: output, shape index: {0}]   ;;  %s13238_s5 = inlined_call_operand.vmem [shape: f32[2,1,128], index: 5, kind: output, shape index: {1}]   ;;  %s13239_s6 = inlined_call_operand.vmem [shape: f32[2,1,128], index: 6, kind: output, shape index: {2}]  }
   0x1 LB: > { %s8807_s2 = sadd.s32 4294967295, %s10617_s21   ;;  %p8811_p0 = scmp.ge.s32.totalorder %s10617_s21, 1  ;;  %s10617_s21 = sphi %s10657_s21, %s17_s21  }
   0x2   : > { %p217_p1 = scmp.lt.s32.totalorder %s10617_s21, 3 }
   0x4   : > { %p218_p2 = pnand %p8811_p0, %p217_p1 }
   0x6   : > { %221 = sbr.rel (%p218_p2) target bundleno = 742 (0x2e6), region = 36 }
   0xd   : > { %v10361_v0 = vld [vmem:[%s13234_s1] sm:$0xff]   ;;  %v10619_v2 = vmov 0   ;;  %v10363_v3 = vld [vmem:[%s13234_s1 + $0x8] sm:$0xff]   ;;  %p253_p3 = scmp.lt.s32.totalorder %s8807_s2, 1  ;;  %v10365_v5 = vld [vmem:[%s13234_s1 + $0x10] sm:$0xff]   ;;  %vm389_vm0 = vcmask 60417  }
   0xe   : > { %v10362_v1 = vld [vmem:[%s13234_s1 + $0x100] sm:$0xff]   ;;  %270 = vst [vmem:[#allocation2] sm:$0xf] %v10619_v2  ;;  %271 = vst [vmem:[#allocation2 + $0x4] sm:$0xf] %v10619_v2  ;;  %9506 = vmatprep.subr.bf16.mxu1 %v10361_v0  ;;  %v10364_v4 = vld [vmem:[%s13234_s1 + $0x108] sm:$0xff]  }
   0xf   : > { %272 = vst [vmem:[#allocation2 + $0x8] sm:$0xf] %v10619_v2  ;;  %273 = vst [vmem:[#allocation2 + $0xc] sm:$0xf] %v10619_v2  ;;  %9507 = vmatpush3.bf16.msra.mxu1 %v10361_v0  ;;  %9714 = vmatprep.subr.bf16.mxu0 %v10362_v1  ;;  %v10366_v6 = vld [vmem:[%s13234_s1 + $0x110] sm:$0xff]   ;;  %s13798_s2 = smov (!%p253_p3, %s8807_s2), 1 }
  0x10   : > { %274 = vst [vmem:[#allocation2 + $0x10] sm:$0xf] %v10619_v2  ;;  %275 = vst [vmem:[#allocation2 + $0x14] sm:$0xf] %v10619_v2  ;;  %9715 = vmatpush3.bf16.msra.mxu0 %v10362_v1  ;;  %9508 = vmatprep.subr.bf16.mxu1 %v10363_v3  ;;  %v10367_v7 = vld [vmem:[%s13234_s1 + $0x18] sm:$0xff]   ;;  %s9238_s13 = sshll.u32 %s13798_s2, 8  ;;  %s265_s25 = scalar_lea.vmem %s13238_s5, %s13798_s2 }
  0x11   : > { %276 = vst [vmem:[#allocation2 + $0x18] sm:$0xf] %v10619_v2  ;;  %277 = vst [vmem:[#allocation2 + $0x1c] sm:$0xf] %v10619_v2  ;;  %9716 = vmatprep.subr.bf16.mxu0 %v10364_v4  ;;  %v10368_v8 = vld [vmem:[%s13234_s1 + $0x118] sm:$0xff]   ;;  %v10369_v9 = vld [vmem:[%s13234_s1 + $0x20] sm:$0xff]   ;;  %s10705_s20 = scalar_lea.vmem %s13233_s0, %s9238_s13  ;;  %s268_s28 = scalar_lea.vmem %s13239_s6, %s13798_s2 }
  0x12   : > { %278 = vst [vmem:[#allocation2 + $0x20] sm:$0xf] %v10619_v2  ;;  %279 = vst [vmem:[#allocation2 + $0x24] sm:$0xf] %v10619_v2  ;;  %v10370_v10 = vld [vmem:[%s13234_s1 + $0x120] sm:$0xff]   ;;  %v10371_v11 = vld [vmem:[%s13234_s1 + $0x28] sm:$0xff]  }
  0x13   : > { %280 = vst [vmem:[#allocation2 + $0x28] sm:$0xf] %v10619_v2  ;;  %281 = vst [vmem:[#allocation2 + $0x2c] sm:$0xf] %v10619_v2  ;;  %9509 = vmatpush3.bf16.msra.mxu1 %v10363_v3  ;;  %v10372_v13 = vld [vmem:[%s13234_s1 + $0x128] sm:$0xff]   ;;  %v311_v14 = vld [vmem:[%s10705_s20] sm:$0xff] }
  0x14   : > { %282 = vst [vmem:[#allocation2 + $0x30] sm:$0xf] %v10619_v2  ;;  %283 = vst [vmem:[#allocation2 + $0x34] sm:$0xf] %v10619_v2  ;;  %9717 = vmatpush3.bf16.msra.mxu0 %v10364_v4  ;;  %9510 = vmatprep.subr.bf16.mxu1 %v10365_v5  ;;  %v312_v15 = vld [vmem:[%s10705_s20 + $0x8] sm:$0xff]  ;;  %vm397_vm1 = vcmask 58368   ;;  %v9240_v17 = vpack.c.bf16 %v311_v14, %v311_v14 }
  0x15   : > { %284 = vst [vmem:[#allocation2 + $0x38] sm:$0xf] %v10619_v2  ;;  %285 = vst [vmem:[#allocation2 + $0x3c] sm:$0xf] %v10619_v2  ;;  %9718 = vmatprep.subr.bf16.mxu0 %v10366_v6  ;;  %v10377_v12 = vld [vmem:[#allocation2] sm:$0xff]   ;;  %vm432_vm2 = vcmask 60418   ;;  %v9241_v18 = vpack.c.bf16 %v312_v15, %v312_v15 }
  0x16   : > { %286 = vst [vmem:[#allocation2 + $0x40] sm:$0xf] %v10619_v2  ;;  %287 = vst [vmem:[#allocation2 + $0x44] sm:$0xf] %v10619_v2  ;;  %v10373_v16 = vld [vmem:[%s13234_s1 + $0x30] sm:$0xff]   ;;  %9522 = vmatprep.mubr.bf16.mxu1 %v10377_v12  ;;  %vm13240_vm4 = vcmask 60416  }
  0x17   : > { %288 = vst [vmem:[#allocation2 + $0x48] sm:$0xf] %v10619_v2  ;;  %289 = vst [vmem:[#allocation2 + $0x4c] sm:$0xf] %v10619_v2  ;;  %9511 = vmatpush3.bf16.msra.mxu1 %v10365_v5  ;;  %vm364_vm3 = vsmask.f32 1280 }
  0x18   : > { %290 = vst [vmem:[#allocation2 + $0x50] sm:$0xf] %v10619_v2  ;;  %291 = vst [vmem:[#allocation2 + $0x54] sm:$0xf] %v10619_v2  ;;  %9719 = vmatpush3.bf16.msra.mxu0 %v10366_v6  ;;  %9512 = vmatprep.subr.bf16.mxu1 %v10367_v7  ;;  %vm439_vm5 = vcmask 59392   ;;  %v368_v19 = vshrl.u32 %v9240_v17, 16 }
  0x19   : > { %292 = vst [vmem:[#allocation2 + $0x58] sm:$0xf] %v10619_v2  ;;  %293 = vst [vmem:[#allocation2 + $0x5c] sm:$0xf] %v10619_v2  ;;  %9720 = vmatprep.subr.bf16.mxu0 %v10368_v8  ;;  %vm365_vm6 = vsmask.f32 5392 }
  0x1a   : > { %294 = vst [vmem:[#allocation2 + $0x60] sm:$0xf] %v10619_v2  ;;  %295 = vst [vmem:[#allocation2 + $0x64] sm:$0xf] %v10619_v2  ;;  %vm390_vm7 = vsmask.f32 7942 }
  0x1b   : > { %296 = vst [vmem:[#allocation2 + $0x68] sm:$0xf] %v10619_v2  ;;  %297 = vst [vmem:[#allocation2 + $0x6c] sm:$0xf] %v10619_v2  ;;  %9513 = vmatpush3.bf16.msra.mxu1 %v10367_v7  ;;  %v371_v20 = vshll.u32 %v9240_v17, 16  ;;  %v377_v21 = vshrl.u32 %v9241_v18, 16 }
  0x1c   : > { %298 = vst [vmem:[#allocation2 + $0x70] sm:$0xf] %v10619_v2  ;;  %299 = vst [vmem:[#allocation2 + $0x74] sm:$0xf] %v10619_v2  ;;  %9721 = vmatpush3.bf16.msra.mxu0 %v10368_v8  ;;  %9514 = vmatprep.subr.bf16.mxu1 %v10369_v9  ;;  %v380_v22 = vshll.u32 %v9241_v18, 16  ;;  %v313_v23 = vld [vmem:[%s10705_s20 + $0x10] sm:$0xff] }
  0x1d   : > { %300 = vst [vmem:[#allocation2 + $0x78] sm:$0xf] %v10619_v2  ;;  %301 = vst [vmem:[#allocation2 + $0x7c] sm:$0xf] %v10619_v2  ;;  %9722 = vmatprep.subr.bf16.mxu0 %v10370_v10  ;;  %v314_v24 = vld [vmem:[%s10705_s20 + $0x18] sm:$0xff]  ;;  %vm474_vm8 = vcmask 60419   ;;  %v9242_v26 = vpack.c.bf16 %v313_v23, %v313_v23 }
  0x1e   : > { %302 = vst [vmem:[#allocation2 + $0x80] sm:$0xf] %v10619_v2  ;;  %303 = vst [vmem:[#allocation2 + $0x84] sm:$0xf] %v10619_v2  ;;  %v10374_v25 = vld [vmem:[%s13234_s1 + $0x130] sm:$0xff]   ;;  %v9243_v27 = vpack.c.bf16 %v314_v24, %v314_v24  ;;  %v10726_v28 = vld [vmem:[%s13234_s1 + $0x38] sm:$0xff]  }
  0x1f   : > { %304 = vst [vmem:[#allocation2 + $0x88] sm:$0xf] %v10619_v2  ;;  %305 = vst [vmem:[#allocation2 + $0x8c] sm:$0xf] %v10619_v2  ;;  %9515 = vmatpush3.bf16.msra.mxu1 %v10369_v9  ;;  %vm407_vm9 = vsmask.f32 2304 }
  0x20   : > { %306 = vst [vmem:[#allocation2 + $0x90] sm:$0xf] %v10619_v2  ;;  %307 = vst [vmem:[#allocation2 + $0x94] sm:$0xf] %v10619_v2  ;;  %9723 = vmatpush3.bf16.msra.mxu0 %v10370_v10  ;;  %9516 = vmatprep.subr.bf16.mxu1 %v10371_v11  ;;  %vm433_vm10 = vsmask.f32 7946 }
  0x21   : > { %308 = vst [vmem:[#allocation2 + $0x98] sm:$0xf] %v10619_v2  ;;  %309 = vst [vmem:[#allocation2 + $0x9c] sm:$0xf] %v10619_v2  ;;  %9724 = vmatprep.subr.bf16.mxu0 %v10372_v13  ;;  %v370_v29 = vrot.slane %v368_v19, 6  ;;  %v373_v30 = vrot.slane %v371_v20, 7 }
  0x22   : > { %310 = vst [vmem:[#allocation2 + $0xa0] sm:$0xf] %v10619_v2  ;;  %v379_v31 = vrot.slane %v377_v21, 6  ;;  %v382_v32 = vrot.slane %v380_v22, 7  ;;  %v392_v33 = vld [vmem:[#allocation2 + $0x8] sm:$0xe]  ;;  %vm10735_vm11 = vmand %vm389_vm0, %vm390_vm7 }
  0x23   : > { %9517 = vmatpush3.bf16.msra.mxu1 %v10371_v11  ;;  %v10731_v34 = vld [vmem:[%s13234_s1 + $0x138] sm:$0xff]   ;;  %v411_v36 = vshrl.u32 %v9242_v26, 16  ;;  %v414_v37 = vshll.u32 %v9242_v26, 16  ;;  %v420_v38 = vshrl.u32 %v9243_v27, 16  ;;  %v423_v39 = vshll.u32 %v9243_v27, 16  ;;  %v315_v40 = vld [vmem:[%s10705_s20 + $0x20] sm:$0xff]  ;;  %vm10743_vm12 = vmor %vm364_vm3, %vm365_vm6 }
  0x24   : > { %v316_v41 = vld [vmem:[%s10705_s20 + $0x28] sm:$0xff]  ;;  %9725 = vmatpush3.bf16.msra.mxu0 %v10372_v13  ;;  %9518 = vmatprep.subr.bf16.mxu1 %v10373_v16  ;;  %v374_v43 = vor.u32 %v373_v30, %v370_v29  ;;  %v383_v44 = vor.u32 %v382_v32, %v379_v31  ;;  %v399_v45 = vld [vmem:[#allocation2 + $0x10] sm:$0x3]  ;;  %vm408_vm13 = vsmask.f32 6416  ;;  %v9244_v47 = vpack.c.bf16 %v315_v40, %v315_v40  ;;  %vm10749_vm14 = vmand %vm397_vm1, %vm364_vm3 }
  0x25   : > { %v435_v46 = vld [vmem:[#allocation2 + $0x10] sm:$0xc]  ;;  %9726 = vmatprep.subr.bf16.mxu0 %v10374_v25  ;;  %v413_v49 = vrot.slane %v411_v36, 5  ;;  %v416_v50 = vrot.slane %v414_v37, 6  ;;  %v422_v51 = vrot.slane %v420_v38, 5  ;;  %v425_v52 = vrot.slane %v423_v39, 6  ;;  %vm10762_vm15 = vmand %vm432_vm2, %vm433_vm10 }
  0x26   : > { %v375_v53 = vrot.slane %v374_v43, 4  ;;  %v385_v54 = vrot.slane %v383_v44, 4  ;;  %v393_v55 = vsel %vm10735_vm11, %v374_v43, %v392_v33  ;;  %v10758_v56 = vld [vmem:[%s13234_s1 + $0x40] sm:$0xff]   ;;  %v441_v58 = vld [vmem:[#allocation2 + $0x18] sm:$0x7]  ;;  %v9245_v59 = vpack.c.bf16 %v316_v41, %v316_v41  ;;  %vm10768_vm0 = vmand %vm439_vm5, %vm407_vm9 }
  0x27   : > { %9519 = vmatpush3.bf16.msra.mxu1 %v10373_v16  ;;  %394 = vst [vmem:[#allocation2 + $0x8] sm:$0xe] %v393_v55  ;;  %v417_v60 = vor.u32 %v416_v50, %v413_v49  ;;  %v426_v61 = vor.u32 %v425_v52, %v422_v51  ;;  %vm449_vm1 = vsmask.f32 3328  ;;  %vm450_vm3 = vsmask.f32 7440  ;;  %vm10779_vm2 = vmor %vm407_vm9, %vm408_vm13 }
  0x28   : > { %9727 = vmatpush3.bf16.msra.mxu0 %v10374_v25  ;;  %9520 = vmatprep.subr.bf16.mxu1 %v10726_v28  ;;  %v384_v63 = vsel %vm10743_vm12, %v375_v53, %v383_v44  ;;  %v400_v0 = vsel %vm10749_vm14, %v385_v54, %v399_v45  ;;  %v453_v2 = vshll.u32 %v9244_v47, 16  ;;  %v456_v3 = vshrl.u32 %v9244_v47, 16  ;;  %v317_v4 = vld [vmem:[%s10705_s20 + $0x30] sm:$0xff]  ;;  %v477_v9 = vld [vmem:[#allocation2 + $0x18] sm:$0x8]  ;;  %v10791_v10 = vld [vmem:[%s13234_s1 + $0x140] sm:$0xff]  }
  0x29   : > { %9728 = vmatprep.subr.bf16.mxu0 %v10731_v34  ;;  %396 = vst.msk [vmem:[#allocation2 + $0xc] sm:$0xf] %vm13240_vm4, %v384_v63  ;;  %401 = vst [vmem:[#allocation2 + $0x10] sm:$0x3] %v400_v0  ;;  %v418_v5 = vrot.slane %v417_v60, 4  ;;  %v436_v6 = vsel %vm10762_vm15, %v417_v60, %v435_v46  ;;  %v428_v7 = vrot.slane %v426_v61, 4  ;;  %v9246_v19 = vpack.c.bf16 %v317_v4, %v317_v4 }
  0x2a   : > { %v462_v8 = vshll.u32 %v9245_v59, 16  ;;  %437 = vst [vmem:[#allocation2 + $0x10] sm:$0xc] %v436_v6  ;;  %v455_v11 = vrot.slane %v453_v2, 5  ;;  %v458_v12 = vrot.slane %v456_v3, 4  ;;  %v466_v13 = vshrl.u32 %v9245_v59, 16  ;;  %vm10819_vm10 = vmand %vm13240_vm4, %vm449_vm1 }
  0x2b   : > { %vm475_vm5 = vsmask.f32 7950  ;;  %v318_v14 = vld [vmem:[%s10705_s20 + $0x38] sm:$0xff]  ;;  %9521 = vmatpush3.bf16.msra.mxu1 %v10726_v28  ;;  %v427_v15 = vsel %vm10779_vm2, %v418_v5, %v426_v61  ;;  %v442_v16 = vsel %vm10768_vm0, %v428_v7, %v441_v58  ;;  %vm514_vm7 = vsmask.f32 7938  ;;  %v319_v23 = vld [vmem:[%s10705_s20 + $0x40] sm:$0xff] }
  0x2c   : > { %v464_v17 = vrot.slane %v462_v8, 5  ;;  %vm10800_vm6 = vmand %vm474_vm8, %vm475_vm5  ;;  %9729 = vmatpush3.bf16.msra.mxu0 %v10731_v34  ;;  %9558 = vmatprep.subr.bf16.mxu1 %v10758_v56  ;;  %438 = vst.msk [vmem:[#allocation2 + $0x14] sm:$0xf] %vm13240_vm4, %v427_v15  ;;  %v459_v20 = vor.u32 %v458_v12, %v455_v11  ;;  %v468_v22 = vrot.slane %v466_v13, 4  ;;  %v483_v25 = vld [vmem:[#allocation2 + $0x20] sm:$0xf]  ;;  %v9247_v28 = vpack.c.bf16 %v318_v14, %v318_v14 }
  0x2d   : > { %443 = vst [vmem:[#allocation2 + $0x18] sm:$0x7] %v442_v16  ;;  %v478_v21 = vsel %vm10800_vm6, %v455_v11, %v477_v9  ;;  %vm10812_vm8 = vmor %vm449_vm1, %vm450_vm3  ;;  %9766 = vmatprep.subr.bf16.mxu0 %v10791_v10  ;;  %v495_v26 = vshrl.u32 %v9246_v19, 16  ;;  %v498_v27 = vshll.u32 %v9246_v19, 16  ;;  %vm491_vm9 = vsmask.f32 256 }
  0x2e   : > { %479 = vst [vmem:[#allocation2 + $0x18] sm:$0x8] %v478_v21  ;;  %v460_v29 = vrot.slane %v459_v20, 4  ;;  %v469_v30 = vor.u32 %v468_v22, %v464_v17  ;;  %v516_v32 = vld [vmem:[#allocation2 + $0x24] sm:$0xf]  ;;  %vm520_vm13 = vcmask 57344   ;;  %v9248_v33 = vpack.c.bf16 %v319_v23, %v319_v23  ;;  %vm10825_vm3 = vmand %vm13240_vm4, %vm514_vm7 }
  0x2f   : > { %v497_v34 = vrot.slane %v495_v26, 7  ;;  %v10388_v37 = vld [vmem:[%s13234_s1 + $0x48] sm:$0xff]   ;;  %vm492_vm5 = vsmask.f32 4368  ;;  %v503_v38 = vshrl.u32 %v9247_v28, 16  ;;  %v506_v39 = vshll.u32 %v9247_v28, 16 }
  0x30   : > { %v10378_v40 = vld [vmem:[#allocation2 + $0x8] sm:$0xff]   ;;  %vm3213_vm1 = vsmask.f32 6400  ;;  %v465_v41 = vsel %vm10812_vm8, %v460_v29, %v464_v17  ;;  %v470_v43 = vrot.slane %v469_v30, 4  ;;  %vm10838_vm7 = vmor %vm491_vm9, %vm492_vm5  ;;  %v531_v51 = vshrl.u32 %v9248_v33, 16  ;;  %v321_v20 = vld [vmem:[%s10705_s20 + $0x50] sm:$0xff] }
  0x31   : > { %v10380_v44 = vld [vmem:[#allocation2 + $0x8] sm:$0xfe]   ;;  %480 = vst.msk [vmem:[#allocation2 + $0x1c] sm:$0xf] %vm13240_vm4, %v465_v41  ;;  %v500_v45 = vor.u32 %v498_v27, %v497_v34  ;;  %9523 = vmatmul.mubr.bf16.vlgmr.msra.gmra.mrb[0].mxu1 %v10378_v40  ;;  %v501_v49 = vrot.slane %v497_v34, 4  ;;  %v505_v50 = vrot.slane %v503_v38, 7  ;;  %vm10847_vm5 = vmand %vm520_vm13, %vm491_vm9  ;;  %v9250_v27 = vpack.c.bf16 %v321_v20, %v321_v20 }
  0x32   : > { %v484_v46 = vsel %vm10819_vm10, %v470_v43, %v483_v25  ;;  %v3215_v53 = vshrl.u32 %v10380_v44, 16  ;;  %v3218_v54 = vshll.u32 %v10380_v44, 16  ;;  %9559 = vmatpush3.bf16.msra.mxu1 %v10758_v56  ;;  %v522_v59 = vld [vmem:[#allocation2 + $0x2c] sm:$0x1]  ;;  %v533_v5 = vrot.slane %v531_v51, 6  ;;  %v322_v44 = vld [vmem:[%s10705_s20 + $0x58] sm:$0xff] }
  0x33   : > { %v10381_v52 = vld [vmem:[#allocation2 + $0x10] sm:$0xff]   ;;  %485 = vst [vmem:[#allocation2 + $0x20] sm:$0xf] %v484_v46  ;;  %v517_v58 = vsel %vm10825_vm3, %v500_v45, %v516_v32  ;;  %9560 = vmatprep.subr.bf16.mxu1 %v10388_v37  ;;  %v508_v60 = vor.u32 %v506_v39, %v505_v50  ;;  %v510_v4 = vrot.slane %v505_v50, 4  ;;  %v534_v6 = vshll.u32 %v9248_v33, 16  ;;  %v320_v7 = vld [vmem:[%s10705_s20 + $0x48] sm:$0xff] }
  0x34   : > { %v10385_v55 = vld [vmem:[#allocation2 + $0x10] sm:$0xff]   ;;  %518 = vst [vmem:[#allocation2 + $0x24] sm:$0xf] %v517_v58  ;;  %v3217_v61 = vrot.slane %v3215_v53, 1  ;;  %v3220_v63 = vrot.slane %v3218_v54, 2  ;;  %v3223_v0 = vshrl.u32 %v10381_v52, 16  ;;  %v9249_v12 = vpack.c.bf16 %v320_v7, %v320_v7 }
  0x35   : > { %v3226_v2 = vshll.u32 %v10381_v52, 16  ;;  %9526 = vmatprep.mubr.bf16.mxu1 %v10385_v55  ;;  %v509_v56 = vsel %vm10838_vm7, %v501_v49, %v508_v60  ;;  %v523_v14 = vsel %vm10847_vm5, %v510_v4, %v522_v59  ;;  %v536_v15 = vrot.slane %v534_v6, 7  ;;  %v552_v19 = vld [vmem:[#allocation2 + $0x2c] sm:$0xe]  ;;  %v323_v45 = vld [vmem:[%s10705_s20 + $0x60] sm:$0xff]  ;;  %v10390_v6 = vld [vmem:[%s13234_s1 + $0x150] sm:$0xff]  }
  0x36   : > { %v3221_v8 = vor.u32 %v3220_v63, %v3217_v61  ;;  %v3225_v9 = vrot.slane %v3223_v0, 1  ;;  %519 = vst.msk [vmem:[#allocation2 + $0x28] sm:$0xf] %vm13240_vm4, %v509_v56  ;;  %9561 = vmatpush3.bf16.msra.mxu1 %v10388_v37  ;;  %524 = vst [vmem:[#allocation2 + $0x2c] sm:$0x1] %v523_v14  ;;  %v540_v21 = vshrl.u32 %v9249_v12, 16  ;;  %v9251_v52 = vpack.c.bf16 %v322_v44, %v322_v44 }
  0x37   : > { %v3228_v11 = vrot.slane %v3226_v2, 2  ;;  %v543_v22 = vshll.u32 %v9249_v12, 16  ;;  %v537_v26 = vor.u32 %v536_v15, %v533_v5  ;;  %v565_v43 = vshrl.u32 %v9250_v27, 16  ;;  %v10384_v49 = vld [vmem:[%s13234_s1 + $0x148] sm:$0xff]   ;;  %v556_v50 = vld [vmem:[#allocation2 + $0x34] sm:$0x3] }
  0x38   : > { %v10382_v13 = vld [vmem:[#allocation2 + $0x18] sm:$0xff]   ;;  %v542_v30 = vrot.slane %v540_v21, 6  ;;  %v568_v51 = vshll.u32 %v9250_v27, 16  ;;  %v9252_v53 = vpack.c.bf16 %v323_v45, %v323_v45  ;;  %v586_v60 = vld [vmem:[#allocation2 + $0x34] sm:$0xc]  ;;  %v574_v2 = vshrl.u32 %v9251_v52, 16 }
  0x39   : > { %v3229_v16 = vor.u32 %v3228_v11, %v3225_v9  ;;  %v10386_v17 = vld [vmem:[#allocation2 + $0x18] sm:$0xff]   ;;  %v3232_v23 = vshrl.u32 %v10382_v13, 16  ;;  %v3235_v25 = vshll.u32 %v10382_v13, 16  ;;  %v553_v34 = vsel %vm10735_vm11, %v537_v26, %v552_v19  ;;  %v10397_v61 = vld [vmem:[%s13234_s1 + $0x50] sm:$0xff]   ;;  %v858_v48 = vld [vmem:[#allocation2 + $0x84] sm:$0x7] }
  0x3a   : > { %9527 = vmatmul.mubr.bf16.gmra.mrb[4].mxu1 %v10386_v17  ;;  %v538_v38 = vrot.slane %v537_v26, 4  ;;  %554 = vst [vmem:[#allocation2 + $0x2c] sm:$0xe] %v553_v34  ;;  %v545_v41 = vrot.slane %v543_v22, 7  ;;  %v567_v59 = vrot.slane %v565_v43, 5  ;;  %v570_v0 = vrot.slane %v568_v51, 6  ;;  %9562 = vmatprep.subr.bf16.mxu1 %v10397_v61 }
  0x3b   : > { %v3230_v28 = vsel %vm3213_vm1, %v3221_v8, %v3229_v16  ;;  %v10387_v29 = vld [vmem:[#allocation2 + $0x20] sm:$0xff]   ;;  %v3234_v32 = vrot.slane %v3232_v23, 1  ;;  %v3237_v33 = vrot.slane %v3235_v25, 2  ;;  %v577_v56 = vshll.u32 %v9251_v52, 16  ;;  %v620_v4 = vld [vmem:[#allocation2 + $0x3c] sm:$0x8]  ;;  %9563 = vmatpush3.bf16.msra.mxu1 %v10397_v61 }
  0x3c   : > { %9730 = vmatprep.mubr.bf16.mxu0 %v3230_v28  ;;  %v10392_v37 = vld [vmem:[#allocation2 + $0x20] sm:$0xff]   ;;  %v3241_v39 = vshrl.u32 %v10387_v29, 16  ;;  %v3244_v40 = vshll.u32 %v10387_v29, 16  ;;  %v546_v58 = vor.u32 %v545_v41, %v542_v30  ;;  %v599_v9 = vshll.u32 %v9252_v53, 16  ;;  %v324_v17 = vld [vmem:[%s10705_s20 + $0x68] sm:$0xff]  ;;  %v325_v28 = vld [vmem:[%s10705_s20 + $0x70] sm:$0xff] }
  0x3d   : > { %v3238_v46 = vor.u32 %v3237_v33, %v3234_v32  ;;  %9530 = vmatprep.mubr.bf16.mxu1 %v10392_v37  ;;  %v571_v11 = vor.u32 %v570_v0, %v567_v59  ;;  %v576_v12 = vrot.slane %v574_v2, 5  ;;  %v579_v13 = vrot.slane %v577_v56, 6  ;;  %v590_v25 = vld [vmem:[#allocation2 + $0x3c] sm:$0x7]  ;;  %v652_v2 = vld [vmem:[#allocation2 + $0x48] sm:$0xf] }
  0x3e   : > { %v3243_v54 = vrot.slane %v3241_v39, 1  ;;  %v3246_v55 = vrot.slane %v3244_v40, 2  ;;  %v547_v7 = vsel %vm10743_vm12, %v538_v38, %v546_v58  ;;  %v548_v8 = vrot.slane %v546_v58, 4  ;;  %v326_v34 = vld [vmem:[%s10705_s20 + $0x78] sm:$0xff]  ;;  %v10441_v31 = vld [vmem:[%s13234_s1 + $0x1a0] sm:$0xff]  }
  0x3f   : > { %v3239_v63 = vsel %vm3213_vm1, %v3229_v16, %v3238_v46  ;;  %555 = vst.msk [vmem:[#allocation2 + $0x30] sm:$0xf] %vm13240_vm4, %v547_v7  ;;  %v601_v16 = vrot.slane %v599_v9, 5  ;;  %v572_v20 = vrot.slane %v571_v11, 4  ;;  %v580_v21 = vor.u32 %v579_v13, %v576_v12  ;;  %v10391_v37 = vld [vmem:[%s13234_s1 + $0x158] sm:$0xff]  }
  0x40   : > { %9731 = vmatmul.mubr.bf16.vlgmr.msra.gmra.mrb[0].mxu0 %v3239_v63  ;;  %v10870_v5 = vor.u32 %v3246_v55, %v3243_v54  ;;  %v557_v15 = vsel %vm10749_vm14, %v548_v8, %v556_v50  ;;  %v9253_v22 = vpack.c.bf16 %v324_v17, %v324_v17  ;;  %v602_v27 = vshrl.u32 %v9252_v53, 16  ;;  %v624_v54 = vld [vmem:[#allocation2 + $0x44] sm:$0xf]  ;;  %v10463_v47 = vld [vmem:[#allocation2 + $0x18] sm:$0xff]  }
  0x41   : > { %9767 = vmatpush3.bf16.msra.mxu0 %v10791_v10  ;;  %v10389_v19 = vld [vmem:[#allocation2 + $0x28] sm:$0xff]   ;;  %558 = vst [vmem:[#allocation2 + $0x34] sm:$0x3] %v557_v15  ;;  %v587_v10 = vsel %vm10762_vm15, %v571_v11, %v586_v60  ;;  %v621_v26 = vsel %vm10800_vm6, %v601_v16, %v620_v4  ;;  %v581_v32 = vsel %vm10779_vm2, %v572_v20, %v580_v21  ;;  %v582_v33 = vrot.slane %v580_v21, 4  ;;  %v10404_v60 = vld [vmem:[%s13234_s1 + $0x58] sm:$0xff]  }
  0x42   : > { %9768 = vmatprep.subr.bf16.mxu0 %v10384_v49  ;;  %v3248_v14 = vsel %vm3213_vm1, %v3238_v46, %v10870_v5  ;;  %v10393_v23 = vld [vmem:[#allocation2 + $0x28] sm:$0xff]   ;;  %588 = vst [vmem:[#allocation2 + $0x34] sm:$0xc] %v587_v10  ;;  %v3250_v29 = vshrl.u32 %v10389_v19, 16  ;;  %v3253_v30 = vshll.u32 %v10389_v19, 16  ;;  %v604_v38 = vrot.slane %v602_v27, 4  ;;  %9564 = vmatprep.subr.bf16.mxu1 %v10404_v60 }
  0x43   : > { %9734 = vmatprep.mubr.bf16.mxu0 %v3248_v14  ;;  %622 = vst [vmem:[#allocation2 + $0x3c] sm:$0x8] %v621_v26  ;;  %9531 = vmatmul.mubr.bf16.gmra.mrb[8].mxu1 %v10393_v23  ;;  %589 = vst.msk [vmem:[#allocation2 + $0x38] sm:$0xf] %vm13240_vm4, %v581_v32  ;;  %v608_v39 = vshll.u32 %v9253_v22, 16  ;;  %v612_v40 = vshrl.u32 %v9253_v22, 16  ;;  %v9254_v41 = vpack.c.bf16 %v325_v28, %v325_v28 }
  0x44   : > { %v3252_v43 = vrot.slane %v3250_v29, 1  ;;  %v3255_v44 = vrot.slane %v3253_v30, 2  ;;  %v591_v45 = vsel %vm10768_vm0, %v582_v33, %v590_v25  ;;  %v9255_v46 = vpack.c.bf16 %v326_v34, %v326_v34  ;;  %9565 = vmatpush3.bf16.msra.mxu1 %v10404_v60  ;;  %v10914_v19 = vld [vmem:[#allocation2 + $0x10] sm:$0xff]   ;;  %v10408_v26 = vld [vmem:[#allocation2 + $0x8] sm:$0xfc]   ;;  %v10411_v33 = vld [vmem:[%s13234_s1 + $0x60] sm:$0xff]  }
  0x45   : > { %9769 = vmatpush3.bf16.msra.mxu0 %v10384_v49  ;;  %592 = vst [vmem:[#allocation2 + $0x3c] sm:$0x7] %v591_v45  ;;  %v10396_v49 = vld [vmem:[%s13234_s1 + $0x160] sm:$0xff]   ;;  %v605_v50 = vor.u32 %v604_v38, %v601_v16  ;;  %v610_v51 = vrot.slane %v608_v39, 5  ;;  %v614_v52 = vrot.slane %v612_v40, 4  ;;  %v633_v55 = vshrl.u32 %v9254_v41, 16  ;;  %9566 = vmatprep.subr.bf16.mxu1 %v10411_v33 }
  0x46   : > { %9770 = vmatprep.subr.bf16.mxu0 %v10390_v6  ;;  %v3256_v53 = vor.u32 %v3255_v44, %v3252_v43  ;;  %v636_v58 = vshll.u32 %v9254_v41, 16  ;;  %v641_v59 = vshrl.u32 %v9255_v46, 16  ;;  %v644_v0 = vshll.u32 %v9255_v46, 16  ;;  %v10403_v30 = vld [vmem:[%s13234_s1 + $0x170] sm:$0xff]   ;;  %v327_v40 = vld [vmem:[%s10705_s20 + $0x80] sm:$0xff]  ;;  %v328_v41 = vld [vmem:[%s10705_s20 + $0x88] sm:$0xff] }
  0x47   : > { %v606_v61 = vrot.slane %v605_v50, 4  ;;  %v615_v63 = vor.u32 %v614_v52, %v610_v51  ;;  %v635_v7 = vrot.slane %v633_v55, 7  ;;  %v3884_v32 = vrot.slane %v10914_v19, 2  ;;  %v10405_v46 = vld [vmem:[%s13234_s1 + $0x178] sm:$0xff]  }
  0x48   : > { %v3257_v56 = vsel %vm3213_vm1, %v10870_v5, %v3256_v53  ;;  %v643_v12 = vrot.slane %v641_v59, 7  ;;  %v3883_v39 = vrot.slane %v10408_v26, 2  ;;  %v9256_v44 = vpack.c.bf16 %v327_v40, %v327_v40  ;;  %9567 = vmatpush3.bf16.msra.mxu1 %v10411_v33 }
  0x49   : > { %9771 = vmatpush3.bf16.msra.mxu0 %v10390_v6  ;;  %v10394_v4 = vld [vmem:[#allocation2 + $0x30] sm:$0xff]   ;;  %v10398_v6 = vld [vmem:[%s13234_s1 + $0x168] sm:$0xff]   ;;  %v611_v9 = vsel %vm10812_vm8, %v606_v61, %v610_v51  ;;  %v616_v11 = vrot.slane %v615_v63, 4  ;;  %v638_v5 = vor.u32 %v636_v58, %v635_v7  ;;  %v639_v16 = vrot.slane %v635_v7, 4 }
  0x4a   : > { %9772 = vmatprep.subr.bf16.mxu0 %v10391_v37  ;;  %9735 = vmatmul.mubr.bf16.gmra.mrb[4].mxu0 %v3257_v56  ;;  %v10399_v8 = vld [vmem:[#allocation2 + $0x30] sm:$0xff]   ;;  %v3259_v13 = vshrl.u32 %v10394_v4, 16  ;;  %v3262_v14 = vshll.u32 %v10394_v4, 16  ;;  %623 = vst.msk [vmem:[#allocation2 + $0x40] sm:$0xf] %vm13240_vm4, %v611_v9  ;;  %v646_v17 = vor.u32 %v644_v0, %v643_v12  ;;  %v648_v43 = vrot.slane %v643_v12, 4 }
  0x4b   : > { %9534 = vmatprep.mubr.bf16.mxu1 %v10399_v8  ;;  %v625_v15 = vsel %vm10819_vm10, %v616_v11, %v624_v54  ;;  %v653_v23 = vsel %vm10825_vm3, %v638_v5, %v652_v2  ;;  %vm3882_vm9 = vcmask 1045504   ;;  %v9257_v50 = vpack.c.bf16 %v328_v41, %v328_v41  ;;  %v329_v51 = vld [vmem:[%s10705_s20 + $0x90] sm:$0xff]  ;;  %v330_v5 = vld [vmem:[%s10705_s20 + $0x98] sm:$0xff] }
  0x4c   : > { %v3261_v10 = vrot.slane %v3259_v13, 1  ;;  %v3264_v20 = vrot.slane %v3262_v14, 2  ;;  %v10395_v21 = vld [vmem:[#allocation2 + $0x38] sm:$0xff]   ;;  %626 = vst [vmem:[#allocation2 + $0x44] sm:$0xf] %v625_v15  ;;  %v647_v25 = vsel %vm10838_vm7, %v639_v16, %v646_v17  ;;  %v665_v54 = vshrl.u32 %v9256_v44, 16 }
  0x4d   : > { %9773 = vmatpush3.bf16.msra.mxu0 %v10391_v37  ;;  %v10400_v22 = vld [vmem:[#allocation2 + $0x38] sm:$0xff]   ;;  %654 = vst [vmem:[#allocation2 + $0x48] sm:$0xf] %v653_v23  ;;  %v3268_v28 = vshrl.u32 %v10395_v21, 16  ;;  %v3271_v29 = vshll.u32 %v10395_v21, 16  ;;  %v668_v59 = vshll.u32 %v9256_v44, 16  ;;  %v3885_v2 = vsel %vm3882_vm9, %v3883_v39, %v3884_v32 }
  0x4e   : > { %9774 = vmatprep.subr.bf16.mxu0 %v10396_v49  ;;  %v3265_v27 = vor.u32 %v3264_v20, %v3261_v10  ;;  %9535 = vmatmul.mubr.bf16.gmra.mrb[12].mxu1 %v10400_v22  ;;  %655 = vst.msk [vmem:[#allocation2 + $0x4c] sm:$0xf] %vm13240_vm4, %v647_v25  ;;  %v686_v56 = vld [vmem:[#allocation2 + $0x50] sm:$0xe]  ;;  %v9258_v4 = vpack.c.bf16 %v329_v51, %v329_v51  ;;  %v667_v7 = vrot.slane %v665_v54, 6  ;;  %v674_v8 = vshrl.u32 %v9257_v50, 16 }
  0x4f   : > { %v3270_v37 = vrot.slane %v3268_v28, 1  ;;  %v3273_v38 = vrot.slane %v3271_v29, 2  ;;  %v677_v9 = vshll.u32 %v9257_v50, 16  ;;  %v10942_v15 = vld [vmem:[#allocation2 + $0x18] sm:$0xff]   ;;  %v9259_v20 = vpack.c.bf16 %v330_v5, %v330_v5  ;;  %v10949_v28 = vld [vmem:[%s13234_s1 + $0x180] sm:$0xff]   ;;  %v10959_v50 = vld [vmem:[#allocation2 + $0x28] sm:$0xff]  }
  0x50   : > { %v3266_v34 = vsel %vm3213_vm1, %v3256_v53, %v3265_v27  ;;  %v676_v17 = vrot.slane %v674_v8, 6  ;;  %v690_v25 = vld [vmem:[#allocation2 + $0x58] sm:$0x3]  ;;  %v699_v26 = vshrl.u32 %v9258_v4, 16  ;;  %v720_v41 = vld [vmem:[#allocation2 + $0x58] sm:$0xc] }
  0x51   : > { %9775 = vmatpush3.bf16.msra.mxu0 %v10396_v49  ;;  %9738 = vmatprep.mubr.bf16.mxu0 %v3266_v34  ;;  %v3274_v45 = vor.u32 %v3273_v38, %v3270_v37  ;;  %v656_v49 = vld [vmem:[#allocation2 + $0x50] sm:$0x1]  ;;  %v679_v10 = vrot.slane %v677_v9, 7  ;;  %v702_v34 = vshll.u32 %v9258_v4, 16  ;;  %v708_v40 = vshrl.u32 %v9259_v20, 16 }
  0x52   : > { %9776 = vmatprep.subr.bf16.mxu0 %v10398_v6  ;;  %v657_v53 = vsel %vm10847_vm5, %v648_v43, %v656_v49  ;;  %v701_v39 = vrot.slane %v699_v26, 5  ;;  %v711_v49 = vshll.u32 %v9259_v20, 16  ;;  %v3890_v8 = vrot.slane %v10959_v50, 2  ;;  %v724_v9 = vld [vmem:[#allocation2 + $0x60] sm:$0x7] }
  0x53   : > { %v10401_v52 = vld [vmem:[#allocation2 + $0x40] sm:$0xff]   ;;  %v3275_v55 = vsel %vm3213_vm1, %v3265_v27, %v3274_v45  ;;  %658 = vst [vmem:[#allocation2 + $0x50] sm:$0x1] %v657_v53  ;;  %v710_v51 = vrot.slane %v708_v40, 5 }
  0x54   : > { %v10406_v58 = vld [vmem:[#allocation2 + $0x40] sm:$0xff]   ;;  %9739 = vmatmul.mubr.bf16.gmra.mrb[8].mxu0 %v3275_v55  ;;  %v3277_v60 = vshrl.u32 %v10401_v52, 16  ;;  %v3280_v61 = vshll.u32 %v10401_v52, 16  ;;  %v3886_v52 = vrot.slane %v10942_v15, 2  ;;  %v713_v55 = vrot.slane %v711_v49, 6 }
  0x55   : > { %9777 = vmatpush3.bf16.msra.mxu0 %v10398_v6  ;;  %v10402_v63 = vld [vmem:[#allocation2 + $0x48] sm:$0xff]   ;;  %9538 = vmatprep.mubr.bf16.mxu1 %v10406_v58  ;;  %v670_v6 = vrot.slane %v668_v59, 7  ;;  %v10944_v27 = vld [vmem:[#allocation2 + $0x20] sm:$0xff]  }
  0x56   : > { %9778 = vmatprep.subr.bf16.mxu0 %v10403_v30  ;;  %v10407_v0 = vld [vmem:[#allocation2 + $0x48] sm:$0xff]   ;;  %v3279_v11 = vrot.slane %v3277_v60, 1  ;;  %v3282_v12 = vrot.slane %v3280_v61, 2  ;;  %v3286_v13 = vshrl.u32 %v10402_v63, 16  ;;  %v3289_v14 = vshll.u32 %v10402_v63, 16  ;;  %v331_v59 = vld [vmem:[%s10705_s20 + $0xa0] sm:$0xff] }
  0x57   : > { %9539 = vmatmul.mubr.bf16.gmra.mrb[16].mxu1 %v10407_v0  ;;  %v671_v16 = vor.u32 %v670_v6, %v667_v7  ;;  %v10417_v58 = vld [vmem:[%s13234_s1 + $0x68] sm:$0xff]   ;;  %v3888_v61 = vrot.slane %v10944_v27, 2  ;;  %v9260_v63 = vpack.c.bf16 %v331_v59, %v331_v59  ;;  %v714_v7 = vor.u32 %v713_v55, %v710_v51  ;;  %v334_v51 = vld [vmem:[%s10705_s20 + $0xb8] sm:$0xff] }
  0x58   : > { %v3283_v21 = vor.u32 %v3282_v12, %v3279_v11  ;;  %v3288_v22 = vrot.slane %v3286_v13, 1  ;;  %v3291_v23 = vrot.slane %v3289_v14, 2  ;;  %v332_v60 = vld [vmem:[%s10705_s20 + $0xa8] sm:$0xff]  ;;  %9568 = vmatprep.subr.bf16.mxu1 %v10417_v58  ;;  %v754_v11 = vld [vmem:[#allocation2 + $0x60] sm:$0x8]  ;;  %v3887_v5 = vsel %vm3882_vm9, %v3884_v32, %v3886_v52 }
  0x59   : > { %9779 = vmatpush3.bf16.msra.mxu0 %v10403_v30  ;;  %v672_v29 = vrot.slane %v671_v16, 4  ;;  %v680_v30 = vor.u32 %v679_v10, %v676_v17  ;;  %v687_v33 = vsel %vm10735_vm11, %v671_v16, %v686_v56  ;;  %v9261_v0 = vpack.c.bf16 %v332_v60, %v332_v60  ;;  %v333_v56 = vld [vmem:[%s10705_s20 + $0xb0] sm:$0xff]  ;;  %9569 = vmatpush3.bf16.msra.mxu1 %v10417_v58  ;;  %v758_v32 = vld [vmem:[#allocation2 + $0x68] sm:$0xf] }
  0x5a   : > { %9780 = vmatprep.subr.bf16.mxu0 %v10405_v46  ;;  %v3284_v37 = vsel %vm3213_vm1, %v3274_v45, %v3283_v21  ;;  %v10954_v38 = vor.u32 %v3291_v23, %v3288_v22  ;;  %688 = vst [vmem:[#allocation2 + $0x50] sm:$0xe] %v687_v33  ;;  %v733_v12 = vshll.u32 %v9260_v63, 16  ;;  %v716_v16 = vrot.slane %v714_v7, 4  ;;  %v10982_v10 = vld [vmem:[#allocation2 + $0x30] sm:$0xff]   ;;  %v336_v59 = vld [vmem:[%s10705_s20 + $0xc8] sm:$0xff] }
  0x5b   : > { %9742 = vmatprep.mubr.bf16.mxu0 %v3284_v37  ;;  %v681_v43 = vsel %vm10743_vm12, %v672_v29, %v680_v30  ;;  %v682_v44 = vrot.slane %v680_v30, 4  ;;  %v742_v13 = vshll.u32 %v9261_v0, 16  ;;  %v746_v14 = vshrl.u32 %v9261_v0, 16  ;;  %v10988_v30 = vld [vmem:[#allocation2 + $0x38] sm:$0xff]   ;;  %v11022_v50 = vld [vmem:[#allocation2 + $0x48] sm:$0xff]  }
  0x5c   : > { %v3293_v45 = vsel %vm3213_vm1, %v3283_v21, %v10954_v38  ;;  %689 = vst.msk [vmem:[#allocation2 + $0x54] sm:$0xf] %vm13240_vm4, %v681_v43  ;;  %v9262_v17 = vpack.c.bf16 %v333_v56, %v333_v56  ;;  %v735_v20 = vrot.slane %v733_v12, 5  ;;  %v3889_v26 = vsel %vm3882_vm9, %v3886_v52, %v3888_v61  ;;  %v10422_v43 = vld [vmem:[%s13234_s1 + $0x188] sm:$0xff]   ;;  %v335_v52 = vld [vmem:[%s10705_s20 + $0xc0] sm:$0xff] }
  0x5d   : > { %9781 = vmatpush3.bf16.msra.mxu0 %v10405_v46  ;;  %v704_v46 = vrot.slane %v702_v34, 6  ;;  %v691_v53 = vsel %vm10749_vm14, %v682_v44, %v690_v25  ;;  %v744_v22 = vrot.slane %v742_v13, 5  ;;  %v748_v23 = vrot.slane %v746_v14, 4  ;;  %v10423_v44 = vld [vmem:[%s13234_s1 + $0x70] sm:$0xff]  }
  0x5e   : > { %9818 = vmatprep.subr.bf16.mxu0 %v10949_v28  ;;  %9743 = vmatmul.mubr.bf16.gmra.mrb[12].mxu0 %v3293_v45  ;;  %692 = vst [vmem:[#allocation2 + $0x58] sm:$0x3] %v691_v53  ;;  %v725_v19 = vsel %vm10768_vm0, %v716_v16, %v724_v9  ;;  %v767_v27 = vshrl.u32 %v9262_v17, 16  ;;  %v770_v29 = vshll.u32 %v9262_v17, 16  ;;  %v755_v34 = vsel %vm10800_vm6, %v735_v20, %v754_v11  ;;  %v790_v11 = vld [vmem:[#allocation2 + $0x74] sm:$0x1] }
  0x5f   : > { %v705_v54 = vor.u32 %v704_v46, %v701_v39  ;;  %9782 = vmatprep.mubr.bf16.mxu0 %v3885_v2  ;;  %v736_v2 = vshrl.u32 %v9260_v63, 16  ;;  %726 = vst [vmem:[#allocation2 + $0x60] sm:$0x7] %v725_v19  ;;  %v749_v37 = vor.u32 %v748_v23, %v744_v22  ;;  %v786_v39 = vld [vmem:[#allocation2 + $0x6c] sm:$0xf]  ;;  %v3891_v46 = vsel %vm3882_vm9, %v3888_v61, %v3890_v8  ;;  %v337_v63 = vld [vmem:[%s10705_s20 + $0xd0] sm:$0xff] }
  0x60   : > { %756 = vst [vmem:[#allocation2 + $0x60] sm:$0x8] %v755_v34  ;;  %v769_v40 = vrot.slane %v767_v27, 7  ;;  %9570 = vmatprep.subr.bf16.mxu1 %v10423_v44  ;;  %v9263_v55 = vpack.c.bf16 %v334_v51, %v334_v51  ;;  %v9265_v0 = vpack.c.bf16 %v336_v59, %v336_v59  ;;  %v9266_v9 = vpack.c.bf16 %v337_v63, %v337_v63  ;;  %v820_v16 = vld [vmem:[#allocation2 + $0x74] sm:$0xe] }
  0x61   : > { %v706_v4 = vrot.slane %v705_v54, 4  ;;  %v721_v6 = vsel %vm10762_vm15, %v705_v54, %v720_v41  ;;  %v738_v21 = vrot.slane %v736_v2, 4  ;;  %v3892_v41 = vrot.slane %v10982_v10, 2  ;;  %9571 = vmatpush3.bf16.msra.mxu1 %v10423_v44  ;;  %v854_v19 = vld [vmem:[#allocation2 + $0x7c] sm:$0xc] }
  0x62   : > { %722 = vst [vmem:[#allocation2 + $0x58] sm:$0xc] %v721_v6  ;;  %v750_v45 = vrot.slane %v749_v37, 4  ;;  %v772_v53 = vor.u32 %v770_v29, %v769_v40  ;;  %v3894_v54 = vrot.slane %v10988_v30, 2  ;;  %v773_v58 = vrot.slane %v769_v40, 4 }
  0x63   : > { %v715_v15 = vsel %vm10779_vm2, %v706_v4, %v714_v7  ;;  %v10412_v25 = vld [vmem:[#allocation2 + $0x50] sm:$0xff]   ;;  %v739_v33 = vor.u32 %v738_v21, %v735_v20  ;;  %v775_v7 = vshrl.u32 %v9263_v55, 16  ;;  %v778_v6 = vshll.u32 %v9263_v55, 16  ;;  %v11020_v21 = vld [vmem:[#allocation2 + $0x40] sm:$0xff]   ;;  %v824_v37 = vld [vmem:[#allocation2 + $0x7c] sm:$0x3] }
  0x64   : > { %723 = vst.msk [vmem:[#allocation2 + $0x5c] sm:$0xf] %vm13240_vm4, %v715_v15  ;;  %9542 = vmatprep.mubr.bf16.mxu1 %v10412_v25  ;;  %v759_v61 = vsel %vm10819_vm10, %v750_v45, %v758_v32  ;;  %v787_v4 = vsel %vm10825_vm3, %v772_v53, %v786_v39  ;;  %v808_v13 = vshrl.u32 %v9265_v0, 16  ;;  %v811_v14 = vshll.u32 %v9265_v0, 16 }
  0x65   : > { %v740_v49 = vrot.slane %v739_v33, 4  ;;  %760 = vst [vmem:[#allocation2 + $0x68] sm:$0xf] %v759_v61  ;;  %788 = vst [vmem:[#allocation2 + $0x6c] sm:$0xf] %v787_v4  ;;  %v777_v15 = vrot.slane %v775_v7, 7 }
  0x66   : > { %9783 = vmatmul.mubr.bf16.vlgmr.msra.gmra.mrb[0].mxu0 %v3887_v5  ;;  %v3893_v5 = vsel %vm3882_vm9, %v3890_v8, %v3892_v41  ;;  %v833_v17 = vshrl.u32 %v9266_v9, 16  ;;  %v836_v20 = vshll.u32 %v9266_v9, 16  ;;  %v810_v25 = vrot.slane %v808_v13, 6  ;;  %v340_v9 = vld [vmem:[%s10705_s20 + $0xe8] sm:$0xff] }
  0x67   : > { %9786 = vmatprep.mubr.bf16.mxu0 %v3889_v26  ;;  %9819 = vmatpush3.bf16.msra.mxu0 %v10949_v28  ;;  %v745_v60 = vsel %vm10812_vm8, %v740_v49, %v744_v22  ;;  %v9264_v28 = vpack.c.bf16 %v335_v52, %v335_v52  ;;  %v813_v26 = vrot.slane %v811_v14, 7  ;;  %v780_v32 = vor.u32 %v778_v6, %v777_v15  ;;  %v338_v49 = vld [vmem:[%s10705_s20 + $0xd8] sm:$0xff] }
  0x68   : > { %9820 = vmatprep.subr.bf16.mxu0 %v10422_v43  ;;  %757 = vst.msk [vmem:[#allocation2 + $0x64] sm:$0xf] %vm13240_vm4, %v745_v60  ;;  %v782_v27 = vrot.slane %v777_v15, 4  ;;  %v835_v29 = vrot.slane %v833_v17, 5  ;;  %v838_v33 = vrot.slane %v836_v20, 6  ;;  %v3896_v44 = vrot.slane %v11020_v21, 2 }
  0x69   : > { %v799_v12 = vshrl.u32 %v9264_v28, 16  ;;  %v802_v2 = vshll.u32 %v9264_v28, 16  ;;  %v814_v34 = vor.u32 %v813_v26, %v810_v25  ;;  %v781_v39 = vsel %vm10838_vm7, %v773_v58, %v780_v32  ;;  %v339_v28 = vld [vmem:[%s10705_s20 + $0xe0] sm:$0xff] }
  0x6a   : > { %v791_v40 = vsel %vm10847_vm5, %v782_v27, %v790_v11  ;;  %789 = vst.msk [vmem:[#allocation2 + $0x70] sm:$0xf] %vm13240_vm4, %v781_v39  ;;  %v9267_v53 = vpack.c.bf16 %v338_v49, %v338_v49  ;;  %v3895_v58 = vsel %vm3882_vm9, %v3892_v41, %v3894_v54  ;;  %v3898_v61 = vrot.slane %v11022_v50, 2  ;;  %v10434_v27 = vld [vmem:[%s13234_s1 + $0x198] sm:$0xff]   ;;  %v10435_v50 = vld [vmem:[#allocation2] sm:$0xff]   ;;  %v10437_v49 = vld [vmem:[#allocation2 + $0x10] sm:$0xff]  }
  0x6b   : > { %v10413_v56 = vld [vmem:[#allocation2 + $0x58] sm:$0xff]   ;;  %9821 = vmatpush3.bf16.msra.mxu0 %v10422_v43  ;;  %v801_v22 = vrot.slane %v799_v12, 6  ;;  %v804_v23 = vrot.slane %v802_v2, 7  ;;  %v839_v43 = vor.u32 %v838_v33, %v835_v29  ;;  %792 = vst [vmem:[#allocation2 + $0x74] sm:$0x1] %v791_v40  ;;  %v816_v59 = vrot.slane %v814_v34, 4 }
  0x6c   : > { %9543 = vmatmul.mubr.bf16.gmra.mrb[20].mxu1 %v10413_v56  ;;  %v10419_v55 = vld [vmem:[#allocation2 + $0x68] sm:$0xff]   ;;  %v842_v63 = vshrl.u32 %v9267_v53, 16  ;;  %v845_v10 = vshll.u32 %v9267_v53, 16  ;;  %v9268_v0 = vpack.c.bf16 %v339_v28, %v339_v28  ;;  %v3897_v41 = vsel %vm3882_vm9, %v3894_v54, %v3896_v44  ;;  %v10430_v56 = vld [vmem:[%s13234_s1 + $0x78] sm:$0xff]   ;;  %v10432_v12 = vld [vmem:[#allocation2 + $0x50] sm:$0xff]  }
  0x6d   : > { %v805_v8 = vor.u32 %v804_v23, %v801_v22  ;;  %v855_v60 = vsel %vm10762_vm15, %v839_v43, %v854_v19  ;;  %v825_v57 = vsel %vm10749_vm14, %v816_v59, %v824_v37  ;;  %v840_v42 = vrot.slane %v839_v43, 4  ;;  %v888_v2 = vld [vmem:[#allocation2 + $0x84] sm:$0x8]  ;;  %9572 = vmatprep.subr.bf16.mxu1 %v10430_v56  ;;  %v10433_v32 = vld [vmem:[#allocation2 + $0x58] sm:$0xff]   ;;  %v892_v33 = vld [vmem:[#allocation2 + $0x8c] sm:$0xf] }
  0x6e   : > { %9787 = vmatmul.mubr.bf16.gmra.mrb[4].mxu0 %v3891_v46  ;;  %v10428_v46 = vld [vmem:[%s13234_s1 + $0x190] sm:$0xff]   ;;  %856 = vst [vmem:[#allocation2 + $0x7c] sm:$0xc] %v855_v60  ;;  %826 = vst [vmem:[#allocation2 + $0x7c] sm:$0x3] %v825_v57  ;;  %v844_v4 = vrot.slane %v842_v63, 5  ;;  %v9269_v13 = vpack.c.bf16 %v340_v9, %v340_v9  ;;  %9573 = vmatpush3.bf16.msra.mxu1 %v10430_v56  ;;  %v3899_v1 = vsel %vm3882_vm9, %v3896_v44, %v3898_v61 }
  0x6f   : > { %9790 = vmatprep.mubr.bf16.mxu0 %v3893_v5  ;;  %v10418_v45 = vld [vmem:[#allocation2 + $0x60] sm:$0xff]   ;;  %v821_v51 = vsel %vm10735_vm11, %v805_v8, %v820_v16  ;;  %v806_v52 = vrot.slane %v805_v8, 4  ;;  %9822 = vmatprep.subr.bf16.mxu0 %v10428_v46  ;;  %v847_v7 = vrot.slane %v845_v10, 6  ;;  %v867_v6 = vshll.u32 %v9268_v0, 16  ;;  %v10436_v40 = vld [vmem:[#allocation2 + $0x8] sm:$0xff]   ;;  %v10442_v63 = vld [vmem:[#allocation2 + $0x18] sm:$0xff]  }
  0x70   : > { %822 = vst [vmem:[#allocation2 + $0x74] sm:$0xe] %v821_v51  ;;  %9546 = vmatprep.mubr.bf16.mxu1 %v10418_v45  ;;  %9823 = vmatpush3.bf16.msra.mxu0 %v10428_v46  ;;  %v870_v11 = vshrl.u32 %v9268_v0, 16  ;;  %v3900_v5 = vrot.slane %v10432_v12, 2  ;;  %v876_v15 = vshll.u32 %v9269_v13, 16  ;;  %v880_v16 = vshrl.u32 %v9269_v13, 16 }
  0x71   : > { %v815_v35 = vsel %vm10743_vm12, %v806_v52, %v814_v34  ;;  %v848_v30 = vor.u32 %v847_v7, %v844_v4  ;;  %v869_v54 = vrot.slane %v867_v6, 5  ;;  %9824 = vmatprep.subr.bf16.mxu0 %v10434_v27  ;;  %v3902_v62 = vrot.slane %v10433_v32, 2  ;;  %v10438_v45 = vld [vmem:[%s13234_s1 + $0x80] sm:$0xff]  }
  0x72   : > { %823 = vst.msk [vmem:[#allocation2 + $0x78] sm:$0xf] %vm13240_vm4, %v815_v35  ;;  %v872_v14 = vrot.slane %v870_v11, 4  ;;  %v878_v26 = vrot.slane %v876_v15, 5  ;;  %v882_v19 = vrot.slane %v880_v16, 4  ;;  %v3901_v37 = vsel %vm3882_vm9, %v3898_v61, %v3900_v5  ;;  %v10439_v52 = vld [vmem:[#allocation2 + $0x60] sm:$0xff]   ;;  %9610 = vmatprep.subr.bf16.mxu1 %v10438_v45 }
  0x73   : > { %v849_v20 = vsel %vm10779_vm2, %v840_v42, %v848_v30  ;;  %v850_v22 = vrot.slane %v848_v30, 4  ;;  %v889_v23 = vsel %vm10800_vm6, %v869_v54, %v888_v2  ;;  %v1499_v43 = vshll.u32 %v10435_v50, 16  ;;  %v10443_v6 = vld [vmem:[#allocation2 + $0x20] sm:$0xff]   ;;  %v11094_v15 = vld [vmem:[#allocation2 + $0x30] sm:$0xff]  }
  0x74   : > { %9547 = vmatmul.mubr.bf16.gmra.mrb[24].mxu1 %v10419_v55  ;;  %v873_v25 = vor.u32 %v872_v14, %v869_v54  ;;  %857 = vst.msk [vmem:[#allocation2 + $0x80] sm:$0xf] %vm13240_vm4, %v849_v20  ;;  %890 = vst [vmem:[#allocation2 + $0x84] sm:$0x8] %v889_v23  ;;  %v883_v34 = vor.u32 %v882_v19, %v878_v26  ;;  %9825 = vmatpush3.bf16.msra.mxu0 %v10434_v27  ;;  %v1497_v44 = vshrl.u32 %v10435_v50, 16  ;;  %v10440_v55 = vld [vmem:[#allocation2 + $0x68] sm:$0xff]  }
  0x75   : > { %v859_v18 = vsel %vm10768_vm0, %v850_v22, %v858_v48  ;;  %v1504_v46 = vshll.u32 %v10436_v40, 16  ;;  %v1501_v51 = vrot.slane %v1499_v43, 1  ;;  %vm1495_vm11 = vsmask.f32 7424  ;;  %9826 = vmatprep.subr.bf16.mxu0 %v10441_v31  ;;  %v10447_v54 = vld [vmem:[%s13234_s1 + $0x1a8] sm:$0xff]   ;;  %v341_v43 = vld [vmem:[%s10705_s20 + $0xf0] sm:$0xff] }
  0x76   : > { %9791 = vmatmul.mubr.bf16.gmra.mrb[8].mxu0 %v3895_v58  ;;  %v874_v29 = vrot.slane %v873_v25, 4  ;;  %860 = vst [vmem:[#allocation2 + $0x84] sm:$0x7] %v859_v18  ;;  %v884_v21 = vrot.slane %v883_v34, 4  ;;  %v3904_v53 = vrot.slane %v10439_v52, 2  ;;  %v3903_v59 = vsel %vm3882_vm9, %v3900_v5, %v3902_v62  ;;  %v11092_v14 = vld [vmem:[#allocation2 + $0x28] sm:$0xff]  }
  0x77   : > { %9794 = vmatprep.mubr.bf16.mxu0 %v3897_v41  ;;  %v10424_v17 = vld [vmem:[#allocation2 + $0x70] sm:$0xff]   ;;  %v1506_v60 = vrot.slane %v1504_v46, 1  ;;  %v1502_v61 = vor.u32 %v1501_v51, %v1497_v44  ;;  %v1512_v28 = vshll.u32 %v10437_v49, 16  ;;  %v1508_v10 = vshrl.u32 %v10436_v40, 16  ;;  %v10445_v20 = vld [vmem:[%s13234_s1 + $0x88] sm:$0xff]   ;;  %v342_v44 = vld [vmem:[%s10705_s20 + $0xf8] sm:$0xff] }
  0x78   : > { %9550 = vmatprep.mubr.bf16.mxu1 %v10424_v17  ;;  %v879_v39 = vsel %vm10812_vm8, %v874_v29, %v878_v26  ;;  %v893_v24 = vsel %vm10819_vm10, %v884_v21, %v892_v33  ;;  %v3905_v35 = vsel %vm3882_vm9, %v3902_v62, %v3904_v53  ;;  %v3906_v0 = vrot.slane %v10440_v55, 2  ;;  %9827 = vmatpush3.bf16.msra.mxu0 %v10441_v31  ;;  %v10444_v4 = vld [vmem:[#allocation2 + $0x70] sm:$0xff]   ;;  %v10458_v52 = vld [vmem:[%s13234_s1 + $0x98] sm:$0xff]   ;;  %s9239_s20 = sshll.u32 %s13798_s2, 7 }
  0x79   : > { %v10425_v8 = vld [vmem:[#allocation2 + $0x78] sm:$0xff]   ;;  %891 = vst.msk [vmem:[#allocation2 + $0x88] sm:$0xf] %vm13240_vm4, %v879_v39  ;;  %894 = vst [vmem:[#allocation2 + $0x8c] sm:$0xf] %v893_v24  ;;  %v1507_v41 = vsel %vm1495_vm11, %v1502_v61, %v1506_v60  ;;  %v1516_v42 = vshrl.u32 %v10437_v49, 16  ;;  %v1510_v11 = vor.u32 %v1508_v10, %v1506_v60  ;;  %9828 = vmatprep.subr.bf16.mxu0 %v10447_v54  ;;  %s12406_s22 = scalar_lea.vmem %s13237_s4, %s9239_s20 }
  0x7a   : > { %v1520_v56 = vshll.u32 %v10442_v63, 16  ;;  %v1514_v7 = vrot.slane %v1512_v28, 1  ;;  %v3908_v9 = vrot.slane %v10444_v4, 2  ;;  %v3907_v12 = vsel %vm3882_vm9, %v3904_v53, %v3906_v0  ;;  %v10446_v48 = vld [vmem:[#allocation2 + $0x78] sm:$0xff]   ;;  %v10452_v40 = vld [vmem:[%s13234_s1 + $0x90] sm:$0xff]  }
  0x7b   : > { %v1528_v5 = vshll.u32 %v10443_v6, 16  ;;  %v1524_v17 = vshrl.u32 %v10442_v63, 16  ;;  %v3910_v22 = vrot.slane %v10446_v48, 2  ;;  %v1532_v26 = vshrl.u32 %v10443_v6, 16  ;;  %v920_v31 = vld [vmem:[#allocation2 + $0x90] sm:$0xf] }
  0x7c   : > { %9551 = vmatmul.mubr.bf16.gmra.mrb[28].mxu1 %v10425_v8  ;;  %v1518_v2 = vor.u32 %v1516_v42, %v1514_v7  ;;  %v1522_v13 = vrot.slane %v1520_v56, 1  ;;  %v3909_v30 = vsel %vm3882_vm9, %v3906_v0, %v3908_v9  ;;  %v1515_v16 = vsel %vm1495_vm11, %v1510_v11, %v1514_v7  ;;  %9829 = vmatpush3.bf16.msra.mxu0 %v10447_v54  ;;  %v11109_v8 = vld [vmem:[#allocation2 + $0x38] sm:$0xff]   ;;  %v10461_v48 = vld [vmem:[#allocation2 + $0x50] sm:$0xff]  }
  0x7d   : > { %v10429_v58 = vld [vmem:[#allocation2 + $0x80] sm:$0xff]   ;;  %v1536_v19 = vshll.u32 %v11092_v14, 16  ;;  %v1530_v18 = vrot.slane %v1528_v5, 1  ;;  %v1544_v29 = vshll.u32 %v11094_v15, 16  ;;  %v3911_v50 = vsel %vm3882_vm9, %v3908_v9, %v3910_v22  ;;  %v924_v56 = vld [vmem:[#allocation2 + $0x98] sm:$0x1] }
  0x7e   : > { %9795 = vmatmul.mubr.bf16.gmra.mrb[12].mxu0 %v3899_v1  ;;  %9554 = vmatprep.mubr.bf16.mxu1 %v10429_v58  ;;  %v10450_v23 = vld [vmem:[#allocation2 + $0x80] sm:$0xff]   ;;  %v1523_v25 = vsel %vm1495_vm11, %v1518_v2, %v1522_v13  ;;  %v10453_v1 = vld [vmem:[%s13234_s1 + $0x1b0] sm:$0xff]   ;;  %v1526_v33 = vor.u32 %v1524_v17, %v1522_v13  ;;  %v1540_v21 = vshrl.u32 %v11092_v14, 16  ;;  %v1548_v49 = vshrl.u32 %v11094_v15, 16  ;;  %v10459_v58 = vld [vmem:[%s13234_s1 + $0x1b8] sm:$0xff]  }
  0x7f   : > { %9798 = vmatprep.mubr.bf16.mxu0 %v3901_v37  ;;  %v3912_v32 = vrot.slane %v10450_v23, 2  ;;  %v1534_v34 = vor.u32 %v1532_v26, %v1530_v18  ;;  %v1538_v37 = vrot.slane %v1536_v19, 1  ;;  %9830 = vmatprep.subr.bf16.mxu0 %v10453_v1  ;;  %v1546_v46 = vrot.slane %v1544_v29, 1  ;;  %v10460_v9 = vld [vmem:[#allocation2 + $0x48] sm:$0xff]   ;;  %v10465_v15 = vld [vmem:[%s13234_s1 + $0xa0] sm:$0xff]   ;;  %v10466_v23 = vld [vmem:[#allocation2 + $0x58] sm:$0xff]  }
  0x80   : > { %v10431_v57 = vld [vmem:[#allocation2 + $0x88] sm:$0xff]   ;;  %9831 = vmatpush3.bf16.msra.mxu0 %v10453_v1  ;;  %v9270_v24 = vpack.c.bf16 %v341_v43, %v341_v43  ;;  %v9271_v51 = vpack.c.bf16 %v342_v44, %v342_v44  ;;  %v1531_v53 = vsel %vm1495_vm11, %v1526_v33, %v1530_v18  ;;  %v1552_v55 = vshll.u32 %v11109_v8, 16  ;;  %v10467_v44 = vld [vmem:[#allocation2 + $0x60] sm:$0xff]  }
  0x81   : > { %v11102_v27 = vld [vmem:[#allocation2 + $0x88] sm:$0xff]   ;;  %v3913_v39 = vsel %vm3882_vm9, %v3910_v22, %v3912_v32  ;;  %9832 = vmatprep.subr.bf16.mxu0 %v10459_v58  ;;  %v1542_v0 = vor.u32 %v1540_v21, %v1538_v37  ;;  %v1550_v4 = vor.u32 %v1548_v49, %v1546_v46  ;;  %v1556_v2 = vshrl.u32 %v11109_v8, 16  ;;  %v10462_v22 = vld [vmem:[#allocation2 + $0x10] sm:$0xfc]  }
  0x82   : > { %v3914_v62 = vrot.slane %v11102_v27, 2  ;;  %v901_v60 = vshrl.u32 %v9270_v24, 16  ;;  %v904_v61 = vshll.u32 %v9270_v24, 16  ;;  %v909_v28 = vshrl.u32 %v9271_v51, 16  ;;  %v10471_v21 = vld [vmem:[%s13234_s1 + $0xa8] sm:$0xff]   ;;  %v10477_v27 = vld [vmem:[%s13234_s1 + $0xb0] sm:$0xff]  }
  0x83   : > { %v1568_v36 = vshll.u32 %v10460_v9, 16  ;;  %v4419_v18 = vrot.slane %v10463_v47, 2  ;;  %v4418_v29 = vrot.slane %v10462_v22, 2  ;;  %v1580_v33 = vshrl.u32 %v10461_v48, 16  ;;  %v10468_v49 = vld [vmem:[#allocation2 + $0x28] sm:$0xff]  }
  0x84   : > { %9555 = vmatmul.mubr.bf16.gmra.mrb[32].mxu1 %v10431_v57  ;;  %v903_v10 = vrot.slane %v901_v60, 7  ;;  %9833 = vmatpush3.bf16.msra.mxu0 %v10459_v58  ;;  %v3915_v57 = vsel %vm3882_vm9, %v3912_v32, %v3914_v62  ;;  %v911_v42 = vrot.slane %v909_v28, 7  ;;  %v1572_v32 = vshrl.u32 %v10460_v9, 16  ;;  %v10472_v58 = vld [vmem:[#allocation2 + $0x68] sm:$0xff]  }
  0x85   : > { %9574 = vmatprep.mubr.bf16.mxu1 %v1507_v41  ;;  %v1554_v41 = vrot.slane %v1552_v55, 1  ;;  %v1570_v19 = vrot.slane %v1568_v36, 1  ;;  %v1588_v60 = vshrl.u32 %v10466_v23, 16  ;;  %v10479_v36 = vld [vmem:[#allocation2 + $0x80] sm:$0xff]   ;;  %v10480_v22 = vld [vmem:[#allocation2 + $0x48] sm:$0xff]   ;;  %vm2142_vm12 = vcmask 1046528  }
  0x86   : > { %9799 = vmatmul.mubr.bf16.gmra.mrb[16].mxu0 %v3903_v59  ;;  %v1539_v59 = vsel %vm1495_vm11, %v1534_v34, %v1538_v37  ;;  %v906_v7 = vor.u32 %v904_v61, %v903_v10  ;;  %v907_v6 = vrot.slane %v903_v10, 4  ;;  %v10464_v34 = vld [vmem:[#allocation2 + $0x20] sm:$0xff]   ;;  %v1584_v37 = vshll.u32 %v10466_v23, 16 }
  0x87   : > { %9802 = vmatprep.mubr.bf16.mxu0 %v3905_v35  ;;  %v912_v35 = vshll.u32 %v9271_v51, 16  ;;  %v1558_v3 = vor.u32 %v1556_v2, %v1554_v41  ;;  %v1574_v24 = vor.u32 %v1572_v32, %v1570_v19  ;;  %v4420_v51 = vsel %vm3882_vm9, %v4418_v29, %v4419_v18  ;;  %v10484_v2 = vld [vmem:[%s13234_s1 + $0xb8] sm:$0xff]   ;;  %v10483_v32 = vld [vmem:[#allocation2 + $0x88] sm:$0xff]  }
  0x88   : > { %v921_v13 = vsel %vm10825_vm3, %v906_v7, %v920_v31  ;;  %v1586_v55 = vrot.slane %v1584_v37, 1  ;;  %v4423_v61 = vrot.slane %v10468_v49, 2  ;;  %v1600_v10 = vshll.u32 %v10472_v58, 16  ;;  %v10476_v7 = vld [vmem:[%s13234_s1 + $0x1c8] sm:$0xff]  }
  0x89   : > { %v914_v11 = vor.u32 %v912_v35, %v911_v42  ;;  %922 = vst [vmem:[#allocation2 + $0x90] sm:$0xf] %v921_v13  ;;  %v10470_v35 = vld [vmem:[#allocation2 + $0x30] sm:$0xff]   ;;  %v1624_v29 = vshll.u32 %v10479_v36, 16  ;;  %vm4953_vm14 = vsmask.f32 5376 }
  0x8a   : > { %v1602_v9 = vrot.slane %v1600_v10, 1  ;;  %vm5622_vm15 = vcmask 1044480  }
  0x8b   : > { %v915_v54 = vsel %vm10838_vm7, %v907_v6, %v914_v11  ;;  %v10478_v11 = vld [vmem:[#allocation2 + $0x78] sm:$0xff]  }
  0x8c   : > { %9575 = vmatmul.mubr.bf16.vlgmr.msra.gmra.mrb[0].mxu1 %v1515_v16  ;;  %v1555_v16 = vsel %vm1495_vm11, %v1550_v4, %v1554_v41  ;;  %923 = vst.msk [vmem:[#allocation2 + $0x94] sm:$0xf] %vm13240_vm4, %v915_v54 }
  0x8d   : > { %9611 = vmatpush3.bf16.msra.mxu1 %v10438_v45  ;;  %9578 = vmatprep.mubr.bf16.mxu1 %v1523_v25  ;;  %v10455_v45 = vld [vmem:[#allocation2 + $0x40] sm:$0xff]  }
  0x8e   : > { %9803 = vmatmul.mubr.bf16.gmra.mrb[20].mxu0 %v3907_v12  ;;  %9612 = vmatprep.subr.bf16.mxu1 %v10445_v20  ;;  %v1560_v63 = vshll.u32 %v10455_v45, 16  ;;  %v916_v12 = vrot.slane %v911_v42, 4  ;;  %v1564_v5 = vshrl.u32 %v10455_v45, 16  ;;  %v10469_v25 = vld [vmem:[%s13234_s1 + $0x1c0] sm:$0xff]   ;;  %v10474_v42 = vld [vmem:[#allocation2 + $0x38] sm:$0xff]  }
  0x8f   : > { %9806 = vmatprep.mubr.bf16.mxu0 %v3909_v30  ;;  %v1547_v30 = vsel %vm1495_vm11, %v1542_v0, %v1546_v46  ;;  %9870 = vmatprep.subr.bf16.mxu0 %v10469_v25  ;;  %v10473_v0 = vld [vmem:[#allocation2 + $0x70] sm:$0xff]   ;;  %v4427_v54 = vrot.slane %v10474_v42, 2 }
  0x90   : > { %v925_v14 = vsel %vm10847_vm5, %v916_v12, %v924_v56  ;;  %v1562_v17 = vrot.slane %v1560_v63, 1  ;;  %v1596_v63 = vshrl.u32 %v10467_v44, 16  ;;  %v1590_v56 = vor.u32 %v1588_v60, %v1586_v55 }
  0x91   : > { %9613 = vmatpush3.bf16.msra.mxu1 %v10445_v20  ;;  %926 = vst [vmem:[#allocation2 + $0x98] sm:$0x1] %v925_v14  ;;  %v1576_v20 = vshll.u32 %v10461_v48, 16  ;;  %v4425_v12 = vrot.slane %v10470_v35, 2  ;;  %v1608_v48 = vshll.u32 %v10473_v0, 16  ;;  %v10482_v14 = vld [vmem:[%s13234_s1 + $0x1d0] sm:$0xff]  }
  0x92   : > { %9614 = vmatprep.subr.bf16.mxu1 %v10452_v40  ;;  %v1566_v26 = vor.u32 %v1564_v5, %v1562_v17 }
  0x93   : > { %v1578_v1 = vrot.slane %v1576_v20, 1  ;;  %v10456_v8 = vld [vmem:[#allocation2 + $0x90] sm:$0xff]   ;;  %v4426_v20 = vsel %vm3882_vm9, %v4423_v61, %v4425_v12  ;;  %v1610_v47 = vrot.slane %v1608_v48, 1  ;;  %v4428_v23 = vsel %vm3882_vm9, %v4425_v12, %v4427_v54  ;;  %v10496_v12 = vld [vmem:[#allocation2 + $0x18] sm:$0xff]  }
  0x94   : > { %9579 = vmatmul.mubr.bf16.gmra.mrb[4].mxu1 %v1531_v53  ;;  %v3916_v43 = vrot.slane %v10456_v8, 2  ;;  %v4431_v8 = vrot.slane %v10480_v22, 2  ;;  %v10494_v48 = vld [vmem:[#allocation2 + $0x70] sm:$0xff]   ;;  %v10502_v22 = vld [vmem:[#allocation2 + $0x28] sm:$0xff]  }
  0x95   : > { %9582 = vmatprep.mubr.bf16.mxu1 %v1539_v59  ;;  %9615 = vmatpush3.bf16.msra.mxu1 %v10452_v40  ;;  %v1571_v40 = vsel %vm1495_vm11, %v1566_v26, %v1570_v19  ;;  %v1582_v53 = vor.u32 %v1580_v33, %v1578_v1  ;;  %v4421_v59 = vrot.slane %v10464_v34, 2  ;;  %v1579_v28 = vsel %vm1495_vm11, %v1574_v24, %v1578_v1  ;;  %v11184_v33 = vld [vmem:[%s13234_s1 + $0xc0] sm:$0xff]   ;;  %v10481_v34 = vld [vmem:[#allocation2 + $0x50] sm:$0xff]   ;;  %v10486_v24 = vld [vmem:[#allocation2 + $0x58] sm:$0xff]  }
  0x96   : > { %9807 = vmatmul.mubr.bf16.gmra.mrb[24].mxu0 %v3911_v50  ;;  %9616 = vmatprep.subr.bf16.mxu1 %v10458_v52  ;;  %v1563_v50 = vsel %vm1495_vm11, %v1558_v3, %v1562_v17  ;;  %v3917_v45 = vsel %vm3882_vm9, %v3914_v62, %v3916_v43  ;;  %v1592_v62 = vshll.u32 %v10467_v44, 16  ;;  %v10475_v17 = vld [vmem:[#allocation2 + $0x40] sm:$0xff]  }
  0x97   : > { %9810 = vmatprep.mubr.bf16.mxu0 %v3913_v39  ;;  %v1587_v31 = vsel %vm1495_vm11, %v1582_v53, %v1586_v55  ;;  %v4424_v4 = vsel %vm3882_vm9, %v4421_v59, %v4423_v61  ;;  %v4429_v1 = vrot.slane %v10475_v17, 2  ;;  %v4433_v53 = vrot.slane %v10481_v34, 2  ;;  %v10497_v17 = vld [vmem:[#allocation2 + $0x20] sm:$0xff]   ;;  %v10505_v34 = vld [vmem:[#allocation2 + $0x90] sm:$0xff]  }
  0x98   : > { %v10457_v39 = vld [vmem:[#allocation2 + $0x98] ss:$0 sps:$4 sm:$0x33]   ;;  %v1594_v41 = vrot.slane %v1592_v62, 1  ;;  %v1636_v55 = vshrl.u32 %v10483_v32, 16  ;;  %v10501_v62 = vld [vmem:[%s13234_s1 + $0x1e8] sm:$0xff]  }
  0x99   : > { %9617 = vmatpush3.bf16.msra.mxu1 %v10458_v52  ;;  %v3918_v46 = vrot.slane %v10457_v39, 2  ;;  %v1628_v39 = vshrl.u32 %v10479_v36, 16  ;;  %v4430_v44 = vsel %vm3882_vm9, %v4427_v54, %v4429_v1  ;;  %v4434_v35 = vsel %vm3882_vm9, %v4431_v8, %v4433_v53 }
  0x9a   : > { %9618 = vmatprep.subr.bf16.mxu1 %v10465_v15  ;;  %v1598_v6 = vor.u32 %v1596_v63, %v1594_v41  ;;  %v1595_v13 = vsel %vm1495_vm11, %v1590_v56, %v1594_v41  ;;  %v10507_v56 = vld [vmem:[%s13234_s1 + $0x1f0] sm:$0xff]  }
  0x9b   : > { %v3919_v52 = vsel %vm3882_vm9, %v3916_v43, %v3918_v46  ;;  %v10495_v43 = vld [vmem:[%s13234_s1 + $0x1e0] sm:$0xff]   ;;  %v1626_v46 = vrot.slane %v1624_v29, 1 }
  0x9c   : > { %9583 = vmatmul.mubr.bf16.gmra.mrb[8].mxu1 %v1547_v30  ;;  %v1604_v30 = vshrl.u32 %v10472_v58, 16  ;;  %v1603_v5 = vsel %vm1495_vm11, %v1598_v6, %v1602_v9  ;;  %v10491_v6 = vld [vmem:[#allocation2 + $0x10] sm:$0xff]  }
  0x9d   : > { %9586 = vmatprep.mubr.bf16.mxu1 %v1555_v16  ;;  %9619 = vmatpush3.bf16.msra.mxu1 %v10465_v15  ;;  %v1612_v15 = vshrl.u32 %v10473_v0, 16  ;;  %v1616_v16 = vshll.u32 %v10478_v11, 16 }
  0x9e   : > { %9811 = vmatmul.mubr.bf16.gmra.mrb[28].mxu0 %v3915_v57  ;;  %9620 = vmatprep.subr.bf16.mxu1 %v10471_v21  ;;  %v4422_v57 = vsel %vm3882_vm9, %v4419_v18, %v4421_v59  ;;  %v1606_v3 = vor.u32 %v1604_v30, %v1602_v9  ;;  %v1620_v18 = vshrl.u32 %v10478_v11, 16  ;;  %v10490_v59 = vld [vmem:[#allocation2 + $0x8] sm:$0xff]   ;;  %v2146_v30 = vrot.slane %v10491_v6, 1 }
  0x9f   : > { %9814 = vmatprep.mubr.bf16.mxu0 %v3917_v45  ;;  %v1614_v26 = vor.u32 %v1612_v15, %v1610_v47  ;;  %v1618_v19 = vrot.slane %v1616_v16, 1  ;;  %v4432_v45 = vsel %vm3882_vm9, %v4429_v1, %v4431_v8  ;;  %v2144_v42 = vrot.slane %v10490_v59, 1  ;;  %v10506_v1 = vld [vmem:[%s13234_s1 + $0xd0] sm:$0xff]  }
  0xa0   : > { %v4441_v15 = vrot.slane %v10494_v48, 2 }
  0xa1   : > { %9621 = vmatpush3.bf16.msra.mxu1 %v10471_v21  ;;  %v1619_v37 = vsel %vm1495_vm11, %v1614_v26, %v1618_v19  ;;  %v10485_v21 = vld [vmem:[#allocation2 + $0x90] ss:$0 sps:$4 sm:$0x11]   ;;  %v1622_v49 = vor.u32 %v1620_v18, %v1618_v19  ;;  %v2147_v16 = vsel %vm2142_vm12, %v2144_v42, %v2146_v30  ;;  %v10504_v19 = vld [vmem:[#allocation2 + $0x88] sm:$0xff]  }
  0xa2   : > { %9622 = vmatprep.subr.bf16.mxu1 %v10477_v27  ;;  %v1640_v58 = vshll.u32 %v10485_v21, 16  ;;  %v10503_v18 = vld [vmem:[#allocation2 + $0x30] sm:$0xff]   ;;  %v10517_v21 = vld [vmem:[#allocation2 + $0x18] sm:$0xff]  }
  0xa3   : > { %v1627_v60 = vsel %vm1495_vm11, %v1622_v49, %v1626_v46  ;;  %v10516_v49 = vld [vmem:[#allocation2 + $0x10] sm:$0xfc]   ;;  %v4963_v59 = vshrl.u32 %v10517_v21, 16 }
  0xa4   : > { %9587 = vmatmul.mubr.bf16.gmra.mrb[12].mxu1 %v1563_v50  ;;  %v1611_v50 = vsel %vm1495_vm11, %v1606_v3, %v1610_v47  ;;  %v1642_v10 = vrot.slane %v1640_v58, 1  ;;  %v10499_v47 = vld [vmem:[%s13234_s1 + $0xc8] sm:$0xff]  }
  0xa5   : > { %9590 = vmatprep.mubr.bf16.mxu1 %v1571_v40  ;;  %9623 = vmatpush3.bf16.msra.mxu1 %v10477_v27  ;;  %v1632_v40 = vshll.u32 %v10483_v32, 16  ;;  %v4435_v27 = vrot.slane %v10486_v24, 2  ;;  %v2152_v32 = vrot.slane %v10502_v22, 1  ;;  %v11238_v58 = vld [vmem:[#allocation2 + $0x48] sm:$0xff]  }
  0xa6   : > { %9815 = vmatmul.mubr.bf16.gmra.mrb[32].mxu0 %v3919_v52  ;;  %9624 = vmatprep.subr.bf16.mxu1 %v10484_v2 }
  0xa7   : > { %9834 = vmatprep.mubr.bf16.mxu0 %v4420_v51  ;;  %v1630_v51 = vor.u32 %v1628_v39, %v1626_v46  ;;  %v1634_v52 = vrot.slane %v1632_v40, 1  ;;  %v4436_v0 = vsel %vm3882_vm9, %v4433_v53, %v4435_v27  ;;  %v10512_v40 = vld [vmem:[%s13234_s1 + $0xd8] sm:$0xff]   ;;  %v10511_v46 = vld [vmem:[#allocation2 + $0xa0] ss:$0 sps:$4 sm:$0x33]  }
  0xa8   : > { %v10519_v53 = vld [vmem:[%s13234_s1 + $0xe0] sm:$0xff]  }
  0xa9   : > { %9625 = vmatpush3.bf16.msra.mxu1 %v10484_v2  ;;  %v1635_v61 = vsel %vm1495_vm11, %v1630_v51, %v1634_v52  ;;  %v1638_v63 = vor.u32 %v1636_v55, %v1634_v52  ;;  %v10510_v51 = vld [vmem:[#allocation2 + $0x98] sm:$0xff]   ;;  %v4449_v55 = vrot.slane %v10505_v34, 2 }
  0xaa   : > { %9662 = vmatprep.subr.bf16.mxu1 %v11184_v33 }
  0xac   : > { %9591 = vmatmul.mubr.bf16.gmra.mrb[16].mxu1 %v1579_v28  ;;  %v10489_v28 = vld [vmem:[#allocation2] sm:$0xfe]  }
  0xad   : > { %9594 = vmatprep.mubr.bf16.mxu1 %v1587_v31  ;;  %v10487_v31 = vld [vmem:[#allocation2 + $0x60] sm:$0xff]   ;;  %v2143_v41 = vrot.slane %v10489_v28, 1  ;;  %v4451_v28 = vrot.slane %v10510_v51, 2 }
  0xae   : > { %9835 = vmatmul.mubr.bf16.vlgmr.msra.gmra.mrb[0].mxu0 %v4422_v57  ;;  %v10493_v57 = vld [vmem:[#allocation2 + $0x68] sm:$0xff]  }
  0xaf   : > { %9838 = vmatprep.mubr.bf16.mxu0 %v4424_v4  ;;  %9871 = vmatpush3.bf16.msra.mxu0 %v10469_v25  ;;  %v10488_v25 = vld [vmem:[%s13234_s1 + $0x1d8] sm:$0xff]   ;;  %v4437_v4 = vrot.slane %v10487_v31, 2  ;;  %v4439_v9 = vrot.slane %v10493_v57, 2  ;;  %v2145_v11 = vsel %vm2142_vm12, %v2143_v41, %v2144_v42  ;;  %v4965_v57 = vrot.slane %v4963_v59, 2  ;;  %v10518_v41 = vld [vmem:[#allocation2 + $0x20] sm:$0xff]   ;;  %v10522_v42 = vld [vmem:[#allocation2 + $0x28] sm:$0xff]  }
  0xb0   : > { %9872 = vmatprep.subr.bf16.mxu0 %v10476_v7  ;;  %v4452_v6 = vsel %vm3882_vm9, %v4449_v55, %v4451_v28  ;;  %v4972_v48 = vshrl.u32 %v10518_v41, 16 }
  0xb1   : > { %v4438_v2 = vsel %vm3882_vm9, %v4435_v27, %v4437_v4  ;;  %v4440_v54 = vsel %vm3882_vm9, %v4437_v4, %v4439_v9  ;;  %v4442_v3 = vsel %vm3882_vm9, %v4439_v9, %v4441_v15  ;;  %v4966_v27 = vshll.u32 %v10517_v21, 16 }
  0xb2   : > { %v4974_v22 = vrot.slane %v4972_v48, 2 }
  0xb3   : > { %9873 = vmatpush3.bf16.msra.mxu0 %v10476_v7  ;;  %v1643_v7 = vsel %vm1495_vm11, %v1638_v63, %v1642_v10  ;;  %v4453_v63 = vrot.slane %v10511_v46, 2  ;;  %v10525_v10 = vld [vmem:[%s13234_s1 + $0xe8] sm:$0xff]   ;;  %v11263_v46 = vld [vmem:[%s13234_s1 + $0x100] sm:$0xff]  }
  0xb4   : > { %9595 = vmatmul.mubr.bf16.gmra.mrb[20].mxu1 %v1595_v13  ;;  %9874 = vmatprep.subr.bf16.mxu0 %v10482_v14  ;;  %v10498_v13 = vld [vmem:[#allocation2 + $0x78] sm:$0xff]  }
  0xb5   : > { %9598 = vmatprep.mubr.bf16.mxu1 %v1603_v5  ;;  %v2148_v5 = vrot.slane %v10496_v12, 1  ;;  %v4443_v36 = vrot.slane %v10498_v13, 2  ;;  %v10515_v12 = vld [vmem:[#allocation2 + $0x50] sm:$0xff]   ;;  %v4981_v13 = vshrl.u32 %v10522_v42, 16 }
  0xb6   : > { %9839 = vmatmul.mubr.bf16.gmra.mrb[4].mxu0 %v4426_v20 }
  0xb7   : > { %9842 = vmatprep.mubr.bf16.mxu0 %v4428_v23  ;;  %9875 = vmatpush3.bf16.msra.mxu0 %v10482_v14  ;;  %v10513_v14 = vld [vmem:[%s13234_s1 + $0x1f8] sm:$0xff]   ;;  %v2149_v20 = vsel %vm2142_vm12, %v2146_v30, %v2148_v5  ;;  %v10500_v23 = vld [vmem:[#allocation2 + $0x80] sm:$0xff]   ;;  %v4444_v26 = vsel %vm3882_vm9, %v4441_v15, %v4443_v36 }
  0xb8   : > { %9876 = vmatprep.subr.bf16.mxu0 %v10488_v25  ;;  %v4445_v29 = vrot.slane %v10500_v23, 2  ;;  %v4983_v23 = vrot.slane %v4981_v13, 2 }
  0xbb   : > { %9877 = vmatpush3.bf16.msra.mxu0 %v10488_v25  ;;  %v2150_v25 = vrot.slane %v10497_v17, 1  ;;  %v4454_v17 = vsel %vm3882_vm9, %v4451_v28, %v4453_v63 }
  0xbc   : > { %9599 = vmatmul.mubr.bf16.gmra.mrb[24].mxu1 %v1611_v50  ;;  %9878 = vmatprep.subr.bf16.mxu0 %v10495_v43  ;;  %v10508_v50 = vld [vmem:[#allocation2 + $0x38] sm:$0xff]  }
  0xbd   : > { %9602 = vmatprep.mubr.bf16.mxu1 %v1619_v37  ;;  %v2151_v8 = vsel %vm2142_vm12, %v2148_v5, %v2150_v25  ;;  %v11226_v37 = vld [vmem:[%s13234_s1 + $0x200] sm:$0xff]   ;;  %v2153_v39 = vsel %vm2142_vm12, %v2150_v25, %v2152_v32  ;;  %v2156_v52 = vrot.slane %v10508_v50, 1  ;;  %v4984_v5 = vshll.u32 %v10522_v42, 16  ;;  %v10535_v42 = vld [vmem:[#allocation2 + $0x50] sm:$0xff]  }
  0xbe   : > { %9843 = vmatmul.mubr.bf16.gmra.mrb[8].mxu0 %v4430_v44  ;;  %v10509_v44 = vld [vmem:[#allocation2 + $0x40] sm:$0xff]   ;;  %v5026_v13 = vshrl.u32 %v10535_v42, 16 }
  0xbf   : > { %9846 = vmatprep.mubr.bf16.mxu0 %v4432_v45  ;;  %9879 = vmatpush3.bf16.msra.mxu0 %v10495_v43  ;;  %v4446_v43 = vsel %vm3882_vm9, %v4443_v36, %v4445_v29  ;;  %v2154_v45 = vrot.slane %v10503_v18, 1  ;;  %v10524_v36 = vld [vmem:[#allocation2 + $0x30] sm:$0xff]  }
  0xc0   : > { %9880 = vmatprep.subr.bf16.mxu0 %v10501_v62  ;;  %v4990_v18 = vshrl.u32 %v10524_v36, 16  ;;  %v4993_v50 = vshll.u32 %v10524_v36, 16 }
  0xc1   : > { %v2157_v31 = vsel %vm2142_vm12, %v2154_v45, %v2156_v52 }
  0xc2   : > { %v4995_v51 = vrot.slane %v4993_v50, 3 }
  0xc3   : > { %9881 = vmatpush3.bf16.msra.mxu0 %v10501_v62  ;;  %v2155_v62 = vsel %vm2142_vm12, %v2152_v32, %v2154_v45  ;;  %v10530_v45 = vld [vmem:[%s13234_s1 + $0x208] sm:$0xff]  }
  0xc4   : > { %9603 = vmatmul.mubr.bf16.gmra.mrb[28].mxu1 %v1627_v60  ;;  %9882 = vmatprep.subr.bf16.mxu0 %v10507_v56  ;;  %v4955_v60 = vshrl.u32 %v10516_v49, 16 }
  0xc5   : > { %9606 = vmatprep.mubr.bf16.mxu1 %v1635_v61  ;;  %v2158_v61 = vrot.slane %v10509_v44, 1  ;;  %v10529_v44 = vld [vmem:[#allocation2 + $0x40] sm:$0xff]  }
  0xc6   : > { %9847 = vmatmul.mubr.bf16.gmra.mrb[12].mxu0 %v4434_v35  ;;  %v4958_v35 = vshll.u32 %v10516_v49, 16  ;;  %v4957_v4 = vrot.slane %v4955_v60, 2  ;;  %v4992_v49 = vrot.slane %v4990_v18, 2  ;;  %v10527_v60 = vld [vmem:[#allocation2 + $0x70] sm:$0xff]  }
  0xc7   : > { %9850 = vmatprep.mubr.bf16.mxu0 %v4436_v0  ;;  %9883 = vmatpush3.bf16.msra.mxu0 %v10507_v56  ;;  %v2160_v0 = vrot.slane %v11238_v58, 1  ;;  %v2159_v30 = vsel %vm2142_vm12, %v2156_v52, %v2158_v61  ;;  %v10534_v52 = vld [vmem:[#allocation2 + $0x48] sm:$0xff]  }
  0xc8   : > { %9884 = vmatprep.subr.bf16.mxu0 %v10513_v14  ;;  %v4960_v9 = vrot.slane %v4958_v35, 3  ;;  %v5017_v28 = vshrl.u32 %v10534_v52, 16  ;;  %v5020_v35 = vshll.u32 %v10534_v52, 16 }
  0xc9   : > { %v2161_v15 = vsel %vm2142_vm12, %v2158_v61, %v2160_v0  ;;  %v5011_v61 = vshll.u32 %v10529_v44, 16 }
  0xcb   : > { %9885 = vmatpush3.bf16.msra.mxu0 %v10513_v14 }
  0xcc   : > { %9607 = vmatmul.mubr.bf16.gmra.mrb[32].mxu1 %v1643_v7  ;;  %9922 = vmatprep.subr.bf16.mxu0 %v11226_v37  ;;  %v4968_v7 = vrot.slane %v4966_v27, 3  ;;  %v5008_v27 = vshrl.u32 %v10529_v44, 16 }
  0xcd   : > { %9626 = vmatprep.mubr.bf16.mxu1 %v2145_v11  ;;  %v10531_v11 = vld [vmem:[%s13234_s1 + $0xf0] sm:$0xff]  }
  0xce   : > { %9851 = vmatmul.mubr.bf16.gmra.mrb[16].mxu0 %v4438_v2  ;;  %v4975_v2 = vshll.u32 %v10518_v41, 16  ;;  %v4969_v14 = vor.u32 %v4968_v7, %v4965_v57  ;;  %v10532_v57 = vld [vmem:[#allocation2 + $0x78] sm:$0xff]   ;;  %v2170_v41 = vrot.slane %v10527_v60, 1  ;;  %v5019_v7 = vrot.slane %v5017_v28, 2 }
  0xcf   : > { %9854 = vmatprep.mubr.bf16.mxu0 %v4440_v54  ;;  %v4961_v54 = vor.u32 %v4960_v9, %v4957_v4  ;;  %v5013_v4 = vrot.slane %v5011_v61, 3  ;;  %v2172_v48 = vrot.slane %v10532_v57, 1  ;;  %v10551_v60 = vld [vmem:[#allocation2 + $0x78] sm:$0xff]  }
  0xd0   : > { %v10563_v61 = vld [vmem:[%s13234_s1 + $0x238] sm:$0xff]   ;;  %v5071_v57 = vshrl.u32 %v10551_v60, 16 }
  0xd1   : > { %v4970_v25 = vsel %vm4953_vm14, %v4961_v54, %v4969_v14  ;;  %v5029_v54 = vshll.u32 %v10535_v42, 16  ;;  %v2173_v36 = vsel %vm2142_vm12, %v2170_v41, %v2172_v48 }
  0xd4   : > { %9627 = vmatmul.mubr.bf16.vlgmr.msra.gmra.mrb[0].mxu1 %v2147_v16  ;;  %v10520_v16 = vld [vmem:[#allocation2 + $0x58] sm:$0xff]  }
  0xd5   : > { %9663 = vmatpush3.bf16.msra.mxu1 %v11184_v33  ;;  %9630 = vmatprep.mubr.bf16.mxu1 %v2149_v20  ;;  %v4447_v33 = vrot.slane %v10504_v19, 2  ;;  %v10538_v20 = vld [vmem:[%s13234_s1 + $0xf8] sm:$0xff]   ;;  %v2164_v32 = vrot.slane %v10520_v16, 1 }
  0xd6   : > { %9664 = vmatprep.subr.bf16.mxu1 %v10499_v47  ;;  %9855 = vmatmul.mubr.bf16.gmra.mrb[20].mxu0 %v4442_v3  ;;  %v4977_v3 = vrot.slane %v4975_v2, 3  ;;  %v10528_v19 = vld [vmem:[#allocation2 + $0x38] sm:$0xff]   ;;  %v10533_v2 = vld [vmem:[#allocation2 + $0x80] sm:$0xff]  }
  0xd7   : > { %9858 = vmatprep.mubr.bf16.mxu0 %v4444_v26  ;;  %v4448_v24 = vsel %vm3882_vm9, %v4445_v29, %v4447_v33  ;;  %v4450_v56 = vsel %vm3882_vm9, %v4447_v33, %v4449_v55  ;;  %v4986_v26 = vrot.slane %v4984_v5, 3  ;;  %v4999_v34 = vshrl.u32 %v10528_v19, 16 }
  0xd8   : > { %v4978_v29 = vor.u32 %v4977_v3, %v4974_v22  ;;  %v10541_v22 = vld [vmem:[#allocation2 + $0x60] sm:$0xff]  }
  0xd9   : > { %9665 = vmatpush3.bf16.msra.mxu1 %v10499_v47  ;;  %v2162_v47 = vrot.slane %v10515_v12, 1  ;;  %v4987_v33 = vor.u32 %v4986_v26, %v4983_v23  ;;  %v5001_v55 = vrot.slane %v4999_v34, 2  ;;  %v10542_v12 = vld [vmem:[%s13234_s1 + $0x218] sm:$0xff]   ;;  %v5028_v23 = vrot.slane %v5026_v13, 2 }
  0xda   : > { %9666 = vmatprep.subr.bf16.mxu1 %v10506_v1 }
  0xdc   : > { %9631 = vmatmul.mubr.bf16.gmra.mrb[4].mxu1 %v2151_v8  ;;  %v2163_v8 = vsel %vm2142_vm12, %v2160_v0, %v2162_v47 }
  0xdd   : > { %9634 = vmatprep.mubr.bf16.mxu1 %v2153_v39  ;;  %9667 = vmatpush3.bf16.msra.mxu1 %v10506_v1  ;;  %v10521_v1 = vld [vmem:[#allocation2 + $0x60] sm:$0xff]   ;;  %v5002_v39 = vshll.u32 %v10528_v19, 16  ;;  %v10546_v19 = vld [vmem:[#allocation2 + $0x68] sm:$0xff]  }
  0xde   : > { %9668 = vmatprep.subr.bf16.mxu1 %v10512_v40  ;;  %9859 = vmatmul.mubr.bf16.gmra.mrb[24].mxu0 %v4446_v43  ;;  %v2166_v21 = vrot.slane %v10521_v1, 1  ;;  %v10526_v43 = vld [vmem:[#allocation2 + $0x68] sm:$0xff]   ;;  %v10539_v1 = vld [vmem:[#allocation2 + $0x90] ss:$0 sps:$4 sm:$0x11]   ;;  %v5056_v44 = vshll.u32 %v10546_v19, 16 }
  0xdf   : > { %9862 = vmatprep.mubr.bf16.mxu0 %v4448_v24  ;;  %v4979_v24 = vsel %vm4953_vm14, %v4969_v14, %v4978_v29  ;;  %v5004_v58 = vrot.slane %v5002_v39, 3  ;;  %v2168_v59 = vrot.slane %v10526_v43, 1  ;;  %v5053_v39 = vshrl.u32 %v10546_v19, 16  ;;  %v10544_v43 = vld [vmem:[#allocation2 + $0x10] sm:$0xff]  }
  0xe0   : > { %v2167_v63 = vsel %vm2142_vm12, %v2164_v32, %v2166_v21 }
  0xe1   : > { %9669 = vmatpush3.bf16.msra.mxu1 %v10512_v40  ;;  %v2165_v40 = vsel %vm2142_vm12, %v2162_v47, %v2164_v32  ;;  %v2169_v0 = vsel %vm2142_vm12, %v2166_v21, %v2168_v59  ;;  %v2171_v5 = vsel %vm2142_vm12, %v2168_v59, %v2170_v41  ;;  %v2174_v47 = vrot.slane %v10533_v2, 1 }
  0xe2   : > { %9670 = vmatprep.subr.bf16.mxu1 %v10519_v53  ;;  %v5055_v59 = vrot.slane %v5053_v39, 2 }
  0xe4   : > { %9635 = vmatmul.mubr.bf16.gmra.mrb[8].mxu1 %v2155_v62  ;;  %v4996_v62 = vor.u32 %v4995_v51, %v4992_v49  ;;  %v10558_v49 = vld [vmem:[%s13234_s1 + $0x230] sm:$0xff]   ;;  %v2178_v51 = vrot.slane %v10539_v1, 1  ;;  %v10561_v1 = vld [vmem:[#allocation2 + $0x98] sm:$0xff]  }
  0xe5   : > { %9638 = vmatprep.mubr.bf16.mxu1 %v2157_v31  ;;  %9671 = vmatpush3.bf16.msra.mxu1 %v10519_v53  ;;  %v4988_v53 = vsel %vm4953_vm14, %v4978_v29, %v4987_v33  ;;  %v10536_v31 = vld [vmem:[%s13234_s1 + $0x210] sm:$0xff]   ;;  %v10553_v29 = vld [vmem:[%s13234_s1 + $0x228] sm:$0xff]  }
  0xe6   : > { %9672 = vmatprep.subr.bf16.mxu1 %v10525_v10  ;;  %9863 = vmatmul.mubr.bf16.gmra.mrb[28].mxu0 %v4450_v56  ;;  %v4997_v56 = vsel %vm4953_vm14, %v4987_v33, %v4996_v62  ;;  %v5047_v33 = vshll.u32 %v10541_v22, 16 }
  0xe7   : > { %9866 = vmatprep.mubr.bf16.mxu0 %v4452_v6  ;;  %v10540_v6 = vld [vmem:[#allocation2 + $0x58] sm:$0xff]  }
  0xe8   : > { %v5035_v14 = vshrl.u32 %v10540_v6, 16  ;;  %v5038_v16 = vshll.u32 %v10540_v6, 16 }
  0xe9   : > { %9673 = vmatpush3.bf16.msra.mxu1 %v10525_v10  ;;  %v5005_v10 = vor.u32 %v5004_v58, %v5001_v55  ;;  %v10547_v55 = vld [vmem:[#allocation2 + $0x70] sm:$0xff]  }
  0xea   : > { %9674 = vmatprep.subr.bf16.mxu1 %v10531_v11  ;;  %v5037_v26 = vrot.slane %v5035_v14, 2  ;;  %v5040_v18 = vrot.slane %v5038_v16, 3  ;;  %v10550_v16 = vld [vmem:[#allocation2 + $0x28] sm:$0xff]  }
  0xeb   : > { %v5006_v9 = vsel %vm4953_vm14, %v4996_v62, %v5005_v10  ;;  %v5058_v62 = vrot.slane %v5056_v44, 3  ;;  %v5110_v44 = vshll.u32 %v10561_v1, 16 }
  0xec   : > { %9639 = vmatmul.mubr.bf16.gmra.mrb[12].mxu1 %v2159_v30  ;;  %v5041_v21 = vor.u32 %v5040_v18, %v5037_v26  ;;  %v10557_v26 = vld [vmem:[#allocation2 + $0x90] sm:$0xff]  }
  0xed   : > { %9642 = vmatprep.mubr.bf16.mxu1 %v2161_v15  ;;  %9675 = vmatpush3.bf16.msra.mxu1 %v10531_v11  ;;  %v5022_v11 = vrot.slane %v5020_v35, 3  ;;  %v2679_v35 = vrot.slane %v10544_v43, 1  ;;  %v5059_v42 = vor.u32 %v5058_v62, %v5055_v59  ;;  %v5107_v43 = vshrl.u32 %v10561_v1, 16 }
  0xee   : > { %9676 = vmatprep.subr.bf16.mxu1 %v10538_v20  ;;  %9867 = vmatmul.mubr.bf16.gmra.mrb[32].mxu0 %v4454_v17  ;;  %v10548_v17 = vld [vmem:[%s13234_s1 + $0x220] sm:$0xff]  }
  0xef   : > { %9886 = vmatprep.mubr.bf16.mxu0 %v4970_v25  ;;  %v5023_v15 = vor.u32 %v5022_v11, %v5019_v7  ;;  %v5031_v25 = vrot.slane %v5029_v54, 3  ;;  %v10552_v7 = vld [vmem:[#allocation2 + $0x80] sm:$0xff]  }
  0xf0   : > { %v5080_v14 = vshrl.u32 %v10552_v7, 16 }
  0xf1   : > { %9677 = vmatpush3.bf16.msra.mxu1 %v10538_v20  ;;  %v10537_v20 = vld [vmem:[#allocation2 + $0x88] sm:$0xff]   ;;  %v5032_v34 = vor.u32 %v5031_v25, %v5028_v23  ;;  %v10554_v23 = vld [vmem:[#allocation2 + $0x30] sm:$0xff]  }
  0xf2   : > { %9974 = vmatprep.subr.bf16.mxu1 %v11263_v46  ;;  %v2176_v50 = vrot.slane %v10537_v20, 1 }
  0xf3   : > { %v5033_v58 = vsel %vm4953_vm14, %v5023_v15, %v5032_v34 }
  0xf4   : > { %9643 = vmatmul.mubr.bf16.gmra.mrb[16].mxu1 %v2163_v8  ;;  %v5044_v8 = vshrl.u32 %v10541_v22, 16  ;;  %v2179_v41 = vsel %vm2142_vm12, %v2176_v50, %v2178_v51  ;;  %v10559_v51 = vld [vmem:[#allocation2 + $0x40] sm:$0xff]  }
  0xf5   : > { %9646 = vmatprep.mubr.bf16.mxu1 %v2165_v40  ;;  %v2175_v40 = vsel %vm2142_vm12, %v2172_v48, %v2174_v47  ;;  %v5073_v48 = vrot.slane %v5071_v57, 2 }
  0xf6   : > { %9887 = vmatmul.mubr.bf16.vlgmr.msra.gmra.mrb[0].mxu0 %v4979_v24  ;;  %v10543_v24 = vld [vmem:[#allocation2 + $0x8] sm:$0xfe]   ;;  %v5046_v52 = vrot.slane %v5044_v8, 2 }
  0xf7   : > { %9890 = vmatprep.mubr.bf16.mxu0 %v4988_v53  ;;  %9923 = vmatpush3.bf16.msra.mxu0 %v11226_v37  ;;  %v5010_v37 = vrot.slane %v5008_v27, 2  ;;  %v5049_v53 = vrot.slane %v5047_v33, 3  ;;  %v5042_v27 = vsel %vm4953_vm14, %v5032_v34, %v5041_v21  ;;  %v2678_v28 = vrot.slane %v10543_v24, 1  ;;  %v10604_v8 = vld [vmem:[%s13234_s1 + $0x108] sm:$0xff]   ;;  %v10555_v34 = vld [vmem:[#allocation2 + $0x38] sm:$0xff]   ;;  %v10605_v24 = vld [vmem:[%s13234_s1 + $0x110] sm:$0xff]  }
  0xf8   : > { %9924 = vmatprep.subr.bf16.mxu0 %v10530_v45  ;;  %v2687_v33 = vrot.slane %v10554_v23, 1 }
  0xf9   : > { %v5014_v30 = vor.u32 %v5013_v4, %v5010_v37  ;;  %v5074_v37 = vshll.u32 %v10551_v60, 16  ;;  %v2680_v4 = vsel %vm2142_vm12, %v2678_v28, %v2679_v35  ;;  %v5109_v60 = vrot.slane %v5107_v43, 2  ;;  %v10606_v28 = vld [vmem:[%s13234_s1 + $0x118] sm:$0xff]  }
  0xfb   : > { %9925 = vmatpush3.bf16.msra.mxu0 %v10530_v45  ;;  %v5015_v3 = vsel %vm4953_vm14, %v5005_v10, %v5014_v30  ;;  %v5024_v32 = vsel %vm4953_vm14, %v5014_v30, %v5023_v15  ;;  %v2177_v45 = vsel %vm2142_vm12, %v2174_v47, %v2176_v50  ;;  %v5050_v10 = vor.u32 %v5049_v53, %v5046_v52  ;;  %v10556_v30 = vld [vmem:[#allocation2 + $0x88] sm:$0xff]  }
  0xfc   : > { %9647 = vmatmul.mubr.bf16.gmra.mrb[20].mxu1 %v2167_v63  ;;  %9926 = vmatprep.subr.bf16.mxu0 %v10536_v31  ;;  %v5062_v63 = vshrl.u32 %v10547_v55, 16  ;;  %v5076_v13 = vrot.slane %v5074_v37, 3  ;;  %v5089_v20 = vshrl.u32 %v10556_v30, 16  ;;  %v5092_v47 = vshll.u32 %v10556_v30, 16 }
  0xfd   : > { %9650 = vmatprep.mubr.bf16.mxu1 %v2169_v0  ;;  %v5065_v0 = vshll.u32 %v10547_v55, 16  ;;  %v5051_v11 = vsel %vm4953_vm14, %v5041_v21, %v5050_v10  ;;  %v5060_v2 = vsel %vm4953_vm14, %v5050_v10, %v5059_v42  ;;  %v5101_v21 = vshll.u32 %v10557_v26, 16  ;;  %v10562_v55 = vld [vmem:[#allocation2 + $0xa0] ss:$0 sps:$4 sm:$0x77]  }
  0xfe   : > { %9891 = vmatmul.mubr.bf16.gmra.mrb[4].mxu0 %v4997_v56  ;;  %v10549_v56 = vld [vmem:[#allocation2 + $0x20] sm:$0xff]   ;;  %v5094_v50 = vrot.slane %v5092_v47, 3  ;;  %v2689_v53 = vrot.slane %v10555_v34, 1 }
  0xff   : > { %9894 = vmatprep.mubr.bf16.mxu0 %v5006_v9  ;;  %9927 = vmatpush3.bf16.msra.mxu0 %v10536_v31  ;;  %v10545_v31 = vld [vmem:[#allocation2 + $0x18] sm:$0xff]   ;;  %v5064_v9 = vrot.slane %v5062_v63, 2  ;;  %v2683_v54 = vrot.slane %v10549_v56, 1  ;;  %v5103_v59 = vrot.slane %v5101_v21, 3  ;;  %v5119_v63 = vshll.u32 %v10562_v55, 16  ;;  %v10607_v56 = vld [vmem:[%s13234_s1 + $0x120] sm:$0xff]  }
 0x100   : > { %9928 = vmatprep.subr.bf16.mxu0 %v10542_v12  ;;  %v2681_v6 = vrot.slane %v10545_v31, 1  ;;  %v5116_v31 = vshrl.u32 %v10562_v55, 16  ;;  %v2690_v10 = vsel %vm2142_vm12, %v2687_v33, %v2689_v53  ;;  %v10579_v55 = vld [vmem:[#allocation2 + $0x48] sm:$0xff]  }
 0x102   : > { %v2684_v22 = vsel %vm2142_vm12, %v2681_v6, %v2683_v54 }
 0x103   : > { %9929 = vmatpush3.bf16.msra.mxu0 %v10542_v12  ;;  %v5067_v12 = vrot.slane %v5065_v0, 3  ;;  %v10560_v0 = vld [vmem:[#allocation2 + $0x48] sm:$0xff]  }
 0x104   : > { %9651 = vmatmul.mubr.bf16.gmra.mrb[24].mxu1 %v2171_v5  ;;  %9930 = vmatprep.subr.bf16.mxu0 %v10548_v17  ;;  %v5083_v5 = vshll.u32 %v10552_v7, 16  ;;  %v5121_v7 = vrot.slane %v5119_v63, 3  ;;  %v10580_v63 = vld [vmem:[#allocation2 + $0x50] sm:$0xff]  }
 0x105   : > { %9654 = vmatprep.mubr.bf16.mxu1 %v2173_v36  ;;  %v5068_v15 = vor.u32 %v5067_v12, %v5064_v9  ;;  %v5077_v36 = vor.u32 %v5076_v13, %v5073_v48  ;;  %v2693_v9 = vrot.slane %v10560_v0, 1  ;;  %v10567_v12 = vld [vmem:[#allocation2 + $0x18] sm:$0xff]  }
 0x106   : > { %9895 = vmatmul.mubr.bf16.gmra.mrb[8].mxu0 %v5015_v3  ;;  %v5082_v3 = vrot.slane %v5080_v14, 2  ;;  %v5085_v25 = vrot.slane %v5083_v5, 3  ;;  %v5624_v5 = vrot.slane %v10567_v12, 3 }
 0x107   : > { %9898 = vmatprep.mubr.bf16.mxu0 %v5024_v32  ;;  %9931 = vmatpush3.bf16.msra.mxu0 %v10548_v17  ;;  %v2682_v17 = vsel %vm2142_vm12, %v2679_v35, %v2681_v6  ;;  %v5069_v19 = vsel %vm4953_vm14, %v5059_v42, %v5068_v15  ;;  %v2685_v32 = vrot.slane %v10550_v16, 1  ;;  %v5078_v18 = vsel %vm4953_vm14, %v5068_v15, %v5077_v36  ;;  %v10564_v42 = vld [vmem:[#allocation2 + $0x50] sm:$0xff]   ;;  %v10569_v16 = vld [vmem:[#allocation2 + $0x60] sm:$0xff]  }
 0x108   : > { %9932 = vmatprep.subr.bf16.mxu0 %v10553_v29  ;;  %v5086_v39 = vor.u32 %v5085_v25, %v5082_v3  ;;  %v10566_v6 = vld [vmem:[#allocation2 + $0x10] sm:$0xf8]   ;;  %v2695_v48 = vrot.slane %v10564_v42, 1  ;;  %v10571_v3 = vld [vmem:[#allocation2 + $0x28] sm:$0xff]   ;;  %v2699_v23 = vrot.slane %v10569_v16, 1  ;;  %v10610_v25 = vld [vmem:[%s13234_s1 + $0x138] sm:$0xff]  }
 0x109   : > { %v5623_v14 = vrot.slane %v10566_v6, 3  ;;  %v5628_v1 = vrot.slane %v10571_v3, 3  ;;  %v10587_v16 = vld [vmem:[#allocation2 + $0x68] sm:$0xff]  }
 0x10a   : > { %v5087_v52 = vsel %vm4953_vm14, %v5077_v36, %v5086_v39  ;;  %v2696_v15 = vsel %vm2142_vm12, %v2693_v9, %v2695_v48 }
 0x10b   : > { %9933 = vmatpush3.bf16.msra.mxu0 %v10553_v29  ;;  %v5091_v29 = vrot.slane %v5089_v20, 2  ;;  %v10568_v20 = vld [vmem:[#allocation2 + $0x20] sm:$0xff]  }
 0x10c   : > { %9655 = vmatmul.mubr.bf16.gmra.mrb[28].mxu1 %v2175_v40  ;;  %9934 = vmatprep.subr.bf16.mxu0 %v10558_v49  ;;  %v5098_v40 = vshrl.u32 %v10557_v26, 16  ;;  %v5626_v26 = vrot.slane %v10568_v20, 3 }
 0x10d   : > { %9658 = vmatprep.mubr.bf16.mxu1 %v2177_v45  ;;  %v2688_v45 = vsel %vm2142_vm12, %v2685_v32, %v2687_v33 }
 0x10e   : > { %9899 = vmatmul.mubr.bf16.gmra.mrb[12].mxu0 %v5033_v58  ;;  %v5100_v58 = vrot.slane %v5098_v40, 2  ;;  %v5629_v34 = vsel %vm5622_vm15, %v5626_v26, %v5628_v1 }
 0x10f   : > { %9902 = vmatprep.mubr.bf16.mxu0 %v5042_v27  ;;  %9935 = vmatpush3.bf16.msra.mxu0 %v10558_v49  ;;  %v5095_v49 = vor.u32 %v5094_v50, %v5091_v29  ;;  %v5112_v27 = vrot.slane %v5110_v44, 3  ;;  %v10573_v29 = vld [vmem:[#allocation2 + $0x70] sm:$0xff]   ;;  %v5627_v50 = vsel %vm5622_vm15, %v5624_v5, %v5626_v26  ;;  %v10574_v44 = vld [vmem:[#allocation2 + $0x78] sm:$0xff]   ;;  %v10590_v26 = vld [vmem:[#allocation2 + $0x68] sm:$0xff]  }
 0x110   : > { %9936 = vmatprep.subr.bf16.mxu0 %v10563_v61  ;;  %v5104_v35 = vor.u32 %v5103_v59, %v5100_v58  ;;  %v2703_v40 = vrot.slane %v10573_v29, 1 }
 0x111   : > { %v5096_v62 = vsel %vm4953_vm14, %v5086_v39, %v5095_v49  ;;  %v5113_v57 = vor.u32 %v5112_v27, %v5109_v60  ;;  %v10575_v39 = vld [vmem:[#allocation2 + $0x38] sm:$0xff]   ;;  %v10578_v27 = vld [vmem:[#allocation2 + $0x88] sm:$0xff]  }
 0x112   : > { %v5105_v37 = vsel %vm4953_vm14, %v5095_v49, %v5104_v35 }
 0x113   : > { %9937 = vmatpush3.bf16.msra.mxu0 %v10563_v61  ;;  %v2691_v61 = vrot.slane %v10559_v51, 1  ;;  %v10576_v51 = vld [vmem:[#allocation2 + $0x40] sm:$0xff]  }
 0x114   : > { %9659 = vmatmul.mubr.bf16.gmra.mrb[32].mxu1 %v2179_v41  ;;  %v5634_v59 = vrot.slane %v10576_v51, 3  ;;  %v10594_v51 = vld [vmem:[#allocation2 + $0x78] sm:$0xff]  }
 0x115   : > { %9678 = vmatprep.mubr.bf16.mxu1 %v2680_v4  ;;  %v2692_v41 = vsel %vm2142_vm12, %v2689_v53, %v2691_v61  ;;  %v5118_v4 = vrot.slane %v5116_v31, 2  ;;  %v2694_v30 = vsel %vm2142_vm12, %v2691_v61, %v2693_v9  ;;  %v10586_v9 = vld [vmem:[#allocation2 + $0x58] sm:$0xff]  }
 0x116   : > { %9903 = vmatmul.mubr.bf16.gmra.mrb[16].mxu0 %v5051_v11  ;;  %v5114_v11 = vsel %vm4953_vm14, %v5104_v35, %v5113_v57  ;;  %v10585_v35 = vld [vmem:[#allocation2 + $0x50] sm:$0xff]  }
 0x117   : > { %9906 = vmatprep.mubr.bf16.mxu0 %v5060_v2  ;;  %v10608_v2 = vld [vmem:[%s13234_s1 + $0x128] sm:$0xff]   ;;  %v5122_v13 = vor.u32 %v5121_v7, %v5118_v4  ;;  %v3295_v42 = vshrl.u32 %v10585_v35, 16  ;;  %v10582_v7 = vld [vmem:[#allocation2 + $0x98] ss:$0 sps:$4 sm:$0x11]  }
 0x119   : > { %v5123_v36 = vsel %vm4953_vm14, %v5113_v57, %v5122_v13  ;;  %v10583_v57 = vld [vmem:[#allocation2 + $0x58] sm:$0xff]   ;;  %v3297_v12 = vrot.slane %v3295_v42, 1 }
 0x11a   : > { %v5640_v6 = vrot.slane %v10583_v57, 3 }
 0x11c   : > { %9679 = vmatmul.mubr.bf16.vlgmr.msra.gmra.mrb[0].mxu1 %v2682_v17  ;;  %v10609_v17 = vld [vmem:[%s13234_s1 + $0x130] sm:$0xff]  }
 0x11d   : > { %9982 = vmatpush3.bf16.msra.mxu1 %v11263_v46  ;;  %9682 = vmatprep.mubr.bf16.mxu1 %v2684_v22  ;;  %v2686_v46 = vsel %vm2142_vm12, %v2683_v54, %v2685_v32  ;;  %v10565_v54 = vld [vmem:[#allocation2 + $0x58] sm:$0xff]   ;;  %v5625_v22 = vsel %vm5622_vm15, %v5623_v14, %v5624_v5  ;;  %v10570_v32 = vld [vmem:[#allocation2 + $0x68] sm:$0xff]   ;;  %v3304_v5 = vshrl.u32 %v10586_v9, 16 }
 0x11e   : > { %9975 = vmatprep.subr.bf16.mxu1 %v10604_v8  ;;  %9907 = vmatmul.mubr.bf16.gmra.mrb[20].mxu0 %v5069_v19  ;;  %v2697_v47 = vrot.slane %v10565_v54, 1  ;;  %v2701_v33 = vrot.slane %v10570_v32, 1  ;;  %v2713_v54 = vrot.slane %v10582_v7, 1 }
 0x11f   : > { %9910 = vmatprep.mubr.bf16.mxu0 %v5078_v18  ;;  %v3306_v3 = vrot.slane %v3304_v5, 1 }
 0x120   : > { %v2698_v19 = vsel %vm2142_vm12, %v2695_v48, %v2697_v47  ;;  %v2700_v18 = vsel %vm2142_vm12, %v2697_v47, %v2699_v23  ;;  %v2702_v43 = vsel %vm2142_vm12, %v2699_v23, %v2701_v33  ;;  %v2704_v49 = vsel %vm2142_vm12, %v2701_v33, %v2703_v40 }
 0x121   : > { %9983 = vmatpush3.bf16.msra.mxu1 %v10604_v8  ;;  %v10572_v8 = vld [vmem:[#allocation2 + $0x30] sm:$0xff]  }
 0x122   : > { %9976 = vmatprep.subr.bf16.mxu1 %v10605_v24  ;;  %v5630_v21 = vrot.slane %v10572_v8, 3 }
 0x124   : > { %9683 = vmatmul.mubr.bf16.gmra.mrb[4].mxu1 %v2686_v46  ;;  %v5632_v46 = vrot.slane %v10575_v39, 3  ;;  %v3325_v39 = vshll.u32 %v10590_v26, 16 }
 0x125   : > { %9686 = vmatprep.mubr.bf16.mxu1 %v2688_v45  ;;  %9984 = vmatpush3.bf16.msra.mxu1 %v10605_v24  ;;  %v10577_v45 = vld [vmem:[#allocation2 + $0x80] sm:$0xff]   ;;  %v5631_v24 = vsel %vm5622_vm15, %v5628_v1, %v5630_v21 }
 0x126   : > { %9977 = vmatprep.subr.bf16.mxu1 %v10606_v28  ;;  %9911 = vmatmul.mubr.bf16.gmra.mrb[24].mxu0 %v5087_v52  ;;  %v2705_v52 = vrot.slane %v10574_v44, 1  ;;  %v5633_v53 = vsel %vm5622_vm15, %v5630_v21, %v5632_v46  ;;  %v2707_v58 = vrot.slane %v10577_v45, 1  ;;  %v5635_v31 = vsel %vm5622_vm15, %v5632_v46, %v5634_v59 }
 0x127   : > { %9914 = vmatprep.mubr.bf16.mxu0 %v5096_v62  ;;  %v5636_v62 = vrot.slane %v10579_v55, 3  ;;  %v3327_v45 = vrot.slane %v3325_v39, 2 }
 0x128   : > { %v2706_v60 = vsel %vm2142_vm12, %v2703_v40, %v2705_v52  ;;  %v2708_v61 = vsel %vm2142_vm12, %v2705_v52, %v2707_v58  ;;  %v10591_v40 = vld [vmem:[#allocation2 + $0x78] sm:$0xff]  }
 0x129   : > { %9985 = vmatpush3.bf16.msra.mxu1 %v10606_v28  ;;  %v10581_v28 = vld [vmem:[#allocation2 + $0x90] sm:$0xff]   ;;  %v5637_v0 = vsel %vm5622_vm15, %v5634_v59, %v5636_v62 }
 0x12a   : > { %9978 = vmatprep.subr.bf16.mxu1 %v10607_v56 }
 0x12c   : > { %9687 = vmatmul.mubr.bf16.gmra.mrb[8].mxu1 %v2690_v10  ;;  %v2709_v10 = vrot.slane %v10578_v27, 1 }
 0x12d   : > { %9690 = vmatprep.mubr.bf16.mxu1 %v2692_v41  ;;  %9986 = vmatpush3.bf16.msra.mxu1 %v10607_v56  ;;  %v2711_v41 = vrot.slane %v10581_v28, 1  ;;  %v3298_v56 = vshll.u32 %v10585_v35, 16  ;;  %v3343_v28 = vshll.u32 %v10594_v51, 16  ;;  %v10595_v35 = vld [vmem:[#allocation2 + $0x88] sm:$0xff]  }
 0x12e   : > { %9979 = vmatprep.subr.bf16.mxu1 %v10608_v2  ;;  %9915 = vmatmul.mubr.bf16.gmra.mrb[28].mxu0 %v5105_v37  ;;  %v5638_v37 = vrot.slane %v10580_v63, 3  ;;  %v2710_v4 = vsel %vm2142_vm12, %v2707_v58, %v2709_v10  ;;  %v10597_v58 = vld [vmem:[#allocation2 + $0x80] sm:$0xff]  }
 0x12f   : > { %9918 = vmatprep.mubr.bf16.mxu0 %v5114_v11  ;;  %v2712_v11 = vsel %vm2142_vm12, %v2709_v10, %v2711_v41  ;;  %v3300_v48 = vrot.slane %v3298_v56, 2  ;;  %v3349_v63 = vshrl.u32 %v10597_v58, 16  ;;  %v3352_v10 = vshll.u32 %v10597_v58, 16 }
 0x130   : > { %v5639_v13 = vsel %vm5622_vm15, %v5636_v62, %v5638_v37  ;;  %v5641_v14 = vsel %vm5622_vm15, %v5638_v37, %v5640_v6  ;;  %v3345_v42 = vrot.slane %v3343_v28, 2  ;;  %v5652_v56 = vrot.slane %v10595_v35, 3  ;;  %v10598_v37 = vld [vmem:[#allocation2 + $0x88] sm:$0xff]  }
 0x131   : > { %9987 = vmatpush3.bf16.msra.mxu1 %v10608_v2  ;;  %v10589_v2 = vld [vmem:[#allocation2 + $0x60] sm:$0xff]   ;;  %v3351_v7 = vrot.slane %v3349_v63, 1 }
 0x132   : > { %9980 = vmatprep.subr.bf16.mxu1 %v10609_v17  ;;  %v3316_v20 = vshll.u32 %v10589_v2, 16 }
 0x134   : > { %9691 = vmatmul.mubr.bf16.gmra.mrb[12].mxu1 %v2694_v30  ;;  %v10584_v30 = vld [vmem:[#allocation2 + $0x60] sm:$0xff]   ;;  %v3318_v1 = vrot.slane %v3316_v20, 2 }
 0x135   : > { %9694 = vmatprep.mubr.bf16.mxu1 %v2696_v15  ;;  %9988 = vmatpush3.bf16.msra.mxu1 %v10609_v17  ;;  %v3307_v15 = vshll.u32 %v10586_v9, 16  ;;  %v3301_v17 = vor.u32 %v3300_v48, %v3297_v12  ;;  %v5642_v47 = vrot.slane %v10584_v30, 3  ;;  %v10601_v9 = vld [vmem:[#allocation2 + $0x90] sm:$0xff]   ;;  %v3361_v30 = vshll.u32 %v10598_v37, 16 }
 0x136   : > { %9981 = vmatprep.subr.bf16.mxu1 %v10610_v25  ;;  %9919 = vmatmul.mubr.bf16.gmra.mrb[32].mxu0 %v5123_v36  ;;  %v3313_v36 = vshrl.u32 %v10589_v2, 16  ;;  %v10596_v12 = vld [vmem:[#allocation2 + $0x90] sm:$0xff]   ;;  %v3367_v5 = vshrl.u32 %v10601_v9, 16 }
 0x137   : > { %9938 = vmatprep.mubr.bf16.mxu0 %v5625_v22  ;;  %v2714_v22 = vsel %vm2142_vm12, %v2711_v41, %v2713_v54  ;;  %v3309_v23 = vrot.slane %v3307_v15, 2  ;;  %v5643_v29 = vsel %vm5622_vm15, %v5640_v6, %v5642_v47  ;;  %v3354_v6 = vrot.slane %v3352_v10, 2  ;;  %v10599_v54 = vld [vmem:[#allocation2 + $0x98] sm:$0xff]  }
 0x138   : > { %v3315_v32 = vrot.slane %v3313_v36, 1  ;;  %v3370_v15 = vshll.u32 %v10601_v9, 16  ;;  %v3363_v20 = vrot.slane %v3361_v30, 2 }
 0x139   : > { %9989 = vmatpush3.bf16.msra.mxu1 %v10610_v25  ;;  %v5644_v25 = vrot.slane %v10587_v16, 3  ;;  %v3310_v8 = vor.u32 %v3309_v23, %v3306_v3  ;;  %v5654_v16 = vrot.slane %v10596_v12, 3  ;;  %v3369_v23 = vrot.slane %v3367_v5, 1 }
 0x13a   : > { %v3319_v21 = vor.u32 %v3318_v1, %v3315_v32 }
 0x13b   : > { %v5645_v33 = vsel %vm5622_vm15, %v5642_v47, %v5644_v25  ;;  %v3311_v46 = vsel %vm3213_vm1, %v3301_v17, %v3310_v8  ;;  %v5656_v47 = vrot.slane %v10599_v54, 3 }
 0x13c   : > { %9695 = vmatmul.mubr.bf16.gmra.mrb[16].mxu1 %v2698_v19  ;;  %v3302_v19 = vsel %vm3213_vm1, %v10954_v38, %v3301_v17  ;;  %v3320_v52 = vsel %vm3213_vm1, %v3310_v8, %v3319_v21 }
 0x13d   : > { %9698 = vmatprep.mubr.bf16.mxu1 %v2700_v18  ;;  %v10593_v18 = vld [vmem:[#allocation2 + $0x70] sm:$0xff]   ;;  %v5657_v1 = vsel %vm5622_vm15, %v5654_v16, %v5656_v47 }
 0x13e   : > { %9939 = vmatmul.mubr.bf16.vlgmr.msra.gmra.mrb[0].mxu0 %v5627_v50  ;;  %v10588_v50 = vld [vmem:[#allocation2 + $0x70] sm:$0xff]   ;;  %v3334_v44 = vshll.u32 %v10593_v18, 16 }
 0x13f   : > { %9942 = vmatprep.mubr.bf16.mxu0 %v5629_v34  ;;  %v3322_v34 = vshrl.u32 %v10590_v26, 16  ;;  %v5646_v38 = vrot.slane %v10588_v50, 3  ;;  %v5655_v26 = vsel %vm5622_vm15, %v5652_v56, %v5654_v16 }
 0x140   : > { %v3336_v55 = vrot.slane %v3334_v44, 2 }
 0x141   : > { %v5647_v59 = vsel %vm5622_vm15, %v5644_v25, %v5646_v38  ;;  %v3372_v25 = vrot.slane %v3370_v15, 2 }
 0x143   : > { %v3373_v50 = vor.u32 %v3372_v25, %v3369_v23 }
 0x144   : > { %9699 = vmatmul.mubr.bf16.gmra.mrb[20].mxu1 %v2702_v43  ;;  %v3331_v43 = vshrl.u32 %v10593_v18, 16 }
 0x145   : > { %9702 = vmatprep.mubr.bf16.mxu1 %v2704_v49  ;;  %v3324_v49 = vrot.slane %v3322_v34, 1 }
 0x146   : > { %9943 = vmatmul.mubr.bf16.gmra.mrb[4].mxu0 %v5631_v24  ;;  %v5648_v24 = vrot.slane %v10591_v40, 3 }
 0x147   : > { %9946 = vmatprep.mubr.bf16.mxu0 %v5633_v53  ;;  %v3333_v53 = vrot.slane %v3331_v43, 1  ;;  %v3328_v27 = vor.u32 %v3327_v45, %v3324_v49 }
 0x148   : > { %v5649_v62 = vsel %vm5622_vm15, %v5646_v38, %v5648_v24  ;;  %v6011_v38 = vlaneseq }
 0x149   : > { %v3329_v57 = vsel %vm3213_vm1, %v3319_v21, %v3328_v27 }
 0x14c   : > { %9703 = vmatmul.mubr.bf16.gmra.mrb[24].mxu1 %v2706_v60  ;;  %v10592_v60 = vld [vmem:[#allocation2 + $0x80] sm:$0xff]  }
 0x14d   : > { %9706 = vmatprep.mubr.bf16.mxu1 %v2708_v61  ;;  %v3340_v61 = vshrl.u32 %v10594_v51, 16 }
 0x14e   : > { %9947 = vmatmul.mubr.bf16.gmra.mrb[8].mxu0 %v5635_v31  ;;  %v3337_v31 = vor.u32 %v3336_v55, %v3333_v53 }
 0x14f   : > { %9950 = vmatprep.mubr.bf16.mxu0 %v5637_v0  ;;  %v5650_v0 = vrot.slane %v10592_v60, 3  ;;  %v3342_v41 = vrot.slane %v3340_v61, 1 }
 0x151   : > { %v3346_v48 = vor.u32 %v3345_v42, %v3342_v41  ;;  %v5653_v2 = vsel %vm5622_vm15, %v5650_v0, %v5652_v56 }
 0x153   : > { %v3347_v17 = vsel %vm3213_vm1, %v3337_v31, %v3346_v48 }
 0x154   : > { %9707 = vmatmul.mubr.bf16.gmra.mrb[28].mxu1 %v2710_v4  ;;  %v3338_v4 = vsel %vm3213_vm1, %v3328_v27, %v3337_v31 }
 0x155   : > { %9710 = vmatprep.mubr.bf16.mxu1 %v2712_v11  ;;  %v5651_v11 = vsel %vm5622_vm15, %v5648_v24, %v5650_v0 }
 0x156   : > { %9951 = vmatmul.mubr.bf16.gmra.mrb[12].mxu0 %v5639_v13  ;;  %v3358_v13 = vshrl.u32 %v10598_v37, 16 }
 0x157   : > { %9954 = vmatprep.mubr.bf16.mxu0 %v5641_v14  ;;  %v3355_v14 = vor.u32 %v3354_v6, %v3351_v7 }
 0x158   : > { %v3360_v36 = vrot.slane %v3358_v13, 1 }
 0x159   : > { %v3356_v3 = vsel %vm3213_vm1, %v3346_v48, %v3355_v14 }
 0x15a   : > { %v3364_v32 = vor.u32 %v3363_v20, %v3360_v36 }
 0x15c   : > { %9711 = vmatmul.mubr.bf16.gmra.mrb[32].mxu1 %v2714_v22  ;;  %v10602_v22 = vld [vmem:[#allocation2 + $0x98] ss:$0 sps:$4 sm:$0x33]   ;;  %v3374_v40 = vsel %vm3213_vm1, %v3364_v32, %v3373_v50 }
 0x15d   : > { %9746 = vmatprep.mubr.bf16.mxu1 %v3302_v19  ;;  %v10600_v19 = vld [vmem:[#allocation2 + $0xa0] ss:$0 sps:$4 sm:$0x77]   ;;  %v3376_v18 = vshrl.u32 %v10602_v22, 16 }
 0x15e   : > { %9955 = vmatmul.mubr.bf16.gmra.mrb[16].mxu0 %v5643_v29  ;;  %v3379_v29 = vshll.u32 %v10602_v22, 16  ;;  %v5658_v8 = vrot.slane %v10600_v19, 3  ;;  %v10620_v22 = vmov 1966171168  }
 0x15f   : > { %9958 = vmatprep.mubr.bf16.mxu0 %v5645_v33  ;;  %v3365_v33 = vsel %vm3213_vm1, %v3355_v14, %v3364_v32  ;;  %v3378_v34 = vrot.slane %v3376_v18, 1  ;;  %v13366_v18 = vmov 0 }
 0x160   : > { %v3381_v39 = vrot.slane %v3379_v29, 2  ;;  %v5659_v21 = vsel %vm5622_vm15, %v5656_v47, %v5658_v8 }
 0x162   : > { %v3382_v43 = vor.u32 %v3381_v39, %v3378_v34 }
 0x164   : > { %9747 = vmatmul.mubr.bf16.vlgmr.msra.gmra.mrb[16].mxu1 %v3311_v46  ;;  %v3383_v44 = vsel %vm3213_vm1, %v3373_v50, %v3382_v43  ;;  %v11381_v46 = vshrl.u32 %v6011_v38, 7 }
 0x165   : > { %9750 = vmatprep.mubr.bf16.mxu1 %v3320_v52 }
 0x166   : > { %9959 = vmatmul.mubr.bf16.gmra.mrb[20].mxu0 %v5647_v59  ;;  %13363 = vst [vmem:[#allocation4_spill] sm:$0xff] %v11381_v46  ;;  %v6014_v49 = vadd.s32 16, %v11381_v46  ;;  %v6015_v45 = vadd.s32 24, %v11381_v46  ;;  %v6013_v24 = vadd.s32 8, %v11381_v46  ;;  %v11408_v0 = vadd.s32 32, %v11381_v46 }
 0x167   : > { %9962 = vmatprep.mubr.bf16.mxu0 %v5649_v62  ;;  %v11390_v53 = vmul.u32.u64.low 3817748708, %v11381_v46  ;;  %v11391_v55 = vmul.u32.u64.high 3817748708, %v11381_v46, %v11390_v53  ;;  %v6018_v62 = vadd.s32 48, %v11381_v46  ;;  %v11414_v56 = vadd.s32 40, %v11381_v46 }
 0x168   : > { %v11386_v51 = vmul.u32.u64.low 3817748708, %v6014_v49  ;;  %v11387_v52 = vmul.u32.u64.high 3817748708, %v6014_v49, %v11386_v51  ;;  %v11393_v58 = vmul.u32.u64.low 3817748708, %v6015_v45  ;;  %v11394_v59 = vmul.u32.u64.high 3817748708, %v6015_v45, %v11393_v58 }
 0x169   : > { %v11396_v60 = vmul.u32.u64.low 3817748708, %v6013_v24  ;;  %v11397_v27 = vmul.u32.u64.high 3817748708, %v6013_v24, %v11396_v60  ;;  %v6054_v28 = vshrl.u32 %v11391_v55, 4  ;;  %v11434_v30 = vadd.s32 80, %v11381_v46 }
 0x16a   : > { %v6076_v61 = vshrl.u32 %v11387_v52, 4  ;;  %v6087_v35 = vshrl.u32 %v11394_v59, 4  ;;  %v11404_v63 = vmul.u32.u64.low 3817748708, %v6018_v62  ;;  %v11405_v10 = vmul.u32.u64.high 3817748708, %v6018_v62, %v11404_v63 }
 0x16b   : > { %v6065_v31 = vshrl.u32 %v11397_v27, 4  ;;  %v6055_v42 = vmul.u32 18, %v6054_v28  ;;  %v11417_v7 = vmul.u32.u64.low 3817748708, %v11408_v0  ;;  %v11418_v6 = vmul.u32.u64.high 3817748708, %v11408_v0, %v11417_v7 }
 0x16c   : > { %9751 = vmatmul.mubr.bf16.gmra.mrb[20].mxu1 %v3329_v57  ;;  %v11411_v57 = vadd.s32 56, %v11381_v46  ;;  %v6077_v41 = vmul.u32 18, %v6076_v61  ;;  %v6088_v37 = vmul.u32 18, %v6087_v35  ;;  %v11437_v54 = vadd.s32 64, %v11381_v46 }
 0x16d   : > { %9754 = vmatprep.mubr.bf16.mxu1 %v3338_v4  ;;  %v6066_v4 = vmul.u32 18, %v6065_v31  ;;  %v11427_v48 = vsub.s32 %v11381_v46, %v6055_v42  ;;  %v6120_v15 = vshrl.u32 %v11405_v10, 4  ;;  %v11483_v50 = vadd.s32 72, %v11381_v46 }
 0x16e   : > { %9963 = vmatmul.mubr.bf16.gmra.mrb[24].mxu0 %v5651_v11  ;;  %v11421_v9 = vmul.u32.u64.low 3817748708, %v11411_v57  ;;  %v11422_v11 = vmul.u32.u64.high 3817748708, %v11411_v57, %v11421_v9  ;;  %v11424_v12 = vsub.s32 %v6014_v49, %v6077_v41  ;;  %v11439_v14 = vsub.s32 %v6015_v45, %v6088_v37 }
 0x16f   : > { %9966 = vmatprep.mubr.bf16.mxu0 %v5653_v2  ;;  %v11430_v2 = vmul.u32.u64.low 3817748708, %v11414_v56  ;;  %v11431_v13 = vmul.u32.u64.high 3817748708, %v11414_v56, %v11430_v2  ;;  %v11441_v5 = vsub.s32 %v6013_v24, %v6066_v4  ;;  %vm6444_vm6 = vcmp.ne.s32.totalorder %v11427_v48, 0 }
 0x170   : > { %vm6446_vm0 = vcmp.ne.s32.totalorder %v11424_v12, 0  ;;  %vm6482_vm2 = vcmp.lt.s32.totalorder %v11424_v12, 0  ;;  %v11447_v16 = vadd.s32 18, %v11424_v12  ;;  %vm6480_vm8 = vcmp.lt.s32.totalorder %v11427_v48, 0 }
 0x171   : > { %v11455_v20 = vmul.u32.u64.low 3817748708, %v11437_v54  ;;  %v11456_v47 = vmul.u32.u64.high 3817748708, %v11437_v54, %v11455_v20  ;;  %vm6447_vm10 = vcmp.ne.s32.totalorder %v11439_v14, 0  ;;  %vm6483_vm13 = vcmp.lt.s32.totalorder %v11439_v14, 0  ;;  %vm11461_vm3 = vmand %vm6482_vm2, %vm6446_vm0 }
 0x172   : > { %vm6445_vm1 = vcmp.ne.s32.totalorder %v11441_v5, 0  ;;  %v6121_v25 = vmul.u32 18, %v6120_v15  ;;  %v6131_v19 = vshrl.u32 %v11422_v11, 4  ;;  %vm6481_vm7 = vcmp.lt.s32.totalorder %v11441_v5, 0  ;;  %vm11475_vm5 = vmand %vm6480_vm8, %vm6444_vm6 }
 0x173   : > { %v6109_v32 = vshrl.u32 %v11431_v13, 4  ;;  %v13367_v18 = vsel %vm11475_vm5, 4294967295, %v13366_v18  ;;  %v11480_v29 = vadd.s32 18, %v11427_v48  ;;  %vm11493_vm9 = vmand %vm6483_vm13, %vm6447_vm10  ;;  %v11498_v34 = vadd.s32 18, %v11439_v14 }
 0x174   : > { %9755 = vmatmul.mubr.bf16.gmra.mrb[24].mxu1 %v3347_v17  ;;  %v11451_v17 = vmul.u32.u64.low 3817748708, %v11434_v30  ;;  %v11452_v36 = vmul.u32.u64.high 3817748708, %v11434_v30, %v11451_v17  ;;  %vm11509_vm11 = vmand %vm6481_vm7, %vm6445_vm1  ;;  %v11513_v38 = vsub.s32 %v6018_v62, %v6121_v25  ;;  %v6132_v45 = vmul.u32 18, %v6131_v19 }
 0x175   : > { %9758 = vmatprep.mubr.bf16.mxu1 %v3356_v3  ;;  %v6998_v3 = vunpack.c.l.s4 %v10620_v22  ;;  %v6110_v24 = vmul.u32 18, %v6109_v32  ;;  %v11520_v53 = vadd.s32 112, %v11381_v46  ;;  %v6142_v58 = vshrl.u32 %v11456_v47, 4 }
 0x176   : > { %9967 = vmatmul.mubr.bf16.gmra.mrb[28].mxu0 %v5655_v26  ;;  %v6098_v26 = vshrl.u32 %v11418_v6, 4  ;;  %13372 = vst [vmem:[#allocation5_spill] sm:$0xff] %v11513_v38  ;;  %v6164_v55 = vshrl.u32 %v11452_v36, 4  ;;  %v11525_v59 = vmul.u32.u64.low 3817748708, %v11483_v50  ;;  %v11526_v60 = vmul.u32.u64.high 3817748708, %v11483_v50, %v11525_v59 }
 0x177   : > { %9970 = vmatprep.mubr.bf16.mxu0 %v5657_v1  ;;  %v11471_v1 = vadd.s32 88, %v11381_v46  ;;  %v6999_v39 = vunpack.c.0.s8 %v6998_v3  ;;  %v11541_v28 = vadd.s32 96, %v11381_v46  ;;  %v11551_v10 = vsub.s32 %v11411_v57, %v6132_v45 }
 0x178   : > { %v6099_v49 = vmul.u32 18, %v6098_v26  ;;  %vm6450_vm12 = vcmp.ne.s32.totalorder %v11513_v38, 0  ;;  %vm6486_vm14 = vcmp.lt.s32.totalorder %v11513_v38, 0  ;;  %v11560_v37 = vadd.s32 18, %v11513_v38 }
 0x179   : > { %v11516_v51 = vmul.u32.u64.low 3817748708, %v11471_v1  ;;  %v11517_v52 = vmul.u32.u64.high 3817748708, %v11471_v1, %v11516_v51  ;;  %v11544_v35 = vsub.s32 %v6999_v39, %v11381_v46  ;;  %13375 = vst [vmem:[#allocation8_spill] sm:$0xff] %v11551_v10  ;;  %v11563_v4 = vsub.s32 %v11414_v56, %v6110_v24  ;;  %vm11619_vm13 = vmand %vm6486_vm14, %vm6450_vm12 }
 0x17a   : > { %v11548_v63 = vsub.s32 %v11408_v0, %v6099_v49  ;;  %v11556_v41 = vmul.u32.u64.low 3817748708, %v11520_v53  ;;  %v11557_v42 = vmul.u32.u64.high 3817748708, %v11520_v53, %v11556_v41  ;;  %13376 = vst [vmem:[#allocation9_spill] sm:$0xff] %v11560_v37  ;;  %v6165_v7 = vmul.u32 18, %v6164_v55 }
 0x17b   : > { %13373 = vst [vmem:[#allocation6_spill] sm:$0xff] %v11544_v35  ;;  %13377 = vst [vmem:[#allocation10_spill] sm:$0xff] %v11563_v4  ;;  %v6143_v0 = vmul.u32 18, %v6142_v58  ;;  %v11566_v6 = vmul.u32.u64.low 3817748708, %v11541_v28  ;;  %v11567_v57 = vmul.u32.u64.high 3817748708, %v11541_v28, %v11566_v6  ;;  %v11570_v9 = vadd.s32 120, %v11381_v46 }
 0x17c   : > { %9759 = vmatmul.mubr.bf16.gmra.mrb[28].mxu1 %v3365_v33  ;;  %13374 = vst [vmem:[#allocation7_spill] sm:$0xff] %v11548_v63  ;;  %v11573_v11 = vadd.s32 104, %v11381_v46  ;;  %vm6448_vm15 = vcmp.ne.s32.totalorder %v11548_v63, 0  ;;  %vm6484_vm0 = vcmp.lt.s32.totalorder %v11548_v63, 0  ;;  %v11578_v2 = vadd.s32 18, %v11548_v63 }
 0x17d   : > { %9762 = vmatprep.mubr.bf16.mxu1 %v3374_v40  ;;  %v11501_v40 = vadd.s32 18, %v11441_v5  ;;  %vm6451_vm2 = vcmp.ne.s32.totalorder %v11551_v10, 0  ;;  %vm6487_vm6 = vcmp.lt.s32.totalorder %v11551_v10, 0  ;;  %v11583_v56 = vadd.s32 18, %v11551_v10  ;;  %vm11632_vm1 = vmand %vm6484_vm0, %vm6448_vm15 }
 0x17e   : > { %9971 = vmatmul.mubr.bf16.gmra.mrb[32].mxu0 %v5659_v21  ;;  %v10621_v21 = vmov 1935823168   ;;  %13378 = vst [vmem:[#allocation11_spill] sm:$0xff] %v11578_v2  ;;  %v6175_v13 = vshrl.u32 %v11517_v52, 4  ;;  %v11587_v15 = vadd.s32 144, %v11381_v46  ;;  %vm6449_vm8 = vcmp.ne.s32.totalorder %v11563_v4, 0  ;;  %vm11645_vm14 = vmand %vm6487_vm6, %vm6451_vm2 }
 0x17f   : > { %v11503_v43 = vunpack.c.l.s4 %v10621_v21  ;;  %13379 = vst [vmem:[#allocation12_spill] sm:$0xff] %v11583_v56  ;;  %v11591_v17 = vsub.s32 %v11434_v30, %v6165_v7  ;;  %v11594_v36 = vsub.s32 %v11437_v54, %v6143_v0  ;;  %v6153_v20 = vshrl.u32 %v11526_v60, 4 }
 0x180   : > { %v11598_v47 = vmul.u32.u64.low 3817748708, %v11570_v9  ;;  %v11599_v22 = vmul.u32.u64.high 3817748708, %v11570_v9, %v11598_v47  ;;  %v11602_v3 = vmul.u32.u64.low 3817748708, %v11573_v11  ;;  %v11603_v25 = vmul.u32.u64.high 3817748708, %v11573_v11, %v11602_v3 }
 0x181   : > { %v7874_v31 = vunpack.c.0.s8 %v11503_v43  ;;  %13380 = vst [vmem:[#allocation13_spill] sm:$0xff] %v11591_v17  ;;  %13381 = vst [vmem:[#allocation14_spill] sm:$0xff] %v11594_v36  ;;  %vm6485_vm10 = vcmp.lt.s32.totalorder %v11563_v4, 0  ;;  %v11607_v26 = vadd.s32 18, %v11563_v4  ;;  %v11610_v30 = vadd.s32 128, %v11381_v46 }
 0x182   : > { %v11613_v54 = vadd.s32 152, %v11381_v46  ;;  %v13383_v19 = vmov 0  ;;  %v6176_v32 = vmul.u32 18, %v6175_v13  ;;  %v6208_v39 = vshrl.u32 %v11557_v42, 4  ;;  %vm11659_vm4 = vmand %vm6485_vm10, %vm6449_vm8 }
 0x183   : > { %13382 = vst [vmem:[#allocation15_spill] sm:$0xff] %v11607_v26  ;;  %v13384_v19 = vsel %vm11619_vm13, 4294967295, %v13383_v19  ;;  %v11625_v21 = vmul.u32.u64.low 3817748708, %v11587_v15  ;;  %v11626_v43 = vmul.u32.u64.high 3817748708, %v11587_v15, %v11625_v21  ;;  %v13386_v49 = vmov 0 }
 0x184   : > { %9763 = vmatmul.mubr.bf16.gmra.mrb[32].mxu1 %v3383_v44  ;;  %v13370_v44 = vmov 0  ;;  %13385 = vst [vmem:[#allocation16_spill] sm:$0xff] %v13384_v19  ;;  %v13387_v49 = vsel %vm11632_vm1, 4294967295, %v13386_v49  ;;  %vm6454_vm7 = vcmp.ne.s32.totalorder %v11591_v17, 0  ;;  %vm6490_vm12 = vcmp.lt.s32.totalorder %v11591_v17, 0 }
 0x185   : > { %v13371_v44 = vsel %vm11509_vm11, 4294967295, %v13370_v44  ;;  %13388 = vst [vmem:[#allocation17_spill] sm:$0xff] %v13387_v49  ;;  %v6154_v45 = vmul.u32 18, %v6153_v20  ;;  %v11639_v24 = vadd.s32 136, %v11381_v46  ;;  %v13389_v51 = vmov 0  ;;  %vm11676_vm2 = vmand %vm6490_vm12, %vm6454_vm7 }
 0x186   : > { %v13390_v51 = vsel %vm11645_vm14, 4294967295, %v13389_v51  ;;  %v11650_v52 = vadd.s32 18, %v11591_v17  ;;  %vm6452_vm15 = vcmp.ne.s32.totalorder %v11594_v36, 0  ;;  %vm6488_vm0 = vcmp.lt.s32.totalorder %v11594_v36, 0 }
 0x187   : > { %13391 = vst [vmem:[#allocation18_spill] sm:$0xff] %v13390_v51  ;;  %v6186_v55 = vshrl.u32 %v11567_v57, 4  ;;  %v13393_v58 = vmov 0  ;;  %v11664_v59 = vmul.u32.u64.low 3817748708, %v11610_v30  ;;  %v11665_v60 = vmul.u32.u64.high 3817748708, %v11610_v30, %v11664_v59  ;;  %vm11692_vm6 = vmand %vm6488_vm0, %vm6452_vm15 }
 0x188   : > { %13392 = vst [vmem:[#allocation19_spill] sm:$0xff] %v11650_v52  ;;  %v13394_v58 = vsel %vm11659_vm4, 4294967295, %v13393_v58  ;;  %v11668_v41 = vmul.u32.u64.low 3817748708, %v11613_v54  ;;  %v11669_v42 = vmul.u32.u64.high 3817748708, %v11613_v54, %v11668_v41  ;;  %v11672_v7 = vsub.s32 %v7874_v31, %v11381_v46 }
 0x189   : > { %13395 = vst [vmem:[#allocation20_spill] sm:$0xff] %v13394_v58  ;;  %v13397_v0 = vmov 0  ;;  %v11681_v6 = vadd.s32 18, %v11594_v36  ;;  %v11684_v57 = vsub.s32 %v11471_v1, %v6176_v32  ;;  %v6209_v13 = vmul.u32 18, %v6208_v39 }
 0x18a   : > { %13396 = vst [vmem:[#allocation21_spill] sm:$0xff] %v11672_v7  ;;  %v13398_v0 = vsel %vm11676_vm2, 4294967295, %v13397_v0  ;;  %v13402_v31 = vmov 0  ;;  %v11697_v47 = vsub.s32 %v11483_v50, %v6154_v45  ;;  %v6187_v32 = vmul.u32 18, %v6186_v55 }
 0x18b   : > { %13399 = vst [vmem:[#allocation22_spill] sm:$0xff] %v13398_v0  ;;  %13400 = vst [vmem:[#allocation23_spill] sm:$0xff] %v11681_v6  ;;  %v13403_v31 = vsel %vm11692_vm6, 4294967295, %v13402_v31  ;;  %v11700_v3 = vmul.u32.u64.low 3817748708, %v11639_v24  ;;  %v11701_v21 = vmul.u32.u64.high 3817748708, %v11639_v24, %v11700_v3  ;;  %v6219_v39 = vshrl.u32 %v11599_v22, 4 }
 0x18c   : > { %13401 = vst [vmem:[#allocation24_spill] sm:$0xff] %v11684_v57  ;;  %13404 = vst [vmem:[#allocation25_spill] sm:$0xff] %v13403_v31  ;;  %v6197_v59 = vshrl.u32 %v11603_v25, 4  ;;  %v11722_v55 = vadd.s32 176, %v11381_v46  ;;  %vm6455_vm8 = vcmp.ne.s32.totalorder %v11684_v57, 0  ;;  %v11730_v25 = vsub.s32 %v11520_v53, %v6209_v13 }
 0x18d   : > { %v6252_v3 = vshrl.u32 %v11626_v43, 4  ;;  %vm6491_vm10 = vcmp.lt.s32.totalorder %v11684_v57, 0  ;;  %v11735_v45 = vadd.s32 18, %v11684_v57  ;;  %v11739_v41 = vadd.s32 160, %v11381_v46 }
 0x18e   : > { %13405 = vst [vmem:[#allocation26_spill] sm:$0xff] %v11730_v25  ;;  %v11743_v22 = vsub.s32 %v11541_v28, %v6187_v32  ;;  %v6220_v50 = vmul.u32 18, %v6219_v39  ;;  %v6198_v53 = vmul.u32 18, %v6197_v59  ;;  %v6230_v13 = vshrl.u32 %v11665_v60, 4  ;;  %vm11815_vm0 = vmand %vm6491_vm10, %vm6455_vm8 }
 0x18f   : > { %13406 = vst [vmem:[#allocation27_spill] sm:$0xff] %v11735_v45  ;;  %v6263_v43 = vshrl.u32 %v11669_v42, 4  ;;  %v11748_v1 = vmul.u32.u64.low 3817748708, %v11722_v55  ;;  %v11749_v20 = vmul.u32.u64.high 3817748708, %v11722_v55, %v11748_v1  ;;  %v11752_v61 = vadd.s32 18, %v11697_v47 }
 0x190   : > { %13407 = vst [vmem:[#allocation28_spill] sm:$0xff] %v11743_v22  ;;  %v6253_v27 = vmul.u32 18, %v6252_v3  ;;  %v11756_v62 = vadd.s32 184, %v11381_v46  ;;  %v6241_v32 = vshrl.u32 %v11701_v21, 4  ;;  %v11766_v39 = vadd.s32 168, %v11381_v46 }
 0x191   : > { %v11762_v60 = vmul.u32.u64.low 3817748708, %v11739_v41  ;;  %v11763_v42 = vmul.u32.u64.high 3817748708, %v11739_v41, %v11762_v60  ;;  %v11772_v59 = vadd.s32 18, %v11730_v25  ;;  %v11776_v3 = vsub.s32 %v11570_v9, %v6220_v50 }
 0x192   : > { %v11782_v60 = vsub.s32 %v11573_v11, %v6198_v53  ;;  %v6231_v8 = vmul.u32 18, %v6230_v13  ;;  %v6264_v7 = vmul.u32 18, %v6263_v43  ;;  %v11787_v6 = vadd.s32 18, %v11743_v22 }
 0x193   : > { %v11790_v31 = vsub.s32 %v11587_v15, %v6253_v27  ;;  %v11793_v9 = vmul.u32.u64.low 3817748708, %v11756_v62  ;;  %v11794_v50 = vmul.u32.u64.high 3817748708, %v11756_v62, %v11793_v9  ;;  %v6242_v17 = vmul.u32 18, %v6241_v32 }
 0x194   : > { %13408 = vst [vmem:[#allocation29_spill] sm:$0xff] %v11787_v6  ;;  %v11797_v52 = vmul.u32.u64.low 3817748708, %v11766_v39  ;;  %v11798_v0 = vmul.u32.u64.high 3817748708, %v11766_v39, %v11797_v52  ;;  %v11801_v11 = vadd.s32 208, %v11381_v46  ;;  %v11806_v53 = vadd.s32 18, %v11776_v3 }
 0x195   : > { %13409 = vst [vmem:[#allocation30_spill] sm:$0xff] %v11790_v31  ;;  %v11809_v27 = vadd.s32 192, %v11381_v46  ;;  %v11821_v52 = vsub.s32 %v11610_v30, %v6231_v8  ;;  %v11824_v13 = vsub.s32 %v11613_v54, %v6264_v7  ;;  %v6296_v43 = vshrl.u32 %v11749_v20, 4 }
 0x196   : > { %vm13414_vm15 = vcmp.ne.s32.totalorder %v11697_v47, 0  ;;  %vm13415_vm12 = vcmp.lt.s32.totalorder %v11697_v47, 0  ;;  %v11837_v9 = vadd.s32 18, %v11782_v60  ;;  %v11841_v8 = vadd.s32 216, %v11381_v46 }
 0x197   : > { %13412 = vst [vmem:[#allocation31_spill] sm:$0xff] %v11821_v52  ;;  %13413 = vst [vmem:[#allocation32_spill] sm:$0xff] %v11824_v13  ;;  %vm13419_vm7 = vcmp.ne.s32.totalorder %v11730_v25, 0  ;;  %vm13420_vm2 = vcmp.lt.s32.totalorder %v11730_v25, 0  ;;  %v13421_v54 = vmov 0  ;;  %v11854_v7 = vsub.s32 %v11639_v24, %v6242_v17 }
 0x198   : > { %vm11831_vm6 = vmand %vm13415_vm12, %vm13414_vm15  ;;  %v6274_v20 = vshrl.u32 %v11763_v42, 4  ;;  %v11858_v4 = vmul.u32.u64.low 3817748708, %v11801_v11  ;;  %v11859_v26 = vmul.u32.u64.high 3817748708, %v11801_v11, %v11858_v4  ;;  %vm13425_vm15 = vcmp.ne.s32.totalorder %v11743_v22, 0 }
 0x199   : > { %vm11849_vm12 = vmand %vm13420_vm2, %vm13419_vm7  ;;  %13423 = vst [vmem:[#allocation34_spill] sm:$0xff] %v11854_v7  ;;  %vm13426_vm10 = vcmp.lt.s32.totalorder %v11743_v22, 0  ;;  %vm6498_vm2 = vcmp.lt.s32.totalorder %v11790_v31, 0  ;;  %v11873_v17 = vmul.u32.u64.low 3817748708, %v11809_v27  ;;  %v11874_v24 = vmul.u32.u64.high 3817748708, %v11809_v27, %v11873_v17 }
 0x19a   : > { %v13422_v54 = vsel %vm11849_vm12, 4294967295, %v13421_v54  ;;  %vm11867_vm8 = vmand %vm13426_vm10, %vm13425_vm15  ;;  %v11877_v42 = vadd.s32 200, %v11381_v46  ;;  %vm13431_vm7 = vcmp.ne.s32.totalorder %v11776_v3, 0  ;;  %vm13432_vm4 = vcmp.lt.s32.totalorder %v11776_v3, 0 }
 0x19b   : > { %vm11885_vm14 = vmand %vm13432_vm4, %vm13431_vm7  ;;  %vm6460_vm10 = vcmp.ne.s32.totalorder %v11821_v52, 0  ;;  %v6297_v17 = vmul.u32 18, %v6296_v43  ;;  %vm13436_vm13 = vcmp.ne.s32.totalorder %v11782_v60, 0  ;;  %vm13437_vm11 = vcmp.lt.s32.totalorder %v11782_v60, 0 }
 0x19c   : > { %vm11898_vm5 = vmand %vm13437_vm11, %vm13436_vm13  ;;  %v6307_v56 = vshrl.u32 %v11794_v50, 4  ;;  %v11905_v51 = vmul.u32.u64.low 3817748708, %v11841_v8  ;;  %v11906_v63 = vmul.u32.u64.high 3817748708, %v11841_v8, %v11905_v51  ;;  %vm13440_vm7 = vcmp.ne.s32.totalorder %v11790_v31, 0 }
 0x19d   : > { %vm11910_vm1 = vmand %vm6498_vm2, %vm13440_vm7  ;;  %v13441_v43 = vmov 0  ;;  %vm6461_vm15 = vcmp.ne.s32.totalorder %v11854_v7, 0  ;;  %vm6497_vm11 = vcmp.lt.s32.totalorder %v11854_v7, 0  ;;  %v6285_v2 = vshrl.u32 %v11798_v0, 4 }
 0x19e   : > { %v13442_v43 = vsel %vm11910_vm1, 4294967295, %v13441_v43  ;;  %v11918_v49 = vadd.s32 18, %v11790_v31  ;;  %vm13445_vm13 = vcmp.lt.s32.totalorder %v11821_v52, 0  ;;  %v13446_v51 = vmov 0 }
 0x19f   : > { %13443 = vst [vmem:[#allocation39_spill] sm:$0xff] %v13442_v43  ;;  %vm11924_vm4 = vmand %vm13445_vm13, %vm6460_vm10  ;;  %v11929_v50 = vadd.s32 18, %v11821_v52  ;;  %v11932_v38 = vmul.u32.u64.low 3817748708, %v11877_v42  ;;  %v11933_v37 = vmul.u32.u64.high 3817748708, %v11877_v42, %v11932_v38  ;;  %vm13450_vm2 = vcmp.ne.s32.totalorder %v11824_v13, 0 }
 0x1a0   : > { %13444 = vst [vmem:[#allocation40_spill] sm:$0xff] %v11918_v49  ;;  %v13447_v51 = vsel %vm11924_vm4, 4294967295, %v13446_v51  ;;  %vm13451_vm7 = vcmp.lt.s32.totalorder %v11824_v13, 0  ;;  %v11948_v19 = vadd.s32 18, %v11824_v13  ;;  %v11951_v35 = vadd.s32 18, %v11854_v7  ;;  %vm11972_vm13 = vmand %vm6497_vm11, %vm6461_vm15 }
 0x1a1   : > { %13448 = vst [vmem:[#allocation41_spill] sm:$0xff] %v13447_v51  ;;  %13449 = vst [vmem:[#allocation42_spill] sm:$0xff] %v11929_v50  ;;  %v11954_v38 = vsub.s32 %v11722_v55, %v6297_v17  ;;  %v13458_v55 = vmov 0  ;;  %v6308_v17 = vmul.u32 18, %v6307_v56  ;;  %v6286_v45 = vmul.u32 18, %v6285_v2 }
 0x1a2   : > { %vm11943_vm10 = vmand %vm13451_vm7, %vm13450_vm2  ;;  %13455 = vst [vmem:[#allocation44_spill] sm:$0xff] %v11948_v19  ;;  %v13459_v55 = vsel %vm11972_vm13, 4294967295, %v13458_v55  ;;  %v6340_v22 = vshrl.u32 %v11859_v26, 4  ;;  %v6318_v2 = vshrl.u32 %v11874_v24, 4  ;;  %v6351_v57 = vshrl.u32 %v11906_v63, 4 }
 0x1a3   : > { %13456 = vst [vmem:[#allocation45_spill] sm:$0xff] %v11951_v35  ;;  %13457 = vst [vmem:[#allocation46_spill] sm:$0xff] %v11954_v38  ;;  %vm6466_vm15 = vcmp.ne.s32.totalorder %v11954_v38, 0  ;;  %v12016_v24 = vadd.s32 18, %v11954_v38  ;;  %v12025_v56 = vsub.s32 %v11766_v39, %v6286_v45  ;;  %v6040_v50 = vadd.s32 224, %v11381_v46 }
 0x1a4   : > { %13460 = vst [vmem:[#allocation47_spill] sm:$0xff] %v13459_v55  ;;  %v6341_v52 = vmul.u32 18, %v6340_v22  ;;  %v6319_v51 = vmul.u32 18, %v6318_v2  ;;  %v6329_v7 = vshrl.u32 %v11933_v37, 4  ;;  %v6041_v2 = vadd.s32 232, %v11381_v46 }
 0x1a5   : > { %13462 = vst [vmem:[#allocation49_spill] sm:$0xff] %v12016_v24  ;;  %13464 = vst [vmem:[#allocation51_spill] sm:$0xff] %v12025_v56  ;;  %v6352_v45 = vmul.u32 18, %v6351_v57  ;;  %vm13470_vm11 = vcmp.lt.s32.totalorder %v11954_v38, 0  ;;  %v12087_v49 = vadd.s32 18, %v12025_v56  ;;  %v13484_v43 = vmov 0 }
 0x1a6   : > { %v12045_v37 = vsub.s32 %v11801_v11, %v6341_v52  ;;  %v12055_v19 = vsub.s32 %v11809_v27, %v6319_v51  ;;  %vm12064_vm2 = vmand %vm13470_vm11, %vm6466_vm15  ;;  %v13471_v11 = vmov 0  ;;  %v13476_v51 = vmov 0 }
 0x1a7   : > { %v13472_v11 = vsel %vm12064_vm2, 4294967295, %v13471_v11  ;;  %13480 = vst [vmem:[#allocation60_spill] sm:$0xff] %v12087_v49 }
 0x1a8   : > { %13466 = vst [vmem:[#allocation53_spill] sm:$0xff] %v12045_v37  ;;  %13468 = vst [vmem:[#allocation55_spill] sm:$0xff] %v12055_v19 }
 0x1ef   : > { %v11758_v28 = vpop.f32.mrb[0].mxu1 }
 0x1f0   : > { %v11768_v1 = vpop.f32.mrb[1].mxu1 }
 0x1f1   : > { %v11778_v21 = vpop.f32.mrb[2].mxu1 }
 0x1f2   : > { %v11784_v36 = vpop.f32.mrb[3].mxu1 }
 0x1f7   : > { %v11843_v30 = vpop.f32.mrb[4].mxu1 }
 0x1f8   : > { %13418 = vst [vmem:[#allocation33_spill] sm:$0xff] %v11843_v30  ;;  %v11861_v58 = vpop.f32.mrb[5].mxu1  ;;  %v13427_v30 = vmov 0 }
 0x1f9   : > { %13424 = vst [vmem:[#allocation35_spill] sm:$0xff] %v11861_v58  ;;  %v13428_v30 = vsel %vm11867_vm8, 4294967295, %v13427_v30  ;;  %v11879_v4 = vpop.f32.mrb[6].mxu1  ;;  %v13433_v58 = vmov 0 }
 0x1fa   : > { %13429 = vst [vmem:[#allocation36_spill] sm:$0xff] %v13428_v30  ;;  %13430 = vst [vmem:[#allocation37_spill] sm:$0xff] %v11879_v4  ;;  %v13434_v58 = vsel %vm11885_vm14, 4294967295, %v13433_v58  ;;  %v11892_v10 = vpop.f32.mrb[7].mxu1  ;;  %v13438_v4 = vmov 0 }
 0x1fb   : > { %13435 = vst [vmem:[#allocation38_spill] sm:$0xff] %v11892_v10  ;;  %v13439_v4 = vsel %vm11898_vm5, 4294967295, %v13438_v4  ;;  %v6275_v10 = vmul.u32 18, %v6274_v20  ;;  %v13452_v20 = vmov 0 }
 0x1fc   : > { %v13453_v20 = vsel %vm11943_vm10, 4294967295, %v13452_v20 }
 0x1fd   : > { %13454 = vst [vmem:[#allocation43_spill] sm:$0xff] %v13453_v20  ;;  %v11983_v25 = vsub.s32 %v11739_v41, %v6275_v10  ;;  %v12019_v10 = vsub.s32 %v11756_v62, %v6308_v17  ;;  %v6042_v41 = vadd.s32 240, %v11381_v46  ;;  %v6043_v17 = vadd.s32 248, %v11381_v46 }
 0x1fe   : > { %v12033_v62 = vmul.u32.u64.low 3817748708, %v6040_v50  ;;  %v12034_v63 = vmul.u32.u64.high 3817748708, %v6040_v50, %v12033_v62  ;;  %v6330_v20 = vmul.u32 18, %v6329_v7 }
 0x1ff   : > { %v11976_v0 = vpop.f32.mrb[8].mxu1  ;;  %13461 = vst [vmem:[#allocation48_spill] sm:$0xff] %v11983_v25  ;;  %13463 = vst [vmem:[#allocation50_spill] sm:$0xff] %v12019_v10  ;;  %v12029_v35 = vmul.u32.u64.low 3817748708, %v6042_v41  ;;  %v12030_v55 = vmul.u32.u64.high 3817748708, %v6042_v41, %v12029_v35  ;;  %v12038_v13 = vadd.s32 18, %v11983_v25 }
 0x200   : > { %v11986_v6 = vpop.f32.mrb[9].mxu1  ;;  %v12047_v35 = vmul.u32.u64.low 3817748708, %v6043_v17  ;;  %v12048_v39 = vmul.u32.u64.high 3817748708, %v6043_v17, %v12047_v35  ;;  %v6362_v52 = vshrl.u32 %v12034_v63, 4  ;;  %vm13474_vm7 = vcmp.ne.s32.totalorder %v11983_v25, 0 }
 0x201   : > { %v12001_v26 = vpop.f32.mrb[10].mxu1  ;;  %13465 = vst [vmem:[#allocation52_spill] sm:$0xff] %v12038_v13  ;;  %v6384_v57 = vshrl.u32 %v12030_v55, 4  ;;  %v12070_v35 = vmul.u32.u64.low 3817748708, %v6041_v2  ;;  %v12071_v27 = vmul.u32.u64.high 3817748708, %v6041_v2, %v12070_v35  ;;  %vm13475_vm13 = vcmp.lt.s32.totalorder %v11983_v25, 0 }
 0x202   : > { %v12013_v30 = vpop.f32.mrb[11].mxu1  ;;  %vm12079_vm10 = vmand %vm13475_vm13, %vm13474_vm7  ;;  %v12084_v55 = vadd.s32 18, %v12019_v10  ;;  %v12090_v63 = vsub.s32 %v11841_v8, %v6352_v45  ;;  %vm13482_vm15 = vcmp.ne.s32.totalorder %v12019_v10, 0  ;;  %vm13483_vm11 = vcmp.lt.s32.totalorder %v12019_v10, 0  ;;  %v13581_v13 = vld [vmem:[#allocation22_spill] sm:$0xff] }
 0x203   : > { %v13477_v51 = vsel %vm12079_vm10, 4294967295, %v13476_v51  ;;  %v6385_v35 = vmul.u32 18, %v6384_v57  ;;  %vm12096_vm4 = vmand %vm13483_vm11, %vm13482_vm15  ;;  %v13487_v8 = vsel %vm11461_vm3, %v11447_v16, %v11424_v12  ;;  %v13490_v57 = vsel %vm11493_vm9, %v11498_v34, %v11439_v14 }
 0x204   : > { %13478 = vst [vmem:[#allocation58_spill] sm:$0xff] %v13477_v51  ;;  %13479 = vst [vmem:[#allocation59_spill] sm:$0xff] %v12084_v55  ;;  %v13485_v43 = vsel %vm12096_vm4, 4294967295, %v13484_v43  ;;  %vm12108_vm1 = vcmp.lt.s32.totalorder %v13487_v8, 16  ;;  %vm12117_vm15 = vcmp.lt.s32.totalorder %v13490_v57, 16  ;;  %vm13493_vm3 = vcmp.ne.s32.totalorder %v12025_v56, 0 }
 0x205   : > { %13481 = vst [vmem:[#allocation61_spill] sm:$0xff] %v12090_v63  ;;  %13486 = vst [vmem:[#allocation62_spill] sm:$0xff] %v13485_v43  ;;  %vm13494_vm11 = vcmp.lt.s32.totalorder %v12025_v56, 0  ;;  %v13495_v12 = vmov 0  ;;  %v12134_v16 = vadd.s32 18, %v12045_v37  ;;  %v12138_v14 = vsub.s32 %v11877_v42, %v6330_v20 }
 0x206   : > { %vm12129_vm7 = vmand %vm13494_vm11, %vm13493_vm3  ;;  %vm13500_vm13 = vnez %v13367_v18  ;;  %vm13504_vm3 = vnez %v13371_v44  ;;  %vm6504_vm9 = vcmp.lt.s32.totalorder %v12055_v19, 0  ;;  %v12159_v42 = vsub.s32 %v6042_v41, %v6385_v35 }
 0x207   : > { %v12042_v22 = vpop.f32.mrb[12].mxu1  ;;  %v13496_v12 = vsel %vm12129_vm7, 4294967295, %v13495_v12  ;;  %13498 = vst [vmem:[#allocation64_spill] sm:$0xff] %v12134_v16  ;;  %13499 = vst [vmem:[#allocation65_spill] sm:$0xff] %v12138_v14  ;;  %v13501_v33 = vsel %vm13500_vm13, %v11480_v29, %v11427_v48  ;;  %v6373_v48 = vshrl.u32 %v12071_v27, 4  ;;  %vm13509_vm13 = vcmp.ne.s32.totalorder %v12045_v37, 0 }
 0x208   : > { %v12051_v62 = vpop.f32.mrb[13].mxu1  ;;  %13497 = vst [vmem:[#allocation63_spill] sm:$0xff] %v13496_v12  ;;  %vm12145_vm2 = vcmp.lt.s32.totalorder %v13501_v33, 16  ;;  %13508 = vst [vmem:[#allocation66_spill] sm:$0xff] %v12159_v42  ;;  %vm6471_vm14 = vcmp.ne.s32.totalorder %v12090_v63, 0  ;;  %vm6507_vm8 = vcmp.lt.s32.totalorder %v12090_v63, 0 }
 0x209   : > { %13467 = vst [vmem:[#allocation54_spill] sm:$0xff] %v12051_v62  ;;  %v12058_v31 = vpop.f32.mrb[14].mxu1  ;;  %v12187_v20 = vadd.s32 18, %v12055_v19  ;;  %v12198_v27 = vadd.s32 18, %v12090_v63  ;;  %vm6505_vm4 = vcmp.lt.s32.totalorder %v12138_v14, 0  ;;  %vm12206_vm7 = vmand %vm6507_vm8, %vm6471_vm14  ;;  %v13522_v35 = vmov 0 }
 0x20a   : > { %13469 = vst [vmem:[#allocation56_spill] sm:$0xff] %v12058_v31  ;;  %v12073_v7 = vpop.f32.mrb[15].mxu1  ;;  %v6395_v31 = vshrl.u32 %v12048_v39, 4  ;;  %v13505_v39 = vsel %vm13504_vm3, %v11501_v40, %v11441_v5  ;;  %vm13510_vm3 = vcmp.lt.s32.totalorder %v12045_v37, 0  ;;  %v13511_v5 = vmov 0 }
 0x20b   : > { %13473 = vst [vmem:[#allocation57_spill] sm:$0xff] %v12073_v7  ;;  %v6363_v7 = vmul.u32 18, %v6362_v52  ;;  %vm12154_vm11 = vcmp.lt.s32.totalorder %v13505_v39, 16  ;;  %vm12170_vm5 = vmand %vm13510_vm3, %vm13509_vm13  ;;  %vm13517_vm13 = vcmp.ne.s32.totalorder %v12055_v19, 0  ;;  %v13523_v35 = vsel %vm12206_vm7, 4294967295, %v13522_v35 }
 0x20c   : > { %v6396_v18 = vmul.u32 18, %v6395_v31  ;;  %v13512_v5 = vsel %vm12170_vm5, 4294967295, %v13511_v5  ;;  %13515 = vst [vmem:[#allocation69_spill] sm:$0xff] %v12187_v20  ;;  %vm12193_vm3 = vmand %vm6504_vm9, %vm13517_vm13  ;;  %vm6474_vm9 = vcmp.ne.s32.totalorder %v12159_v42, 0  ;;  %v12213_v8 = vadd.s32 272, %v11381_v46 }
 0x20d   : > { %13513 = vst [vmem:[#allocation67_spill] sm:$0xff] %v13512_v5  ;;  %v12176_v40 = vsub.s32 %v6040_v50, %v6363_v7  ;;  %v13518_v50 = vmov 0  ;;  %13521 = vst [vmem:[#allocation72_spill] sm:$0xff] %v12198_v27  ;;  %v6374_v7 = vmul.u32 18, %v6373_v48  ;;  %v12216_v33 = vadd.s32 18, %v12138_v14 }
 0x20e   : > { %v12189_v41 = vsub.s32 %v6043_v17, %v6396_v18  ;;  %v13519_v50 = vsel %vm12193_vm3, 4294967295, %v13518_v50  ;;  %13524 = vst [vmem:[#allocation73_spill] sm:$0xff] %v13523_v35  ;;  %13525 = vst [vmem:[#allocation74_spill] sm:$0xff] %v12213_v8  ;;  %vm13528_vm14 = vcmp.ne.s32.totalorder %v12138_v14, 0  ;;  %v13529_v17 = vmov 0  ;;  %v13567_v35 = vld [vmem:[#allocation18_spill] sm:$0xff] }
 0x20f   : > { %13514 = vst [vmem:[#allocation68_spill] sm:$0xff] %v12176_v40  ;;  %13520 = vst [vmem:[#allocation71_spill] sm:$0xff] %v13519_v50  ;;  %vm6508_vm12 = vcmp.lt.s32.totalorder %v12176_v40, 0  ;;  %v12220_v39 = vsub.s32 %v6041_v2, %v6374_v7  ;;  %v12230_v29 = vadd.s32 18, %v12159_v42  ;;  %vm13538_vm13 = vcmp.ne.s32.totalorder %v12176_v40, 0  ;;  %v13574_v50 = vld [vmem:[#allocation20_spill] sm:$0xff] }
 0x210   : > { %13516 = vst [vmem:[#allocation70_spill] sm:$0xff] %v12189_v41  ;;  %13526 = vst [vmem:[#allocation75_spill] sm:$0xff] %v12216_v33  ;;  %vm6511_vm10 = vcmp.lt.s32.totalorder %v12189_v41, 0  ;;  %v13539_v7 = vmov 0  ;;  %v12267_v23 = vmul.u32.u64.low 3817748708, %v12213_v8  ;;  %v12268_v46 = vmul.u32.u64.high 3817748708, %v12213_v8, %v12267_v23 }
 0x211   : > { %v9940_v57 = vpop.f32.mrb[0].mxu0  ;;  %13527 = vst [vmem:[#allocation76_spill] sm:$0xff] %v12220_v39  ;;  %vm12225_vm8 = vmand %vm6505_vm4, %vm13528_vm14  ;;  %vm13533_vm4 = vcmp.lt.s32.totalorder %v12159_v42, 0  ;;  %v13549_v34 = vmov 0 }
 0x212   : > { %v9990_v18 = vadd.f32 %v9940_v57, %v11758_v28  ;;  %v5760_v48 = vpop.f32.mrb[1].mxu0  ;;  %v13530_v17 = vsel %vm12225_vm8, 4294967295, %v13529_v17  ;;  %13532 = vst [vmem:[#allocation78_spill] sm:$0xff] %v12230_v29  ;;  %vm12247_vm14 = vmand %vm13533_vm4, %vm6474_vm9  ;;  %v13534_v57 = vmov 0  ;;  %v12264_v28 = vadd.s32 18, %v12189_v41  ;;  %v13560_v29 = vld [vmem:[#allocation17_spill] sm:$0xff] }
 0x213   : > { %13531 = vst [vmem:[#allocation77_spill] sm:$0xff] %v13530_v17  ;;  %v9991_v31 = vadd.f32 %v5760_v48, %v11768_v1  ;;  %v9941_v2 = vpop.f32.mrb[2].mxu0  ;;  %v13535_v57 = vsel %vm12247_vm14, 4294967295, %v13534_v57  ;;  %v12252_v1 = vadd.s32 18, %v12176_v40  ;;  %vm12259_vm3 = vmand %vm6508_vm12, %vm13538_vm13  ;;  %vm13544_vm12 = vcmp.ne.s32.totalorder %v12189_v41, 0  ;;  %v13563_v17 = vld [vmem:[#allocation7_spill] sm:$0xff] }
 0x214   : > { %13536 = vst [vmem:[#allocation79_spill] sm:$0xff] %v13535_v57  ;;  %v9992_v48 = vadd.f32 %v9941_v2, %v11778_v21  ;;  %v5763_v44 = vpop.f32.mrb[3].mxu0  ;;  %v13540_v7 = vsel %vm12259_vm3, 4294967295, %v13539_v7  ;;  %13542 = vst [vmem:[#allocation82_spill] sm:$0xff] %v12264_v28  ;;  %v13545_v2 = vmov 0  ;;  %vm6473_vm13 = vcmp.ne.s32.totalorder %v12220_v39, 0 }
 0x215   : > { %13537 = vst [vmem:[#allocation80_spill] sm:$0xff] %v12252_v1  ;;  %13541 = vst [vmem:[#allocation81_spill] sm:$0xff] %v13540_v7  ;;  %v9993_v63 = vadd.f32 %v5763_v44, %v11784_v36  ;;  %vm6509_vm4 = vcmp.lt.s32.totalorder %v12220_v39, 0  ;;  %v6770_v23 = vsel %vm12108_vm1, %v9990_v18, 0.0  ;;  %v12293_v21 = vadd.s32 18, %v12220_v39  ;;  %v13553_v1 = vld [vmem:[#allocation16_spill] sm:$0xff] }
 0x216   : > { %13543 = vst [vmem:[#allocation83_spill] sm:$0xff] %v12268_v46  ;;  %vm12278_vm9 = vmand %vm6511_vm10, %vm13544_vm12  ;;  %v6771_v36 = vsel %vm12117_vm15, %v9992_v48, 0.0  ;;  %v6768_v8 = vsel %vm12145_vm2, %v9991_v31, 0.0  ;;  %vm13554_vm10 = vnez %v13553_v1  ;;  %v13555_v48 = vld [vmem:[#allocation9_spill] sm:$0xff]  ;;  %vm13561_vm15 = vnez %v13560_v29  ;;  %v13562_v57 = vld [vmem:[#allocation11_spill] sm:$0xff] }
 0x217   : > { %v13546_v2 = vsel %vm12278_vm9, 4294967295, %v13545_v2  ;;  %13548 = vst [vmem:[#allocation85_spill] sm:$0xff] %v12293_v21  ;;  %v6805_v46 = vpack.c.bf16 %v6771_v36, %v6770_v23  ;;  %v9219_v14 = vpack.c.bf16 %v6771_v36, %v6771_v36  ;;  %v6769_v45 = vsel %vm12154_vm11, %v9993_v63, 0.0  ;;  %vm12307_vm1 = vmand %vm6509_vm4, %vm6473_vm13  ;;  %v13552_v63 = vld [vmem:[#allocation6_spill] sm:$0xff]  ;;  %v13556_v7 = vld [vmem:[#allocation5_spill] sm:$0xff] }
 0x218   : > { %13547 = vst [vmem:[#allocation84_spill] sm:$0xff] %v13546_v2  ;;  %v6804_v18 = vpack.c.bf16 %v6769_v45, %v6768_v8  ;;  %v9218_v33 = vpack.c.bf16 %v6769_v45, %v6769_v45  ;;  %v13550_v34 = vsel %vm12307_vm1, 4294967295, %v13549_v34  ;;  %v13557_v41 = vsel %vm13554_vm10, %v13555_v48, %v13556_v7 }
 0x219   : > { %13551 = vst [vmem:[#allocation86_spill] sm:$0xff] %v13550_v34  ;;  %v6824_v31 = vunpack.c.l.bf16 %v6805_v46  ;;  %v12311_v23 = vunpack.c.h.bf16 %v6805_v46  ;;  %v7052_v52 = vrot.slane %v6805_v46, %v13552_v63  ;;  %v7059_v8 = vrot.slane %v9219_v14, %v13552_v63  ;;  %v9944_v36 = vpop.f32.mrb[4].mxu0 }
 0x21a   : > { %v6822_v45 = vunpack.c.l.bf16 %v6804_v18  ;;  %v6823_v44 = vunpack.c.h.bf16 %v6804_v18  ;;  %v7003_v62 = vrot.slane %v6804_v18, %v13552_v63  ;;  %v7010_v40 = vrot.slane %v9218_v33, %v13552_v63  ;;  %v5776_v2 = vpop.f32.mrb[5].mxu0 }
 0x21b   : > { %vm12322_vm2 = vcmp.lt.s32.totalorder %v13557_v41, 16  ;;  %v6902_v46 = vmul.f32 %v6824_v31, %v6824_v31  ;;  %v7060_v42 = vcombine.high %v7052_v52, %v7052_v52  ;;  %v7061_v14 = vcombine.high %v7059_v8, %v7059_v8  ;;  %v9945_v1 = vpop.f32.mrb[6].mxu0 }
 0x21c   : > { %v13564_v18 = vsel %vm13561_vm15, %v13562_v57, %v13563_v17  ;;  %v7068_v7 = vrot.slane %v7052_v52, %v13552_v63  ;;  %v12341_v48 = vrot.slane %v7059_v8, %v13552_v63  ;;  %v6858_v27 = vadd.f32 %v6823_v44, %v6822_v45  ;;  %v13569_v17 = vld [vmem:[#allocation12_spill] sm:$0xff]  ;;  %v5779_v20 = vpop.f32.mrb[7].mxu0 }
 0x21d   : > { %vm12331_vm11 = vcmp.lt.s32.totalorder %v13564_v18, 16  ;;  %v6900_v29 = vmul.f32 %v6822_v45, %v6822_v45  ;;  %vm13568_vm12 = vnez %v13567_v35  ;;  %v13570_v57 = vld [vmem:[#allocation8_spill] sm:$0xff]  ;;  %v7082_v34 = vrot.slane %v7060_v42, %v13552_v63 }
 0x21e   : > { %v13571_v18 = vsel %vm13568_vm12, %v13569_v17, %v13570_v57  ;;  %v7089_v41 = vrot.slane %v7061_v14, %v13552_v63  ;;  %v6901_v52 = vmul.f32 %v6823_v44, %v6823_v44  ;;  %v7011_v39 = vcombine.high %v7003_v62, %v7003_v62  ;;  %v13576_v17 = vld [vmem:[#allocation15_spill] sm:$0xff]  ;;  %v13577_v57 = vld [vmem:[#allocation10_spill] sm:$0xff] }
 0x21f   : > { %vm12348_vm13 = vcmp.lt.s32.totalorder %v13571_v18, 16  ;;  %v6903_v8 = vmul.f32 %v12311_v23, %v12311_v23  ;;  %v7090_v45 = vcombine.high %v7068_v7, %v7068_v7  ;;  %v6859_v21 = vadd.f32 %v6858_v27, %v6824_v31  ;;  %v13588_v7 = vld [vmem:[#allocation25_spill] sm:$0xff] }
 0x220   : > { %v7012_v35 = vcombine.high %v7010_v40, %v7010_v40  ;;  %vm13575_vm4 = vnez %v13574_v50  ;;  %v7092_v42 = vcombine.high %v7082_v34, %v7082_v34  ;;  %v7093_v16 = vcombine.high %v7089_v41, %v7089_v41 }
 0x221   : > { %v13578_v18 = vsel %vm13575_vm4, %v13576_v17, %v13577_v57  ;;  %v6936_v14 = vadd.f32 %v6901_v52, %v6900_v29  ;;  %v7019_v44 = vrot.slane %v7003_v62, %v13552_v63  ;;  %v7919_v5 = vcombine.low %v7090_v45, %v12341_v48  ;;  %v9948_v25 = vpop.f32.mrb[8].mxu0  ;;  %v13583_v29 = vld [vmem:[#allocation19_spill] sm:$0xff]  ;;  %v13584_v62 = vld [vmem:[#allocation13_spill] sm:$0xff] }
 0x222   : > { %vm12361_vm10 = vcmp.lt.s32.totalorder %v13578_v18, 16  ;;  %v7026_v27 = vrot.slane %v7010_v40, %v13552_v63  ;;  %v7033_v31 = vrot.slane %v7011_v39, %v13552_v63  ;;  %v7040_v50 = vrot.slane %v7012_v35, %v13552_v63  ;;  %v5792_v56 = vpop.f32.mrb[9].mxu0 }
 0x223   : > { %v7918_v17 = vcombine.low %v7082_v34, %v7092_v42  ;;  %v6937_v57 = vadd.f32 %v6936_v14, %v6902_v46  ;;  %v7041_v18 = vcombine.high %v7019_v44, %v7019_v44  ;;  %vm13582_vm15 = vnez %v13581_v13  ;;  %v13590_v34 = vld [vmem:[#allocation23_spill] sm:$0xff]  ;;  %v13591_v46 = vld [vmem:[#allocation14_spill] sm:$0xff]  ;;  %v13595_v14 = vld [vmem:[#allocation21_spill] sm:$0xff]  ;;  %v9949_v49 = vpop.f32.mrb[10].mxu0 }
 0x224   : > { %v13585_v52 = vsel %vm13582_vm15, %v13583_v29, %v13584_v62  ;;  %v12381_v40 = vcombine.low %v7089_v41, %v7093_v16  ;;  %v7042_v39 = vcombine.high %v7026_v27, %v7026_v27  ;;  %v7043_v35 = vcombine.high %v7033_v31, %v7033_v31  ;;  %v13596_v41 = vld [vmem:[#allocation33_spill] sm:$0xff]  ;;  %v12397_v38 = vpop.f32.mrb[11].mxu0 }
 0x225   : > { %vm12377_vm12 = vcmp.lt.s32.totalorder %v13585_v52, 16  ;;  %v7044_v51 = vcombine.high %v7040_v50, %v7040_v50  ;;  %vm13589_vm4 = vnez %v13588_v7  ;;  %v7926_v29 = vrot.slane %v7918_v17, %v13595_v14  ;;  %v13597_v7 = vld [vmem:[#allocation35_spill] sm:$0xff]  ;;  %v13598_v17 = vld [vmem:[#allocation37_spill] sm:$0xff] }
 0x226   : > { %v13592_v42 = vsel %vm13589_vm4, %v13590_v34, %v13591_v46  ;;  %v7933_v62 = vrot.slane %v7919_v5, %v13595_v14  ;;  %v7870_v16 = vcombine.low %v7019_v44, %v7041_v18  ;;  %v9994_v52 = vadd.f32 %v9944_v36, %v13596_v41  ;;  %v13599_v44 = vld [vmem:[#allocation38_spill] sm:$0xff] }
 0x227   : > { %vm12388_vm3 = vcmp.lt.s32.totalorder %v13592_v42, 16  ;;  %v7871_v12 = vcombine.low %v7033_v31, %v7043_v35  ;;  %v7894_v10 = vcombine.low %v7026_v27, %v7042_v39  ;;  %v7895_v55 = vcombine.low %v7040_v50, %v7044_v51 }
 0x228   : > { %v9995_v43 = vadd.f32 %v5776_v2, %v13597_v7  ;;  %v7934_v34 = vcombine.low %v7926_v29, %v7933_v62  ;;  %v7878_v46 = vrot.slane %v7870_v16, %v13595_v14  ;;  %v6774_v42 = vsel %vm12322_vm2, %v9994_v52, 0.0  ;;  %v13613_v29 = vld [vmem:[#allocation26_spill] sm:$0xff] }
 0x229   : > { %v9996_v24 = vadd.f32 %v9945_v1, %v13598_v17  ;;  %v7885_v51 = vrot.slane %v7871_v12, %v13595_v14  ;;  %v7902_v5 = vrot.slane %v7894_v10, %v13595_v14  ;;  %v7909_v2 = vrot.slane %v7895_v55, %v13595_v14 }
 0x22a   : > { %v6772_v36 = vsel %vm12331_vm11, %v9995_v43, 0.0  ;;  %v7941_v28 = vrot.slane %v7934_v34, %v13595_v14  ;;  %v9997_v27 = vadd.f32 %v5779_v20, %v13599_v44  ;;  %v6860_v31 = vadd.f32 %v6859_v21, %v12311_v23 }
 0x22b   : > { %v6775_v1 = vsel %vm12348_vm13, %v9996_v24, 0.0  ;;  %v7886_v50 = vcombine.low %v7878_v46, %v7885_v51  ;;  %v7910_v18 = vcombine.low %v7902_v5, %v7909_v2  ;;  %vm13600_vm2 = vcmask 60416   ;;  %v12428_v24 = vpop.f32.mrb[12].mxu0 }
 0x22c   : > { %v6807_v39 = vpack.c.bf16 %v6775_v1, %v6774_v42  ;;  %v9221_v12 = vpack.c.bf16 %v6775_v1, %v6775_v1  ;;  %8672 = vst.msk [vmem:[%s12406_s22 + $0x8] sm:$0xf] %vm13600_vm2, %v7941_v28  ;;  %v6773_v10 = vsel %vm12361_vm10, %v9997_v27, 0.0  ;;  %v6938_v55 = vadd.f32 %v6937_v57, %v6903_v8  ;;  %v12434_v37 = vpop.f32.mrb[13].mxu0  ;;  %vm13606_vm13 = vmmov %vm13600_vm2 }
 0x22d   : > { %v12423_v43 = vadd.f32 %v9948_v25, %v11976_v0  ;;  %v12426_v19 = vadd.f32 %v5792_v56, %v11986_v6  ;;  %v7893_v20 = vrot.slane %v7886_v50, %v13595_v14  ;;  %v7917_v21 = vrot.slane %v7910_v18, %v13595_v14  ;;  %v13601_v6 = vld [vmem:[#allocation27_spill] sm:$0xff]  ;;  %v13602_v56 = vld [vmem:[#allocation24_spill] sm:$0xff]  ;;  %v12447_v62 = vpop.f32.mrb[14].mxu0  ;;  %vm13607_vm10 = vmmov %vm13600_vm2 }
 0x22e   : > { %v6828_v23 = vunpack.c.l.bf16 %v6807_v39  ;;  %v12432_v33 = vunpack.c.h.bf16 %v6807_v39  ;;  %v7150_v8 = vrot.slane %v6807_v39, %v13552_v63  ;;  %v7157_v25 = vrot.slane %v9221_v12, %v13552_v63  ;;  %v12462_v7 = vpop.f32.mrb[15].mxu0  ;;  %vm13618_vm4 = vmmov %vm13600_vm2 }
 0x22f   : > { %v6806_v0 = vpack.c.bf16 %v6773_v10, %v6772_v36  ;;  %v9220_v57 = vpack.c.bf16 %v6773_v10, %v6773_v10  ;;  %v13603_v35 = vsel %vm11815_vm0, %v13601_v6, %v13602_v56  ;;  %v7950_v16 = vrot.slane %v12381_v40, %v13595_v14  ;;  %8670 = vst.msk [vmem:[%s12406_s22] sm:$0xf] %vm13606_vm13, %v7893_v20  ;;  %vm13626_vm13 = vmmov %vm13618_vm4 }
 0x230   : > { %vm12443_vm11 = vcmp.lt.s32.totalorder %v13603_v35, 16  ;;  %8671 = vst.msk [vmem:[%s12406_s22 + $0x4] sm:$0xf] %vm13607_vm10, %v7917_v21  ;;  %v6906_v41 = vmul.f32 %v6828_v23, %v6828_v23  ;;  %v12457_v15 = vmul.f32 %v12432_v33, %v12432_v33  ;;  %v6778_v52 = vsel %vm12377_vm12, %v12423_v43, 0.0  ;;  %vm13617_vm12 = vmmov %vm13600_vm2 }
 0x231   : > { %v7158_v34 = vcombine.high %v7150_v8, %v7150_v8  ;;  %v7159_v46 = vcombine.high %v7157_v25, %v7157_v25  ;;  %v7173_v42 = vrot.slane %v7157_v25, %v13552_v63  ;;  %v6776_v17 = vsel %vm12388_vm3, %v12426_v19, 0.0  ;;  %v12476_v21 = vpop.f32.mrb[16].mxu0  ;;  %vm13627_vm10 = vmmov %vm13618_vm4 }
 0x232   : > { %v6826_v51 = vunpack.c.l.bf16 %v6806_v0  ;;  %v6827_v5 = vunpack.c.h.bf16 %v6806_v0  ;;  %v7101_v2 = vrot.slane %v6806_v0, %v13552_v63  ;;  %v7108_v36 = vrot.slane %v9220_v57, %v13552_v63  ;;  %v12480_v6 = vpop.f32.mrb[17].mxu0 }
 0x233   : > { %v7166_v28 = vrot.slane %v7150_v8, %v13552_v63  ;;  %v7180_v45 = vrot.slane %v7158_v34, %v13552_v63  ;;  %v7188_v1 = vcombine.high %v7173_v42, %v7173_v42  ;;  %v10000_v44 = vadd.f32 %v9949_v49, %v12001_v26  ;;  %v12495_v34 = vpop.f32.mrb[18].mxu0 }
 0x234   : > { %v12474_v27 = vrot.slane %v7159_v46, %v13552_v63  ;;  %v6861_v50 = vadd.f32 %v6860_v31, %v6826_v51  ;;  %v6904_v18 = vmul.f32 %v6826_v51, %v6826_v51  ;;  %v7109_v39 = vcombine.high %v7101_v2, %v7101_v2 }
 0x235   : > { %v7189_v12 = vcombine.high %v7180_v45, %v7180_v45  ;;  %v8015_v10 = vcombine.low %v7173_v42, %v7188_v1  ;;  %v6905_v43 = vmul.f32 %v6827_v5, %v6827_v5  ;;  %v7110_v20 = vcombine.high %v7108_v36, %v7108_v36 }
 0x236   : > { %v6862_v25 = vadd.f32 %v6861_v50, %v6827_v5  ;;  %v6939_v0 = vadd.f32 %v6938_v55, %v6904_v18  ;;  %v7117_v8 = vrot.slane %v7101_v2, %v13552_v63  ;;  %v7124_v57 = vrot.slane %v7108_v36, %v13552_v63  ;;  %v12497_v2 = vpop.f32.mrb[19].mxu0 }
 0x237   : > { %v8014_v49 = vcombine.low %v7189_v12, %v12474_v27  ;;  %v8029_v26 = vrot.slane %v8015_v10, %v13595_v14  ;;  %v7131_v31 = vrot.slane %v7109_v39, %v13552_v63  ;;  %v7138_v56 = vrot.slane %v7110_v20, %v13552_v63 }
 0x238   : > { %v13608_v35 = vsel %vm11831_vm6, %v11752_v61, %v11697_v47  ;;  %v6863_v46 = vadd.f32 %v6862_v25, %v6828_v23  ;;  %v6940_v42 = vadd.f32 %v6939_v0, %v6905_v43  ;;  %v7139_v51 = vcombine.high %v7117_v8, %v7117_v8  ;;  %v12505_v23 = vpop.f32.mrb[16].mxu1 }
 0x239   : > { %vm12491_vm0 = vcmp.lt.s32.totalorder %v13608_v35, 16  ;;  %v7140_v5 = vcombine.high %v7124_v57, %v7124_v57  ;;  %v8022_v36 = vrot.slane %v8014_v49, %v13595_v14  ;;  %v7141_v1 = vcombine.high %v7131_v31, %v7131_v31  ;;  %v12508_v0 = vpop.f32.mrb[17].mxu1 }
 0x23a   : > { %v7142_v50 = vcombine.high %v7138_v56, %v7138_v56  ;;  %v13611_v32 = vcombine.high %v12341_v48, %v12341_v48  ;;  %v6941_v47 = vadd.f32 %v6940_v42, %v6906_v41  ;;  %v7966_v18 = vcombine.low %v7139_v51, %v7124_v57  ;;  %v12521_v57 = vpop.f32.mrb[18].mxu1 }
 0x23b   : > { %v7990_v39 = vcombine.low %v7140_v5, %v7166_v28  ;;  %v6779_v12 = vsel %vm12443_vm11, %v10000_v44, 0.0  ;;  %v8030_v10 = vcombine.low %v8022_v36, %v8029_v26  ;;  %v7967_v20 = vcombine.low %v7141_v1, %v7138_v56  ;;  %v12531_v56 = vpop.f32.mrb[19].mxu1 }
 0x23c   : > { %v7943_v61 = vcombine.low %v13611_v32, %v7117_v8  ;;  %v7991_v25 = vcombine.low %v7142_v50, %v7180_v45  ;;  %v7974_v49 = vrot.slane %v7966_v18, %v13595_v14  ;;  %v6809_v41 = vpack.c.bf16 %v6779_v12, %v6778_v52 }
 0x23d   : > { %v7998_v48 = vrot.slane %v7990_v39, %v13595_v14  ;;  %v9223_v8 = vpack.c.bf16 %v6779_v12, %v6779_v12  ;;  %vm13612_vm6 = vnez %v13422_v54  ;;  %v8037_v45 = vrot.slane %v8030_v10, %v13595_v14  ;;  %v12529_v54 = vpop.f32.mrb[20].mxu0 }
 0x23e   : > { %v7957_v43 = vrot.slane %v7943_v61, %v13595_v14  ;;  %v13614_v28 = vsel %vm13612_vm6, %v11772_v59, %v13613_v29  ;;  %v7981_v52 = vrot.slane %v7967_v20, %v13595_v14  ;;  %v8005_v31 = vrot.slane %v7991_v25, %v13595_v14  ;;  %v12539_v5 = vpop.f32.mrb[21].mxu0  ;;  %v13619_v20 = vld [vmem:[#allocation36_spill] sm:$0xff]  ;;  %v13621_v25 = vld [vmem:[#allocation29_spill] sm:$0xff] }
 0x23f   : > { %vm12517_vm15 = vcmp.lt.s32.totalorder %v13614_v28, 16  ;;  %v12533_v59 = vunpack.c.l.bf16 %v6809_v41  ;;  %v12535_v35 = vunpack.c.h.bf16 %v6809_v41  ;;  %v7246_v42 = vrot.slane %v6809_v41, %v13552_v63  ;;  %8676 = vst.msk [vmem:[%s12406_s22 + $0x18] sm:$0xf] %vm13617_vm12, %v8037_v45  ;;  %v12546_v50 = vpop.f32.mrb[22].mxu0  ;;  %v13639_v41 = vld [vmem:[#allocation57_spill] sm:$0xff] }
 0x240   : > { %v7958_v26 = vcombine.low %v7950_v16, %v7957_v43  ;;  %v7253_v51 = vrot.slane %v9223_v8, %v13552_v63  ;;  %v7982_v16 = vcombine.low %v7974_v49, %v7981_v52  ;;  %v8006_v36 = vcombine.low %v7998_v48, %v8005_v31  ;;  %v12554_v12 = vpop.f32.mrb[23].mxu0  ;;  %v13622_v49 = vld [vmem:[#allocation28_spill] sm:$0xff] }
 0x241   : > { %v10001_v1 = vadd.f32 %v12397_v38, %v12013_v30  ;;  %v7190_v32 = vcombine.high %v12474_v27, %v12474_v27  ;;  %v12552_v61 = vmul.f32 %v12533_v59, %v12533_v59  ;;  %v7254_v18 = vcombine.high %v7246_v42, %v7246_v42 }
 0x242   : > { %v7965_v40 = vrot.slane %v7958_v26, %v13595_v14  ;;  %v7255_v39 = vcombine.high %v7253_v51, %v7253_v51  ;;  %v7989_v10 = vrot.slane %v7982_v16, %v13595_v14  ;;  %v8013_v43 = vrot.slane %v8006_v36, %v13595_v14  ;;  %v12578_v26 = vpop.f32.mrb[20].mxu1 }
 0x243   : > { %v7262_v30 = vrot.slane %v7246_v42, %v13552_v63  ;;  %v12562_v38 = vrot.slane %v7253_v51, %v13552_v63  ;;  %vm13620_vm2 = vnez %v13619_v20  ;;  %v7276_v8 = vrot.slane %v7254_v18, %v13552_v63  ;;  %v12593_v51 = vpop.f32.mrb[21].mxu1 }
 0x244   : > { %8673 = vst.msk [vmem:[%s12406_s22 + $0xc] sm:$0xf] %vm13618_vm4, %v7965_v40  ;;  %v13623_v48 = vsel %vm13620_vm2, %v13621_v25, %v13622_v49  ;;  %v7283_v29 = vrot.slane %v7255_v39, %v13552_v63  ;;  %v6777_v28 = vsel %vm12491_vm0, %v10001_v1, 0.0  ;;  %v6864_v45 = vadd.f32 %v6863_v46, %v12432_v33  ;;  %v12608_v19 = vpop.f32.mrb[22].mxu1 }
 0x245   : > { %vm12569_vm11 = vcmp.lt.s32.totalorder %v13623_v48, 16  ;;  %8674 = vst.msk [vmem:[%s12406_s22 + $0x10] sm:$0xf] %vm13626_vm13, %v7989_v10  ;;  %v12586_v52 = vmul.f32 %v12535_v35, %v12535_v35  ;;  %v7284_v31 = vcombine.high %v7262_v30, %v7262_v30  ;;  %v6808_v42 = vpack.c.bf16 %v6777_v28, %v6776_v17  ;;  %vm13653_vm13 = vmmov %vm13627_vm10 }
 0x246   : > { %8675 = vst.msk [vmem:[%s12406_s22 + $0x14] sm:$0xf] %vm13627_vm10, %v8013_v43  ;;  %v6942_v55 = vadd.f32 %v6941_v47, %v12457_v15  ;;  %v7286_v33 = vcombine.high %v7276_v8, %v7276_v8  ;;  %v7287_v46 = vcombine.high %v7283_v29, %v7283_v29  ;;  %v9222_v40 = vpack.c.bf16 %v6777_v28, %v6777_v28 }
 0x247   : > { %v12597_v16 = vadd.f32 %v12428_v24, %v12042_v22  ;;  %vm13628_vm0 = vnez %v13434_v58  ;;  %v8086_v15 = vcombine.low %v7262_v30, %v7284_v31  ;;  %v6830_v17 = vunpack.c.l.bf16 %v6808_v42 }
 0x248   : > { %v13629_v36 = vsel %vm13628_vm0, %v11806_v53, %v11776_v3  ;;  %v6831_v47 = vunpack.c.h.bf16 %v6808_v42  ;;  %v7198_v1 = vrot.slane %v6808_v42, %v13552_v63  ;;  %vm13632_vm3 = vnez %v13439_v4  ;;  %v12620_v3 = vpop.f32.mrb[24].mxu0  ;;  %v12622_v53 = vpop.f32.mrb[23].mxu1 }
 0x249   : > { %vm12604_vm6 = vcmp.lt.s32.totalorder %v13629_v36, 16  ;;  %v13633_v22 = vsel %vm13632_vm3, %v11837_v9, %v11782_v60  ;;  %v8087_v18 = vcombine.low %v7276_v8, %v7286_v33  ;;  %v12626_v39 = vcombine.low %v7283_v29, %v7287_v46  ;;  %v12629_v4 = vpop.f32.mrb[25].mxu0  ;;  %v12646_v36 = vpop.f32.mrb[24].mxu1 }
 0x24a   : > { %vm12616_vm12 = vcmp.lt.s32.totalorder %v13633_v22, 16  ;;  %v7205_v10 = vrot.slane %v9222_v40, %v13552_v63  ;;  %v8094_v60 = vrot.slane %v8086_v15, %v13595_v14  ;;  %v6865_v9 = vadd.f32 %v6864_v45, %v6830_v17  ;;  %v12635_v20 = vpop.f32.mrb[26].mxu0  ;;  %v13636_v40 = vld [vmem:[#allocation54_spill] sm:$0xff]  ;;  %v12649_v22 = vpop.f32.mrb[25].mxu1 }
 0x24b   : > { %v6908_v43 = vmul.f32 %v6830_v17, %v6830_v17  ;;  %v6782_v30 = vsel %vm12517_vm15, %v12597_v16, 0.0  ;;  %v8101_v25 = vrot.slane %v8087_v18, %v13595_v14  ;;  %v6909_v49 = vmul.f32 %v6831_v47, %v6831_v47  ;;  %v12638_v29 = vpop.f32.mrb[27].mxu0  ;;  %vm13638_vm15 = vmmov %vm13618_vm4 }
 0x24c   : > { %v7206_v48 = vcombine.high %v7198_v1, %v7198_v1  ;;  %v7207_v8 = vcombine.high %v7205_v10, %v7205_v10  ;;  %v6866_v28 = vadd.f32 %v6865_v9, %v6831_v47  ;;  %v7214_v42 = vrot.slane %v7198_v1, %v13552_v63 }
 0x24d   : > { %v6943_v31 = vadd.f32 %v6942_v55, %v6908_v43  ;;  %v7221_v45 = vrot.slane %v7205_v10, %v13552_v63  ;;  %v8102_v33 = vcombine.low %v8094_v60, %v8101_v25  ;;  %v10003_v16 = vadd.f32 %v12434_v37, %v13636_v40  ;;  %v12657_v60 = vpop.f32.mrb[26].mxu1  ;;  %v13637_v25 = vld [vmem:[#allocation56_spill] sm:$0xff] }
 0x24e   : > { %v7228_v46 = vrot.slane %v7206_v48, %v13552_v63  ;;  %v7235_v44 = vrot.slane %v7207_v8, %v13552_v63  ;;  %v6867_v15 = vadd.f32 %v6866_v28, %v12533_v59  ;;  %v7236_v47 = vcombine.high %v7214_v42, %v7214_v42  ;;  %v12662_v48 = vpop.f32.mrb[28].mxu0  ;;  %v12664_v8 = vpop.f32.mrb[27].mxu1 }
 0x24f   : > { %v6944_v17 = vadd.f32 %v6943_v31, %v6909_v49  ;;  %v7237_v55 = vcombine.high %v7221_v45, %v7221_v45  ;;  %v8109_v1 = vrot.slane %v8102_v33, %v13595_v14  ;;  %v6780_v37 = vsel %vm12569_vm11, %v10003_v16, 0.0  ;;  %vm13650_vm11 = vmmov %vm13627_vm10 }
 0x250   : > { %v7238_v18 = vcombine.high %v7235_v44, %v7235_v44  ;;  %v8038_v10 = vcombine.low %v7190_v32, %v7228_v46  ;;  %v8039_v9 = vcombine.low %v7214_v42, %v7236_v47  ;;  %v10004_v49 = vadd.f32 %v12447_v62, %v13637_v25 }
 0x251   : > { %v6945_v59 = vadd.f32 %v6944_v17, %v12552_v61  ;;  %v8062_v43 = vcombine.low %v7221_v45, %v7237_v55  ;;  %8679 = vst.msk [vmem:[%s12406_s22 + $0x24] sm:$0xf] %vm13638_vm15, %v8109_v1  ;;  %v10005_v28 = vadd.f32 %v12462_v7, %v13639_v41  ;;  %v6868_v31 = vadd.f32 %v6867_v15, %v12535_v35  ;;  %v12672_v61 = vpop.f32.mrb[29].mxu0 }
 0x252   : > { %v8046_v27 = vrot.slane %v8038_v10, %v13595_v14  ;;  %v8063_v32 = vcombine.low %v7235_v44, %v7238_v18  ;;  %v8053_v42 = vrot.slane %v8039_v9, %v13595_v14  ;;  %v6783_v45 = vsel %vm12604_vm6, %v10004_v49, 0.0  ;;  %v12679_v46 = vpop.f32.mrb[30].mxu0  ;;  %v12693_v18 = vpop.f32.mrb[28].mxu1  ;;  %v13642_v49 = vld [vmem:[#allocation39_spill] sm:$0xff] }
 0x253   : > { %v8070_v62 = vrot.slane %v8062_v43, %v13595_v14  ;;  %v6946_v33 = vadd.f32 %v6945_v59, %v12586_v52  ;;  %13640 = vst [vmem:[#allocation6_spill] sm:$0xff] %v12679_v46  ;;  %v6811_v40 = vpack.c.bf16 %v6783_v45, %v6782_v30  ;;  %v9225_v16 = vpack.c.bf16 %v6783_v45, %v6783_v45  ;;  %v12684_v35 = vpop.f32.mrb[31].mxu0 }
 0x254   : > { %v8077_v44 = vrot.slane %v8063_v32, %v13595_v14  ;;  %v6781_v7 = vsel %vm12616_vm12, %v10005_v28, 0.0  ;;  %13641 = vst [vmem:[#allocation16_spill] sm:$0xff] %v12684_v35  ;;  %v8054_v17 = vcombine.low %v8046_v27, %v8053_v42  ;;  %v12690_v13 = vadd.f32 %v12476_v21, %v12505_v23  ;;  %v13644_v27 = vld [vmem:[#allocation40_spill] sm:$0xff]  ;;  %v13645_v32 = vld [vmem:[#allocation30_spill] sm:$0xff] }
 0x255   : > { %v6810_v47 = vpack.c.bf16 %v6781_v7, %v6780_v37  ;;  %v6836_v55 = vunpack.c.l.bf16 %v6811_v40  ;;  %v7344_v30 = vrot.slane %v6811_v40, %v13552_v63  ;;  %v9224_v1 = vpack.c.bf16 %v6781_v7, %v6781_v7  ;;  %v12697_v37 = vpop.f32.mrb[29].mxu1  ;;  %v13666_v35 = vld [vmem:[#allocation34_spill] sm:$0xff] }
 0x256   : > { %v8078_v52 = vcombine.low %v8070_v62, %v8077_v44  ;;  %v8061_v58 = vrot.slane %v8054_v17, %v13595_v14  ;;  %v7351_v10 = vrot.slane %v9225_v16, %v13552_v63  ;;  %v12700_v23 = vunpack.c.h.bf16 %v6811_v40  ;;  %v12711_v42 = vpop.f32.mrb[30].mxu1  ;;  %v12717_v16 = vpop.f32.mrb[32].mxu0 }
 0x257   : > { %v6834_v59 = vunpack.c.l.bf16 %v6810_v47  ;;  %v6835_v9 = vunpack.c.h.bf16 %v6810_v47  ;;  %v6914_v43 = vmul.f32 %v6836_v55, %v6836_v55  ;;  %v7352_v25 = vcombine.high %v7344_v30, %v7344_v30  ;;  %13649 = vst [vmem:[#allocation9_spill] sm:$0xff] %v12711_v42  ;;  %13651 = vst [vmem:[#allocation5_spill] sm:$0xff] %v12717_v16  ;;  %v12719_v7 = vpop.f32.mrb[31].mxu1 }
 0x258   : > { %v8085_v21 = vrot.slane %v8078_v52, %v13595_v14  ;;  %vm13643_vm4 = vnez %v13642_v49  ;;  %8677 = vst.msk [vmem:[%s12406_s22 + $0x1c] sm:$0xf] %vm13650_vm11, %v8061_v58  ;;  %v7353_v62 = vcombine.high %v7351_v10, %v7351_v10  ;;  %v7360_v45 = vrot.slane %v7344_v30, %v13552_v63  ;;  %13652 = vst [vmem:[#allocation17_spill] sm:$0xff] %v12719_v7  ;;  %v13656_v58 = vld [vmem:[#allocation44_spill] sm:$0xff]  ;;  %v12768_v42 = vpop.f32.mrb[32].mxu1 }
 0x259   : > { %v13646_v41 = vsel %vm13643_vm4, %v13644_v27, %v13645_v32  ;;  %v7367_v44 = vrot.slane %v7351_v10, %v13552_v63  ;;  %v6869_v40 = vadd.f32 %v6868_v31, %v6834_v59  ;;  %v7374_v17 = vrot.slane %v7352_v25, %v13552_v63  ;;  %v13654_v32 = vld [vmem:[#allocation43_spill] sm:$0xff]  ;;  %v12734_v31 = vpop.f32.mrb[33].mxu0  ;;  %13678 = vst [vmem:[#allocation12_spill] sm:$0xff] %v12768_v42  ;;  %vm13682_vm4 = vmmov %vm13650_vm11 }
 0x25a   : > { %vm12707_vm2 = vcmp.lt.s32.totalorder %v13646_v41, 16  ;;  %8678 = vst.msk [vmem:[%s12406_s22 + $0x20] sm:$0xf] %vm13653_vm13, %v8085_v21  ;;  %v6912_v52 = vmul.f32 %v6834_v59, %v6834_v59  ;;  %v6913_v49 = vmul.f32 %v6835_v9, %v6835_v9  ;;  %v7295_v27 = vrot.slane %v6810_v47, %v13552_v63  ;;  %v13657_v41 = vld [vmem:[#allocation32_spill] sm:$0xff]  ;;  %13661 = vst [vmem:[#allocation11_spill] sm:$0xff] %v12734_v31  ;;  %v12740_v24 = vpop.f32.mrb[34].mxu0 }
 0x25b   : > { %vm13655_vm10 = vnez %v13654_v32  ;;  %v12737_v15 = vrot.slane %v7353_v62, %v13552_v63  ;;  %v7382_v21 = vcombine.high %v7360_v45, %v7360_v45  ;;  %v6870_v25 = vadd.f32 %v6869_v40, %v6835_v9  ;;  %13662 = vst [vmem:[#allocation7_spill] sm:$0xff] %v12740_v24  ;;  %v12752_v62 = vpop.f32.mrb[35].mxu0  ;;  %v13674_v24 = vld [vmem:[#allocation31_spill] sm:$0xff] }
 0x25c   : > { %v13658_v30 = vsel %vm13655_vm10, %v13656_v58, %v13657_v41  ;;  %v7302_v59 = vrot.slane %v9224_v1, %v13552_v63  ;;  %v7383_v47 = vcombine.high %v7374_v17, %v7374_v17  ;;  %v6947_v32 = vadd.f32 %v6946_v33, %v6912_v52  ;;  %v13663_v41 = vld [vmem:[#allocation47_spill] sm:$0xff]  ;;  %13670 = vst [vmem:[#allocation18_spill] sm:$0xff] %v12752_v62  ;;  %v13671_v52 = vld [vmem:[#allocation41_spill] sm:$0xff] }
 0x25d   : > { %vm12730_vm0 = vcmp.lt.s32.totalorder %v13658_v30, 16  ;;  %v7303_v16 = vcombine.high %v7295_v27, %v7295_v27  ;;  %v7311_v58 = vrot.slane %v7295_v27, %v13552_v63  ;;  %vm13664_vm6 = vnez %v13663_v41  ;;  %v13665_v30 = vld [vmem:[#allocation45_spill] sm:$0xff]  ;;  %v13673_v27 = vld [vmem:[#allocation42_spill] sm:$0xff] }
 0x25e   : > { %v13667_v7 = vsel %vm13664_vm6, %v13665_v30, %v13666_v35  ;;  %v6915_v1 = vmul.f32 %v12700_v23, %v12700_v23  ;;  %v8182_v9 = vcombine.low %v7382_v21, %v7367_v44  ;;  %v6871_v40 = vadd.f32 %v6870_v25, %v6836_v55 }
 0x25f   : > { %vm12748_vm3 = vcmp.lt.s32.totalorder %v13667_v7, 16  ;;  %v7304_v33 = vcombine.high %v7302_v59, %v7302_v59  ;;  %vm13672_vm12 = vnez %v13671_v52  ;;  %v8183_v35 = vcombine.low %v7383_v47, %v12737_v15  ;;  %v12775_v52 = vpop.f32.mrb[33].mxu1 }
 0x260   : > { %v13675_v41 = vsel %vm13672_vm12, %v13673_v27, %v13674_v24  ;;  %v6948_v7 = vadd.f32 %v6947_v32, %v6913_v49  ;;  %v7318_v30 = vrot.slane %v7302_v59, %v13552_v63  ;;  %v7325_v62 = vrot.slane %v7303_v16, %v13552_v63  ;;  %v12778_v27 = vpop.f32.mrb[34].mxu1 }
 0x261   : > { %vm12761_vm15 = vcmp.lt.s32.totalorder %v13675_v41, 16  ;;  %v8190_v55 = vrot.slane %v8182_v9, %v13595_v14  ;;  %v7332_v44 = vrot.slane %v7304_v33, %v13552_v63  ;;  %v7333_v21 = vcombine.high %v7311_v58, %v7311_v58  ;;  %13680 = vst [vmem:[#allocation8_spill] sm:$0xff] %v12778_v27  ;;  %v12783_v42 = vpop.f32.mrb[35].mxu1 }
 0x262   : > { %v13679_v24 = vcombine.high %v12562_v38, %v12562_v38  ;;  %v8197_v47 = vrot.slane %v8183_v35, %v13595_v14  ;;  %v6949_v49 = vadd.f32 %v6948_v7, %v6914_v43  ;;  %v7334_v32 = vcombine.high %v7318_v30, %v7318_v30 }
 0x263   : > { %v7335_v59 = vcombine.high %v7325_v62, %v7325_v62  ;;  %v7384_v16 = vcombine.high %v12737_v15, %v12737_v15  ;;  %v7336_v9 = vcombine.high %v7332_v44, %v7332_v44  ;;  %v8135_v41 = vcombine.low %v7333_v21, %v7318_v30 }
 0x264   : > { %v8111_v25 = vcombine.low %v13679_v24, %v7311_v58  ;;  %v8198_v38 = vcombine.low %v8190_v55, %v8197_v47  ;;  %v8158_v24 = vcombine.low %v7334_v32, %v7360_v45  ;;  %v10007_v43 = vadd.f32 %v12480_v6, %v12508_v0 }
 0x265   : > { %v8134_v58 = vcombine.low %v7325_v62, %v7335_v59  ;;  %v13681_v35 = vrot.slane %v12626_v39, %v13595_v14  ;;  %v8159_v27 = vcombine.low %v7336_v9, %v7374_v17  ;;  %v6786_v44 = vsel %vm12707_vm2, %v12690_v13, 0.0  ;;  %vm13683_vm2 = vmmov %vm13682_vm4 }
 0x266   : > { %v8125_v33 = vrot.slane %v8111_v25, %v13595_v14  ;;  %v10008_v30 = vadd.f32 %v12495_v34, %v12521_v57  ;;  %v8205_v55 = vrot.slane %v8198_v38, %v13595_v14  ;;  %v8149_v62 = vrot.slane %v8135_v41, %v13595_v14  ;;  %vm13684_vm11 = vmmov %vm13683_vm2 }
 0x267   : > { %v8142_v45 = vrot.slane %v8134_v58, %v13595_v14  ;;  %v8166_v6 = vrot.slane %v8158_v24, %v13595_v14  ;;  %v8173_v39 = vrot.slane %v8159_v27, %v13595_v14  ;;  %v10009_v13 = vadd.f32 %v12497_v2, %v12531_v56  ;;  %vm13685_vm13 = vmmov %vm13683_vm2 }
 0x268   : > { %v8126_v7 = vcombine.low %v13681_v35, %v8125_v33  ;;  %v6787_v28 = vsel %vm12730_vm0, %v10008_v30, 0.0  ;;  %8683 = vst.msk [vmem:[%s12406_s22 + $0x34] sm:$0xf] %vm13682_vm4, %v8205_v55  ;;  %v6872_v21 = vadd.f32 %v6871_v40, %v12700_v23  ;;  %v6950_v10 = vadd.f32 %v6949_v49, %v6915_v1 }
 0x269   : > { %v8150_v34 = vcombine.low %v8142_v45, %v8149_v62  ;;  %v6813_v57 = vpack.c.bf16 %v6787_v28, %v6786_v44  ;;  %v9227_v17 = vpack.c.bf16 %v6787_v28, %v6787_v28  ;;  %v8174_v25 = vcombine.low %v8166_v6, %v8173_v39  ;;  %v13688_v44 = vld [vmem:[#allocation46_spill] sm:$0xff]  ;;  %v13694_v62 = vld [vmem:[#allocation59_spill] sm:$0xff] }
 0x26a   : > { %v8133_v0 = vrot.slane %v8126_v7, %v13595_v14  ;;  %v6785_v47 = vsel %vm12748_vm3, %v10009_v13, 0.0  ;;  %v12814_v32 = vadd.f32 %v12529_v54, %v12578_v26  ;;  %v6784_v56 = vsel %vm12761_vm15, %v10007_v43, 0.0  ;;  %v13687_v7 = vld [vmem:[#allocation49_spill] sm:$0xff]  ;;  %v13692_v45 = vld [vmem:[#allocation62_spill] sm:$0xff] }
 0x26b   : > { %v8157_v2 = vrot.slane %v8150_v34, %v13595_v14  ;;  %v6840_v59 = vunpack.c.l.bf16 %v6813_v57  ;;  %v7440_v23 = vrot.slane %v6813_v57, %v13552_v63  ;;  %v8181_v40 = vrot.slane %v8174_v25, %v13595_v14  ;;  %v13695_v6 = vld [vmem:[#allocation50_spill] sm:$0xff] }
 0x26c   : > { %8680 = vst.msk [vmem:[%s12406_s22 + $0x28] sm:$0xf] %vm13683_vm2, %v8133_v0  ;;  %v7447_v27 = vrot.slane %v9227_v17, %v13552_v63  ;;  %v6812_v31 = vpack.c.bf16 %v6785_v47, %v6784_v56  ;;  %v9226_v9 = vpack.c.bf16 %v6785_v47, %v6785_v47  ;;  %v12824_v1 = vunpack.c.h.bf16 %v6813_v57 }
 0x26d   : > { %8681 = vst.msk [vmem:[%s12406_s22 + $0x2c] sm:$0xf] %vm13684_vm11, %v8157_v2  ;;  %v6918_v54 = vmul.f32 %v6840_v59, %v6840_v59  ;;  %v7448_v26 = vcombine.high %v7440_v23, %v7440_v23  ;;  %v7456_v49 = vrot.slane %v7440_v23, %v13552_v63  ;;  %vm13686_vm10 = vnez %v13472_v11 }
 0x26e   : > { %8682 = vst.msk [vmem:[%s12406_s22 + $0x30] sm:$0xf] %vm13685_vm13, %v8181_v40  ;;  %v7449_v46 = vcombine.high %v7447_v27, %v7447_v27  ;;  %v7463_v33 = vrot.slane %v7447_v27, %v13552_v63  ;;  %v6838_v41 = vunpack.c.l.bf16 %v6812_v31  ;;  %v6839_v38 = vunpack.c.h.bf16 %v6812_v31 }
 0x26f   : > { %v7470_v58 = vrot.slane %v7448_v26, %v13552_v63  ;;  %v7478_v24 = vcombine.high %v7456_v49, %v7456_v49  ;;  %v7392_v43 = vrot.slane %v6812_v31, %v13552_v63  ;;  %v7399_v35 = vrot.slane %v9226_v9, %v13552_v63 }
 0x270   : > { %v13689_v30 = vsel %vm13686_vm10, %v13687_v7, %v13688_v44  ;;  %vm13693_vm6 = vnez %v13692_v45  ;;  %v7477_v28 = vrot.slane %v7449_v46, %v13552_v63  ;;  %v7479_v13 = vcombine.high %v7463_v33, %v7463_v33  ;;  %v13699_v7 = vld [vmem:[#allocation63_spill] sm:$0xff]  ;;  %v13701_v46 = vld [vmem:[#allocation60_spill] sm:$0xff]  ;;  %v13706_v44 = vld [vmem:[#allocation58_spill] sm:$0xff] }
 0x271   : > { %vm12838_vm0 = vcmp.lt.s32.totalorder %v13689_v30, 16  ;;  %v13696_v0 = vsel %vm13693_vm6, %v13694_v62, %v13695_v6  ;;  %v6873_v11 = vadd.f32 %v6872_v21, %v6838_v41  ;;  %v6916_v34 = vmul.f32 %v6838_v41, %v6838_v41  ;;  %v13702_v21 = vld [vmem:[#allocation51_spill] sm:$0xff]  ;;  %v13709_v30 = vld [vmem:[#allocation48_spill] sm:$0xff] }
 0x272   : > { %vm12847_vm3 = vcmp.lt.s32.totalorder %v13696_v0, 16  ;;  %v7480_v57 = vcombine.high %v7470_v58, %v7470_v58  ;;  %v8254_v17 = vcombine.low %v7456_v49, %v7478_v24  ;;  %v6917_v25 = vmul.f32 %v6839_v38, %v6839_v38 }
 0x273   : > { %v7400_v47 = vcombine.high %v7392_v43, %v7392_v43  ;;  %v7481_v2 = vcombine.high %v7477_v28, %v7477_v28  ;;  %v8278_v56 = vcombine.low %v7463_v33, %v7479_v13  ;;  %v6874_v23 = vadd.f32 %v6873_v11, %v6839_v38 }
 0x274   : > { %v6951_v40 = vadd.f32 %v6950_v10, %v6916_v34  ;;  %v6919_v27 = vmul.f32 %v12824_v1, %v12824_v1  ;;  %v8255_v31 = vcombine.low %v7470_v58, %v7480_v57  ;;  %v7401_v9 = vcombine.high %v7399_v35, %v7399_v35  ;;  %v13708_v58 = vld [vmem:[#allocation52_spill] sm:$0xff] }
 0x275   : > { %v7408_v26 = vrot.slane %v7392_v43, %v13552_v63  ;;  %vm13700_vm12 = vnez %v13699_v7  ;;  %v8262_v33 = vrot.slane %v8254_v17, %v13595_v14  ;;  %v8279_v38 = vcombine.low %v7477_v28, %v7481_v2 }
 0x276   : > { %v13703_v41 = vsel %vm13700_vm12, %v13701_v46, %v13702_v21  ;;  %v6875_v10 = vadd.f32 %v6874_v23, %v6840_v59  ;;  %v6952_v24 = vadd.f32 %v6951_v40, %v6917_v25  ;;  %vm13707_vm4 = vnez %v13706_v44 }
 0x277   : > { %vm12860_vm15 = vcmp.lt.s32.totalorder %v13703_v41, 16  ;;  %v13710_v45 = vsel %vm13707_vm4, %v13708_v58, %v13709_v30  ;;  %v8269_v62 = vrot.slane %v8255_v31, %v13595_v14  ;;  %v8286_v6 = vrot.slane %v8278_v56, %v13595_v14  ;;  %v13714_v56 = vld [vmem:[#allocation64_spill] sm:$0xff] }
 0x278   : > { %vm12870_vm2 = vcmp.lt.s32.totalorder %v13710_v45, 16  ;;  %v7415_v0 = vrot.slane %v7399_v35, %v13552_v63  ;;  %v7422_v13 = vrot.slane %v7400_v47, %v13552_v63  ;;  %v8293_v59 = vrot.slane %v8279_v38, %v13595_v14  ;;  %v13715_v35 = vld [vmem:[#allocation53_spill] sm:$0xff] }
 0x279   : > { %v6953_v28 = vadd.f32 %v6952_v24, %v6918_v54  ;;  %v7429_v11 = vrot.slane %v7401_v9, %v13552_v63  ;;  %v7430_v34 = vcombine.high %v7408_v26, %v7408_v26  ;;  %v8270_v57 = vcombine.low %v8262_v33, %v8269_v62  ;;  %v13721_v62 = vld [vmem:[#allocation71_spill] sm:$0xff] }
 0x27a   : > { %v7431_v17 = vcombine.high %v7415_v0, %v7415_v0  ;;  %v7432_v25 = vcombine.high %v7422_v13, %v7422_v13  ;;  %v8206_v2 = vcombine.low %v7384_v16, %v7422_v13  ;;  %v13716_v40 = vsel %vm12170_vm5, %v13714_v56, %v13715_v35  ;;  %vm13719_vm5 = vmmov %vm13685_vm13  ;;  %v13731_v56 = vld [vmem:[#allocation72_spill] sm:$0xff]  ;;  %v13732_v35 = vld [vmem:[#allocation61_spill] sm:$0xff] }
 0x27b   : > { %vm12888_vm11 = vcmp.lt.s32.totalorder %v13716_v40, 16  ;;  %v8294_v54 = vcombine.low %v8286_v6, %v8293_v59  ;;  %v8207_v31 = vcombine.low %v7408_v26, %v7430_v34  ;;  %v10011_v9 = vadd.f32 %v12539_v5, %v12593_v51  ;;  %vm13720_vm13 = vmmov %vm13719_vm5  ;;  %v13723_v6 = vld [vmem:[#allocation69_spill] sm:$0xff] }
 0x27c   : > { %v10012_v7 = vadd.f32 %v12546_v50, %v12608_v19  ;;  %v8277_v15 = vrot.slane %v8270_v57, %v13595_v14  ;;  %v8214_v16 = vrot.slane %v8206_v2, %v13595_v14  ;;  %v8230_v46 = vcombine.low %v7432_v25, %v7429_v11  ;;  %vm13728_vm6 = vmmov %vm13719_vm5 }
 0x27d   : > { %v8231_v21 = vcombine.low %v7415_v0, %v7431_v17  ;;  %v8301_v41 = vrot.slane %v8294_v54, %v13595_v14  ;;  %v8221_v33 = vrot.slane %v8207_v31, %v13595_v14  ;;  %v6790_v26 = vsel %vm12838_vm0, %v12814_v32, 0.0  ;;  %v13724_v0 = vld [vmem:[#allocation55_spill] sm:$0xff] }
 0x27e   : > { %v6791_v5 = vsel %vm12847_vm3, %v10012_v7, 0.0  ;;  %8686 = vst.msk [vmem:[%s12406_s22 + $0x40] sm:$0xf] %vm13719_vm5, %v8277_v15  ;;  %v8238_v50 = vrot.slane %v8230_v46, %v13595_v14  ;;  %v10013_v44 = vadd.f32 %v12554_v12, %v12622_v53  ;;  %v6876_v32 = vadd.f32 %v6875_v10, %v12824_v1  ;;  %vm13729_vm3 = vmmov %vm13719_vm5  ;;  %v13738_v7 = vld [vmem:[#allocation65_spill] sm:$0xff] }
 0x27f   : > { %v8245_v51 = vrot.slane %v8231_v21, %v13595_v14  ;;  %v6815_v19 = vpack.c.bf16 %v6791_v5, %v6790_v26  ;;  %v9229_v38 = vpack.c.bf16 %v6791_v5, %v6791_v5  ;;  %8687 = vst.msk [vmem:[%s12406_s22 + $0x44] sm:$0xf] %vm13720_vm13, %v8301_v41  ;;  %v8222_v24 = vcombine.low %v8214_v16, %v8221_v33  ;;  %vm13749_vm4 = vmmov %vm13729_vm3 }
 0x280   : > { %v6954_v55 = vadd.f32 %v6953_v28, %v6919_v27  ;;  %vm13722_vm10 = vnez %v13721_v62  ;;  %v6789_v1 = vsel %vm12860_vm15, %v10013_v44, 0.0  ;;  %v12932_v27 = vadd.f32 %v12620_v3, %v12646_v36 }
 0x281   : > { %v8246_v39 = vcombine.low %v8238_v50, %v8245_v51  ;;  %v6844_v58 = vunpack.c.l.bf16 %v6815_v19  ;;  %v12914_v30 = vunpack.c.h.bf16 %v6815_v19  ;;  %v7538_v45 = vrot.slane %v6815_v19, %v13552_v63 }
 0x282   : > { %v13725_v13 = vsel %vm13722_vm10, %v13723_v6, %v13724_v0  ;;  %v8229_v12 = vrot.slane %v8222_v24, %v13595_v14  ;;  %v7545_v53 = vrot.slane %v9229_v38, %v13552_v63  ;;  %v6788_v28 = vsel %vm12870_vm2, %v10011_v9, 0.0  ;;  %v13737_v9 = vld [vmem:[#allocation75_spill] sm:$0xff]  ;;  %vm13750_vm2 = vmmov %vm13729_vm3 }
 0x283   : > { %vm12922_vm0 = vcmp.lt.s32.totalorder %v13725_v13, 16  ;;  %v8253_v10 = vrot.slane %v8246_v39, %v13595_v14  ;;  %v6922_v11 = vmul.f32 %v6844_v58, %v6844_v58  ;;  %v7546_v34 = vcombine.high %v7538_v45, %v7538_v45 }
 0x284   : > { %8684 = vst.msk [vmem:[%s12406_s22 + $0x38] sm:$0xf] %vm13728_vm6, %v8229_v12  ;;  %v7547_v57 = vcombine.high %v7545_v53, %v7545_v53  ;;  %v7554_v17 = vrot.slane %v7538_v45, %v13552_v63  ;;  %v12941_v25 = vrot.slane %v7545_v53, %v13552_v63  ;;  %v6814_v49 = vpack.c.bf16 %v6789_v1, %v6788_v28 }
 0x285   : > { %8685 = vst.msk [vmem:[%s12406_s22 + $0x3c] sm:$0xf] %vm13729_vm3, %v8253_v10  ;;  %v6923_v3 = vmul.f32 %v12914_v30, %v12914_v30  ;;  %v7568_v36 = vrot.slane %v7546_v34, %v13552_v63  ;;  %v9228_v43 = vpack.c.bf16 %v6789_v1, %v6789_v1  ;;  %v10015_v2 = vadd.f32 %v12629_v4, %v12649_v22 }
 0x286   : > { %v13733_v40 = vsel %vm12206_vm7, %v13731_v56, %v13732_v35  ;;  %v13739_v15 = vsel %vm12225_vm8, %v13737_v9, %v13738_v7  ;;  %v12969_v4 = vrot.slane %v7547_v57, %v13552_v63  ;;  %v7576_v22 = vcombine.high %v7554_v17, %v7554_v17  ;;  %vm13742_vm7 = vmmov %vm13729_vm3 }
 0x287   : > { %vm12955_vm12 = vcmp.lt.s32.totalorder %v13733_v40, 16  ;;  %vm12964_vm15 = vcmp.lt.s32.totalorder %v13739_v15, 16  ;;  %v6842_v46 = vunpack.c.l.bf16 %v6814_v49  ;;  %v6794_v21 = vsel %vm12888_vm11, %v12932_v27, 0.0 }
 0x288   : > { %v7578_v41 = vcombine.high %v7568_v36, %v7568_v36  ;;  %v6843_v33 = vunpack.c.h.bf16 %v6814_v49  ;;  %v7489_v26 = vrot.slane %v6814_v49, %v13552_v63  ;;  %v7496_v5 = vrot.slane %v9228_v43, %v13552_v63 }
 0x289   : > { %v7577_v50 = vcombine.high %v12941_v25, %v12941_v25  ;;  %v8350_v51 = vcombine.low %v7576_v22, %v12941_v25  ;;  %v6877_v19 = vadd.f32 %v6876_v32, %v6842_v46  ;;  %v6920_v38 = vmul.f32 %v6842_v46, %v6842_v46 }
 0x28a   : > { %v8351_v24 = vcombine.low %v7578_v41, %v12969_v4  ;;  %v6921_v44 = vmul.f32 %v6843_v33, %v6843_v33  ;;  %v7497_v39 = vcombine.high %v7489_v26, %v7489_v26  ;;  %v7498_v45 = vcombine.high %v7496_v5, %v7496_v5 }
 0x28b   : > { %v8358_v47 = vrot.slane %v8350_v51, %v13595_v14  ;;  %v6878_v62 = vadd.f32 %v6877_v19, %v6843_v33  ;;  %v6955_v6 = vadd.f32 %v6954_v55, %v6920_v38  ;;  %v7505_v0 = vrot.slane %v7489_v26, %v13552_v63 }
 0x28c   : > { %v8365_v13 = vrot.slane %v8351_v24, %v13595_v14  ;;  %v7512_v12 = vrot.slane %v7496_v5, %v13552_v63  ;;  %v7519_v53 = vrot.slane %v7497_v39, %v13552_v63  ;;  %v7526_v32 = vrot.slane %v7498_v45, %v13552_v63  ;;  %v13744_v45 = vld [vmem:[#allocation78_spill] sm:$0xff] }
 0x28d   : > { %v6879_v1 = vadd.f32 %v6878_v62, %v6844_v58  ;;  %v6956_v27 = vadd.f32 %v6955_v6, %v6921_v44  ;;  %v7527_v10 = vcombine.high %v7505_v0, %v7505_v0  ;;  %v6792_v28 = vsel %vm12922_vm0, %v10015_v2, 0.0 }
 0x28e   : > { %v8366_v34 = vcombine.low %v8358_v47, %v8365_v13  ;;  %v7528_v57 = vcombine.high %v7512_v12, %v7512_v12  ;;  %v7529_v55 = vcombine.high %v7519_v53, %v7519_v53  ;;  %v7530_v49 = vcombine.high %v7526_v32, %v7526_v32  ;;  %v13745_v47 = vld [vmem:[#allocation66_spill] sm:$0xff] }
 0x28f   : > { %v6957_v36 = vadd.f32 %v6956_v27, %v6922_v11  ;;  %v8303_v43 = vcombine.low %v7527_v10, %v7512_v12  ;;  %v10016_v23 = vadd.f32 %v12635_v20, %v12657_v60  ;;  %v10017_v56 = vadd.f32 %v12638_v29, %v12664_v8 }
 0x290   : > { %v8373_v58 = vrot.slane %v8366_v34, %v13595_v14  ;;  %v8302_v35 = vcombine.low %v7519_v53, %v7529_v55  ;;  %v8326_v40 = vcombine.low %v7526_v32, %v7530_v49  ;;  %v8327_v31 = vcombine.low %v7528_v57, %v7554_v17  ;;  %v13752_v34 = vld [vmem:[#allocation82_spill] sm:$0xff] }
 0x291   : > { %v8317_v59 = vrot.slane %v8303_v43, %v13595_v14  ;;  %v6795_v2 = vsel %vm12955_vm12, %v10016_v23, 0.0  ;;  %v6793_v11 = vsel %vm12964_vm15, %v10017_v56, 0.0  ;;  %v6880_v9 = vadd.f32 %v6879_v1, %v12914_v30  ;;  %v13753_v57 = vld [vmem:[#allocation70_spill] sm:$0xff] }
 0x292   : > { %8690 = vst.msk [vmem:[%s12406_s22 + $0x50] sm:$0xf] %vm13742_vm7, %v8373_v58  ;;  %v8310_v20 = vrot.slane %v8302_v35, %v13595_v14  ;;  %v8334_v29 = vrot.slane %v8326_v40, %v13595_v14  ;;  %v8341_v60 = vrot.slane %v8327_v31, %v13595_v14  ;;  %v6817_v8 = vpack.c.bf16 %v6795_v2, %v6794_v21 }
 0x293   : > { %v7579_v17 = vcombine.high %v12969_v4, %v12969_v4  ;;  %v9231_v7 = vpack.c.bf16 %v6795_v2, %v6795_v2  ;;  %v6816_v54 = vpack.c.bf16 %v6793_v11, %v6792_v28  ;;  %v6958_v15 = vadd.f32 %v6957_v36, %v6923_v3  ;;  %v13758_v2 = vld [vmem:[#allocation85_spill] sm:$0xff]  ;;  %v13773_v28 = vld [vmem:[#allocation16_spill] sm:$0xff] }
 0x294   : > { %v8318_v22 = vcombine.low %v8310_v20, %v8317_v59  ;;  %v8342_v16 = vcombine.low %v8334_v29, %v8341_v60  ;;  %v6848_v46 = vunpack.c.l.bf16 %v6817_v8  ;;  %v13006_v30 = vunpack.c.h.bf16 %v6817_v8  ;;  %v13776_v59 = vld [vmem:[#allocation5_spill] sm:$0xff] }
 0x295   : > { %v7635_v41 = vrot.slane %v6817_v8, %v13552_v63  ;;  %v7642_v33 = vrot.slane %v9231_v7, %v13552_v63  ;;  %v6846_v26 = vunpack.c.l.bf16 %v6816_v54  ;;  %v6847_v5 = vunpack.c.h.bf16 %v6816_v54 }
 0x296   : > { %v8325_v21 = vrot.slane %v8318_v22, %v13595_v14  ;;  %v8349_v4 = vrot.slane %v8342_v16, %v13595_v14  ;;  %v6926_v51 = vmul.f32 %v6848_v46, %v6848_v46  ;;  %v9230_v19 = vpack.c.bf16 %v6793_v11, %v6793_v11  ;;  %v13759_v11 = vld [vmem:[#allocation76_spill] sm:$0xff] }
 0x297   : > { %v6927_v3 = vmul.f32 %v13006_v30, %v13006_v30  ;;  %v7644_v38 = vcombine.high %v7642_v33, %v7642_v33  ;;  %v7651_v24 = vrot.slane %v7635_v41, %v13552_v63  ;;  %v7658_v44 = vrot.slane %v7642_v33, %v13552_v63  ;;  %v13766_v22 = vld [vmem:[#allocation68_spill] sm:$0xff] }
 0x298   : > { %v13746_v62 = vsel %vm12247_vm14, %v13744_v45, %v13745_v47  ;;  %8688 = vst.msk [vmem:[%s12406_s22 + $0x48] sm:$0xf] %vm13749_vm4, %v8325_v21  ;;  %v7643_v0 = vcombine.high %v7635_v41, %v7635_v41  ;;  %v6881_v13 = vadd.f32 %v6880_v9, %v6846_v26  ;;  %v6924_v12 = vmul.f32 %v6846_v26, %v6846_v26 }
 0x299   : > { %vm13021_vm8 = vcmp.lt.s32.totalorder %v13746_v62, 16  ;;  %8689 = vst.msk [vmem:[%s12406_s22 + $0x4c] sm:$0xf] %vm13750_vm2, %v8349_v4  ;;  %v7587_v53 = vrot.slane %v6816_v54, %v13552_v63  ;;  %v7672_v32 = vrot.slane %v7644_v38, %v13552_v63  ;;  %v7673_v1 = vcombine.high %v7651_v24, %v7651_v24  ;;  %v13763_v54 = vld [vmem:[#allocation81_spill] sm:$0xff] }
 0x29a   : > { %v7674_v27 = vcombine.high %v7658_v44, %v7658_v44  ;;  %v6925_v10 = vmul.f32 %v6847_v5, %v6847_v5  ;;  %v13754_v55 = vsel %vm12278_vm9, %v13752_v34, %v13753_v57  ;;  %v6882_v36 = vadd.f32 %v6881_v13, %v6847_v5 }
 0x29b   : > { %vm13036_vm14 = vcmp.lt.s32.totalorder %v13754_v55, 16  ;;  %v6959_v43 = vadd.f32 %v6958_v15, %v6924_v12  ;;  %v7594_v23 = vrot.slane %v9230_v19, %v13552_v63  ;;  %v7595_v56 = vcombine.high %v7587_v53, %v7587_v53  ;;  %v13765_v15 = vld [vmem:[#allocation80_spill] sm:$0xff] }
 0x29c   : > { %v7675_v58 = vcombine.high %v7672_v32, %v7672_v32  ;;  %v8423_v35 = vcombine.low %v7651_v24, %v7673_v1  ;;  %v8446_v40 = vcombine.low %v7658_v44, %v7674_v27  ;;  %v7603_v31 = vrot.slane %v7587_v53, %v13552_v63 }
 0x29d   : > { %v13760_v9 = vsel %vm12307_vm1, %v13758_v2, %v13759_v11  ;;  %v6883_v29 = vadd.f32 %v6882_v36, %v6848_v46  ;;  %v6960_v60 = vadd.f32 %v6959_v43, %v6925_v10  ;;  %v7596_v8 = vcombine.high %v7594_v23, %v7594_v23  ;;  %vm13774_vm1 = vmmov %vm13750_vm2 }
 0x29e   : > { %vm13047_vm9 = vcmp.lt.s32.totalorder %v13760_v9, 16  ;;  %v7610_v7 = vrot.slane %v7594_v23, %v13552_v63  ;;  %vm13764_vm11 = vnez %v13763_v54  ;;  %v7665_v33 = vrot.slane %v7643_v0, %v13552_v63  ;;  %vm13777_vm13 = vmmov %vm13774_vm1 }
 0x29f   : > { %v13767_v16 = vsel %vm13764_vm11, %v13765_v15, %v13766_v22  ;;  %v8447_v26 = vcombine.low %v7672_v32, %v7675_v58  ;;  %v8454_v5 = vrot.slane %v8446_v40, %v13595_v14  ;;  %v7617_v46 = vrot.slane %v7595_v56, %v13552_v63  ;;  %v13771_v32 = vld [vmem:[#allocation6_spill] sm:$0xff]  ;;  %vm13778_vm10 = vmmov %vm13774_vm1 }
 0x2a0   : > { %vm13057_vm5 = vcmp.lt.s32.totalorder %v13767_v16, 16  ;;  %v6961_v21 = vadd.f32 %v6960_v60, %v6926_v51  ;;  %v7624_v4 = vrot.slane %v7596_v8, %v13552_v63  ;;  %v7625_v19 = vcombine.high %v7610_v7, %v7610_v7  ;;  %vm13780_vm0 = vmmov %vm13774_vm1 }
 0x2a1   : > { %v8374_v38 = vcombine.low %v7577_v50, %v7603_v31  ;;  %v8461_v24 = vrot.slane %v8447_v26, %v13595_v14  ;;  %v7626_v44 = vcombine.high %v7617_v46, %v7617_v46  ;;  %v8375_v39 = vcombine.low %v7579_v17, %v7617_v46  ;;  %v13775_v31 = vld [vmem:[#allocation12_spill] sm:$0xff]  ;;  %vm13786_vm6 = vmmov %vm13780_vm0 }
 0x2a2   : > { %v10018_v45 = vadd.f32 %v12662_v48, %v12693_v18  ;;  %v8437_v47 = vrot.slane %v8423_v35, %v13595_v14  ;;  %v7627_v62 = vcombine.high %v7624_v4, %v7624_v4  ;;  %v8399_v0 = vcombine.low %v7610_v7, %v7625_v19  ;;  %v13770_v18 = vld [vmem:[#allocation9_spill] sm:$0xff]  ;;  %v13779_v7 = vld [vmem:[#allocation83_spill] sm:$0xff]  ;;  %vm13788_vm15 = vmmov %vm13780_vm0 }
 0x2a3   : > { %v10019_v51 = vadd.f32 %v12672_v61, %v12697_v37  ;;  %v8462_v13 = vcombine.low %v8454_v5, %v8461_v24  ;;  %v8382_v12 = vrot.slane %v8374_v38, %v13595_v14  ;;  %v8389_v25 = vrot.slane %v8375_v39, %v13595_v14  ;;  %v13772_v37 = vld [vmem:[#allocation17_spill] sm:$0xff]  ;;  %vm13789_vm7 = vmmov %vm13780_vm0 }
 0x2a4   : > { %v8398_v50 = vcombine.low %v7626_v44, %v7624_v4  ;;  %v8413_v53 = vrot.slane %v8399_v0, %v13595_v14  ;;  %v8422_v17 = vcombine.low %v7627_v62, %v7665_v33  ;;  %v6798_v48 = vsel %vm13021_vm8, %v10018_v45, 0.0 }
 0x2a5   : > { %v10020_v1 = vadd.f32 %v13771_v32, %v13770_v18  ;;  %v8469_v27 = vrot.slane %v8462_v13, %v13595_v14  ;;  %v8390_v10 = vcombine.low %v8382_v12, %v8389_v25  ;;  %v10021_v34 = vadd.f32 %v13773_v28, %v13772_v37  ;;  %v13781_v37 = vld [vmem:[#allocation4_spill] sm:$0xff] }
 0x2a6   : > { %v8406_v61 = vrot.slane %v8398_v50, %v13595_v14  ;;  %v8430_v57 = vrot.slane %v8422_v17, %v13595_v14  ;;  %v6884_v6 = vadd.f32 %v6883_v29, %v13006_v30  ;;  %v6962_v36 = vadd.f32 %v6961_v21, %v6927_v3 }
 0x2a7   : > { %v6799_v55 = vsel %vm13036_vm14, %v10020_v1, 0.0  ;;  %8694 = vst.msk [vmem:[%s12406_s22 + $0x60] sm:$0xf] %vm13774_vm1, %v8469_v27  ;;  %v8397_v43 = vrot.slane %v8390_v10, %v13595_v14  ;;  %v6797_v40 = vsel %vm13047_vm9, %v10021_v34, 0.0  ;;  %v13096_v49 = vadd.f32 %v13776_v59, %v13775_v31 }
 0x2a8   : > { %v8414_v23 = vcombine.low %v8406_v61, %v8413_v53  ;;  %v6819_v56 = vpack.c.bf16 %v6799_v55, %v6798_v48  ;;  %v9233_v58 = vpack.c.bf16 %v6799_v55, %v6799_v55  ;;  %v8438_v35 = vcombine.low %v8430_v57, %v8437_v47 }
 0x2a9   : > { %8691 = vst.msk [vmem:[%s12406_s22 + $0x54] sm:$0xf] %vm13777_vm13, %v8397_v43  ;;  %v6796_v3 = vsel %vm13057_vm5, %v10019_v51, 0.0  ;;  %v9232_v29 = vpack.c.bf16 %v6797_v40, %v6797_v40  ;;  %v6428_v54 = vshrl.u32 %v13779_v7, 4  ;;  %v6044_v28 = vadd.s32 256, %v13781_v37  ;;  %v13787_v7 = vld [vmem:[#allocation18_spill] sm:$0xff] }
 0x2aa   : > { %v8421_v30 = vrot.slane %v8414_v23, %v13595_v14  ;;  %v7732_v2 = vrot.slane %v6819_v56, %v13552_v63  ;;  %v8445_v11 = vrot.slane %v8438_v35, %v13595_v14  ;;  %v13106_v9 = vrot.slane %v9233_v58, %v13552_v63  ;;  %v13782_v23 = vld [vmem:[#allocation11_spill] sm:$0xff]  ;;  %v13783_v35 = vld [vmem:[#allocation8_spill] sm:$0xff] }
 0x2ab   : > { %v6818_v20 = vpack.c.bf16 %v6797_v40, %v6796_v3  ;;  %v6852_v15 = vunpack.c.l.bf16 %v6819_v56  ;;  %v7690_v46 = vrot.slane %v9232_v29, %v13552_v63  ;;  %v6429_v44 = vmul.u32 18, %v6428_v54  ;;  %v13784_v40 = vld [vmem:[#allocation7_spill] sm:$0xff]  ;;  %v13785_v3 = vld [vmem:[#allocation74_spill] sm:$0xff] }
 0x2ac   : > { %8692 = vst.msk [vmem:[%s12406_s22 + $0x58] sm:$0xf] %vm13778_vm10, %v8421_v30  ;;  %v7740_v60 = vcombine.high %v7732_v2, %v7732_v2  ;;  %v7748_v8 = vrot.slane %v7732_v2, %v13552_v63  ;;  %v13116_v22 = vrot.slane %v13106_v9, %v13552_v63  ;;  %v6853_v34 = vunpack.c.h.bf16 %v6819_v56 }
 0x2ad   : > { %8693 = vst.msk [vmem:[%s12406_s22 + $0x5c] sm:$0xf] %vm13780_vm0, %v8445_v11  ;;  %v6850_v16 = vunpack.c.l.bf16 %v6818_v20  ;;  %v6851_v41 = vunpack.c.h.bf16 %v6818_v20  ;;  %v7683_v5 = vrot.slane %v6818_v20, %v13552_v63  ;;  %v7692_v62 = vcombine.high %v7690_v46, %v7690_v46 }
 0x2ae   : > { %v7762_v33 = vrot.slane %v7740_v60, %v13552_v63  ;;  %v7770_v26 = vcombine.high %v7748_v8, %v7748_v8  ;;  %v6930_v0 = vmul.f32 %v6852_v15, %v6852_v15  ;;  %v7706_v12 = vrot.slane %v7690_v46, %v13552_v63 }
 0x2af   : > { %v6885_v21 = vadd.f32 %v6884_v6, %v6850_v16  ;;  %v6928_v4 = vmul.f32 %v6850_v16, %v6850_v16  ;;  %v7691_v24 = vcombine.high %v7683_v5, %v7683_v5  ;;  %v6929_v45 = vmul.f32 %v6851_v41, %v6851_v41 }
 0x2b0   : > { %v7772_v19 = vcombine.high %v7762_v33, %v7762_v33  ;;  %v8519_v38 = vcombine.low %v7770_v26, %v13116_v22  ;;  %v7699_v13 = vrot.slane %v7683_v5, %v13552_v63  ;;  %v7720_v17 = vrot.slane %v7692_v62, %v13552_v63 }
 0x2b1   : > { %v6886_v39 = vadd.f32 %v6885_v21, %v6851_v41  ;;  %v6963_v47 = vadd.f32 %v6962_v36, %v6928_v4  ;;  %v7713_v53 = vrot.slane %v7691_v24, %v13552_v63  ;;  %v7722_v1 = vcombine.high %v7706_v12, %v7706_v12 }
 0x2b2   : > { %v8518_v51 = vcombine.low %v7762_v33, %v7772_v19  ;;  %v8533_v18 = vrot.slane %v8519_v38, %v13595_v14  ;;  %v7721_v32 = vcombine.high %v7699_v13, %v7699_v13  ;;  %v7724_v61 = vcombine.high %v7720_v17, %v7720_v17 }
 0x2b3   : > { %v6887_v25 = vadd.f32 %v6886_v39, %v6852_v15  ;;  %v6964_v50 = vadd.f32 %v6963_v47, %v6929_v45  ;;  %v7723_v10 = vcombine.high %v7713_v53, %v7713_v53  ;;  %v8495_v6 = vcombine.low %v7722_v1, %v7748_v8 }
 0x2b4   : > { %v8526_v48 = vrot.slane %v8518_v51, %v13595_v14  ;;  %v8470_v55 = vcombine.low %v7699_v13, %v7721_v32  ;;  %v8494_v43 = vcombine.low %v7720_v17, %v7724_v61  ;;  %v13131_v58 = vadd.f32 %v13782_v23, %v12775_v52 }
 0x2b5   : > { %v6965_v27 = vadd.f32 %v6964_v50, %v6930_v0  ;;  %v8471_v36 = vcombine.low %v7713_v53, %v7723_v10  ;;  %v10024_v31 = vadd.f32 %v13784_v40, %v13783_v35  ;;  %v6430_v2 = vsub.s32 %v13785_v3, %v6429_v44 }
 0x2b6   : > { %v8534_v57 = vcombine.low %v8526_v48, %v8533_v18  ;;  %v8478_v30 = vrot.slane %v8470_v55, %v13595_v14  ;;  %v8502_v11 = vrot.slane %v8494_v43, %v13595_v14  ;;  %v8509_v20 = vrot.slane %v8495_v6, %v13595_v14 }
 0x2b7   : > { %v8485_v56 = vrot.slane %v8471_v36, %v13595_v14  ;;  %v6047_v29 = vadd.s32 280, %v13781_v37  ;;  %v6931_v60 = vmul.f32 %v6853_v34, %v6853_v34  ;;  %v10025_v54 = vadd.f32 %v13787_v7, %v12783_v42 }
 0x2b8   : > { %v8541_v59 = vrot.slane %v8534_v57, %v13595_v14  ;;  %v13144_v52 = vmul.u32.u64.low 3817748708, %v6044_v28  ;;  %v13145_v8 = vmul.u32.u64.high 3817748708, %v6044_v28, %v13144_v52  ;;  %v8510_v16 = vcombine.low %v8502_v11, %v8509_v20 }
 0x2b9   : > { %v8486_v15 = vcombine.low %v8478_v30, %v8485_v56  ;;  %v13149_v41 = vmul.u32.u64.low 3817748708, %v6047_v29  ;;  %v13150_v33 = vmul.u32.u64.high 3817748708, %v6047_v29, %v13149_v41  ;;  %v6045_v26 = vadd.s32 264, %v13781_v37 }
 0x2ba   : > { %8697 = vst.msk [vmem:[%s12406_s22 + $0x6c] sm:$0xf] %vm13786_vm6, %v8541_v59  ;;  %v13153_v5 = vadd.f32 %v6887_v25, %v6853_v34  ;;  %v13155_v46 = vadd.f32 %v6965_v27, %v6931_v60  ;;  %v8517_v4 = vrot.slane %v8510_v16, %v13595_v14  ;;  %vm6478_vm3 = vcmp.ne.s32.totalorder %v6430_v2, 0 }
 0x2bb   : > { %v8493_v21 = vrot.slane %v8486_v15, %v13595_v14  ;;  %vm6514_vm12 = vcmp.lt.s32.totalorder %v6430_v2, 0  ;;  %v6406_v19 = vshrl.u32 %v13145_v8, 4  ;;  %v6586_v24 = vadd.s32 18, %v6430_v2 }
 0x2bc   : > { %v13160_v42 = vmul.u32.u64.low 3817748708, %v6045_v26  ;;  %v13161_v38 = vmul.u32.u64.high 3817748708, %v6045_v26, %v13160_v42  ;;  %8696 = vst.msk [vmem:[%s12406_s22 + $0x68] sm:$0xf] %vm13789_vm7, %v8517_v4  ;;  %v6439_v44 = vshrl.u32 %v13150_v33, 4  ;;  %vm13168_vm8 = vmand %vm6514_vm12, %vm6478_vm3  ;;  %v7741_v32 = vcombine.high %v13106_v9, %v13106_v9 }
 0x2bd   : > { %8695 = vst.msk [vmem:[%s12406_s22 + $0x64] sm:$0xf] %vm13788_vm15, %v8493_v21  ;;  %v6407_v45 = vmul.u32 18, %v6406_v19  ;;  %v6622_v51 = vsel %vm13168_vm8, %v6586_v24, %v6430_v2  ;;  %v7771_v3 = vcombine.high %v13116_v22, %v13116_v22  ;;  %vm13794_vm15 = vmmov %vm13789_vm7 }
 0x2be   : > { %v6440_v47 = vmul.u32 18, %v6439_v44  ;;  %v6417_v0 = vshrl.u32 %v13161_v38, 4  ;;  %vm6658_vm5 = vcmp.lt.s32.totalorder %v6622_v51, 16  ;;  %v7769_v55 = vrot.slane %v7741_v32, %v13552_v63  ;;  %vm13795_vm8 = vmmov %vm13789_vm7 }
 0x2bf   : > { %v6408_v62 = vsub.s32 %v6044_v28, %v6407_v45  ;;  %v6802_v1 = vsel %vm6658_vm5, %v13096_v49, 0.0 }
 0x2c0   : > { %v6441_v13 = vsub.s32 %v6047_v29, %v6440_v47  ;;  %v6418_v25 = vmul.u32 18, %v6417_v0  ;;  %v7773_v2 = vcombine.high %v7769_v55, %v7769_v55 }
 0x2c1   : > { %vm6476_vm4 = vcmp.ne.s32.totalorder %v6408_v62, 0  ;;  %vm6512_vm2 = vcmp.lt.s32.totalorder %v6408_v62, 0  ;;  %v6584_v12 = vadd.s32 18, %v6408_v62 }
 0x2c2   : > { %vm13175_vm14 = vmand %vm6512_vm2, %vm6476_vm4  ;;  %vm6479_vm9 = vcmp.ne.s32.totalorder %v6441_v13, 0  ;;  %vm6515_vm11 = vcmp.lt.s32.totalorder %v6441_v13, 0  ;;  %v6587_v53 = vadd.s32 18, %v6441_v13  ;;  %v6419_v17 = vsub.s32 %v6045_v26, %v6418_v25 }
 0x2c3   : > { %vm6551_vm1 = vmand %vm6515_vm11, %vm6479_vm9  ;;  %v6620_v18 = vsel %vm13175_vm14, %v6584_v12, %v6408_v62 }
 0x2c4   : > { %v6623_v48 = vsel %vm6551_vm1, %v6587_v53, %v6441_v13  ;;  %vm6477_vm10 = vcmp.ne.s32.totalorder %v6419_v17, 0  ;;  %vm6513_vm0 = vcmp.lt.s32.totalorder %v6419_v17, 0  ;;  %v6585_v10 = vadd.s32 18, %v6419_v17  ;;  %vm13796_vm4 = vmmov %vm13789_vm7 }
 0x2c5   : > { %vm6659_vm13 = vcmp.lt.s32.totalorder %v6623_v48, 16  ;;  %vm6549_vm6 = vmand %vm6513_vm0, %vm6477_vm10  ;;  %vm6656_vm3 = vcmp.lt.s32.totalorder %v6620_v18, 16 }
 0x2c6   : > { %v6803_v27 = vsel %vm6659_vm13, %v10024_v31, 0.0  ;;  %v6621_v28 = vsel %vm6549_vm6, %v6585_v10, %v6419_v17  ;;  %v6800_v6 = vsel %vm6656_vm3, %v13131_v58, 0.0 }
 0x2c7   : > { %v6821_v61 = vpack.c.bf16 %v6803_v27, %v6802_v1  ;;  %v9235_v37 = vpack.c.bf16 %v6803_v27, %v6803_v27  ;;  %vm6657_vm12 = vcmp.lt.s32.totalorder %v6621_v28, 16 }
 0x2c8   : > { %v6801_v35 = vsel %vm6657_vm12, %v10025_v54, 0.0 }
 0x2c9   : > { %v7829_v34 = vrot.slane %v6821_v61, %v13552_v63  ;;  %v7836_v57 = vrot.slane %v9235_v37, %v13552_v63  ;;  %v6856_v43 = vunpack.c.l.bf16 %v6821_v61  ;;  %v6857_v40 = vunpack.c.h.bf16 %v6821_v61 }
 0x2ca   : > { %v6820_v59 = vpack.c.bf16 %v6801_v35, %v6800_v6  ;;  %v9234_v30 = vpack.c.bf16 %v6801_v35, %v6801_v35 }
 0x2cb   : > { %v7837_v36 = vcombine.high %v7829_v34, %v7829_v34  ;;  %v7838_v9 = vcombine.high %v7836_v57, %v7836_v57  ;;  %v7845_v49 = vrot.slane %v7829_v34, %v13552_v63  ;;  %v7852_v23 = vrot.slane %v7836_v57, %v13552_v63 }
 0x2cc   : > { %v6854_v20 = vunpack.c.l.bf16 %v6820_v59  ;;  %v6855_v29 = vunpack.c.h.bf16 %v6820_v59  ;;  %v7781_v60 = vrot.slane %v6820_v59, %v13552_v63  ;;  %v6934_v52 = vmul.f32 %v6856_v43, %v6856_v43 }
 0x2cd   : > { %v7859_v31 = vrot.slane %v7837_v36, %v13552_v63  ;;  %v7866_v56 = vrot.slane %v7838_v9, %v13552_v63  ;;  %v7868_v58 = vcombine.high %v7852_v23, %v7852_v23  ;;  %v7867_v8 = vcombine.high %v7845_v49, %v7845_v49 }
 0x2ce   : > { %v7788_v54 = vrot.slane %v9234_v30, %v13552_v63  ;;  %v6935_v15 = vmul.f32 %v6857_v40, %v6857_v40  ;;  %v6889_v41 = vadd.f32 %v13153_v5, %v6854_v20  ;;  %v6932_v33 = vmul.f32 %v6854_v20, %v6854_v20 }
 0x2cf   : > { %v7869_v11 = vcombine.high %v7859_v31, %v7859_v31  ;;  %v8615_v7 = vcombine.low %v7852_v23, %v7868_v58  ;;  %v6933_v26 = vmul.f32 %v6855_v29, %v6855_v29  ;;  %v7789_v21 = vcombine.high %v7781_v60, %v7781_v60 }
 0x2d0   : > { %v7790_v4 = vcombine.high %v7788_v54, %v7788_v54  ;;  %v6890_v42 = vadd.f32 %v6889_v41, %v6855_v29  ;;  %v6967_v38 = vadd.f32 %v13155_v46, %v6932_v33  ;;  %v7797_v24 = vrot.slane %v7781_v60, %v13552_v63 }
 0x2d1   : > { %v8614_v16 = vcombine.low %v7869_v11, %v7866_v56  ;;  %v8629_v22 = vrot.slane %v8615_v7, %v13595_v14  ;;  %v8591_v44 = vcombine.low %v7845_v49, %v7867_v8  ;;  %v7804_v39 = vrot.slane %v7788_v54, %v13552_v63 }
 0x2d2   : > { %v7811_v45 = vrot.slane %v7789_v21, %v13552_v63  ;;  %v7818_v5 = vrot.slane %v7790_v4, %v13552_v63  ;;  %v6891_v62 = vadd.f32 %v6890_v42, %v6856_v43  ;;  %v6968_v0 = vadd.f32 %v6967_v38, %v6933_v26 }
 0x2d3   : > { %v8622_v19 = vrot.slane %v8614_v16, %v13595_v14  ;;  %v7819_v51 = vcombine.high %v7797_v24, %v7797_v24  ;;  %v8542_v25 = vcombine.low %v7771_v3, %v7797_v24  ;;  %v8605_v27 = vrot.slane %v8591_v44, %v13595_v14 }
 0x2d4   : > { %v7820_v13 = vcombine.high %v7811_v45, %v7811_v45  ;;  %v7821_v12 = vcombine.high %v7818_v5, %v7818_v5  ;;  %v8543_v50 = vcombine.low %v7773_v2, %v7811_v45  ;;  %v6892_v53 = vadd.f32 %v6891_v62, %v6857_v40 }
 0x2d5   : > { %v8630_v47 = vcombine.low %v8622_v19, %v8629_v22  ;;  %v6969_v17 = vadd.f32 %v6968_v0, %v6934_v52  ;;  %v8566_v48 = vcombine.low %v7819_v51, %v7804_v39  ;;  %v8550_v18 = vrot.slane %v8542_v25, %v13595_v14 }
 0x2d6   : > { %v8557_v32 = vrot.slane %v8543_v50, %v13595_v14  ;;  %v8567_v1 = vcombine.low %v7820_v13, %v7818_v5  ;;  %v8590_v63 = vcombine.low %v7821_v12, %v7859_v31  ;;  %v6893_v10 = vrot.slane %v6892_v53, 4 }
 0x2d7   : > { %v8637_v46 = vrot.slane %v8630_v47, %v13595_v14  ;;  %v6970_v61 = vadd.f32 %v6969_v17, %v6935_v15  ;;  %v8574_v28 = vrot.slane %v8566_v48, %v13595_v14 }
 0x2d8   : > { %v8558_v37 = vcombine.low %v8550_v18, %v8557_v32  ;;  %v8581_v34 = vrot.slane %v8567_v1, %v13595_v14  ;;  %v8598_v57 = vrot.slane %v8590_v63, %v13595_v14  ;;  %v6894_v55 = vadd.f32 %v6893_v10, %v6892_v53 }
 0x2d9   : > { %8701 = vst.msk [vmem:[%s12406_s22 + $0x7c] sm:$0xf] %vm13794_vm15, %v8637_v46  ;;  %v6971_v6 = vrot.slane %v6970_v61, 4 }
 0x2da   : > { %v8565_v36 = vrot.slane %v8558_v37, %v13595_v14  ;;  %v8582_v9 = vcombine.low %v8574_v28, %v8581_v34  ;;  %v8606_v43 = vcombine.low %v8598_v57, %v8605_v27  ;;  %v6895_v49 = vrot.slane %v6894_v55, 2 }
 0x2db   : > { %v6972_v23 = vadd.f32 %v6971_v6, %v6970_v61 }
 0x2dc   : > { %v8589_v35 = vrot.slane %v8582_v9, %v13595_v14  ;;  %v8613_v40 = vrot.slane %v8606_v43, %v13595_v14  ;;  %8698 = vst.msk [vmem:[%s12406_s22 + $0x70] sm:$0xf] %vm13789_vm7, %v8565_v36  ;;  %v6896_v31 = vadd.f32 %v6895_v49, %v6894_v55 }
 0x2dd   : > { %v6973_v59 = vrot.slane %v6972_v23, 2 }
 0x2de   : > { %8699 = vst.msk [vmem:[%s12406_s22 + $0x74] sm:$0xf] %vm13795_vm8, %v8589_v35  ;;  %v6897_v30 = vrot.slane %v6896_v31, 1 }
 0x2df   : > { %8700 = vst.msk [vmem:[%s12406_s22 + $0x78] sm:$0xf] %vm13796_vm4, %v8613_v40  ;;  %v6974_v3 = vadd.f32 %v6973_v59, %v6972_v23 }
 0x2e0   : > { %v6898_v2 = vadd.f32 %v6897_v30, %v6896_v31 }
 0x2e1   : > { %v6975_v56 = vrot.slane %v6974_v3, 1 }
 0x2e2   : > { %6899 = vst [vmem:[%s265_s25] sm:$0x1] %v6898_v2 }
 0x2e3   : > { %v6976_v14 = vadd.f32 %v6975_v56, %v6974_v3 }
 0x2e5   : > { %6977 = vst [vmem:[%s268_s28] sm:$0x1] %v6976_v14 }
 0x2e6 PF: > { %s17_s21 = sadd.s32 1, %s10617_s21  }
 0x2e7   : > { %p14_p4 = scmp.ge.s32.totalorder %s17_s21, 4  }
 0x2e9   :  { %16 = sbr.rel (!%p14_p4) target bundleno = 1 (0x1), region = 98 }

</bundles_post_ra>
